<compile_context>
chip_gen: v5e
topology: v5e:2x2
jax: 0.10.0
libtpu: 0.0.40
codegen_flags: <defaults>
</compile_context>

<pallas_src>
import functools
import numpy as np
import jax
import jax.numpy as jnp
from jax import lax
from jax.experimental import pallas as pl
from jax.experimental.pallas import tpu as pltpu

EPS = 1e-5  # torch.nn.InstanceNorm2d default


# ---------------------------------------------------------------------------
# Glue: per-tap gather matrices (shift + ReflectionPad2d(1)) as 0/1 matrices.
# ---------------------------------------------------------------------------
def _build_tap_gathers(H, W):
    """Returns GT of shape (9, HW, HW), float32.

    GT[t, n, m] = 1 iff the 3x3 conv output at flattened pixel m, for tap
    t = kh*3 + kw, reads flattened input pixel n (after reflection padding).
    Then x_tap = x @ GT[t] gives the tap view directly in compact layout.
    """
    def refl(i, n):
        i = np.where(i < 0, -i, i)
        i = np.where(i >= n, 2 * n - 2 - i, i)
        return i

    HW = H * W
    hh, ww = np.meshgrid(np.arange(H), np.arange(W), indexing="ij")
    m = (hh * W + ww).ravel()
    gt = np.zeros((9, HW, HW), np.float32)
    for kh in range(3):
        for kw in range(3):
            ih = refl(hh + kh - 1, H)
            iw = refl(ww + kw - 1, W)
            n = (ih * W + iw).ravel()
            gt[kh * 3 + kw, n, m] = 1.0
    return jnp.asarray(gt)


# ---------------------------------------------------------------------------
# Fused Pallas kernel: conv1+IN+ReLU -> conv2+IN -> PAM -> CAM -> combine
# ---------------------------------------------------------------------------
def _resnet_block_kernel(x_ref, gt_ref, w1_ref, w2_ref, wq_ref, wk_ref, wv_ref,
                         pamb_ref, gam_ref, o_ref, *, C, Cq):
    x = x_ref[0]                                               # (C, HW)

    def conv3x3(h, w_taps_ref):
        # 9 accumulating MXU matmuls, one per tap.  The gather matrix GT[t]
        # performs the shifted view + reflection padding in VMEM, so no im2col
        # or padded activation ever touches HBM.
        acc = None
        for t in range(9):
            ht = jnp.dot(h, gt_ref[t], preferred_element_type=jnp.float32)        # (C, HW)
            pt = jnp.dot(w_taps_ref[t], ht, preferred_element_type=jnp.float32)   # (C, HW)
            acc = pt if acc is None else acc + pt
        return acc

    def inst_norm(y, relu):
        # Fused InstanceNorm (+ ReLU); conv bias is omitted because it cancels
        # exactly under the per-(b, c) mean subtraction (affine=False).
        mean = jnp.mean(y, axis=-1, keepdims=True)
        yc = y - mean
        var = jnp.mean(yc * yc, axis=-1, keepdims=True)
        y = yc * lax.rsqrt(var + EPS)
        return jnp.maximum(y, 0.0) if relu else y

    h1 = inst_norm(conv3x3(x, w1_ref), relu=True)
    out = inst_norm(conv3x3(h1, w2_ref), relu=False)           # conv_block output

    pb = pamb_ref[...]                                         # (2*Cq + C, 1)
    bq = pb[0:Cq]
    bk = pb[Cq:2 * Cq]
    bv = pb[2 * Cq:2 * Cq + C]

    # ---- PAM (position attention) ----
    q = jnp.dot(wq_ref[...], out, preferred_element_type=jnp.float32) + bq   # (Cq, HW)
    k = jnp.dot(wk_ref[...], out, preferred_element_type=jnp.float32) + bk   # (Cq, HW)
    v = jnp.dot(wv_ref[...], out, preferred_element_type=jnp.float32) + bv   # (C, HW)
    if Cq == 1:
        # rank-1 energy: VPU outer product instead of a K=1 MXU matmul
        energy = q.T * k                                       # (HW, HW)
    else:
        energy = jnp.dot(q.T, k, preferred_element_type=jnp.float32)
    m = jnp.max(energy, axis=-1, keepdims=True)
    e = jnp.exp(energy - m)
    attn = e * pl.reciprocal(jnp.sum(e, axis=-1, keepdims=True), approx=False)
    # v @ attn^T without materializing the transpose
    pam = lax.dot_general(v, attn, (((1,), (1,)), ((), ())),
                          preferred_element_type=jnp.float32)                # (C, HW)
    pam = gam_ref[0] * pam + out

    # ---- CAM (channel attention) ----
    ce = lax.dot_general(out, out, (((1,), (1,)), ((), ())),
                         preferred_element_type=jnp.float32)                 # (C, C)
    ce = jnp.max(ce, axis=-1, keepdims=True) - ce
    mc = jnp.max(ce, axis=-1, keepdims=True)
    ee = jnp.exp(ce - mc)
    attn_c = ee * pl.reciprocal(jnp.sum(ee, axis=-1, keepdims=True), approx=False)
    cam = jnp.dot(attn_c, out, preferred_element_type=jnp.float32)           # (C, HW)
    cam = gam_ref[1] * cam + out

    # residual: x + (out + pam(out) + cam(out))
    o_ref[0] = x + out + pam + cam


# ---------------------------------------------------------------------------
# Wrapper
# ---------------------------------------------------------------------------
@jax.jit
def resnet_block_forward(x, p):
    B, C, H, W = x.shape
    HW = H * W
    Cq = p["wq"].shape[0]

    gt = _build_tap_gathers(H, W)                                   # (9, HW, HW)
    w1t = jnp.transpose(p["w1"], (2, 3, 0, 1)).reshape(9, C, C)     # per-tap weights
    w2t = jnp.transpose(p["w2"], (2, 3, 0, 1)).reshape(9, C, C)
    # NOTE: p["b1"], p["b2"] are intentionally not passed to the kernel — the
    # conv bias cancels exactly inside InstanceNorm (verified vs. the reference).
    pam_b = jnp.concatenate([p["bq"], p["bk"], p["bv"]]).reshape(-1, 1)  # (2Cq+C, 1)
    gammas = jnp.concatenate([p["gamma_p"], p["gamma_c"]])               # (2,) -> SMEM
    xf = x.reshape(B, C, HW)

    kernel = functools.partial(_resnet_block_kernel, C=C, Cq=Cq)
    out = pl.pallas_call(
        kernel,
        out_shape=jax.ShapeDtypeStruct((B, C, HW), jnp.float32),
        grid=(B,),
        in_specs=[
            pl.BlockSpec((1, C, HW), lambda i: (i, 0, 0)),            # x (per batch)
            pl.BlockSpec((9, HW, HW), lambda i: (0, 0, 0)),           # tap gathers (loaded once)
            pl.BlockSpec((9, C, C), lambda i: (0, 0, 0)),             # conv1 taps
            pl.BlockSpec((9, C, C), lambda i: (0, 0, 0)),             # conv2 taps
            pl.BlockSpec((Cq, C), lambda i: (0, 0)),                  # wq
            pl.BlockSpec((Cq, C), lambda i: (0, 0)),                  # wk
            pl.BlockSpec((C, C), lambda i: (0, 0)),                   # wv
            pl.BlockSpec((2 * Cq + C, 1), lambda i: (0, 0)),          # packed PAM biases
            pl.BlockSpec(memory_space=pltpu.MemorySpace.SMEM),        # gammas
        ],
        out_specs=pl.BlockSpec((1, C, HW), lambda i: (i, 0, 0)),
        compiler_params=pltpu.CompilerParams(
            dimension_semantics=("parallel",),        # 2x on v7x, harmless on v5e/v6e
            vmem_limit_bytes=32 * 1024 * 1024,
        ),
    )(xf, gt, w1t, w2t, p["wq"], p["wk"], p["wv"], pam_b, gammas)
    return out.reshape(B, C, H, W)


# ---------------------------------------------------------------------------
# Pure-JAX reference (includes the conv biases, proving the fold-out is exact)
# ---------------------------------------------------------------------------
def resnet_block_reference(x, p):
    B, C, H, W = x.shape

    def conv(inp, w, b):
        xp = jnp.pad(inp, ((0, 0), (0, 0), (1, 1), (1, 1)), mode="reflect")
        y = jax.lax.conv_general_dilated(
            xp, w, (1, 1), "VALID", dimension_numbers=("NCHW", "OIHW", "NCHW"))
        return y + b[None, :, None, None]

    def inorm(y, relu):
        m = jnp.mean(y, axis=(2, 3), keepdims=True)
        v = jnp.mean((y - m) ** 2, axis=(2, 3), keepdims=True)
        y = (y - m) / jnp.sqrt(v + EPS)
        return jnp.maximum(y, 0.0) if relu else y

    out = inorm(conv(x, p["w1"], p["b1"]), True)
    out = inorm(conv(out, p["w2"], p["b2"]), False)
    of = out.reshape(B, C, H * W)
    # PAM
    q = jnp.einsum("oc,bcn->bon", p["wq"], of) + p["bq"][None, :, None]
    k = jnp.einsum("oc,bcn->bon", p["wk"], of) + p["bk"][None, :, None]
    v = jnp.einsum("oc,bcn->bon", p["wv"], of) + p["bv"][None, :, None]
    energy = jnp.einsum("bcn,bcm->bnm", q, k)
    attn = jax.nn.softmax(energy, axis=-1)
    pam_out = p["gamma_p"][0] * jnp.einsum("bcm,bnm->bcn", v, attn) + of
    # CAM
    e = jnp.einsum("bcn,bdn->bcd", of, of)
    e_new = jnp.max(e, axis=-1, keepdims=True) - e
    a = jax.nn.softmax(e_new, axis=-1)
    cam_out = p["gamma_c"][0] * jnp.einsum("bcd,bdn->bcn", a, of) + of
    total = of + pam_out + cam_out
    return x + total.reshape(B, C, H, W)


# ---------------------------------------------------------------------------
if __name__ == "__main__":
    B, C, H, W = 2, 8, 16, 16          # dim=8 -> PAM q/k channels = dim//8 = 1
    Cq = C // 8

    key = jax.random.PRNGKey(0)
    ks = jax.random.split(key, 11)
    params = {
        "w1": jax.random.normal(ks[0], (C, C, 3, 3), jnp.float32) * 0.1,
        "b1": jax.random.normal(ks[1], (C,), jnp.float32) * 0.05,
        "w2": jax.random.normal(ks[2], (C, C, 3, 3), jnp.float32) * 0.1,
        "b2": jax.random.normal(ks[3], (C,), jnp.float32) * 0.05,
        "wq": jax.random.normal(ks[4], (Cq, C), jnp.float32) * 0.1,
        "bq": jax.random.normal(ks[5], (Cq,), jnp.float32) * 0.05,
        "wk": jax.random.normal(ks[6], (Cq, C), jnp.float32) * 0.1,
        "bk": jax.random.normal(ks[7], (Cq,), jnp.float32) * 0.05,
        "wv": jax.random.normal(ks[8], (C, C), jnp.float32) * 0.1,
        "bv": jax.random.normal(ks[9], (C,), jnp.float32) * 0.05,
        # torch inits gamma to zeros(1); use nonzero deterministic values so the
        # attention paths are actually exercised in the numeric check.
        "gamma_p": jnp.array([0.3], jnp.float32),
        "gamma_c": jnp.array([0.2], jnp.float32),
    }

    x = jax.random.normal(ks[10], (B, C, H, W), jnp.float32)

    y = jax.block_until_ready(resnet_block_forward(x, params))
    y_ref = jax.block_until_ready(resnet_block_reference(x, params))

    np.testing.assert_allclose(np.asarray(y), np.asarray(y_ref),
                               rtol=1e-3, atol=1e-3)
    print("KERNEL_OK")
</pallas_src>

<mosaic_0001>
module attributes {stable_mosaic.version = 11 : i64} {
  func.func @_resnet_block_kernel(%arg0: i32, %arg1: memref<1x8x256xf32, #tpu.memory_space<vmem>>, %arg2: memref<9x256x256xf32, #tpu.memory_space<vmem>>, %arg3: memref<9x8x8xf32, #tpu.memory_space<vmem>>, %arg4: memref<9x8x8xf32, #tpu.memory_space<vmem>>, %arg5: memref<1x8xf32, #tpu.memory_space<vmem>>, %arg6: memref<1x8xf32, #tpu.memory_space<vmem>>, %arg7: memref<8x8xf32, #tpu.memory_space<vmem>>, %arg8: memref<10x1xf32, #tpu.memory_space<vmem>>, %arg9: memref<2xf32, #tpu.memory_space<smem>>, %arg10: memref<1x8x256xf32, #tpu.memory_space<vmem>>) attributes {dimension_semantics = [#tpu.dimension_semantics<parallel>], iteration_bounds = array<i64: 2>, scalar_prefetch = 0 : i64, scratch_operands = 0 : i64, tpu.core_type = #tpu.core_type<tc>, window_params = [{transform_indices = @transform_0, window_bounds = array<i64: 1, 8, 256>}, {pipeline_mode = #tpu.pipeline_mode<synchronous>, transform_indices = @transform_1, window_bounds = array<i64: 9, 256, 256>}, {pipeline_mode = #tpu.pipeline_mode<synchronous>, transform_indices = @transform_2, window_bounds = array<i64: 9, 8, 8>}, {pipeline_mode = #tpu.pipeline_mode<synchronous>, transform_indices = @transform_3, window_bounds = array<i64: 9, 8, 8>}, {pipeline_mode = #tpu.pipeline_mode<synchronous>, transform_indices = @transform_4, window_bounds = array<i64: 1, 8>}, {pipeline_mode = #tpu.pipeline_mode<synchronous>, transform_indices = @transform_5, window_bounds = array<i64: 1, 8>}, {pipeline_mode = #tpu.pipeline_mode<synchronous>, transform_indices = @transform_6, window_bounds = array<i64: 8, 8>}, {pipeline_mode = #tpu.pipeline_mode<synchronous>, transform_indices = @transform_7, window_bounds = array<i64: 10, 1>}, {transform_indices = @transform_8, window_bounds = array<i64: 2>}, {transform_indices = @transform_9, window_bounds = array<i64: 1, 8, 256>}]} {
    %c0 = arith.constant 0 : index
    %c0_0 = arith.constant 0 : index
    %c0_1 = arith.constant 0 : index
    %0 = vector.load %arg1[%c0, %c0_0, %c0_1] : memref<1x8x256xf32, #tpu.memory_space<vmem>>, vector<1x8x256xf32>
    %1 = vector.shape_cast %0 : vector<1x8x256xf32> to vector<8x256xf32>
    %c0_2 = arith.constant 0 : index
    %c0_3 = arith.constant 0 : index
    %c0_4 = arith.constant 0 : index
    %2 = vector.load %arg2[%c0_2, %c0_3, %c0_4] : memref<9x256x256xf32, #tpu.memory_space<vmem>>, vector<1x256x256xf32>
    %3 = vector.shape_cast %2 : vector<1x256x256xf32> to vector<256x256xf32>
    %cst = arith.constant dense<0.000000e+00> : vector<8x256xf32>
    %4 = tpu.matmul %1, %3, %cst {dimension_numbers = #tpu.dot_dimension_numbers<[1], [0], [0], [1], [0, 0, 1, 1], [], []>} : vector<8x256xf32>, vector<256x256xf32>, vector<8x256xf32> -> vector<8x256xf32>
    %c0_5 = arith.constant 0 : index
    %c0_6 = arith.constant 0 : index
    %c0_7 = arith.constant 0 : index
    %5 = vector.load %arg3[%c0_5, %c0_6, %c0_7] : memref<9x8x8xf32, #tpu.memory_space<vmem>>, vector<1x8x8xf32>
    %6 = vector.shape_cast %5 : vector<1x8x8xf32> to vector<8x8xf32>
    %cst_8 = arith.constant dense<0.000000e+00> : vector<8x256xf32>
    %7 = tpu.matmul %6, %4, %cst_8 {dimension_numbers = #tpu.dot_dimension_numbers<[1], [0], [0], [1], [0, 0, 1, 1], [], []>} : vector<8x8xf32>, vector<8x256xf32>, vector<8x256xf32> -> vector<8x256xf32>
    %c1 = arith.constant 1 : index
    %c0_9 = arith.constant 0 : index
    %c0_10 = arith.constant 0 : index
    %8 = vector.load %arg2[%c1, %c0_9, %c0_10] : memref<9x256x256xf32, #tpu.memory_space<vmem>>, vector<1x256x256xf32>
    %9 = vector.shape_cast %8 : vector<1x256x256xf32> to vector<256x256xf32>
    %cst_11 = arith.constant dense<0.000000e+00> : vector<8x256xf32>
    %10 = tpu.matmul %1, %9, %cst_11 {dimension_numbers = #tpu.dot_dimension_numbers<[1], [0], [0], [1], [0, 0, 1, 1], [], []>} : vector<8x256xf32>, vector<256x256xf32>, vector<8x256xf32> -> vector<8x256xf32>
    %c1_12 = arith.constant 1 : index
    %c0_13 = arith.constant 0 : index
    %c0_14 = arith.constant 0 : index
    %11 = vector.load %arg3[%c1_12, %c0_13, %c0_14] : memref<9x8x8xf32, #tpu.memory_space<vmem>>, vector<1x8x8xf32>
    %12 = vector.shape_cast %11 : vector<1x8x8xf32> to vector<8x8xf32>
    %cst_15 = arith.constant dense<0.000000e+00> : vector<8x256xf32>
    %13 = tpu.matmul %12, %10, %cst_15 {dimension_numbers = #tpu.dot_dimension_numbers<[1], [0], [0], [1], [0, 0, 1, 1], [], []>} : vector<8x8xf32>, vector<8x256xf32>, vector<8x256xf32> -> vector<8x256xf32>
    %14 = arith.addf %7, %13 : vector<8x256xf32>
    %c2 = arith.constant 2 : index
    %c0_16 = arith.constant 0 : index
    %c0_17 = arith.constant 0 : index
    %15 = vector.load %arg2[%c2, %c0_16, %c0_17] : memref<9x256x256xf32, #tpu.memory_space<vmem>>, vector<1x256x256xf32>
    %16 = vector.shape_cast %15 : vector<1x256x256xf32> to vector<256x256xf32>
    %cst_18 = arith.constant dense<0.000000e+00> : vector<8x256xf32>
    %17 = tpu.matmul %1, %16, %cst_18 {dimension_numbers = #tpu.dot_dimension_numbers<[1], [0], [0], [1], [0, 0, 1, 1], [], []>} : vector<8x256xf32>, vector<256x256xf32>, vector<8x256xf32> -> vector<8x256xf32>
    %c2_19 = arith.constant 2 : index
    %c0_20 = arith.constant 0 : index
    %c0_21 = arith.constant 0 : index
    %18 = vector.load %arg3[%c2_19, %c0_20, %c0_21] : memref<9x8x8xf32, #tpu.memory_space<vmem>>, vector<1x8x8xf32>
    %19 = vector.shape_cast %18 : vector<1x8x8xf32> to vector<8x8xf32>
    %cst_22 = arith.constant dense<0.000000e+00> : vector<8x256xf32>
    %20 = tpu.matmul %19, %17, %cst_22 {dimension_numbers = #tpu.dot_dimension_numbers<[1], [0], [0], [1], [0, 0, 1, 1], [], []>} : vector<8x8xf32>, vector<8x256xf32>, vector<8x256xf32> -> vector<8x256xf32>
    %21 = arith.addf %14, %20 : vector<8x256xf32>
    %c3 = arith.constant 3 : index
    %c0_23 = arith.constant 0 : index
    %c0_24 = arith.constant 0 : index
    %22 = vector.load %arg2[%c3, %c0_23, %c0_24] : memref<9x256x256xf32, #tpu.memory_space<vmem>>, vector<1x256x256xf32>
    %23 = vector.shape_cast %22 : vector<1x256x256xf32> to vector<256x256xf32>
    %cst_25 = arith.constant dense<0.000000e+00> : vector<8x256xf32>
    %24 = tpu.matmul %1, %23, %cst_25 {dimension_numbers = #tpu.dot_dimension_numbers<[1], [0], [0], [1], [0, 0, 1, 1], [], []>} : vector<8x256xf32>, vector<256x256xf32>, vector<8x256xf32> -> vector<8x256xf32>
    %c3_26 = arith.constant 3 : index
    %c0_27 = arith.constant 0 : index
    %c0_28 = arith.constant 0 : index
    %25 = vector.load %arg3[%c3_26, %c0_27, %c0_28] : memref<9x8x8xf32, #tpu.memory_space<vmem>>, vector<1x8x8xf32>
    %26 = vector.shape_cast %25 : vector<1x8x8xf32> to vector<8x8xf32>
    %cst_29 = arith.constant dense<0.000000e+00> : vector<8x256xf32>
    %27 = tpu.matmul %26, %24, %cst_29 {dimension_numbers = #tpu.dot_dimension_numbers<[1], [0], [0], [1], [0, 0, 1, 1], [], []>} : vector<8x8xf32>, vector<8x256xf32>, vector<8x256xf32> -> vector<8x256xf32>
    %28 = arith.addf %21, %27 : vector<8x256xf32>
    %c4 = arith.constant 4 : index
    %c0_30 = arith.constant 0 : index
    %c0_31 = arith.constant 0 : index
    %29 = vector.load %arg2[%c4, %c0_30, %c0_31] : memref<9x256x256xf32, #tpu.memory_space<vmem>>, vector<1x256x256xf32>
    %30 = vector.shape_cast %29 : vector<1x256x256xf32> to vector<256x256xf32>
    %cst_32 = arith.constant dense<0.000000e+00> : vector<8x256xf32>
    %31 = tpu.matmul %1, %30, %cst_32 {dimension_numbers = #tpu.dot_dimension_numbers<[1], [0], [0], [1], [0, 0, 1, 1], [], []>} : vector<8x256xf32>, vector<256x256xf32>, vector<8x256xf32> -> vector<8x256xf32>
    %c4_33 = arith.constant 4 : index
    %c0_34 = arith.constant 0 : index
    %c0_35 = arith.constant 0 : index
    %32 = vector.load %arg3[%c4_33, %c0_34, %c0_35] : memref<9x8x8xf32, #tpu.memory_space<vmem>>, vector<1x8x8xf32>
    %33 = vector.shape_cast %32 : vector<1x8x8xf32> to vector<8x8xf32>
    %cst_36 = arith.constant dense<0.000000e+00> : vector<8x256xf32>
    %34 = tpu.matmul %33, %31, %cst_36 {dimension_numbers = #tpu.dot_dimension_numbers<[1], [0], [0], [1], [0, 0, 1, 1], [], []>} : vector<8x8xf32>, vector<8x256xf32>, vector<8x256xf32> -> vector<8x256xf32>
    %35 = arith.addf %28, %34 : vector<8x256xf32>
    %c5 = arith.constant 5 : index
    %c0_37 = arith.constant 0 : index
    %c0_38 = arith.constant 0 : index
    %36 = vector.load %arg2[%c5, %c0_37, %c0_38] : memref<9x256x256xf32, #tpu.memory_space<vmem>>, vector<1x256x256xf32>
    %37 = vector.shape_cast %36 : vector<1x256x256xf32> to vector<256x256xf32>
    %cst_39 = arith.constant dense<0.000000e+00> : vector<8x256xf32>
    %38 = tpu.matmul %1, %37, %cst_39 {dimension_numbers = #tpu.dot_dimension_numbers<[1], [0], [0], [1], [0, 0, 1, 1], [], []>} : vector<8x256xf32>, vector<256x256xf32>, vector<8x256xf32> -> vector<8x256xf32>
    %c5_40 = arith.constant 5 : index
    %c0_41 = arith.constant 0 : index
    %c0_42 = arith.constant 0 : index
    %39 = vector.load %arg3[%c5_40, %c0_41, %c0_42] : memref<9x8x8xf32, #tpu.memory_space<vmem>>, vector<1x8x8xf32>
    %40 = vector.shape_cast %39 : vector<1x8x8xf32> to vector<8x8xf32>
    %cst_43 = arith.constant dense<0.000000e+00> : vector<8x256xf32>
    %41 = tpu.matmul %40, %38, %cst_43 {dimension_numbers = #tpu.dot_dimension_numbers<[1], [0], [0], [1], [0, 0, 1, 1], [], []>} : vector<8x8xf32>, vector<8x256xf32>, vector<8x256xf32> -> vector<8x256xf32>
    %42 = arith.addf %35, %41 : vector<8x256xf32>
    %c6 = arith.constant 6 : index
    %c0_44 = arith.constant 0 : index
    %c0_45 = arith.constant 0 : index
    %43 = vector.load %arg2[%c6, %c0_44, %c0_45] : memref<9x256x256xf32, #tpu.memory_space<vmem>>, vector<1x256x256xf32>
    %44 = vector.shape_cast %43 : vector<1x256x256xf32> to vector<256x256xf32>
    %cst_46 = arith.constant dense<0.000000e+00> : vector<8x256xf32>
    %45 = tpu.matmul %1, %44, %cst_46 {dimension_numbers = #tpu.dot_dimension_numbers<[1], [0], [0], [1], [0, 0, 1, 1], [], []>} : vector<8x256xf32>, vector<256x256xf32>, vector<8x256xf32> -> vector<8x256xf32>
    %c6_47 = arith.constant 6 : index
    %c0_48 = arith.constant 0 : index
    %c0_49 = arith.constant 0 : index
    %46 = vector.load %arg3[%c6_47, %c0_48, %c0_49] : memref<9x8x8xf32, #tpu.memory_space<vmem>>, vector<1x8x8xf32>
    %47 = vector.shape_cast %46 : vector<1x8x8xf32> to vector<8x8xf32>
    %cst_50 = arith.constant dense<0.000000e+00> : vector<8x256xf32>
    %48 = tpu.matmul %47, %45, %cst_50 {dimension_numbers = #tpu.dot_dimension_numbers<[1], [0], [0], [1], [0, 0, 1, 1], [], []>} : vector<8x8xf32>, vector<8x256xf32>, vector<8x256xf32> -> vector<8x256xf32>
    %49 = arith.addf %42, %48 : vector<8x256xf32>
    %c7 = arith.constant 7 : index
    %c0_51 = arith.constant 0 : index
    %c0_52 = arith.constant 0 : index
    %50 = vector.load %arg2[%c7, %c0_51, %c0_52] : memref<9x256x256xf32, #tpu.memory_space<vmem>>, vector<1x256x256xf32>
    %51 = vector.shape_cast %50 : vector<1x256x256xf32> to vector<256x256xf32>
    %cst_53 = arith.constant dense<0.000000e+00> : vector<8x256xf32>
    %52 = tpu.matmul %1, %51, %cst_53 {dimension_numbers = #tpu.dot_dimension_numbers<[1], [0], [0], [1], [0, 0, 1, 1], [], []>} : vector<8x256xf32>, vector<256x256xf32>, vector<8x256xf32> -> vector<8x256xf32>
    %c7_54 = arith.constant 7 : index
    %c0_55 = arith.constant 0 : index
    %c0_56 = arith.constant 0 : index
    %53 = vector.load %arg3[%c7_54, %c0_55, %c0_56] : memref<9x8x8xf32, #tpu.memory_space<vmem>>, vector<1x8x8xf32>
    %54 = vector.shape_cast %53 : vector<1x8x8xf32> to vector<8x8xf32>
    %cst_57 = arith.constant dense<0.000000e+00> : vector<8x256xf32>
    %55 = tpu.matmul %54, %52, %cst_57 {dimension_numbers = #tpu.dot_dimension_numbers<[1], [0], [0], [1], [0, 0, 1, 1], [], []>} : vector<8x8xf32>, vector<8x256xf32>, vector<8x256xf32> -> vector<8x256xf32>
    %56 = arith.addf %49, %55 : vector<8x256xf32>
    %c8 = arith.constant 8 : index
    %c0_58 = arith.constant 0 : index
    %c0_59 = arith.constant 0 : index
    %57 = vector.load %arg2[%c8, %c0_58, %c0_59] : memref<9x256x256xf32, #tpu.memory_space<vmem>>, vector<1x256x256xf32>
    %58 = vector.shape_cast %57 : vector<1x256x256xf32> to vector<256x256xf32>
    %cst_60 = arith.constant dense<0.000000e+00> : vector<8x256xf32>
    %59 = tpu.matmul %1, %58, %cst_60 {dimension_numbers = #tpu.dot_dimension_numbers<[1], [0], [0], [1], [0, 0, 1, 1], [], []>} : vector<8x256xf32>, vector<256x256xf32>, vector<8x256xf32> -> vector<8x256xf32>
    %c8_61 = arith.constant 8 : index
    %c0_62 = arith.constant 0 : index
    %c0_63 = arith.constant 0 : index
    %60 = vector.load %arg3[%c8_61, %c0_62, %c0_63] : memref<9x8x8xf32, #tpu.memory_space<vmem>>, vector<1x8x8xf32>
    %61 = vector.shape_cast %60 : vector<1x8x8xf32> to vector<8x8xf32>
    %cst_64 = arith.constant dense<0.000000e+00> : vector<8x256xf32>
    %62 = tpu.matmul %61, %59, %cst_64 {dimension_numbers = #tpu.dot_dimension_numbers<[1], [0], [0], [1], [0, 0, 1, 1], [], []>} : vector<8x8xf32>, vector<8x256xf32>, vector<8x256xf32> -> vector<8x256xf32>
    %63 = arith.addf %56, %62 : vector<8x256xf32>
    %cst_65 = arith.constant dense<0.000000e+00> : vector<8xf32>
    %64 = vector.multi_reduction <add>, %63, %cst_65 [1] : vector<8x256xf32> to vector<8xf32>
    %65 = vector.shape_cast %64 : vector<8xf32> to vector<8x1xf32>
    %cst_66 = arith.constant 2.560000e+02 : f32
    %66 = vector.broadcast %cst_66 : f32 to vector<8x1xf32>
    %67 = arith.divf %65, %66 : vector<8x1xf32>
    %68 = vector.broadcast %67 : vector<8x1xf32> to vector<8x256xf32>
    %69 = arith.subf %63, %68 : vector<8x256xf32>
    %70 = arith.mulf %69, %69 : vector<8x256xf32>
    %cst_67 = arith.constant dense<0.000000e+00> : vector<8xf32>
    %71 = vector.multi_reduction <add>, %70, %cst_67 [1] : vector<8x256xf32> to vector<8xf32>
    %72 = vector.shape_cast %71 : vector<8xf32> to vector<8x1xf32>
    %cst_68 = arith.constant 2.560000e+02 : f32
    %73 = vector.broadcast %cst_68 : f32 to vector<8x1xf32>
    %74 = arith.divf %72, %73 : vector<8x1xf32>
    %cst_69 = arith.constant 9.99999974E-6 : f32
    %75 = vector.broadcast %cst_69 : f32 to vector<8x1xf32>
    %76 = arith.addf %74, %75 : vector<8x1xf32>
    %77 = math.rsqrt %76 : vector<8x1xf32>
    %78 = vector.broadcast %77 : vector<8x1xf32> to vector<8x256xf32>
    %79 = arith.mulf %69, %78 : vector<8x256xf32>
    %cst_70 = arith.constant 0.000000e+00 : f32
    %80 = vector.broadcast %cst_70 : f32 to vector<8x256xf32>
    %81 = arith.maximumf %79, %80 : vector<8x256xf32>
    %c0_71 = arith.constant 0 : index
    %c0_72 = arith.constant 0 : index
    %c0_73 = arith.constant 0 : index
    %82 = vector.load %arg2[%c0_71, %c0_72, %c0_73] : memref<9x256x256xf32, #tpu.memory_space<vmem>>, vector<1x256x256xf32>
    %83 = vector.shape_cast %82 : vector<1x256x256xf32> to vector<256x256xf32>
    %cst_74 = arith.constant dense<0.000000e+00> : vector<8x256xf32>
    %84 = tpu.matmul %81, %83, %cst_74 {dimension_numbers = #tpu.dot_dimension_numbers<[1], [0], [0], [1], [0, 0, 1, 1], [], []>} : vector<8x256xf32>, vector<256x256xf32>, vector<8x256xf32> -> vector<8x256xf32>
    %c0_75 = arith.constant 0 : index
    %c0_76 = arith.constant 0 : index
    %c0_77 = arith.constant 0 : index
    %85 = vector.load %arg4[%c0_75, %c0_76, %c0_77] : memref<9x8x8xf32, #tpu.memory_space<vmem>>, vector<1x8x8xf32>
    %86 = vector.shape_cast %85 : vector<1x8x8xf32> to vector<8x8xf32>
    %cst_78 = arith.constant dense<0.000000e+00> : vector<8x256xf32>
    %87 = tpu.matmul %86, %84, %cst_78 {dimension_numbers = #tpu.dot_dimension_numbers<[1], [0], [0], [1], [0, 0, 1, 1], [], []>} : vector<8x8xf32>, vector<8x256xf32>, vector<8x256xf32> -> vector<8x256xf32>
    %c1_79 = arith.constant 1 : index
    %c0_80 = arith.constant 0 : index
    %c0_81 = arith.constant 0 : index
    %88 = vector.load %arg2[%c1_79, %c0_80, %c0_81] : memref<9x256x256xf32, #tpu.memory_space<vmem>>, vector<1x256x256xf32>
    %89 = vector.shape_cast %88 : vector<1x256x256xf32> to vector<256x256xf32>
    %cst_82 = arith.constant dense<0.000000e+00> : vector<8x256xf32>
    %90 = tpu.matmul %81, %89, %cst_82 {dimension_numbers = #tpu.dot_dimension_numbers<[1], [0], [0], [1], [0, 0, 1, 1], [], []>} : vector<8x256xf32>, vector<256x256xf32>, vector<8x256xf32> -> vector<8x256xf32>
    %c1_83 = arith.constant 1 : index
    %c0_84 = arith.constant 0 : index
    %c0_85 = arith.constant 0 : index
    %91 = vector.load %arg4[%c1_83, %c0_84, %c0_85] : memref<9x8x8xf32, #tpu.memory_space<vmem>>, vector<1x8x8xf32>
    %92 = vector.shape_cast %91 : vector<1x8x8xf32> to vector<8x8xf32>
    %cst_86 = arith.constant dense<0.000000e+00> : vector<8x256xf32>
    %93 = tpu.matmul %92, %90, %cst_86 {dimension_numbers = #tpu.dot_dimension_numbers<[1], [0], [0], [1], [0, 0, 1, 1], [], []>} : vector<8x8xf32>, vector<8x256xf32>, vector<8x256xf32> -> vector<8x256xf32>
    %94 = arith.addf %87, %93 : vector<8x256xf32>
    %c2_87 = arith.constant 2 : index
    %c0_88 = arith.constant 0 : index
    %c0_89 = arith.constant 0 : index
    %95 = vector.load %arg2[%c2_87, %c0_88, %c0_89] : memref<9x256x256xf32, #tpu.memory_space<vmem>>, vector<1x256x256xf32>
    %96 = vector.shape_cast %95 : vector<1x256x256xf32> to vector<256x256xf32>
    %cst_90 = arith.constant dense<0.000000e+00> : vector<8x256xf32>
    %97 = tpu.matmul %81, %96, %cst_90 {dimension_numbers = #tpu.dot_dimension_numbers<[1], [0], [0], [1], [0, 0, 1, 1], [], []>} : vector<8x256xf32>, vector<256x256xf32>, vector<8x256xf32> -> vector<8x256xf32>
    %c2_91 = arith.constant 2 : index
    %c0_92 = arith.constant 0 : index
    %c0_93 = arith.constant 0 : index
    %98 = vector.load %arg4[%c2_91, %c0_92, %c0_93] : memref<9x8x8xf32, #tpu.memory_space<vmem>>, vector<1x8x8xf32>
    %99 = vector.shape_cast %98 : vector<1x8x8xf32> to vector<8x8xf32>
    %cst_94 = arith.constant dense<0.000000e+00> : vector<8x256xf32>
    %100 = tpu.matmul %99, %97, %cst_94 {dimension_numbers = #tpu.dot_dimension_numbers<[1], [0], [0], [1], [0, 0, 1, 1], [], []>} : vector<8x8xf32>, vector<8x256xf32>, vector<8x256xf32> -> vector<8x256xf32>
    %101 = arith.addf %94, %100 : vector<8x256xf32>
    %c3_95 = arith.constant 3 : index
    %c0_96 = arith.constant 0 : index
    %c0_97 = arith.constant 0 : index
    %102 = vector.load %arg2[%c3_95, %c0_96, %c0_97] : memref<9x256x256xf32, #tpu.memory_space<vmem>>, vector<1x256x256xf32>
    %103 = vector.shape_cast %102 : vector<1x256x256xf32> to vector<256x256xf32>
    %cst_98 = arith.constant dense<0.000000e+00> : vector<8x256xf32>
    %104 = tpu.matmul %81, %103, %cst_98 {dimension_numbers = #tpu.dot_dimension_numbers<[1], [0], [0], [1], [0, 0, 1, 1], [], []>} : vector<8x256xf32>, vector<256x256xf32>, vector<8x256xf32> -> vector<8x256xf32>
    %c3_99 = arith.constant 3 : index
    %c0_100 = arith.constant 0 : index
    %c0_101 = arith.constant 0 : index
    %105 = vector.load %arg4[%c3_99, %c0_100, %c0_101] : memref<9x8x8xf32, #tpu.memory_space<vmem>>, vector<1x8x8xf32>
    %106 = vector.shape_cast %105 : vector<1x8x8xf32> to vector<8x8xf32>
    %cst_102 = arith.constant dense<0.000000e+00> : vector<8x256xf32>
    %107 = tpu.matmul %106, %104, %cst_102 {dimension_numbers = #tpu.dot_dimension_numbers<[1], [0], [0], [1], [0, 0, 1, 1], [], []>} : vector<8x8xf32>, vector<8x256xf32>, vector<8x256xf32> -> vector<8x256xf32>
    %108 = arith.addf %101, %107 : vector<8x256xf32>
    %c4_103 = arith.constant 4 : index
    %c0_104 = arith.constant 0 : index
    %c0_105 = arith.constant 0 : index
    %109 = vector.load %arg2[%c4_103, %c0_104, %c0_105] : memref<9x256x256xf32, #tpu.memory_space<vmem>>, vector<1x256x256xf32>
    %110 = vector.shape_cast %109 : vector<1x256x256xf32> to vector<256x256xf32>
    %cst_106 = arith.constant dense<0.000000e+00> : vector<8x256xf32>
    %111 = tpu.matmul %81, %110, %cst_106 {dimension_numbers = #tpu.dot_dimension_numbers<[1], [0], [0], [1], [0, 0, 1, 1], [], []>} : vector<8x256xf32>, vector<256x256xf32>, vector<8x256xf32> -> vector<8x256xf32>
    %c4_107 = arith.constant 4 : index
    %c0_108 = arith.constant 0 : index
    %c0_109 = arith.constant 0 : index
    %112 = vector.load %arg4[%c4_107, %c0_108, %c0_109] : memref<9x8x8xf32, #tpu.memory_space<vmem>>, vector<1x8x8xf32>
    %113 = vector.shape_cast %112 : vector<1x8x8xf32> to vector<8x8xf32>
    %cst_110 = arith.constant dense<0.000000e+00> : vector<8x256xf32>
    %114 = tpu.matmul %113, %111, %cst_110 {dimension_numbers = #tpu.dot_dimension_numbers<[1], [0], [0], [1], [0, 0, 1, 1], [], []>} : vector<8x8xf32>, vector<8x256xf32>, vector<8x256xf32> -> vector<8x256xf32>
    %115 = arith.addf %108, %114 : vector<8x256xf32>
    %c5_111 = arith.constant 5 : index
    %c0_112 = arith.constant 0 : index
    %c0_113 = arith.constant 0 : index
    %116 = vector.load %arg2[%c5_111, %c0_112, %c0_113] : memref<9x256x256xf32, #tpu.memory_space<vmem>>, vector<1x256x256xf32>
    %117 = vector.shape_cast %116 : vector<1x256x256xf32> to vector<256x256xf32>
    %cst_114 = arith.constant dense<0.000000e+00> : vector<8x256xf32>
    %118 = tpu.matmul %81, %117, %cst_114 {dimension_numbers = #tpu.dot_dimension_numbers<[1], [0], [0], [1], [0, 0, 1, 1], [], []>} : vector<8x256xf32>, vector<256x256xf32>, vector<8x256xf32> -> vector<8x256xf32>
    %c5_115 = arith.constant 5 : index
    %c0_116 = arith.constant 0 : index
    %c0_117 = arith.constant 0 : index
    %119 = vector.load %arg4[%c5_115, %c0_116, %c0_117] : memref<9x8x8xf32, #tpu.memory_space<vmem>>, vector<1x8x8xf32>
    %120 = vector.shape_cast %119 : vector<1x8x8xf32> to vector<8x8xf32>
    %cst_118 = arith.constant dense<0.000000e+00> : vector<8x256xf32>
    %121 = tpu.matmul %120, %118, %cst_118 {dimension_numbers = #tpu.dot_dimension_numbers<[1], [0], [0], [1], [0, 0, 1, 1], [], []>} : vector<8x8xf32>, vector<8x256xf32>, vector<8x256xf32> -> vector<8x256xf32>
    %122 = arith.addf %115, %121 : vector<8x256xf32>
    %c6_119 = arith.constant 6 : index
    %c0_120 = arith.constant 0 : index
    %c0_121 = arith.constant 0 : index
    %123 = vector.load %arg2[%c6_119, %c0_120, %c0_121] : memref<9x256x256xf32, #tpu.memory_space<vmem>>, vector<1x256x256xf32>
    %124 = vector.shape_cast %123 : vector<1x256x256xf32> to vector<256x256xf32>
    %cst_122 = arith.constant dense<0.000000e+00> : vector<8x256xf32>
    %125 = tpu.matmul %81, %124, %cst_122 {dimension_numbers = #tpu.dot_dimension_numbers<[1], [0], [0], [1], [0, 0, 1, 1], [], []>} : vector<8x256xf32>, vector<256x256xf32>, vector<8x256xf32> -> vector<8x256xf32>
    %c6_123 = arith.constant 6 : index
    %c0_124 = arith.constant 0 : index
    %c0_125 = arith.constant 0 : index
    %126 = vector.load %arg4[%c6_123, %c0_124, %c0_125] : memref<9x8x8xf32, #tpu.memory_space<vmem>>, vector<1x8x8xf32>
    %127 = vector.shape_cast %126 : vector<1x8x8xf32> to vector<8x8xf32>
    %cst_126 = arith.constant dense<0.000000e+00> : vector<8x256xf32>
    %128 = tpu.matmul %127, %125, %cst_126 {dimension_numbers = #tpu.dot_dimension_numbers<[1], [0], [0], [1], [0, 0, 1, 1], [], []>} : vector<8x8xf32>, vector<8x256xf32>, vector<8x256xf32> -> vector<8x256xf32>
    %129 = arith.addf %122, %128 : vector<8x256xf32>
    %c7_127 = arith.constant 7 : index
    %c0_128 = arith.constant 0 : index
    %c0_129 = arith.constant 0 : index
    %130 = vector.load %arg2[%c7_127, %c0_128, %c0_129] : memref<9x256x256xf32, #tpu.memory_space<vmem>>, vector<1x256x256xf32>
    %131 = vector.shape_cast %130 : vector<1x256x256xf32> to vector<256x256xf32>
    %cst_130 = arith.constant dense<0.000000e+00> : vector<8x256xf32>
    %132 = tpu.matmul %81, %131, %cst_130 {dimension_numbers = #tpu.dot_dimension_numbers<[1], [0], [0], [1], [0, 0, 1, 1], [], []>} : vector<8x256xf32>, vector<256x256xf32>, vector<8x256xf32> -> vector<8x256xf32>
    %c7_131 = arith.constant 7 : index
    %c0_132 = arith.constant 0 : index
    %c0_133 = arith.constant 0 : index
    %133 = vector.load %arg4[%c7_131, %c0_132, %c0_133] : memref<9x8x8xf32, #tpu.memory_space<vmem>>, vector<1x8x8xf32>
    %134 = vector.shape_cast %133 : vector<1x8x8xf32> to vector<8x8xf32>
    %cst_134 = arith.constant dense<0.000000e+00> : vector<8x256xf32>
    %135 = tpu.matmul %134, %132, %cst_134 {dimension_numbers = #tpu.dot_dimension_numbers<[1], [0], [0], [1], [0, 0, 1, 1], [], []>} : vector<8x8xf32>, vector<8x256xf32>, vector<8x256xf32> -> vector<8x256xf32>
    %136 = arith.addf %129, %135 : vector<8x256xf32>
    %c8_135 = arith.constant 8 : index
    %c0_136 = arith.constant 0 : index
    %c0_137 = arith.constant 0 : index
    %137 = vector.load %arg2[%c8_135, %c0_136, %c0_137] : memref<9x256x256xf32, #tpu.memory_space<vmem>>, vector<1x256x256xf32>
    %138 = vector.shape_cast %137 : vector<1x256x256xf32> to vector<256x256xf32>
    %cst_138 = arith.constant dense<0.000000e+00> : vector<8x256xf32>
    %139 = tpu.matmul %81, %138, %cst_138 {dimension_numbers = #tpu.dot_dimension_numbers<[1], [0], [0], [1], [0, 0, 1, 1], [], []>} : vector<8x256xf32>, vector<256x256xf32>, vector<8x256xf32> -> vector<8x256xf32>
    %c8_139 = arith.constant 8 : index
    %c0_140 = arith.constant 0 : index
    %c0_141 = arith.constant 0 : index
    %140 = vector.load %arg4[%c8_139, %c0_140, %c0_141] : memref<9x8x8xf32, #tpu.memory_space<vmem>>, vector<1x8x8xf32>
    %141 = vector.shape_cast %140 : vector<1x8x8xf32> to vector<8x8xf32>
    %cst_142 = arith.constant dense<0.000000e+00> : vector<8x256xf32>
    %142 = tpu.matmul %141, %139, %cst_142 {dimension_numbers = #tpu.dot_dimension_numbers<[1], [0], [0], [1], [0, 0, 1, 1], [], []>} : vector<8x8xf32>, vector<8x256xf32>, vector<8x256xf32> -> vector<8x256xf32>
    %143 = arith.addf %136, %142 : vector<8x256xf32>
    %cst_143 = arith.constant dense<0.000000e+00> : vector<8xf32>
    %144 = vector.multi_reduction <add>, %143, %cst_143 [1] : vector<8x256xf32> to vector<8xf32>
    %145 = vector.shape_cast %144 : vector<8xf32> to vector<8x1xf32>
    %cst_144 = arith.constant 2.560000e+02 : f32
    %146 = vector.broadcast %cst_144 : f32 to vector<8x1xf32>
    %147 = arith.divf %145, %146 : vector<8x1xf32>
    %148 = vector.broadcast %147 : vector<8x1xf32> to vector<8x256xf32>
    %149 = arith.subf %143, %148 : vector<8x256xf32>
    %150 = arith.mulf %149, %149 : vector<8x256xf32>
    %cst_145 = arith.constant dense<0.000000e+00> : vector<8xf32>
    %151 = vector.multi_reduction <add>, %150, %cst_145 [1] : vector<8x256xf32> to vector<8xf32>
    %152 = vector.shape_cast %151 : vector<8xf32> to vector<8x1xf32>
    %cst_146 = arith.constant 2.560000e+02 : f32
    %153 = vector.broadcast %cst_146 : f32 to vector<8x1xf32>
    %154 = arith.divf %152, %153 : vector<8x1xf32>
    %cst_147 = arith.constant 9.99999974E-6 : f32
    %155 = vector.broadcast %cst_147 : f32 to vector<8x1xf32>
    %156 = arith.addf %154, %155 : vector<8x1xf32>
    %157 = math.rsqrt %156 : vector<8x1xf32>
    %158 = vector.broadcast %157 : vector<8x1xf32> to vector<8x256xf32>
    %159 = arith.mulf %149, %158 : vector<8x256xf32>
    %c0_148 = arith.constant 0 : index
    %c0_149 = arith.constant 0 : index
    %160 = vector.load %arg8[%c0_148, %c0_149] : memref<10x1xf32, #tpu.memory_space<vmem>>, vector<10x1xf32>
    %161 = vector.extract_strided_slice %160 {offsets = [0, 0], sizes = [1, 1], strides = [1, 1]} : vector<10x1xf32> to vector<1x1xf32>
    %162 = vector.extract_strided_slice %160 {offsets = [1, 0], sizes = [1, 1], strides = [1, 1]} : vector<10x1xf32> to vector<1x1xf32>
    %163 = vector.extract_strided_slice %160 {offsets = [2, 0], sizes = [8, 1], strides = [1, 1]} : vector<10x1xf32> to vector<8x1xf32>
    %c0_150 = arith.constant 0 : index
    %c0_151 = arith.constant 0 : index
    %164 = vector.load %arg5[%c0_150, %c0_151] : memref<1x8xf32, #tpu.memory_space<vmem>>, vector<1x8xf32>
    %cst_152 = arith.constant dense<0.000000e+00> : vector<1x256xf32>
    %165 = tpu.matmul %164, %159, %cst_152 {dimension_numbers = #tpu.dot_dimension_numbers<[1], [0], [0], [1], [0, 0, 1, 1], [], []>} : vector<1x8xf32>, vector<8x256xf32>, vector<1x256xf32> -> vector<1x256xf32>
    %166 = vector.broadcast %161 : vector<1x1xf32> to vector<1x256xf32>
    %167 = arith.addf %165, %166 : vector<1x256xf32>
    %c0_153 = arith.constant 0 : index
    %c0_154 = arith.constant 0 : index
    %168 = vector.load %arg6[%c0_153, %c0_154] : memref<1x8xf32, #tpu.memory_space<vmem>>, vector<1x8xf32>
    %cst_155 = arith.constant dense<0.000000e+00> : vector<1x256xf32>
    %169 = tpu.matmul %168, %159, %cst_155 {dimension_numbers = #tpu.dot_dimension_numbers<[1], [0], [0], [1], [0, 0, 1, 1], [], []>} : vector<1x8xf32>, vector<8x256xf32>, vector<1x256xf32> -> vector<1x256xf32>
    %170 = vector.broadcast %162 : vector<1x1xf32> to vector<1x256xf32>
    %171 = arith.addf %169, %170 : vector<1x256xf32>
    %c0_156 = arith.constant 0 : index
    %c0_157 = arith.constant 0 : index
    %172 = vector.load %arg7[%c0_156, %c0_157] : memref<8x8xf32, #tpu.memory_space<vmem>>, vector<8x8xf32>
    %cst_158 = arith.constant dense<0.000000e+00> : vector<8x256xf32>
    %173 = tpu.matmul %172, %159, %cst_158 {dimension_numbers = #tpu.dot_dimension_numbers<[1], [0], [0], [1], [0, 0, 1, 1], [], []>} : vector<8x8xf32>, vector<8x256xf32>, vector<8x256xf32> -> vector<8x256xf32>
    %174 = vector.broadcast %163 : vector<8x1xf32> to vector<8x256xf32>
    %175 = arith.addf %173, %174 : vector<8x256xf32>
    %176 = tpu.transpose %167, [1, 0] : vector<1x256xf32> -> vector<256x1xf32>
    %177 = vector.broadcast %176 : vector<256x1xf32> to vector<256x256xf32>
    %178 = vector.broadcast %171 : vector<1x256xf32> to vector<256x256xf32>
    %179 = arith.mulf %177, %178 : vector<256x256xf32>
    %cst_159 = arith.constant dense<0xFF800000> : vector<256xf32>
    %180 = vector.multi_reduction <maximumf>, %179, %cst_159 [1] : vector<256x256xf32> to vector<256xf32>
    %181 = vector.shape_cast %180 : vector<256xf32> to vector<256x1xf32>
    %182 = vector.broadcast %181 : vector<256x1xf32> to vector<256x256xf32>
    %183 = arith.subf %179, %182 : vector<256x256xf32>
    %184 = math.exp %183 : vector<256x256xf32>
    %cst_160 = arith.constant dense<0.000000e+00> : vector<256xf32>
    %185 = vector.multi_reduction <add>, %184, %cst_160 [1] : vector<256x256xf32> to vector<256xf32>
    %186 = vector.shape_cast %185 : vector<256xf32> to vector<256x1xf32>
    %187 = tpu.reciprocal %186 : vector<256x1xf32> -> vector<256x1xf32>
    %188 = vector.broadcast %187 : vector<256x1xf32> to vector<256x256xf32>
    %189 = arith.mulf %184, %188 : vector<256x256xf32>
    %cst_161 = arith.constant dense<0.000000e+00> : vector<8x256xf32>
    %190 = tpu.matmul %175, %189, %cst_161 {dimension_numbers = #tpu.dot_dimension_numbers<[1], [1], [0], [0], [0, 0, 1, 0], [], []>} : vector<8x256xf32>, vector<256x256xf32>, vector<8x256xf32> -> vector<8x256xf32>
    %c0_162 = arith.constant 0 : index
    %191 = memref.load %arg9[%c0_162] : memref<2xf32, #tpu.memory_space<smem>>
    %192 = vector.broadcast %191 : f32 to vector<8x256xf32>
    %193 = arith.mulf %192, %190 : vector<8x256xf32>
    %194 = arith.addf %193, %159 : vector<8x256xf32>
    %cst_163 = arith.constant dense<0.000000e+00> : vector<8x8xf32>
    %195 = tpu.matmul %159, %159, %cst_163 {dimension_numbers = #tpu.dot_dimension_numbers<[1], [1], [0], [0], [0, 0, 1, 0], [], []>} : vector<8x256xf32>, vector<8x256xf32>, vector<8x8xf32> -> vector<8x8xf32>
    %cst_164 = arith.constant dense<0xFF800000> : vector<8xf32>
    %196 = vector.multi_reduction <maximumf>, %195, %cst_164 [1] : vector<8x8xf32> to vector<8xf32>
    %197 = vector.shape_cast %196 : vector<8xf32> to vector<8x1xf32>
    %198 = vector.broadcast %197 : vector<8x1xf32> to vector<8x8xf32>
    %199 = arith.subf %198, %195 : vector<8x8xf32>
    %cst_165 = arith.constant dense<0xFF800000> : vector<8xf32>
    %200 = vector.multi_reduction <maximumf>, %199, %cst_165 [1] : vector<8x8xf32> to vector<8xf32>
    %201 = vector.shape_cast %200 : vector<8xf32> to vector<8x1xf32>
    %202 = vector.broadcast %201 : vector<8x1xf32> to vector<8x8xf32>
    %203 = arith.subf %199, %202 : vector<8x8xf32>
    %204 = math.exp %203 : vector<8x8xf32>
    %cst_166 = arith.constant dense<0.000000e+00> : vector<8xf32>
    %205 = vector.multi_reduction <add>, %204, %cst_166 [1] : vector<8x8xf32> to vector<8xf32>
    %206 = vector.shape_cast %205 : vector<8xf32> to vector<8x1xf32>
    %207 = tpu.reciprocal %206 : vector<8x1xf32> -> vector<8x1xf32>
    %208 = vector.broadcast %207 : vector<8x1xf32> to vector<8x8xf32>
    %209 = arith.mulf %204, %208 : vector<8x8xf32>
    %cst_167 = arith.constant dense<0.000000e+00> : vector<8x256xf32>
    %210 = tpu.matmul %209, %159, %cst_167 {dimension_numbers = #tpu.dot_dimension_numbers<[1], [0], [0], [1], [0, 0, 1, 1], [], []>} : vector<8x8xf32>, vector<8x256xf32>, vector<8x256xf32> -> vector<8x256xf32>
    %c1_168 = arith.constant 1 : index
    %211 = memref.load %arg9[%c1_168] : memref<2xf32, #tpu.memory_space<smem>>
    %212 = vector.broadcast %211 : f32 to vector<8x256xf32>
    %213 = arith.mulf %212, %210 : vector<8x256xf32>
    %214 = arith.addf %213, %159 : vector<8x256xf32>
    %215 = arith.addf %1, %159 : vector<8x256xf32>
    %216 = arith.addf %215, %194 : vector<8x256xf32>
    %217 = arith.addf %216, %214 : vector<8x256xf32>
    %c0_169 = arith.constant 0 : index
    %c0_170 = arith.constant 0 : index
    %c0_171 = arith.constant 0 : index
    %218 = vector.load %arg10[%c0_169, %c0_170, %c0_171] : memref<1x8x256xf32, #tpu.memory_space<vmem>>, vector<1x8x256xf32>
    %219 = vector.shape_cast %218 : vector<1x8x256xf32> to vector<8x256xf32>
    %220 = vector.shape_cast %217 : vector<8x256xf32> to vector<1x8x256xf32>
    tpu.vector_store %arg10[%c0_169, %c0_170, %c0_171], %220 {strides = array<i32>} : memref<1x8x256xf32, #tpu.memory_space<vmem>>, vector<1x8x256xf32>,
    return
  }
  func.func @transform_0(%arg0: i32) -> (i32, i32, i32) {
    %c0_i32 = arith.constant 0 : i32
    %c0_i32_0 = arith.constant 0 : i32
    %c0_i32_1 = arith.constant 0 : i32
    return %arg0, %c0_i32, %c0_i32_0 : i32, i32, i32
  }
  func.func @transform_1(%arg0: i32) -> (i32, i32, i32) {
    %c0_i32 = arith.constant 0 : i32
    %c0_i32_0 = arith.constant 0 : i32
    %c0_i32_1 = arith.constant 0 : i32
    %c0_i32_2 = arith.constant 0 : i32
    return %c0_i32, %c0_i32_0, %c0_i32_1 : i32, i32, i32
  }
  func.func @transform_2(%arg0: i32) -> (i32, i32, i32) {
    %c0_i32 = arith.constant 0 : i32
    %c0_i32_0 = arith.constant 0 : i32
    %c0_i32_1 = arith.constant 0 : i32
    %c0_i32_2 = arith.constant 0 : i32
    return %c0_i32, %c0_i32_0, %c0_i32_1 : i32, i32, i32
  }
  func.func @transform_3(%arg0: i32) -> (i32, i32, i32) {
    %c0_i32 = arith.constant 0 : i32
    %c0_i32_0 = arith.constant 0 : i32
    %c0_i32_1 = arith.constant 0 : i32
    %c0_i32_2 = arith.constant 0 : i32
    return %c0_i32, %c0_i32_0, %c0_i32_1 : i32, i32, i32
  }
  func.func @transform_4(%arg0: i32) -> (i32, i32) {
    %c0_i32 = arith.constant 0 : i32
    %c0_i32_0 = arith.constant 0 : i32
    %c0_i32_1 = arith.constant 0 : i32
    return %c0_i32, %c0_i32_0 : i32, i32
  }
  func.func @transform_5(%arg0: i32) -> (i32, i32) {
    %c0_i32 = arith.constant 0 : i32
    %c0_i32_0 = arith.constant 0 : i32
    %c0_i32_1 = arith.constant 0 : i32
    return %c0_i32, %c0_i32_0 : i32, i32
  }
  func.func @transform_6(%arg0: i32) -> (i32, i32) {
    %c0_i32 = arith.constant 0 : i32
    %c0_i32_0 = arith.constant 0 : i32
    %c0_i32_1 = arith.constant 0 : i32
    return %c0_i32, %c0_i32_0 : i32, i32
  }
  func.func @transform_7(%arg0: i32) -> (i32, i32) {
    %c0_i32 = arith.constant 0 : i32
    %c0_i32_0 = arith.constant 0 : i32
    %c0_i32_1 = arith.constant 0 : i32
    return %c0_i32, %c0_i32_0 : i32, i32
  }
  func.func @transform_8(%arg0: i32) -> i32 {
    %c0_i32 = arith.constant 0 : i32
    %c0_i32_0 = arith.constant 0 : i32
    return %c0_i32 : i32
  }
  func.func @transform_9(%arg0: i32) -> (i32, i32, i32) {
    %c0_i32 = arith.constant 0 : i32
    %c0_i32_0 = arith.constant 0 : i32
    %c0_i32_1 = arith.constant 0 : i32
    return %arg0, %c0_i32, %c0_i32_0 : i32, i32, i32
  }
}

</mosaic_0001>

<bundles_post_ra>
// kernel: resnet_block_forward.1
= control target key start
LH: loop header
LB: loop body
LE: loop exit
PB: predicated region body
PF: predicated region fallthrough
CT: control target
= control target key end

     0   :  { %14 = vsyncpa [#allocation3], 0  ;;  %s7610_s0 = inlined_call_operand.vmem [shape: f32[2,8,256], index: 0, kind: input, shape index: {}]   ;;  %s7611_s1 = inlined_call_operand.hbm [shape: f32[9,256,256], index: 1, kind: input, shape index: {}]   ;;  %s7612_s2 = inlined_call_operand.hbm [shape: f32[9,8,8], index: 2, kind: input, shape index: {}]   ;;  %s7613_s3 = inlined_call_operand.hbm [shape: f32[9,8,8], index: 3, kind: input, shape index: {}]   ;;  %s7614_s4 = inlined_call_operand.hbm [shape: f32[1,8], index: 4, kind: input, shape index: {}]   ;;  %s7615_s5 = inlined_call_operand.hbm [shape: f32[1,8], index: 5, kind: input, shape index: {}]   ;;  %s7616_s6 = inlined_call_operand.hbm [shape: f32[8,8], index: 6, kind: input, shape index: {}]   ;;  %s7617_s7 = inlined_call_operand.vmem [shape: f32[10,1], index: 7, kind: input, shape index: {}]   ;;  %s7618_s8 = inlined_call_operand.vmem [shape: f32[2], index: 8, kind: input, shape index: {}]   ;;  %s7619_s9 = inlined_call_operand.vmem [shape: f32[2,8,256], index: 9, kind: output, shape index: {}]  }
   0x1   :  { %15 = vsyncpa [#allocation6], 0 }
   0x2   :  { %16 = vsyncpa [#allocation9], 0 }
   0x3   :  { %17 = vsyncpa [#allocation12], 0 }
   0x4   :  { %18 = vsyncpa [#allocation4], 0  ;;  %s6268_s30 = smov 0  }
   0x5 LB: > { %s274_s12 = sshll.u32 %s7612_s2, 4  ;;  %s6277_s13 = sadd.s32 4294967295, %s6203_s30   ;;  %s6203_s30 = sphi %s6268_s30, %s24_s30   ;;  %s275_s12 = int_to_ptr.hbm [resolvable:$true] %s274_s12 }
   0x6   : > { %p5039_p0 = scmp.ge.s32.totalorder %s6203_s30, 1  ;;  %p249_p1 = scmp.lt.s32.totalorder %s6203_s30, 3 }
   0x7   : > { %p5159_p2 = scmp.eq.s32.totalorder %s6277_s13, 0  ;;  %s6205_s15 = smov [#allocation5]  }
   0x8   : > { %p6282_p3 = pnand %p5039_p0, %p249_p1  ;;  %s276_s16 = sshll.u32 %s6205_s15, 4  ;;  %s277_s16 = int_to_ptr.vmem [resolvable:$true] %s276_s16 }
   0x9   : > { %s303_s19 = sshll.u32 %s7614_s4, 4  ;;  %s6206_s21 = smov [#allocation8]   ;;  %s304_s19 = int_to_ptr.hbm [resolvable:$true] %s303_s19 }
   0xa   : > { %p5137_p4 = pneg %p6282_p3  ;;  %s305_s22 = sshll.u32 %s6206_s21, 4  ;;  %s306_s22 = int_to_ptr.vmem [resolvable:$true] %s305_s22 }
   0xb   : > { %s260_s25 = sshll.u32 %s7611_s1, 4  ;;  %s6207_s26 = smov 128   ;;  %s261_s25 = int_to_ptr.hbm [resolvable:$true] %s260_s25 }
   0xc   : > { %p6293_p5 = pnand %p5159_p2, %p5137_p4  ;;  %s6208_s27 = smov 8  }
   0xd   : > { %s6209_s28 = smov [#allocation2]   ;;  %s6210_s10 = smov 256  }
   0xe   : > { %5143 = dma.hbm_to_vmem [thread:$0]  (!%p6293_p5), %s275_s12, 1152, %s277_s16, [#allocation6], %s6207_s26, %s6207_s26, %s6208_s27  }
   0xf   : > { %5149 = dma.hbm_to_vmem [thread:$0]  (!%p6293_p5), %s304_s19, 16, %s306_s22, [#allocation9]  }
  0x10   : > { %s262_s29 = sshll.u32 %s6209_s28, 4  ;;  %s6211_s11 = smov 16   ;;  %s263_s29 = int_to_ptr.vmem [resolvable:$true] %s262_s29 }
  0x11   : > { %5140 = dma.hbm_to_vmem [thread:$0]  (!%p6293_p5), %s261_s25, 73728, %s263_s29, [#allocation3], %s6210_s10, %s6210_s10, %s6211_s11  }
  0x12   : > { %s288_s18 = sshll.u32 %s7613_s3, 4  ;;  %s6212_s21 = smov [#allocation7]   ;;  %s289_s18 = int_to_ptr.hbm [resolvable:$true] %s288_s18 }
  0x13   : > { %s290_s23 = sshll.u32 %s6212_s21, 4  ;;  %s315_s19 = sshll.u32 %s7615_s5, 4  ;;  %s291_s23 = int_to_ptr.vmem [resolvable:$true] %s290_s23  ;;  %s316_s19 = int_to_ptr.hbm [resolvable:$true] %s315_s19 }
  0x14   : > { %5146 = dma.hbm_to_vmem [thread:$0]  (!%p6293_p5), %s289_s18, 1152, %s291_s23, [#allocation6], %s6207_s26, %s6207_s26, %s6208_s27  }
  0x15   : > { %s6213_s22 = smov [#allocation10]   ;;  %s327_s29 = sshll.u32 %s7616_s6, 4  ;;  %s328_s29 = int_to_ptr.hbm [resolvable:$true] %s327_s29 }
  0x16   : > { %s317_s24 = sshll.u32 %s6213_s22, 4  ;;  %s342_s15 = sshll.u32 %s7618_s8, 4  ;;  %s318_s24 = int_to_ptr.vmem [resolvable:$true] %s317_s24  ;;  %s343_s15 = int_to_ptr.vmem [resolvable:$true] %s342_s15 }
  0x17   : > { %5152 = dma.hbm_to_vmem [thread:$0]  (!%p6293_p5), %s316_s19, 16, %s318_s24, [#allocation9]  }
  0x18   : > { %s6214_s17 = smov [#allocation11]   ;;  %s6215_s26 = smov [#allocation13]  }
  0x19   : > { %s329_s21 = sshll.u32 %s6214_s17, 4  ;;  %363 = sbr.rel (%p6282_p3) target bundleno = 5518 (0x158e), region = 56  ;;  %s330_s21 = int_to_ptr.vmem [resolvable:$true] %s329_s21 }
  0x1a   : > { %5155 = dma.hbm_to_vmem [thread:$0]  (!%p6293_p5), %s328_s29, 128, %s330_s21, [#allocation12]  }
  0x1b   : > { %5158 = dma.vmem_to_smem (!%p6293_p5), %s343_s15, 16, %s6215_s26, [#allocation4]  }
  0x1e   : > { %6182 = dma.done.wait (%p5159_p2), [#allocation3], 73728  }
  0x1f   : > { %6184 = vsyncadd (%p5159_p2), [#allocation3], 4294893568 }
  0x20   : > { %6186 = dma.done.wait (%p5159_p2), [#allocation6], 2304  }
  0x21   : > { %6188 = vsyncadd (%p5159_p2), [#allocation6], 4294964992 }
  0x22   : > { %6190 = dma.done.wait (%p5159_p2), [#allocation9], 32  }
  0x23   : > { %6192 = vsyncadd (%p5159_p2), [#allocation9], 4294967264 }
  0x24   : > { %6194 = dma.done.wait (%p5159_p2), [#allocation12], 128  }
  0x25   : > { %6196 = vsyncadd (%p5159_p2), [#allocation12], 4294967168 }
  0x26   : > { %6198 = dma.done.wait (%p5159_p2), [#allocation4], 16  }
  0x27   : > { %6200 = vsyncadd (%p5159_p2), [#allocation4], 4294967280 }
  0x28   : > { %400 = sfence }
  0x29   : > { %v474_v0 = vld [vmem:[#allocation2 + $0xf8] sm:$0xff]  ;;  %v472_v2 = vld [vmem:[#allocation2 + $0xe8] sm:$0xff]  ;;  %v473_v6 = vld [vmem:[#allocation2 + $0xf0] sm:$0xff]  ;;  %p431_p6 = scmp.lt.s32.totalorder %s6277_s13, 1  ;;  %vm735_vm0 = vcmask 64512   ;;  %s4779_s22 = sld [smem:[#allocation13]] }
  0x2a   : > { %v506_v1 = vld [vmem:[#allocation2 + $0x1f8] sm:$0xff]  ;;  %547 = vmatpush.msra.mxu2 %v474_v0  ;;  %v504_v3 = vld [vmem:[#allocation2 + $0x1e8] sm:$0xff]  ;;  %v505_v7 = vld [vmem:[#allocation2 + $0x1f0] sm:$0xff]  ;;  %507 = vmatpush.msra.mxu0 %v473_v6  ;;  %s5104_s24 = sld [smem:[#allocation13 + $0x1]] }
  0x2b   : > { %567 = vmatpush.msra.mxu3 %v506_v1  ;;  %v470_v4 = vld [vmem:[#allocation2 + $0xd8] sm:$0xff]  ;;  %v471_v8 = vld [vmem:[#allocation2 + $0xe0] sm:$0xff]  ;;  %527 = vmatpush.msra.mxu1 %v505_v7  ;;  %v468_v10 = vld [vmem:[#allocation2 + $0xc8] sm:$0xff]  ;;  %s7682_s13 = smov (!%p431_p6, %s6277_s13), 1 }
  0x2c   : > { %v502_v5 = vld [vmem:[#allocation2 + $0x1d8] sm:$0xff]  ;;  %548 = vmatpush.msra.mxu2 %v472_v2  ;;  %v503_v9 = vld [vmem:[#allocation2 + $0x1e0] sm:$0xff]  ;;  %v500_v11 = vld [vmem:[#allocation2 + $0x1c8] sm:$0xff]  ;;  %508 = vmatpush.msra.mxu0 %v471_v8  ;;  %s5107_s14 = sshll.u32 %s7682_s13, 4 }
  0x2d   : > { %568 = vmatpush.msra.mxu3 %v504_v3  ;;  %v469_v12 = vld [vmem:[#allocation2 + $0xd0] sm:$0xff]  ;;  %528 = vmatpush.msra.mxu1 %v503_v9  ;;  %v466_v14 = vld [vmem:[#allocation2 + $0xb8] sm:$0xff]  ;;  %v467_v16 = vld [vmem:[#allocation2 + $0xc0] sm:$0xff]  ;;  %s6360_s18 = scalar_lea.vmem %s7610_s0, %s5107_s14  ;;  %s440_s29 = scalar_lea.vmem %s7619_s9, %s5107_s14 }
  0x2e   : > { %549 = vmatpush.msra.mxu2 %v470_v4  ;;  %v501_v13 = vld [vmem:[#allocation2 + $0x1d0] sm:$0xff]  ;;  %v498_v15 = vld [vmem:[#allocation2 + $0x1b8] sm:$0xff]  ;;  %v499_v17 = vld [vmem:[#allocation2 + $0x1c0] sm:$0xff]  ;;  %509 = vmatpush.msra.mxu0 %v469_v12 }
  0x2f   : > { %569 = vmatpush.msra.mxu3 %v502_v5  ;;  %529 = vmatpush.msra.mxu1 %v501_v13  ;;  %v464_v18 = vld [vmem:[#allocation2 + $0xa8] sm:$0xff]  ;;  %v465_v20 = vld [vmem:[#allocation2 + $0xb0] sm:$0xff]  ;;  %v462_v22 = vld [vmem:[#allocation2 + $0x98] sm:$0xff] }
  0x30   : > { %550 = vmatpush.msra.mxu2 %v468_v10  ;;  %v496_v19 = vld [vmem:[#allocation2 + $0x1a8] sm:$0xff]  ;;  %v497_v21 = vld [vmem:[#allocation2 + $0x1b0] sm:$0xff]  ;;  %510 = vmatpush.msra.mxu0 %v467_v16  ;;  %v494_v23 = vld [vmem:[#allocation2 + $0x198] sm:$0xff] }
  0x31   : > { %570 = vmatpush.msra.mxu3 %v500_v11  ;;  %530 = vmatpush.msra.mxu1 %v499_v17  ;;  %v463_v24 = vld [vmem:[#allocation2 + $0xa0] sm:$0xff]  ;;  %v460_v26 = vld [vmem:[#allocation2 + $0x88] sm:$0xff]  ;;  %v461_v28 = vld [vmem:[#allocation2 + $0x90] sm:$0xff] }
  0x32   : > { %551 = vmatpush.msra.mxu2 %v466_v14  ;;  %v495_v25 = vld [vmem:[#allocation2 + $0x1a0] sm:$0xff]  ;;  %511 = vmatpush.msra.mxu0 %v465_v20  ;;  %v492_v27 = vld [vmem:[#allocation2 + $0x188] sm:$0xff]  ;;  %v493_v29 = vld [vmem:[#allocation2 + $0x190] sm:$0xff] }
  0x33   : > { %571 = vmatpush.msra.mxu3 %v498_v15  ;;  %531 = vmatpush.msra.mxu1 %v497_v21  ;;  %v458_v30 = vld [vmem:[#allocation2 + $0x78] sm:$0xff]  ;;  %v459_v32 = vld [vmem:[#allocation2 + $0x80] sm:$0xff]  ;;  %v456_v34 = vld [vmem:[#allocation2 + $0x68] sm:$0xff] }
  0x34   : > { %552 = vmatpush.msra.mxu2 %v464_v18  ;;  %512 = vmatpush.msra.mxu0 %v463_v24  ;;  %v490_v31 = vld [vmem:[#allocation2 + $0x178] sm:$0xff]  ;;  %v491_v33 = vld [vmem:[#allocation2 + $0x180] sm:$0xff]  ;;  %v488_v35 = vld [vmem:[#allocation2 + $0x168] sm:$0xff] }
  0x35   : > { %572 = vmatpush.msra.mxu3 %v496_v19  ;;  %532 = vmatpush.msra.mxu1 %v495_v25  ;;  %v457_v36 = vld [vmem:[#allocation2 + $0x70] sm:$0xff]  ;;  %v454_v38 = vld [vmem:[#allocation2 + $0x58] sm:$0xff]  ;;  %v455_v40 = vld [vmem:[#allocation2 + $0x60] sm:$0xff] }
  0x36   : > { %553 = vmatpush.msra.mxu2 %v462_v22  ;;  %513 = vmatpush.msra.mxu0 %v461_v28  ;;  %v489_v37 = vld [vmem:[#allocation2 + $0x170] sm:$0xff]  ;;  %v486_v39 = vld [vmem:[#allocation2 + $0x158] sm:$0xff]  ;;  %v487_v41 = vld [vmem:[#allocation2 + $0x160] sm:$0xff] }
  0x37   : > { %573 = vmatpush.msra.mxu3 %v494_v23  ;;  %533 = vmatpush.msra.mxu1 %v493_v29  ;;  %v452_v42 = vld [vmem:[#allocation2 + $0x48] sm:$0xff]  ;;  %v453_v44 = vld [vmem:[#allocation2 + $0x50] sm:$0xff]  ;;  %v450_v46 = vld [vmem:[#allocation2 + $0x38] sm:$0xff] }
  0x38   : > { %554 = vmatpush.msra.mxu2 %v460_v26  ;;  %514 = vmatpush.msra.mxu0 %v459_v32  ;;  %v484_v43 = vld [vmem:[#allocation2 + $0x148] sm:$0xff]  ;;  %v485_v45 = vld [vmem:[#allocation2 + $0x150] sm:$0xff]  ;;  %v482_v47 = vld [vmem:[#allocation2 + $0x138] sm:$0xff] }
  0x39   : > { %574 = vmatpush.msra.mxu3 %v492_v27  ;;  %534 = vmatpush.msra.mxu1 %v491_v33  ;;  %v451_v48 = vld [vmem:[#allocation2 + $0x40] sm:$0xff]  ;;  %v448_v50 = vld [vmem:[#allocation2 + $0x28] sm:$0xff]  ;;  %v449_v52 = vld [vmem:[#allocation2 + $0x30] sm:$0xff] }
  0x3a   : > { %555 = vmatpush.msra.mxu2 %v458_v30  ;;  %515 = vmatpush.msra.mxu0 %v457_v36  ;;  %v483_v49 = vld [vmem:[#allocation2 + $0x140] sm:$0xff]  ;;  %v480_v51 = vld [vmem:[#allocation2 + $0x128] sm:$0xff]  ;;  %v481_v53 = vld [vmem:[#allocation2 + $0x130] sm:$0xff] }
  0x3b   : > { %575 = vmatpush.msra.mxu3 %v490_v31  ;;  %535 = vmatpush.msra.mxu1 %v489_v37  ;;  %v446_v54 = vld [vmem:[#allocation2 + $0x18] sm:$0xff]  ;;  %v447_v56 = vld [vmem:[#allocation2 + $0x20] sm:$0xff]  ;;  %v444_v58 = vld [vmem:[#allocation2 + $0x8] sm:$0xff] }
  0x3c   : > { %556 = vmatpush.msra.mxu2 %v456_v34  ;;  %516 = vmatpush.msra.mxu0 %v455_v40  ;;  %v478_v55 = vld [vmem:[#allocation2 + $0x118] sm:$0xff]  ;;  %v479_v57 = vld [vmem:[#allocation2 + $0x120] sm:$0xff]  ;;  %v476_v59 = vld [vmem:[#allocation2 + $0x108] sm:$0xff] }
  0x3d   : > { %576 = vmatpush.msra.mxu3 %v488_v35  ;;  %536 = vmatpush.msra.mxu1 %v487_v41  ;;  %v6363_v60 = vld [vmem:[%s6360_s18] sm:$0xff]  ;;  %v6366_v61 = vld [vmem:[%s6360_s18 + $0x8] sm:$0xff]  ;;  %v620_v62 = vld [vmem:[#allocation2 + $0x2f8] sm:$0xff] }
  0x3e   : > { %557 = vmatpush.msra.mxu2 %v454_v38  ;;  %517 = vmatpush.msra.mxu0 %v453_v44  ;;  %v652_v63 = vld [vmem:[#allocation2 + $0x3f8] sm:$0xff]  ;;  %v445_v0 = vld [vmem:[#allocation2 + $0x10] sm:$0xff]  ;;  %v618_v2 = vld [vmem:[#allocation2 + $0x2e8] sm:$0xff] }
  0x3f   : > { %577 = vmatpush.msra.mxu3 %v486_v39  ;;  %537 = vmatpush.msra.mxu1 %v485_v45  ;;  %v477_v1 = vld [vmem:[#allocation2 + $0x110] sm:$0xff]  ;;  %v650_v3 = vld [vmem:[#allocation2 + $0x3e8] sm:$0xff]  ;;  %v443_v4 = vld [vmem:[#allocation2] sm:$0xff] }
  0x40   : > { %558 = vmatpush.msra.mxu2 %v452_v42  ;;  %518 = vmatpush.msra.mxu0 %v451_v48  ;;  %v475_v5 = vld [vmem:[#allocation2 + $0x100] sm:$0xff]  ;;  %v616_v6 = vld [vmem:[#allocation2 + $0x2d8] sm:$0xff]  ;;  %v619_v8 = vld [vmem:[#allocation2 + $0x2f0] sm:$0xff] }
  0x41   : > { %578 = vmatpush.msra.mxu3 %v484_v43  ;;  %538 = vmatpush.msra.mxu1 %v483_v49  ;;  %v648_v7 = vld [vmem:[#allocation2 + $0x3d8] sm:$0xff]  ;;  %v651_v9 = vld [vmem:[#allocation2 + $0x3f0] sm:$0xff]  ;;  %v614_v10 = vld [vmem:[#allocation2 + $0x2c8] sm:$0xff] }
  0x42   : > { %559 = vmatpush.msra.mxu2 %v450_v46  ;;  %519 = vmatpush.msra.mxu0 %v449_v52  ;;  %v646_v11 = vld [vmem:[#allocation2 + $0x3c8] sm:$0xff]  ;;  %v617_v12 = vld [vmem:[#allocation2 + $0x2e0] sm:$0xff]  ;;  %v612_v14 = vld [vmem:[#allocation2 + $0x2b8] sm:$0xff] }
  0x43   : > { %579 = vmatpush.msra.mxu3 %v482_v47  ;;  %539 = vmatpush.msra.mxu1 %v481_v53  ;;  %v649_v13 = vld [vmem:[#allocation2 + $0x3e0] sm:$0xff]  ;;  %v644_v15 = vld [vmem:[#allocation2 + $0x3b8] sm:$0xff]  ;;  %v615_v16 = vld [vmem:[#allocation2 + $0x2d0] sm:$0xff] }
  0x44   : > { %560 = vmatpush.msra.mxu2 %v448_v50  ;;  %520 = vmatpush.msra.mxu0 %v447_v56  ;;  %v647_v17 = vld [vmem:[#allocation2 + $0x3d0] sm:$0xff]  ;;  %v610_v18 = vld [vmem:[#allocation2 + $0x2a8] sm:$0xff]  ;;  %v613_v20 = vld [vmem:[#allocation2 + $0x2c0] sm:$0xff] }
  0x45   : > { %580 = vmatpush.msra.mxu3 %v480_v51  ;;  %540 = vmatpush.msra.mxu1 %v479_v57  ;;  %v642_v19 = vld [vmem:[#allocation2 + $0x3a8] sm:$0xff]  ;;  %v645_v21 = vld [vmem:[#allocation2 + $0x3c0] sm:$0xff]  ;;  %v608_v22 = vld [vmem:[#allocation2 + $0x298] sm:$0xff] }
  0x46   : > { %561 = vmatpush.msra.mxu2 %v446_v54  ;;  %521 = vmatpush.msra.mxu0 %v445_v0  ;;  %v640_v23 = vld [vmem:[#allocation2 + $0x398] sm:$0xff]  ;;  %v611_v24 = vld [vmem:[#allocation2 + $0x2b0] sm:$0xff]  ;;  %v606_v26 = vld [vmem:[#allocation2 + $0x288] sm:$0xff] }
  0x47   : > { %581 = vmatpush.msra.mxu3 %v478_v55  ;;  %541 = vmatpush.msra.mxu1 %v477_v1  ;;  %v643_v25 = vld [vmem:[#allocation2 + $0x3b0] sm:$0xff]  ;;  %v638_v27 = vld [vmem:[#allocation2 + $0x388] sm:$0xff]  ;;  %v609_v28 = vld [vmem:[#allocation2 + $0x2a0] sm:$0xff] }
  0x48   : > { %562 = vmatpush.msra.mxu2 %v444_v58  ;;  %522 = vmatpush.msra.mxu0 %v443_v4  ;;  %v641_v29 = vld [vmem:[#allocation2 + $0x3a0] sm:$0xff]  ;;  %v604_v30 = vld [vmem:[#allocation2 + $0x278] sm:$0xff]  ;;  %v607_v32 = vld [vmem:[#allocation2 + $0x290] sm:$0xff] }
  0x49   : > { %582 = vmatpush.msra.mxu3 %v476_v59  ;;  %563 = vmatmul.f32.vlgmr.msra.gmra.mxu2 %v6363_v60  ;;  %v636_v31 = vld [vmem:[#allocation2 + $0x378] sm:$0xff]  ;;  %v639_v33 = vld [vmem:[#allocation2 + $0x390] sm:$0xff]  ;;  %v602_v34 = vld [vmem:[#allocation2 + $0x268] sm:$0xff] }
  0x4a   : > { %583 = vmatmul.f32.vlgmr.msra.gmra.mxu3 %v6366_v61  ;;  %693 = vmatpush.msrb.mxu2 %v620_v62  ;;  %v634_v35 = vld [vmem:[#allocation2 + $0x368] sm:$0xff]  ;;  %v605_v36 = vld [vmem:[#allocation2 + $0x280] sm:$0xff]  ;;  %v600_v38 = vld [vmem:[#allocation2 + $0x258] sm:$0xff] }
  0x4b   : > { %713 = vmatpush.msrb.mxu3 %v652_v63  ;;  %542 = vmatpush.msra.mxu1 %v475_v5  ;;  %v637_v37 = vld [vmem:[#allocation2 + $0x380] sm:$0xff]  ;;  %v632_v39 = vld [vmem:[#allocation2 + $0x358] sm:$0xff]  ;;  %v603_v40 = vld [vmem:[#allocation2 + $0x270] sm:$0xff] }
  0x4c   : > { %694 = vmatpush.msrb.mxu2 %v618_v2  ;;  %523 = vmatmul.f32.vlgmr.msra.gmra.mxu0 %v6363_v60  ;;  %v635_v41 = vld [vmem:[#allocation2 + $0x370] sm:$0xff]  ;;  %v598_v42 = vld [vmem:[#allocation2 + $0x248] sm:$0xff]  ;;  %v601_v44 = vld [vmem:[#allocation2 + $0x260] sm:$0xff] }
  0x4d   : > { %714 = vmatpush.msrb.mxu3 %v650_v3  ;;  %543 = vmatmul.f32.vlgmr.msra.gmra.mxu1 %v6366_v61  ;;  %v630_v43 = vld [vmem:[#allocation2 + $0x348] sm:$0xff]  ;;  %v633_v45 = vld [vmem:[#allocation2 + $0x360] sm:$0xff]  ;;  %v596_v46 = vld [vmem:[#allocation2 + $0x238] sm:$0xff] }
  0x4e   : > { %695 = vmatpush.msrb.mxu2 %v616_v6  ;;  %653 = vmatpush.msrb.mxu0 %v619_v8  ;;  %v628_v47 = vld [vmem:[#allocation2 + $0x338] sm:$0xff]  ;;  %v599_v48 = vld [vmem:[#allocation2 + $0x250] sm:$0xff]  ;;  %v594_v50 = vld [vmem:[#allocation2 + $0x228] sm:$0xff] }
  0x4f   : > { %715 = vmatpush.msrb.mxu3 %v648_v7  ;;  %673 = vmatpush.msrb.mxu1 %v651_v9  ;;  %v631_v49 = vld [vmem:[#allocation2 + $0x350] sm:$0xff]  ;;  %v626_v51 = vld [vmem:[#allocation2 + $0x328] sm:$0xff]  ;;  %v597_v52 = vld [vmem:[#allocation2 + $0x240] sm:$0xff] }
  0x50   : > { %696 = vmatpush.msrb.mxu2 %v614_v10  ;;  %654 = vmatpush.msrb.mxu0 %v617_v12  ;;  %v629_v53 = vld [vmem:[#allocation2 + $0x340] sm:$0xff]  ;;  %v592_v54 = vld [vmem:[#allocation2 + $0x218] sm:$0xff]  ;;  %v595_v56 = vld [vmem:[#allocation2 + $0x230] sm:$0xff] }
  0x51   : > { %716 = vmatpush.msrb.mxu3 %v646_v11  ;;  %674 = vmatpush.msrb.mxu1 %v649_v13  ;;  %v624_v55 = vld [vmem:[#allocation2 + $0x318] sm:$0xff]  ;;  %v627_v57 = vld [vmem:[#allocation2 + $0x330] sm:$0xff]  ;;  %v590_v58 = vld [vmem:[#allocation2 + $0x208] sm:$0xff] }
  0x52   : > { %697 = vmatpush.msrb.mxu2 %v612_v14  ;;  %655 = vmatpush.msrb.mxu0 %v615_v16  ;;  %v622_v59 = vld [vmem:[#allocation2 + $0x308] sm:$0xff]  ;;  %v593_v62 = vld [vmem:[#allocation2 + $0x220] sm:$0xff]  ;;  %v591_v0 = vld [vmem:[#allocation2 + $0x210] sm:$0xff] }
  0x53   : > { %717 = vmatpush.msrb.mxu3 %v644_v15  ;;  %675 = vmatpush.msrb.mxu1 %v647_v17  ;;  %v625_v63 = vld [vmem:[#allocation2 + $0x320] sm:$0xff]  ;;  %v623_v1 = vld [vmem:[#allocation2 + $0x310] sm:$0xff]  ;;  %v854_v9 = vld [vmem:[#allocation2 + $0x4f8] sm:$0xff] }
  0x54   : > { %698 = vmatpush.msrb.mxu2 %v610_v18  ;;  %656 = vmatpush.msrb.mxu0 %v613_v20  ;;  %v589_v2 = vld [vmem:[#allocation2 + $0x200] sm:$0xff]  ;;  %v886_v11 = vld [vmem:[#allocation2 + $0x5f8] sm:$0xff]  ;;  %v852_v13 = vld [vmem:[#allocation2 + $0x4e8] sm:$0xff] }
  0x55   : > { %718 = vmatpush.msrb.mxu3 %v642_v19  ;;  %676 = vmatpush.msrb.mxu1 %v645_v21  ;;  %v621_v3 = vld [vmem:[#allocation2 + $0x300] sm:$0xff]  ;;  %v884_v14 = vld [vmem:[#allocation2 + $0x5e8] sm:$0xff]  ;;  %v850_v15 = vld [vmem:[#allocation2 + $0x4d8] sm:$0xff] }
  0x56   : > { %699 = vmatpush.msrb.mxu2 %v608_v22  ;;  %657 = vmatpush.msrb.mxu0 %v611_v24  ;;  %v587_v12 = vld [vmem:[#allocation5] sm:$0xff]  ;;  %v882_v16 = vld [vmem:[#allocation2 + $0x5d8] sm:$0xff]  ;;  %v848_v17 = vld [vmem:[#allocation2 + $0x4c8] sm:$0xff] }
  0x57   : > { %719 = vmatpush.msrb.mxu3 %v640_v23  ;;  %677 = vmatpush.msrb.mxu1 %v643_v25  ;;  %v880_v18 = vld [vmem:[#allocation2 + $0x5c8] sm:$0xff]  ;;  %v846_v19 = vld [vmem:[#allocation2 + $0x4b8] sm:$0xff] }
  0x58   : > { %700 = vmatpush.msrb.mxu2 %v606_v26  ;;  %658 = vmatpush.msrb.mxu0 %v609_v28  ;;  %v878_v20 = vld [vmem:[#allocation2 + $0x5b8] sm:$0xff]  ;;  %v844_v21 = vld [vmem:[#allocation2 + $0x4a8] sm:$0xff] }
  0x59   : > { %720 = vmatpush.msrb.mxu3 %v638_v27  ;;  %678 = vmatpush.msrb.mxu1 %v641_v29  ;;  %v876_v22 = vld [vmem:[#allocation2 + $0x5a8] sm:$0xff]  ;;  %v842_v23 = vld [vmem:[#allocation2 + $0x498] sm:$0xff] }
  0x5a   : > { %701 = vmatpush.msrb.mxu2 %v604_v30  ;;  %659 = vmatpush.msrb.mxu0 %v607_v32  ;;  %v874_v24 = vld [vmem:[#allocation2 + $0x598] sm:$0xff]  ;;  %v840_v25 = vld [vmem:[#allocation2 + $0x488] sm:$0xff] }
  0x5b   : > { %721 = vmatpush.msrb.mxu3 %v636_v31  ;;  %679 = vmatpush.msrb.mxu1 %v639_v33  ;;  %v872_v26 = vld [vmem:[#allocation2 + $0x588] sm:$0xff]  ;;  %v838_v27 = vld [vmem:[#allocation2 + $0x478] sm:$0xff] }
  0x5c   : > { %702 = vmatpush.msrb.mxu2 %v602_v34  ;;  %660 = vmatpush.msrb.mxu0 %v605_v36  ;;  %v870_v28 = vld [vmem:[#allocation2 + $0x578] sm:$0xff]  ;;  %v836_v29 = vld [vmem:[#allocation2 + $0x468] sm:$0xff] }
  0x5d   : > { %722 = vmatpush.msrb.mxu3 %v634_v35  ;;  %680 = vmatpush.msrb.mxu1 %v637_v37  ;;  %v868_v30 = vld [vmem:[#allocation2 + $0x568] sm:$0xff]  ;;  %v834_v31 = vld [vmem:[#allocation2 + $0x458] sm:$0xff] }
  0x5e   : > { %703 = vmatpush.msrb.mxu2 %v600_v38  ;;  %661 = vmatpush.msrb.mxu0 %v603_v40  ;;  %v866_v32 = vld [vmem:[#allocation2 + $0x558] sm:$0xff]  ;;  %v832_v33 = vld [vmem:[#allocation2 + $0x448] sm:$0xff] }
  0x5f   : > { %723 = vmatpush.msrb.mxu3 %v632_v39  ;;  %681 = vmatpush.msrb.mxu1 %v635_v41  ;;  %v864_v34 = vld [vmem:[#allocation2 + $0x548] sm:$0xff]  ;;  %v830_v35 = vld [vmem:[#allocation2 + $0x438] sm:$0xff] }
  0x60   : > { %704 = vmatpush.msrb.mxu2 %v598_v42  ;;  %662 = vmatpush.msrb.mxu0 %v601_v44  ;;  %v862_v36 = vld [vmem:[#allocation2 + $0x538] sm:$0xff]  ;;  %v828_v37 = vld [vmem:[#allocation2 + $0x428] sm:$0xff] }
  0x61   : > { %724 = vmatpush.msrb.mxu3 %v630_v43  ;;  %682 = vmatpush.msrb.mxu1 %v633_v45  ;;  %v860_v38 = vld [vmem:[#allocation2 + $0x528] sm:$0xff]  ;;  %v826_v39 = vld [vmem:[#allocation2 + $0x418] sm:$0xff] }
  0x62   : > { %705 = vmatpush.msrb.mxu2 %v596_v46  ;;  %663 = vmatpush.msrb.mxu0 %v599_v48  ;;  %v858_v40 = vld [vmem:[#allocation2 + $0x518] sm:$0xff]  ;;  %v824_v41 = vld [vmem:[#allocation2 + $0x408] sm:$0xff]  ;;  %v853_v48 = vld [vmem:[#allocation2 + $0x4f0] sm:$0xff] }
  0x63   : > { %725 = vmatpush.msrb.mxu3 %v628_v47  ;;  %683 = vmatpush.msrb.mxu1 %v631_v49  ;;  %v856_v42 = vld [vmem:[#allocation2 + $0x508] sm:$0xff] }
  0x64   : > { %706 = vmatpush.msrb.mxu2 %v594_v50  ;;  %664 = vmatpush.msrb.mxu0 %v597_v52  ;;  %v885_v50 = vld [vmem:[#allocation2 + $0x5f0] sm:$0xff] }
  0x65   : > { %726 = vmatpush.msrb.mxu3 %v626_v51  ;;  %684 = vmatpush.msrb.mxu1 %v629_v53  ;;  %v1045_v51 = vld [vmem:[#allocation2 + $0x6f0] sm:$0xff]  ;;  %v851_v53 = vld [vmem:[#allocation2 + $0x4e0] sm:$0xff] }
  0x66   : > { %707 = vmatpush.msrb.mxu2 %v592_v54  ;;  %665 = vmatpush.msrb.mxu0 %v595_v56  ;;  %v1077_v52 = vld [vmem:[#allocation2 + $0x7f0] sm:$0xff]  ;;  %v883_v54 = vld [vmem:[#allocation2 + $0x5e0] sm:$0xff] }
  0x67   : > { %727 = vmatpush.msrb.mxu3 %v624_v55  ;;  %685 = vmatpush.msrb.mxu1 %v627_v57  ;;  %v1043_v55 = vld [vmem:[#allocation2 + $0x6e0] sm:$0xff]  ;;  %v849_v57 = vld [vmem:[#allocation2 + $0x4d0] sm:$0xff] }
  0x68   : > { %708 = vmatpush.msrb.mxu2 %v590_v58  ;;  %666 = vmatpush.msrb.mxu0 %v593_v62  ;;  %v1075_v56 = vld [vmem:[#allocation2 + $0x7e0] sm:$0xff]  ;;  %v881_v58 = vld [vmem:[#allocation2 + $0x5d0] sm:$0xff] }
  0x69   : > { %728 = vmatpush.msrb.mxu3 %v622_v59  ;;  %709 = vmatmul.f32.vlgmr.msrb.gmra.mxu2 %v6363_v60  ;;  %v1041_v59 = vld [vmem:[#allocation2 + $0x6d0] sm:$0xff] }
  0x6a   : > { %729 = vmatmul.f32.vlgmr.msrb.gmra.mxu3 %v6366_v61  ;;  %686 = vmatpush.msrb.mxu1 %v625_v63  ;;  %v1073_v62 = vld [vmem:[#allocation2 + $0x7d0] sm:$0xff]  ;;  %v847_v63 = vld [vmem:[#allocation2 + $0x4c0] sm:$0xff] }
  0x6b   : > { %667 = vmatpush.msrb.mxu0 %v591_v0  ;;  %v879_v0 = vld [vmem:[#allocation2 + $0x5c0] sm:$0xff] }
  0x6c   : > { %687 = vmatpush.msrb.mxu1 %v623_v1  ;;  %v1039_v1 = vld [vmem:[#allocation2 + $0x6c0] sm:$0xff] }
  0x6d   : > { %668 = vmatpush.msrb.mxu0 %v589_v2  ;;  %v1071_v2 = vld [vmem:[#allocation2 + $0x7c0] sm:$0xff] }
  0x6e   : > { %688 = vmatpush.msrb.mxu1 %v621_v3  ;;  %669 = vmatmul.f32.vlgmr.msrb.gmra.mxu0 %v6363_v60  ;;  %v845_v3 = vld [vmem:[#allocation2 + $0x4b0] sm:$0xff] }
  0x6f   : > { %689 = vmatmul.f32.vlgmr.msrb.gmra.mxu1 %v6366_v61 }
  0xc9   : > { %v524_v4 = vpop.f32.mrf.mxu0 }
  0xca   : > { %v544_v5 = vpop.f32.mrf.mxu1 }
  0xcb   : > { %v545_v6 = vadd.f32 %v544_v5, %v524_v4  ;;  %v877_v4 = vld [vmem:[#allocation2 + $0x5b0] sm:$0xff] }
  0xcc   : > { %v564_v7 = vpop.f32.mrf.mxu2  ;;  %v1037_v5 = vld [vmem:[#allocation2 + $0x6b0] sm:$0xff] }
  0xcd   : > { %v584_v8 = vpop.f32.mrf.mxu3  ;;  %797 = vmatpush.msra.mxu2 %v545_v6  ;;  %v1069_v6 = vld [vmem:[#allocation2 + $0x7b0] sm:$0xff] }
  0xce   : > { %v585_v10 = vadd.f32 %v584_v8, %v564_v7  ;;  %5062 = vmatmul.msk.f32.vlgmr.msra.gmra.mxu2 %vm735_vm0, %v587_v12  ;;  %v843_v7 = vld [vmem:[#allocation2 + $0x4a0] sm:$0xff] }
  0xcf   : > { %927 = vmatpush.msrb.mxu2 %v854_v9  ;;  %v875_v8 = vld [vmem:[#allocation2 + $0x5a0] sm:$0xff] }
  0xd0   : > { %817 = vmatpush.msra.mxu3 %v585_v10  ;;  %v1035_v9 = vld [vmem:[#allocation2 + $0x6a0] sm:$0xff] }
  0xd1   : > { %928 = vmatpush.msrb.mxu2 %v852_v13  ;;  %5063 = vmatmul.msk.f32.vlgmr.msra.gmra.mxu3 %vm735_vm0, %v587_v12  ;;  %v1067_v10 = vld [vmem:[#allocation2 + $0x7a0] sm:$0xff]  ;;  %v873_v12 = vld [vmem:[#allocation2 + $0x590] sm:$0xff] }
  0xd2   : > { %947 = vmatpush.msrb.mxu3 %v886_v11  ;;  %v841_v11 = vld [vmem:[#allocation2 + $0x490] sm:$0xff] }
  0xd3   : > { %929 = vmatpush.msrb.mxu2 %v850_v15  ;;  %v1033_v13 = vld [vmem:[#allocation2 + $0x690] sm:$0xff]  ;;  %v839_v15 = vld [vmem:[#allocation2 + $0x480] sm:$0xff] }
  0xd4   : > { %948 = vmatpush.msrb.mxu3 %v884_v14  ;;  %v1065_v14 = vld [vmem:[#allocation2 + $0x790] sm:$0xff] }
  0xd5   : > { %930 = vmatpush.msrb.mxu2 %v848_v17  ;;  %v1031_v17 = vld [vmem:[#allocation2 + $0x680] sm:$0xff] }
  0xd6   : > { %949 = vmatpush.msrb.mxu3 %v882_v16  ;;  %v871_v16 = vld [vmem:[#allocation2 + $0x580] sm:$0xff] }
  0xd7   : > { %931 = vmatpush.msrb.mxu2 %v846_v19  ;;  %v837_v19 = vld [vmem:[#allocation2 + $0x470] sm:$0xff] }
  0xd8   : > { %950 = vmatpush.msrb.mxu3 %v880_v18  ;;  %v1063_v18 = vld [vmem:[#allocation2 + $0x780] sm:$0xff] }
  0xd9   : > { %932 = vmatpush.msrb.mxu2 %v844_v21  ;;  %v1029_v21 = vld [vmem:[#allocation2 + $0x670] sm:$0xff] }
  0xda   : > { %951 = vmatpush.msrb.mxu3 %v878_v20  ;;  %v869_v20 = vld [vmem:[#allocation2 + $0x570] sm:$0xff] }
  0xdb   : > { %933 = vmatpush.msrb.mxu2 %v842_v23  ;;  %v835_v23 = vld [vmem:[#allocation2 + $0x460] sm:$0xff] }
  0xdc   : > { %952 = vmatpush.msrb.mxu3 %v876_v22  ;;  %v1061_v22 = vld [vmem:[#allocation2 + $0x770] sm:$0xff] }
  0xdd   : > { %934 = vmatpush.msrb.mxu2 %v840_v25  ;;  %v1027_v25 = vld [vmem:[#allocation2 + $0x660] sm:$0xff] }
  0xde   : > { %953 = vmatpush.msrb.mxu3 %v874_v24  ;;  %v867_v24 = vld [vmem:[#allocation2 + $0x560] sm:$0xff] }
  0xdf   : > { %935 = vmatpush.msrb.mxu2 %v838_v27  ;;  %v833_v27 = vld [vmem:[#allocation2 + $0x450] sm:$0xff] }
  0xe0   : > { %954 = vmatpush.msrb.mxu3 %v872_v26  ;;  %v1059_v26 = vld [vmem:[#allocation2 + $0x760] sm:$0xff] }
  0xe1   : > { %936 = vmatpush.msrb.mxu2 %v836_v29  ;;  %v1025_v29 = vld [vmem:[#allocation2 + $0x650] sm:$0xff] }
  0xe2   : > { %955 = vmatpush.msrb.mxu3 %v870_v28  ;;  %v865_v28 = vld [vmem:[#allocation2 + $0x550] sm:$0xff] }
  0xe3   : > { %937 = vmatpush.msrb.mxu2 %v834_v31  ;;  %v831_v31 = vld [vmem:[#allocation2 + $0x440] sm:$0xff] }
  0xe4   : > { %956 = vmatpush.msrb.mxu3 %v868_v30  ;;  %v1057_v30 = vld [vmem:[#allocation2 + $0x750] sm:$0xff] }
  0xe5   : > { %938 = vmatpush.msrb.mxu2 %v832_v33  ;;  %v1023_v33 = vld [vmem:[#allocation2 + $0x640] sm:$0xff] }
  0xe6   : > { %957 = vmatpush.msrb.mxu3 %v866_v32  ;;  %v863_v32 = vld [vmem:[#allocation2 + $0x540] sm:$0xff] }
  0xe7   : > { %939 = vmatpush.msrb.mxu2 %v830_v35  ;;  %v734_v35 = vld [vmem:[#allocation5 + $0x8] sm:$0xff] }
  0xe8   : > { %958 = vmatpush.msrb.mxu3 %v864_v34  ;;  %v1055_v34 = vld [vmem:[#allocation2 + $0x740] sm:$0xff] }
  0xe9   : > { %940 = vmatpush.msrb.mxu2 %v828_v37  ;;  %v861_v37 = vld [vmem:[#allocation2 + $0x530] sm:$0xff] }
  0xea   : > { %959 = vmatpush.msrb.mxu3 %v862_v36  ;;  %v829_v36 = vld [vmem:[#allocation2 + $0x430] sm:$0xff] }
  0xeb   : > { %941 = vmatpush.msrb.mxu2 %v826_v39  ;;  %v670_v43 = vpop.f32.mrf.mxu0  ;;  %v1053_v39 = vld [vmem:[#allocation2 + $0x730] sm:$0xff] }
  0xec   : > { %960 = vmatpush.msrb.mxu3 %v860_v38  ;;  %v690_v44 = vpop.f32.mrf.mxu1  ;;  %v710_v46 = vpop.f32.mrf.mxu2  ;;  %v1021_v38 = vld [vmem:[#allocation2 + $0x630] sm:$0xff] }
  0xed   : > { %v691_v45 = vadd.f32 %v690_v44, %v670_v43  ;;  %v730_v47 = vpop.f32.mrf.mxu3  ;;  %942 = vmatpush.msrb.mxu2 %v824_v41  ;;  %v859_v41 = vld [vmem:[#allocation2 + $0x520] sm:$0xff]  ;;  %v825_v44 = vld [vmem:[#allocation2 + $0x410] sm:$0xff] }
  0xee   : > { %961 = vmatpush.msrb.mxu3 %v858_v40  ;;  %v731_v49 = vadd.f32 %v730_v47, %v710_v46  ;;  %943 = vmatmul.f32.vlgmr.msrb.gmra.mxu2 %v6363_v60  ;;  %v827_v40 = vld [vmem:[#allocation2 + $0x420] sm:$0xff]  ;;  %v1017_v46 = vld [vmem:[#allocation2 + $0x610] sm:$0xff] }
  0xef   : > { %754 = vmatpush.msra.mxu0 %v691_v45  ;;  %1079 = vmatpush.msra.mxu2 %v1045_v51  ;;  %v1051_v43 = vld [vmem:[#allocation2 + $0x720] sm:$0xff]  ;;  %v857_v45 = vld [vmem:[#allocation2 + $0x510] sm:$0xff] }
  0xf0   : > { %962 = vmatpush.msrb.mxu3 %v856_v42  ;;  %774 = vmatpush.msra.mxu1 %v731_v49  ;;  %v1019_v42 = vld [vmem:[#allocation2 + $0x620] sm:$0xff]  ;;  %v1049_v47 = vld [vmem:[#allocation2 + $0x710] sm:$0xff] }
  0xf1   : > { %963 = vmatmul.f32.vlgmr.msrb.gmra.mxu3 %v6366_v61  ;;  %887 = vmatpush.msrb.mxu0 %v853_v48  ;;  %v823_v48 = vld [vmem:[#allocation2 + $0x400] sm:$0xff] }
  0xf2   : > { %907 = vmatpush.msrb.mxu1 %v885_v50  ;;  %1099 = vmatpush.msra.mxu3 %v1077_v52  ;;  %v855_v49 = vld [vmem:[#allocation2 + $0x500] sm:$0xff] }
  0xf3   : > { %888 = vmatpush.msrb.mxu0 %v851_v53  ;;  %1080 = vmatpush.msra.mxu2 %v1043_v55  ;;  %v1015_v50 = vld [vmem:[#allocation2 + $0x600] sm:$0xff] }
  0xf4   : > { %908 = vmatpush.msrb.mxu1 %v883_v54  ;;  %1100 = vmatpush.msra.mxu3 %v1075_v56  ;;  %v1047_v51 = vld [vmem:[#allocation2 + $0x700] sm:$0xff] }
  0xf5   : > { %889 = vmatpush.msrb.mxu0 %v849_v57  ;;  %1081 = vmatpush.msra.mxu2 %v1041_v59  ;;  %v968_v57 = vld [vmem:[#allocation5 + $0x10] sm:$0xff]  ;;  %v1076_v59 = vld [vmem:[#allocation2 + $0x7e8] sm:$0xff] }
  0xf6   : > { %909 = vmatpush.msrb.mxu1 %v881_v58  ;;  %1101 = vmatpush.msra.mxu3 %v1073_v62  ;;  %v1078_v58 = vld [vmem:[#allocation2 + $0x7f8] sm:$0xff] }
  0xf7   : > { %890 = vmatpush.msrb.mxu0 %v847_v63  ;;  %1082 = vmatpush.msra.mxu2 %v1039_v1  ;;  %v1074_v62 = vld [vmem:[#allocation2 + $0x7d8] sm:$0xff]  ;;  %v1072_v63 = vld [vmem:[#allocation2 + $0x7c8] sm:$0xff] }
  0xf8   : > { %910 = vmatpush.msrb.mxu1 %v879_v0  ;;  %1102 = vmatpush.msra.mxu3 %v1071_v2  ;;  %v1070_v0 = vld [vmem:[#allocation2 + $0x7b8] sm:$0xff]  ;;  %v1068_v1 = vld [vmem:[#allocation2 + $0x7a8] sm:$0xff] }
  0xf9   : > { %891 = vmatpush.msrb.mxu0 %v845_v3  ;;  %1083 = vmatpush.msra.mxu2 %v1037_v5  ;;  %v1066_v2 = vld [vmem:[#allocation2 + $0x798] sm:$0xff]  ;;  %v1064_v3 = vld [vmem:[#allocation2 + $0x788] sm:$0xff] }
  0xfa   : > { %911 = vmatpush.msrb.mxu1 %v877_v4  ;;  %1103 = vmatpush.msra.mxu3 %v1069_v6  ;;  %v1062_v4 = vld [vmem:[#allocation2 + $0x778] sm:$0xff] }
  0xfb   : > { %892 = vmatpush.msrb.mxu0 %v843_v7  ;;  %1084 = vmatpush.msra.mxu2 %v1035_v9  ;;  %v1060_v7 = vld [vmem:[#allocation2 + $0x768] sm:$0xff] }
  0xfc   : > { %912 = vmatpush.msrb.mxu1 %v875_v8  ;;  %1104 = vmatpush.msra.mxu3 %v1067_v10  ;;  %v1058_v8 = vld [vmem:[#allocation2 + $0x758] sm:$0xff]  ;;  %v1056_v9 = vld [vmem:[#allocation2 + $0x748] sm:$0xff] }
  0xfd   : > { %893 = vmatpush.msrb.mxu0 %v841_v11  ;;  %1085 = vmatpush.msra.mxu2 %v1033_v13  ;;  %v1054_v10 = vld [vmem:[#allocation2 + $0x738] sm:$0xff] }
  0xfe   : > { %913 = vmatpush.msrb.mxu1 %v873_v12  ;;  %1105 = vmatpush.msra.mxu3 %v1065_v14  ;;  %v1052_v12 = vld [vmem:[#allocation2 + $0x728] sm:$0xff] }
  0xff   : > { %894 = vmatpush.msrb.mxu0 %v839_v15  ;;  %1086 = vmatpush.msra.mxu2 %v1031_v17  ;;  %v1050_v15 = vld [vmem:[#allocation2 + $0x718] sm:$0xff]  ;;  %v1048_v17 = vld [vmem:[#allocation2 + $0x708] sm:$0xff] }
 0x100   : > { %914 = vmatpush.msrb.mxu1 %v871_v16  ;;  %1106 = vmatpush.msra.mxu3 %v1063_v18  ;;  %v1046_v16 = vld [vmem:[#allocation2 + $0x6f8] sm:$0xff]  ;;  %v1044_v18 = vld [vmem:[#allocation2 + $0x6e8] sm:$0xff] }
 0x101   : > { %895 = vmatpush.msrb.mxu0 %v837_v19  ;;  %1087 = vmatpush.msra.mxu2 %v1029_v21  ;;  %v1269_v19 = vld [vmem:[#allocation2 + $0x9f0] sm:$0xff]  ;;  %v1042_v21 = vld [vmem:[#allocation2 + $0x6d8] sm:$0xff] }
 0x102   : > { %915 = vmatpush.msrb.mxu1 %v869_v20  ;;  %1107 = vmatpush.msra.mxu3 %v1061_v22 }
 0x103   : > { %896 = vmatpush.msrb.mxu0 %v835_v23  ;;  %1088 = vmatpush.msra.mxu2 %v1027_v25  ;;  %v1267_v23 = vld [vmem:[#allocation2 + $0x9e0] sm:$0xff]  ;;  %v1040_v25 = vld [vmem:[#allocation2 + $0x6c8] sm:$0xff] }
 0x104   : > { %916 = vmatpush.msrb.mxu1 %v867_v24  ;;  %1108 = vmatpush.msra.mxu3 %v1059_v26  ;;  %v6397_v26 = vld [vmem:[#allocation5 + $0x18] sm:$0xff] }
 0x105   : > { %897 = vmatpush.msrb.mxu0 %v833_v27  ;;  %1089 = vmatpush.msra.mxu2 %v1025_v29  ;;  %v1265_v27 = vld [vmem:[#allocation2 + $0x9d0] sm:$0xff]  ;;  %v1263_v29 = vld [vmem:[#allocation2 + $0x9c0] sm:$0xff] }
 0x106   : > { %917 = vmatpush.msrb.mxu1 %v865_v28  ;;  %1109 = vmatpush.msra.mxu3 %v1057_v30  ;;  %v1038_v28 = vld [vmem:[#allocation2 + $0x6b8] sm:$0xff]  ;;  %v1036_v30 = vld [vmem:[#allocation2 + $0x6a8] sm:$0xff] }
 0x107   : > { %898 = vmatpush.msrb.mxu0 %v831_v31  ;;  %1090 = vmatpush.msra.mxu2 %v1023_v33  ;;  %v1261_v31 = vld [vmem:[#allocation2 + $0x9b0] sm:$0xff]  ;;  %v1259_v33 = vld [vmem:[#allocation2 + $0x9a0] sm:$0xff] }
 0x108   : > { %918 = vmatpush.msrb.mxu1 %v863_v32  ;;  %1110 = vmatpush.msra.mxu3 %v1055_v34  ;;  %v1034_v32 = vld [vmem:[#allocation2 + $0x698] sm:$0xff]  ;;  %v1032_v34 = vld [vmem:[#allocation2 + $0x688] sm:$0xff] }
 0x109   : > { %5060 = vmatmul.msk.f32.vlgmr.msra.gmra.mxu0 %vm735_vm0, %v734_v35  ;;  %5061 = vmatmul.msk.f32.vlgmr.msra.gmra.mxu1 %vm735_vm0, %v734_v35  ;;  %v1257_v35 = vld [vmem:[#allocation2 + $0x990] sm:$0xff] }
 0x10a   : > { %899 = vmatpush.msrb.mxu0 %v829_v36  ;;  %919 = vmatpush.msrb.mxu1 %v861_v37  ;;  %v1030_v36 = vld [vmem:[#allocation2 + $0x678] sm:$0xff]  ;;  %v1255_v37 = vld [vmem:[#allocation2 + $0x980] sm:$0xff] }
 0x10b   : > { %1091 = vmatpush.msra.mxu2 %v1021_v38  ;;  %1111 = vmatpush.msra.mxu3 %v1053_v39  ;;  %v1028_v38 = vld [vmem:[#allocation2 + $0x668] sm:$0xff]  ;;  %v1253_v39 = vld [vmem:[#allocation2 + $0x970] sm:$0xff] }
 0x10c   : > { %900 = vmatpush.msrb.mxu0 %v827_v40  ;;  %920 = vmatpush.msrb.mxu1 %v859_v41  ;;  %v1026_v40 = vld [vmem:[#allocation2 + $0x658] sm:$0xff]  ;;  %v1251_v41 = vld [vmem:[#allocation2 + $0x960] sm:$0xff] }
 0x10d   : > { %1092 = vmatpush.msra.mxu2 %v1019_v42  ;;  %1112 = vmatpush.msra.mxu3 %v1051_v43  ;;  %v1024_v42 = vld [vmem:[#allocation2 + $0x648] sm:$0xff]  ;;  %v1249_v43 = vld [vmem:[#allocation2 + $0x950] sm:$0xff] }
 0x10e   : > { %901 = vmatpush.msrb.mxu0 %v825_v44  ;;  %921 = vmatpush.msrb.mxu1 %v857_v45  ;;  %v1022_v44 = vld [vmem:[#allocation2 + $0x638] sm:$0xff]  ;;  %v1247_v45 = vld [vmem:[#allocation2 + $0x940] sm:$0xff] }
 0x10f   : > { %1093 = vmatpush.msra.mxu2 %v1017_v46  ;;  %1113 = vmatpush.msra.mxu3 %v1049_v47  ;;  %v1020_v46 = vld [vmem:[#allocation2 + $0x628] sm:$0xff]  ;;  %v1245_v47 = vld [vmem:[#allocation2 + $0x930] sm:$0xff] }
 0x110   : > { %902 = vmatpush.msrb.mxu0 %v823_v48  ;;  %922 = vmatpush.msrb.mxu1 %v855_v49  ;;  %v1018_v48 = vld [vmem:[#allocation2 + $0x618] sm:$0xff]  ;;  %v1243_v49 = vld [vmem:[#allocation2 + $0x920] sm:$0xff] }
 0x111   : > { %1094 = vmatpush.msra.mxu2 %v1015_v50  ;;  %1114 = vmatpush.msra.mxu3 %v1047_v51  ;;  %v1016_v50 = vld [vmem:[#allocation2 + $0x608] sm:$0xff]  ;;  %v1241_v51 = vld [vmem:[#allocation2 + $0x910] sm:$0xff] }
 0x112   : > { %903 = vmatmul.f32.vlgmr.msrb.gmra.mxu0 %v6363_v60  ;;  %923 = vmatmul.f32.vlgmr.msrb.gmra.mxu1 %v6366_v61 }
 0x113   : > { %1095 = vmatmul.f32.vlgmr.msra.gmra.mxu2 %v6363_v60  ;;  %1115 = vmatmul.f32.vlgmr.msra.gmra.mxu3 %v6366_v61 }
 0x151   : > { %v6386_v52 = vpop.f32.mrf.mxu2 }
 0x154   : > { %v6388_v53 = vpop.f32.mrf.mxu3 }
 0x171   : > { %v944_v54 = vpop.f32.mrf.mxu2 }
 0x174   : > { %v964_v55 = vpop.f32.mrf.mxu3 }
 0x175   : > { %v965_v56 = vadd.f32 %v964_v55, %v944_v54  ;;  %v1237_v54 = vld [vmem:[#allocation2 + $0x8f0] sm:$0xff]  ;;  %v1239_v55 = vld [vmem:[#allocation2 + $0x900] sm:$0xff] }
 0x177   : > { %1007 = vmatpush.msra.mxu1 %v965_v56  ;;  %v1235_v56 = vld [vmem:[#allocation2 + $0x8e0] sm:$0xff] }
 0x178   : > { %5065 = vmatmul.msk.f32.vlgmr.msra.gmra.mxu1 %vm735_vm0, %v968_v57 }
 0x179   : > { %1139 = vmatpush.msrb.mxu1 %v1078_v58  ;;  %v1231_v58 = vld [vmem:[#allocation2 + $0x8c0] sm:$0xff] }
 0x17b   : > { %1140 = vmatpush.msrb.mxu1 %v1076_v59  ;;  %v1229_v59 = vld [vmem:[#allocation2 + $0x8b0] sm:$0xff] }
 0x17d   : > { %1141 = vmatpush.msrb.mxu1 %v1074_v62  ;;  %v1227_v62 = vld [vmem:[#allocation2 + $0x8a0] sm:$0xff] }
 0x17f   : > { %1142 = vmatpush.msrb.mxu1 %v1072_v63  ;;  %v1225_v63 = vld [vmem:[#allocation2 + $0x890] sm:$0xff] }
 0x181   : > { %1143 = vmatpush.msrb.mxu1 %v1070_v0  ;;  %v1223_v0 = vld [vmem:[#allocation2 + $0x880] sm:$0xff] }
 0x183   : > { %1144 = vmatpush.msrb.mxu1 %v1068_v1  ;;  %v1221_v1 = vld [vmem:[#allocation2 + $0x870] sm:$0xff] }
 0x185   : > { %1145 = vmatpush.msrb.mxu1 %v1066_v2  ;;  %v1217_v2 = vld [vmem:[#allocation2 + $0x850] sm:$0xff] }
 0x186   : > { %v6391_v5 = vpop.f32.mrf.mxu0  ;;  %v6393_v6 = vpop.f32.mrf.mxu1 }
 0x187   : > { %1146 = vmatpush.msrb.mxu1 %v1064_v3  ;;  %v1215_v3 = vld [vmem:[#allocation2 + $0x840] sm:$0xff] }
 0x189   : > { %1147 = vmatpush.msrb.mxu1 %v1062_v4  ;;  %v1211_v4 = vld [vmem:[#allocation2 + $0x820] sm:$0xff] }
 0x18b   : > { %1148 = vmatpush.msrb.mxu1 %v1060_v7  ;;  %v1209_v7 = vld [vmem:[#allocation2 + $0x810] sm:$0xff] }
 0x18d   : > { %1149 = vmatpush.msrb.mxu1 %v1058_v8  ;;  %v1207_v8 = vld [vmem:[#allocation2 + $0x800] sm:$0xff] }
 0x18f   : > { %1150 = vmatpush.msrb.mxu1 %v1056_v9  ;;  %v904_v11 = vpop.f32.mrf.mxu0  ;;  %v924_v13 = vpop.f32.mrf.mxu1  ;;  %v6404_v9 = vld [vmem:[%s6360_s18] sm:$0xff] }
 0x190   : > { %v925_v14 = vadd.f32 %v924_v13, %v904_v11  ;;  %v1236_v11 = vld [vmem:[#allocation2 + $0x8e8] sm:$0xff] }
 0x191   : > { %1151 = vmatpush.msrb.mxu1 %v1054_v10  ;;  %v1238_v10 = vld [vmem:[#allocation2 + $0x8f8] sm:$0xff]  ;;  %v1232_v13 = vld [vmem:[#allocation2 + $0x8c8] sm:$0xff] }
 0x192   : > { %987 = vmatpush.msra.mxu0 %v925_v14  ;;  %v1230_v14 = vld [vmem:[#allocation2 + $0x8b8] sm:$0xff] }
 0x193   : > { %1152 = vmatpush.msrb.mxu1 %v1052_v12  ;;  %5064 = vmatmul.msk.f32.vlgmr.msra.gmra.mxu0 %vm735_vm0, %v968_v57  ;;  %v1233_v57 = vld [vmem:[#allocation2 + $0x8d0] sm:$0xff]  ;;  %v1234_v12 = vld [vmem:[#allocation2 + $0x8d8] sm:$0xff] }
 0x194   : > { %1119 = vmatpush.msrb.mxu0 %v1046_v16  ;;  %v1226_v16 = vld [vmem:[#allocation2 + $0x898] sm:$0xff] }
 0x195   : > { %1153 = vmatpush.msrb.mxu1 %v1050_v15  ;;  %v1228_v15 = vld [vmem:[#allocation2 + $0x8a8] sm:$0xff] }
 0x196   : > { %v1096_v20 = vpop.f32.mrf.mxu2  ;;  %v1116_v22 = vpop.f32.mrf.mxu3  ;;  %1120 = vmatpush.msrb.mxu0 %v1044_v18  ;;  %v1222_v18 = vld [vmem:[#allocation2 + $0x878] sm:$0xff] }
 0x197   : > { %1154 = vmatpush.msrb.mxu1 %v1048_v17  ;;  %v1117_v24 = vadd.f32 %v1116_v22, %v1096_v20  ;;  %v1224_v17 = vld [vmem:[#allocation2 + $0x888] sm:$0xff] }
 0x198   : > { %1155 = vmatmul.f32.vlgmr.msrb.gmra.mxu1 %v6366_v61  ;;  %1121 = vmatpush.msrb.mxu0 %v1042_v21  ;;  %v1218_v21 = vld [vmem:[#allocation2 + $0x858] sm:$0xff] }
 0x199   : > { %1291 = vmatpush.msra.mxu1 %v1269_v19  ;;  %1179 = vmatpush.msrb.mxu2 %v1117_v24  ;;  %v1220_v19 = vld [vmem:[#allocation2 + $0x868] sm:$0xff]  ;;  %v1214_v24 = vld [vmem:[#allocation2 + $0x838] sm:$0xff] }
 0x19a   : > { %1122 = vmatpush.msrb.mxu0 %v1040_v25  ;;  %5066 = vmatmul.msk.f32.vlgmr.msrb.gmra.mxu2 %vm735_vm0, %v6397_v26  ;;  %v1212_v25 = vld [vmem:[#allocation2 + $0x828] sm:$0xff] }
 0x19b   : > { %1292 = vmatpush.msra.mxu1 %v1267_v23  ;;  %1311 = vmatpush.msra.mxu2 %v1238_v10  ;;  %v1216_v23 = vld [vmem:[#allocation2 + $0x848] sm:$0xff]  ;;  %v1459_v10 = vld [vmem:[#allocation2 + $0xbe0] sm:$0xff] }
 0x19c   : > { %1123 = vmatpush.msrb.mxu0 %v1038_v28 }
 0x19d   : > { %1293 = vmatpush.msra.mxu1 %v1265_v27  ;;  %1312 = vmatpush.msra.mxu2 %v1236_v11  ;;  %v1457_v11 = vld [vmem:[#allocation2 + $0xbd0] sm:$0xff] }
 0x19e   : > { %1124 = vmatpush.msrb.mxu0 %v1036_v30 }
 0x19f   : > { %1294 = vmatpush.msra.mxu1 %v1263_v29  ;;  %1313 = vmatpush.msra.mxu2 %v1234_v12  ;;  %v1210_v29 = vld [vmem:[#allocation2 + $0x818] sm:$0xff]  ;;  %v1455_v12 = vld [vmem:[#allocation2 + $0xbc0] sm:$0xff] }
 0x1a0   : > { %1125 = vmatpush.msrb.mxu0 %v1034_v32  ;;  %v1270_v32 = vld [vmem:[#allocation2 + $0x9f8] sm:$0xff] }
 0x1a1   : > { %1295 = vmatpush.msra.mxu1 %v1261_v31  ;;  %1314 = vmatpush.msra.mxu2 %v1232_v13  ;;  %v1208_v31 = vld [vmem:[#allocation2 + $0x808] sm:$0xff]  ;;  %v1453_v13 = vld [vmem:[#allocation2 + $0xbb0] sm:$0xff] }
 0x1a2   : > { %1126 = vmatpush.msrb.mxu0 %v1032_v34  ;;  %v1268_v34 = vld [vmem:[#allocation2 + $0x9e8] sm:$0xff] }
 0x1a3   : > { %1296 = vmatpush.msra.mxu1 %v1259_v33  ;;  %1315 = vmatpush.msra.mxu2 %v1230_v14  ;;  %v1429_v33 = vld [vmem:[#allocation2 + $0xaf0] sm:$0xff]  ;;  %v1451_v14 = vld [vmem:[#allocation2 + $0xba0] sm:$0xff] }
 0x1a4   : > { %1127 = vmatpush.msrb.mxu0 %v1030_v36  ;;  %v1266_v36 = vld [vmem:[#allocation2 + $0x9d8] sm:$0xff] }
 0x1a5   : > { %1297 = vmatpush.msra.mxu1 %v1257_v35  ;;  %1316 = vmatpush.msra.mxu2 %v1228_v15  ;;  %v1427_v35 = vld [vmem:[#allocation2 + $0xae0] sm:$0xff]  ;;  %v1449_v15 = vld [vmem:[#allocation2 + $0xb90] sm:$0xff] }
 0x1a6   : > { %1128 = vmatpush.msrb.mxu0 %v1028_v38  ;;  %v1264_v38 = vld [vmem:[#allocation2 + $0x9c8] sm:$0xff] }
 0x1a7   : > { %1298 = vmatpush.msra.mxu1 %v1255_v37  ;;  %1317 = vmatpush.msra.mxu2 %v1226_v16  ;;  %v1425_v37 = vld [vmem:[#allocation2 + $0xad0] sm:$0xff]  ;;  %v1447_v16 = vld [vmem:[#allocation2 + $0xb80] sm:$0xff] }
 0x1a8   : > { %1129 = vmatpush.msrb.mxu0 %v1026_v40  ;;  %v1262_v40 = vld [vmem:[#allocation2 + $0x9b8] sm:$0xff] }
 0x1a9   : > { %1299 = vmatpush.msra.mxu1 %v1253_v39  ;;  %1318 = vmatpush.msra.mxu2 %v1224_v17  ;;  %v1423_v39 = vld [vmem:[#allocation2 + $0xac0] sm:$0xff]  ;;  %v1445_v17 = vld [vmem:[#allocation2 + $0xb70] sm:$0xff] }
 0x1aa   : > { %1130 = vmatpush.msrb.mxu0 %v1024_v42  ;;  %v1260_v42 = vld [vmem:[#allocation2 + $0x9a8] sm:$0xff] }
 0x1ab   : > { %1300 = vmatpush.msra.mxu1 %v1251_v41  ;;  %1319 = vmatpush.msra.mxu2 %v1222_v18  ;;  %v1421_v41 = vld [vmem:[#allocation2 + $0xab0] sm:$0xff]  ;;  %v1443_v18 = vld [vmem:[#allocation2 + $0xb60] sm:$0xff] }
 0x1ac   : > { %1131 = vmatpush.msrb.mxu0 %v1022_v44  ;;  %v1417_v44 = vld [vmem:[#allocation2 + $0xa90] sm:$0xff] }
 0x1ad   : > { %1301 = vmatpush.msra.mxu1 %v1249_v43  ;;  %1320 = vmatpush.msra.mxu2 %v1220_v19  ;;  %v1258_v43 = vld [vmem:[#allocation2 + $0x998] sm:$0xff]  ;;  %v1441_v19 = vld [vmem:[#allocation2 + $0xb50] sm:$0xff] }
 0x1ae   : > { %1132 = vmatpush.msrb.mxu0 %v1020_v46  ;;  %v1415_v46 = vld [vmem:[#allocation2 + $0xa80] sm:$0xff] }
 0x1af   : > { %1302 = vmatpush.msra.mxu1 %v1247_v45  ;;  %1321 = vmatpush.msra.mxu2 %v1218_v21  ;;  %v1256_v45 = vld [vmem:[#allocation2 + $0x988] sm:$0xff]  ;;  %v1439_v21 = vld [vmem:[#allocation2 + $0xb40] sm:$0xff] }
 0x1b0   : > { %1133 = vmatpush.msrb.mxu0 %v1018_v48  ;;  %v1413_v48 = vld [vmem:[#allocation2 + $0xa70] sm:$0xff] }
 0x1b1   : > { %1303 = vmatpush.msra.mxu1 %v1245_v47  ;;  %1322 = vmatpush.msra.mxu2 %v1216_v23  ;;  %v1254_v47 = vld [vmem:[#allocation2 + $0x978] sm:$0xff]  ;;  %v1437_v23 = vld [vmem:[#allocation2 + $0xb30] sm:$0xff] }
 0x1b2   : > { %1134 = vmatpush.msrb.mxu0 %v1016_v50  ;;  %v1411_v50 = vld [vmem:[#allocation2 + $0xa60] sm:$0xff] }
 0x1b3   : > { %1304 = vmatpush.msra.mxu1 %v1243_v49  ;;  %1135 = vmatmul.f32.vlgmr.msrb.gmra.mxu0 %v6363_v60  ;;  %v1219_v60 = vld [vmem:[#allocation2 + $0x860] sm:$0xff]  ;;  %v1252_v49 = vld [vmem:[#allocation2 + $0x968] sm:$0xff] }
 0x1b4   : > { %1271 = vmatpush.msra.mxu0 %v1237_v54  ;;  %1323 = vmatpush.msra.mxu2 %v1214_v24  ;;  %v1409_v54 = vld [vmem:[#allocation2 + $0xa50] sm:$0xff]  ;;  %v1435_v24 = vld [vmem:[#allocation2 + $0xb20] sm:$0xff] }
 0x1b5   : > { %1305 = vmatpush.msra.mxu1 %v1241_v51  ;;  %v1250_v51 = vld [vmem:[#allocation2 + $0x958] sm:$0xff] }
 0x1b6   : > { %1272 = vmatpush.msra.mxu0 %v1235_v56  ;;  %1324 = vmatpush.msra.mxu2 %v1212_v25  ;;  %v1407_v56 = vld [vmem:[#allocation2 + $0xa40] sm:$0xff]  ;;  %v1433_v25 = vld [vmem:[#allocation2 + $0xb10] sm:$0xff] }
 0x1b7   : > { %1306 = vmatpush.msra.mxu1 %v1239_v55  ;;  %v1248_v55 = vld [vmem:[#allocation2 + $0x948] sm:$0xff] }
 0x1b8   : > { %1307 = vmatmul.f32.vlgmr.msra.gmra.mxu1 %v6366_v61  ;;  %1273 = vmatpush.msra.mxu0 %v1233_v57  ;;  %v1213_v61 = vld [vmem:[#allocation2 + $0x830] sm:$0xff]  ;;  %v1246_v57 = vld [vmem:[#allocation2 + $0x938] sm:$0xff] }
 0x1b9   : > { %1325 = vmatpush.msra.mxu2 %v1210_v29  ;;  %v1428_v29 = vld [vmem:[#allocation2 + $0xae8] sm:$0xff] }
 0x1ba   : > { %1274 = vmatpush.msra.mxu0 %v1231_v58  ;;  %v1405_v58 = vld [vmem:[#allocation2 + $0xa30] sm:$0xff] }
 0x1bb   : > { %1326 = vmatpush.msra.mxu2 %v1208_v31  ;;  %v1424_v31 = vld [vmem:[#allocation2 + $0xac8] sm:$0xff] }
 0x1bc   : > { %1275 = vmatpush.msra.mxu0 %v1229_v59  ;;  %1327 = vmatmul.f32.vlgmr.msra.gmra.mxu2 %v6404_v9  ;;  %v1244_v59 = vld [vmem:[#allocation2 + $0x928] sm:$0xff] }
 0x1bd   : > { %1463 = vmatpush.msrb.mxu2 %v1429_v33  ;;  %v1420_v33 = vld [vmem:[#allocation2 + $0xaa8] sm:$0xff] }
 0x1be   : > { %1276 = vmatpush.msra.mxu0 %v1227_v62  ;;  %v1403_v62 = vld [vmem:[#allocation2 + $0xa20] sm:$0xff] }
 0x1bf   : > { %1464 = vmatpush.msrb.mxu2 %v1427_v35  ;;  %v1416_v35 = vld [vmem:[#allocation2 + $0xa88] sm:$0xff] }
 0x1c0   : > { %1277 = vmatpush.msra.mxu0 %v1225_v63 }
 0x1c1   : > { %1465 = vmatpush.msrb.mxu2 %v1425_v37  ;;  %v1412_v37 = vld [vmem:[#allocation2 + $0xa68] sm:$0xff] }
 0x1c2   : > { %1278 = vmatpush.msra.mxu0 %v1223_v0  ;;  %v1242_v0 = vld [vmem:[#allocation2 + $0x918] sm:$0xff] }
 0x1c3   : > { %1466 = vmatpush.msrb.mxu2 %v1423_v39  ;;  %v1410_v39 = vld [vmem:[#allocation2 + $0xa58] sm:$0xff] }
 0x1c4   : > { %1279 = vmatpush.msra.mxu0 %v1221_v1  ;;  %v1401_v1 = vld [vmem:[#allocation2 + $0xa10] sm:$0xff] }
 0x1c5   : > { %1467 = vmatpush.msrb.mxu2 %v1421_v41  ;;  %v1408_v41 = vld [vmem:[#allocation2 + $0xa48] sm:$0xff] }
 0x1c6   : > { %1280 = vmatpush.msra.mxu0 %v1219_v60 }
 0x1c8   : > { %1281 = vmatpush.msra.mxu0 %v1217_v2  ;;  %v1240_v2 = vld [vmem:[#allocation2 + $0x908] sm:$0xff] }
 0x1ca   : > { %1282 = vmatpush.msra.mxu0 %v1215_v3 }
 0x1cc   : > { %1283 = vmatpush.msra.mxu0 %v1213_v61  ;;  %v6414_v61 = vld [vmem:[#allocation5 + $0x20] sm:$0xff] }
 0x1ce   : > { %1284 = vmatpush.msra.mxu0 %v1211_v4  ;;  %v1461_v4 = vld [vmem:[#allocation2 + $0xbf0] sm:$0xff] }
 0x1d0   : > { %1285 = vmatpush.msra.mxu0 %v1209_v7  ;;  %v1399_v7 = vld [vmem:[#allocation2 + $0xa00] sm:$0xff] }
 0x1d2   : > { %1286 = vmatpush.msra.mxu0 %v1207_v8  ;;  %v6417_v8 = vld [vmem:[%s6360_s18 + $0x8] sm:$0xff] }
 0x1d3   : > { %1287 = vmatmul.f32.vlgmr.msra.gmra.mxu0 %v6404_v9 }
 0x1f5   : > { %v6407_v20 = vpop.f32.mrf.mxu1 }
 0x210   : > { %v6409_v22 = vpop.f32.mrf.mxu0 }
 0x215   : > { %v1156_v27 = vpop.f32.mrf.mxu1 }
 0x230   : > { %v1136_v28 = vpop.f32.mrf.mxu0 }
 0x231   : > { %v1157_v30 = vadd.f32 %v1156_v27, %v1136_v28  ;;  %v1431_v27 = vld [vmem:[#allocation2 + $0xb00] sm:$0xff]  ;;  %v1430_v28 = vld [vmem:[#allocation2 + $0xaf8] sm:$0xff] }
 0x233   : > { %1199 = vmatpush.msrb.mxu3 %v1157_v30  ;;  %v1426_v30 = vld [vmem:[#allocation2 + $0xad8] sm:$0xff] }
 0x234   : > { %5067 = vmatmul.msk.f32.vlgmr.msrb.gmra.mxu3 %vm735_vm0, %v6397_v26  ;;  %v1419_v26 = vld [vmem:[#allocation2 + $0xaa0] sm:$0xff] }
 0x235   : > { %1331 = vmatpush.msra.mxu3 %v1270_v32  ;;  %1468 = vmatpush.msrb.mxu2 %v1419_v26  ;;  %v1308_v63 = vpop.f32.mrf.mxu1  ;;  %v1422_v32 = vld [vmem:[#allocation2 + $0xab8] sm:$0xff]  ;;  %v1404_v26 = vld [vmem:[#allocation2 + $0xa28] sm:$0xff] }
 0x237   : > { %1332 = vmatpush.msra.mxu3 %v1268_v34  ;;  %1469 = vmatpush.msrb.mxu2 %v1417_v44  ;;  %v1418_v34 = vld [vmem:[#allocation2 + $0xa98] sm:$0xff] }
 0x239   : > { %1333 = vmatpush.msra.mxu3 %v1266_v36  ;;  %1470 = vmatpush.msrb.mxu2 %v1415_v46  ;;  %v1414_v36 = vld [vmem:[#allocation2 + $0xa78] sm:$0xff] }
 0x23b   : > { %1334 = vmatpush.msra.mxu3 %v1264_v38  ;;  %1471 = vmatpush.msrb.mxu2 %v1413_v48  ;;  %v6424_v38 = vpop.f32.mrf.mxu2  ;;  %v1462_v48 = vld [vmem:[#allocation2 + $0xbf8] sm:$0xff] }
 0x23d   : > { %1335 = vmatpush.msra.mxu3 %v1262_v40  ;;  %1472 = vmatpush.msrb.mxu2 %v1411_v50  ;;  %v1460_v50 = vld [vmem:[#allocation2 + $0xbe8] sm:$0xff] }
 0x23f   : > { %1336 = vmatpush.msra.mxu3 %v1260_v42  ;;  %1473 = vmatpush.msrb.mxu2 %v1409_v54  ;;  %v1406_v42 = vld [vmem:[#allocation2 + $0xa38] sm:$0xff] }
 0x240   : > { %v1458_v54 = vld [vmem:[#allocation2 + $0xbd8] sm:$0xff] }
 0x241   : > { %1337 = vmatpush.msra.mxu3 %v1258_v43  ;;  %1474 = vmatpush.msrb.mxu2 %v1407_v56  ;;  %v1456_v56 = vld [vmem:[#allocation2 + $0xbc8] sm:$0xff] }
 0x243   : > { %1338 = vmatpush.msra.mxu3 %v1256_v45  ;;  %1475 = vmatpush.msrb.mxu2 %v1405_v58  ;;  %v1328_v43 = vpop.f32.mrf.mxu2  ;;  %v1402_v45 = vld [vmem:[#allocation2 + $0xa18] sm:$0xff] }
 0x244   : > { %v1454_v58 = vld [vmem:[#allocation2 + $0xbb8] sm:$0xff] }
 0x245   : > { %1339 = vmatpush.msra.mxu3 %v1254_v47  ;;  %1476 = vmatpush.msrb.mxu2 %v1403_v62  ;;  %v1400_v47 = vld [vmem:[#allocation2 + $0xa08] sm:$0xff] }
 0x246   : > { %v1452_v62 = vld [vmem:[#allocation2 + $0xba8] sm:$0xff] }
 0x247   : > { %1340 = vmatpush.msra.mxu3 %v1252_v49  ;;  %1477 = vmatpush.msrb.mxu2 %v1401_v1  ;;  %v1621_v49 = vld [vmem:[#allocation2 + $0xcf0] sm:$0xff] }
 0x248   : > { %v1609_v1 = vld [vmem:[#allocation2 + $0xc90] sm:$0xff] }
 0x249   : > { %1341 = vmatpush.msra.mxu3 %v1250_v51  ;;  %1478 = vmatpush.msrb.mxu2 %v1399_v7  ;;  %v1619_v51 = vld [vmem:[#allocation2 + $0xce0] sm:$0xff] }
 0x24a   : > { %1479 = vmatmul.f32.vlgmr.msrb.gmra.mxu2 %v6404_v9  ;;  %v1603_v7 = vld [vmem:[#allocation2 + $0xc60] sm:$0xff] }
 0x24b   : > { %1342 = vmatpush.msra.mxu3 %v1248_v55  ;;  %v1617_v55 = vld [vmem:[#allocation2 + $0xcd0] sm:$0xff] }
 0x24d   : > { %1343 = vmatpush.msra.mxu3 %v1246_v57  ;;  %v1615_v57 = vld [vmem:[#allocation2 + $0xcc0] sm:$0xff] }
 0x24f   : > { %1344 = vmatpush.msra.mxu3 %v1244_v59  ;;  %v1613_v59 = vld [vmem:[#allocation2 + $0xcb0] sm:$0xff] }
 0x250   : > { %v1288_v60 = vpop.f32.mrf.mxu0 }
 0x251   : > { %v1309_v3 = vadd.f32 %v1308_v63, %v1288_v60  ;;  %1345 = vmatpush.msra.mxu3 %v1242_v0  ;;  %v1611_v63 = vld [vmem:[#allocation2 + $0xca0] sm:$0xff]  ;;  %v1450_v0 = vld [vmem:[#allocation2 + $0xb98] sm:$0xff]  ;;  %v1448_v60 = vld [vmem:[#allocation2 + $0xb88] sm:$0xff] }
 0x253   : > { %1346 = vmatpush.msra.mxu3 %v1240_v2  ;;  %1371 = vmatpush.msrb.mxu0 %v1309_v3  ;;  %v1607_v2 = vld [vmem:[#allocation2 + $0xc80] sm:$0xff]  ;;  %v1446_v3 = vld [vmem:[#allocation2 + $0xb78] sm:$0xff] }
 0x254   : > { %1347 = vmatmul.f32.vlgmr.msra.gmra.mxu3 %v6417_v8  ;;  %5068 = vmatmul.msk.f32.vlgmr.msrb.gmra.mxu0 %vm735_vm0, %v6414_v61 }
 0x255   : > { %1483 = vmatpush.msrb.mxu3 %v1461_v4  ;;  %1503 = vmatpush.msra.mxu0 %v1430_v28  ;;  %v1444_v4 = vld [vmem:[#allocation2 + $0xb68] sm:$0xff]  ;;  %v1653_v28 = vld [vmem:[#allocation2 + $0xdf0] sm:$0xff] }
 0x257   : > { %1484 = vmatpush.msrb.mxu3 %v1459_v10  ;;  %1504 = vmatpush.msra.mxu0 %v1428_v29  ;;  %v1442_v10 = vld [vmem:[#allocation2 + $0xb58] sm:$0xff]  ;;  %v1591_v29 = vld [vmem:[#allocation2 + $0xc00] sm:$0xff] }
 0x259   : > { %1485 = vmatpush.msrb.mxu3 %v1457_v11  ;;  %1505 = vmatpush.msra.mxu0 %v1426_v30  ;;  %v1601_v11 = vld [vmem:[#allocation2 + $0xc50] sm:$0xff]  ;;  %v1651_v30 = vld [vmem:[#allocation2 + $0xde0] sm:$0xff] }
 0x25b   : > { %1486 = vmatpush.msrb.mxu3 %v1455_v12  ;;  %1506 = vmatpush.msra.mxu0 %v1424_v31  ;;  %v1440_v12 = vld [vmem:[#allocation2 + $0xb48] sm:$0xff]  ;;  %v1649_v31 = vld [vmem:[#allocation2 + $0xdd0] sm:$0xff] }
 0x25d   : > { %1487 = vmatpush.msrb.mxu3 %v1453_v13  ;;  %1507 = vmatpush.msra.mxu0 %v1422_v32  ;;  %v1599_v13 = vld [vmem:[#allocation2 + $0xc40] sm:$0xff] }
 0x25e   : > { %v1647_v32 = vld [vmem:[#allocation2 + $0xdc0] sm:$0xff] }
 0x25f   : > { %1488 = vmatpush.msrb.mxu3 %v1451_v14  ;;  %1508 = vmatpush.msra.mxu0 %v1420_v33  ;;  %v1438_v14 = vld [vmem:[#allocation2 + $0xb38] sm:$0xff]  ;;  %v1645_v33 = vld [vmem:[#allocation2 + $0xdb0] sm:$0xff] }
 0x261   : > { %1489 = vmatpush.msrb.mxu3 %v1449_v15  ;;  %1509 = vmatpush.msra.mxu0 %v1418_v34  ;;  %v1597_v15 = vld [vmem:[#allocation2 + $0xc30] sm:$0xff]  ;;  %v1643_v34 = vld [vmem:[#allocation2 + $0xda0] sm:$0xff] }
 0x263   : > { %1490 = vmatpush.msrb.mxu3 %v1447_v16  ;;  %1510 = vmatpush.msra.mxu0 %v1416_v35  ;;  %v1436_v16 = vld [vmem:[#allocation2 + $0xb28] sm:$0xff]  ;;  %v1641_v35 = vld [vmem:[#allocation2 + $0xd90] sm:$0xff] }
 0x265   : > { %1491 = vmatpush.msrb.mxu3 %v1445_v17  ;;  %1511 = vmatpush.msra.mxu0 %v1414_v36  ;;  %v1595_v17 = vld [vmem:[#allocation2 + $0xc20] sm:$0xff] }
 0x266   : > { %v1639_v36 = vld [vmem:[#allocation2 + $0xd80] sm:$0xff] }
 0x267   : > { %1492 = vmatpush.msrb.mxu3 %v1443_v18  ;;  %1512 = vmatpush.msra.mxu0 %v1412_v37  ;;  %v1637_v37 = vld [vmem:[#allocation2 + $0xd70] sm:$0xff] }
 0x269   : > { %1493 = vmatpush.msrb.mxu3 %v1441_v19  ;;  %1513 = vmatpush.msra.mxu0 %v1410_v39  ;;  %v1434_v19 = vld [vmem:[#allocation2 + $0xb18] sm:$0xff]  ;;  %v1635_v39 = vld [vmem:[#allocation2 + $0xd60] sm:$0xff] }
 0x26b   : > { %1494 = vmatpush.msrb.mxu3 %v1439_v21  ;;  %1514 = vmatpush.msra.mxu0 %v1408_v41  ;;  %v1593_v21 = vld [vmem:[#allocation2 + $0xc10] sm:$0xff] }
 0x26c   : > { %v1633_v41 = vld [vmem:[#allocation2 + $0xd50] sm:$0xff] }
 0x26d   : > { %1495 = vmatpush.msrb.mxu3 %v1437_v23  ;;  %1515 = vmatpush.msra.mxu0 %v1406_v42  ;;  %v1631_v42 = vld [vmem:[#allocation2 + $0xd40] sm:$0xff] }
 0x26f   : > { %1496 = vmatpush.msrb.mxu3 %v1435_v24  ;;  %1516 = vmatpush.msra.mxu0 %v1404_v26  ;;  %v1432_v24 = vld [vmem:[#allocation2 + $0xb08] sm:$0xff]  ;;  %v1629_v26 = vld [vmem:[#allocation2 + $0xd30] sm:$0xff] }
 0x271   : > { %1497 = vmatpush.msrb.mxu3 %v1433_v25  ;;  %1517 = vmatpush.msra.mxu0 %v1402_v45  ;;  %v1623_v45 = vld [vmem:[#allocation2 + $0xd00] sm:$0xff] }
 0x273   : > { %1498 = vmatpush.msrb.mxu3 %v1431_v27  ;;  %1518 = vmatpush.msra.mxu0 %v1400_v47  ;;  %v6431_v27 = vld [vmem:[#allocation5 + $0x28] sm:$0xff] }
 0x274   : > { %1499 = vmatmul.f32.vlgmr.msrb.gmra.mxu3 %v6417_v8  ;;  %1519 = vmatmul.f32.vlgmr.msra.gmra.mxu0 %v6404_v9  ;;  %v1620_v47 = vld [vmem:[#allocation2 + $0xce8] sm:$0xff] }
 0x275   : > { %1655 = vmatpush.msrb.mxu0 %v1621_v49  ;;  %v1616_v49 = vld [vmem:[#allocation2 + $0xcc8] sm:$0xff] }
 0x277   : > { %1656 = vmatpush.msrb.mxu0 %v1619_v51  ;;  %v1612_v51 = vld [vmem:[#allocation2 + $0xca8] sm:$0xff] }
 0x279   : > { %1657 = vmatpush.msrb.mxu0 %v1617_v55  ;;  %v1608_v55 = vld [vmem:[#allocation2 + $0xc88] sm:$0xff] }
 0x27b   : > { %1658 = vmatpush.msrb.mxu0 %v1615_v57  ;;  %v1604_v57 = vld [vmem:[#allocation2 + $0xc68] sm:$0xff] }
 0x27d   : > { %1659 = vmatpush.msrb.mxu0 %v1613_v59  ;;  %v1602_v59 = vld [vmem:[#allocation2 + $0xc58] sm:$0xff] }
 0x27f   : > { %1660 = vmatpush.msrb.mxu0 %v1611_v63  ;;  %v1600_v63 = vld [vmem:[#allocation2 + $0xc48] sm:$0xff] }
 0x281   : > { %1661 = vmatpush.msrb.mxu0 %v1609_v1  ;;  %v1596_v1 = vld [vmem:[#allocation2 + $0xc28] sm:$0xff] }
 0x283   : > { %1662 = vmatpush.msrb.mxu0 %v1607_v2 }
 0x2b7   : > { %v6426_v40 = vpop.f32.mrf.mxu3 }
 0x2cd   : > { %v1480_v18 = vpop.f32.mrf.mxu2 }
 0x2d7   : > { %v1348_v44 = vpop.f32.mrf.mxu3 }
 0x2d8   : > { %v1349_v46 = vadd.f32 %v1348_v44, %v1328_v43  ;;  %v1627_v43 = vld [vmem:[#allocation2 + $0xd20] sm:$0xff]  ;;  %v1625_v44 = vld [vmem:[#allocation2 + $0xd10] sm:$0xff] }
 0x2da   : > { %1391 = vmatpush.msrb.mxu1 %v1349_v46  ;;  %v1622_v46 = vld [vmem:[#allocation2 + $0xcf8] sm:$0xff] }
 0x2db   : > { %5069 = vmatmul.msk.f32.vlgmr.msrb.gmra.mxu1 %vm735_vm0, %v6414_v61  ;;  %v1605_v61 = vld [vmem:[#allocation2 + $0xc70] sm:$0xff] }
 0x2dc   : > { %1523 = vmatpush.msra.mxu1 %v1462_v48  ;;  %1663 = vmatpush.msrb.mxu0 %v1605_v61  ;;  %v1618_v48 = vld [vmem:[#allocation2 + $0xcd8] sm:$0xff] }
 0x2de   : > { %1524 = vmatpush.msra.mxu1 %v1460_v50  ;;  %1664 = vmatpush.msrb.mxu0 %v1603_v7  ;;  %v1614_v50 = vld [vmem:[#allocation2 + $0xcb8] sm:$0xff] }
 0x2df   : > { %v1654_v7 = vld [vmem:[#allocation2 + $0xdf8] sm:$0xff] }
 0x2e0   : > { %1525 = vmatpush.msra.mxu1 %v1458_v54  ;;  %1665 = vmatpush.msrb.mxu0 %v1601_v11  ;;  %v1610_v54 = vld [vmem:[#allocation2 + $0xc98] sm:$0xff]  ;;  %v1652_v11 = vld [vmem:[#allocation2 + $0xde8] sm:$0xff] }
 0x2e2   : > { %1526 = vmatpush.msra.mxu1 %v1456_v56  ;;  %1666 = vmatpush.msrb.mxu0 %v1599_v13  ;;  %v1606_v56 = vld [vmem:[#allocation2 + $0xc78] sm:$0xff] }
 0x2e3   : > { %v1650_v13 = vld [vmem:[#allocation2 + $0xdd8] sm:$0xff] }
 0x2e4   : > { %1527 = vmatpush.msra.mxu1 %v1454_v58  ;;  %1667 = vmatpush.msrb.mxu0 %v1597_v15  ;;  %v6438_v58 = vpop.f32.mrf.mxu0  ;;  %v1648_v15 = vld [vmem:[#allocation2 + $0xdc8] sm:$0xff] }
 0x2e6   : > { %1528 = vmatpush.msra.mxu1 %v1452_v62  ;;  %1668 = vmatpush.msrb.mxu0 %v1595_v17  ;;  %v1646_v17 = vld [vmem:[#allocation2 + $0xdb8] sm:$0xff] }
 0x2e8   : > { %1529 = vmatpush.msra.mxu1 %v1450_v0  ;;  %1669 = vmatpush.msrb.mxu0 %v1593_v21  ;;  %v1598_v0 = vld [vmem:[#allocation2 + $0xc38] sm:$0xff]  ;;  %v1803_v21 = vld [vmem:[#allocation2 + $0xea0] sm:$0xff] }
 0x2ea   : > { %1530 = vmatpush.msra.mxu1 %v1448_v60  ;;  %1670 = vmatpush.msrb.mxu0 %v1591_v29  ;;  %v1797_v29 = vld [vmem:[#allocation2 + $0xe70] sm:$0xff] }
 0x2eb   : > { %1671 = vmatmul.f32.vlgmr.msrb.gmra.mxu0 %v6404_v9 }
 0x2ec   : > { %1531 = vmatpush.msra.mxu1 %v1446_v3  ;;  %v1594_v3 = vld [vmem:[#allocation2 + $0xc18] sm:$0xff] }
 0x2ee   : > { %1532 = vmatpush.msra.mxu1 %v1444_v4  ;;  %v1592_v4 = vld [vmem:[#allocation2 + $0xc08] sm:$0xff] }
 0x2f0   : > { %1533 = vmatpush.msra.mxu1 %v1442_v10  ;;  %v1813_v10 = vld [vmem:[#allocation2 + $0xef0] sm:$0xff] }
 0x2f1   : > { %v1520_v60 = vpop.f32.mrf.mxu0 }
 0x2f2   : > { %1534 = vmatpush.msra.mxu1 %v1440_v12  ;;  %v1811_v12 = vld [vmem:[#allocation2 + $0xee0] sm:$0xff] }
 0x2f4   : > { %1535 = vmatpush.msra.mxu1 %v1438_v14  ;;  %v1809_v14 = vld [vmem:[#allocation2 + $0xed0] sm:$0xff] }
 0x2f6   : > { %1536 = vmatpush.msra.mxu1 %v1436_v16  ;;  %v1807_v16 = vld [vmem:[#allocation2 + $0xec0] sm:$0xff] }
 0x2f7   : > { %v1500_v23 = vpop.f32.mrf.mxu3 }
 0x2f8   : > { %v1501_v25 = vadd.f32 %v1500_v23, %v1480_v18  ;;  %1537 = vmatpush.msra.mxu1 %v1434_v19  ;;  %v1805_v18 = vld [vmem:[#allocation2 + $0xeb0] sm:$0xff]  ;;  %v1644_v19 = vld [vmem:[#allocation2 + $0xda8] sm:$0xff]  ;;  %v1642_v23 = vld [vmem:[#allocation2 + $0xd98] sm:$0xff] }
 0x2fa   : > { %1538 = vmatpush.msra.mxu1 %v1432_v24  ;;  %1563 = vmatpush.msra.mxu2 %v1501_v25  ;;  %v1801_v24 = vld [vmem:[#allocation2 + $0xe90] sm:$0xff]  ;;  %v1640_v25 = vld [vmem:[#allocation2 + $0xd88] sm:$0xff] }
 0x2fb   : > { %1539 = vmatmul.f32.vlgmr.msra.gmra.mxu1 %v6417_v8  ;;  %5070 = vmatmul.msk.f32.vlgmr.msra.gmra.mxu2 %vm735_vm0, %v6431_v27 }
 0x2fc   : > { %1675 = vmatpush.msrb.mxu1 %v1653_v28  ;;  %1695 = vmatpush.msrb.mxu2 %v1622_v46  ;;  %v1638_v28 = vld [vmem:[#allocation2 + $0xd78] sm:$0xff] }
 0x2fe   : > { %1676 = vmatpush.msrb.mxu1 %v1651_v30  ;;  %1696 = vmatpush.msrb.mxu2 %v1620_v47  ;;  %v1636_v30 = vld [vmem:[#allocation2 + $0xd68] sm:$0xff]  ;;  %v6445_v47 = vld [vmem:[#allocation5 + $0x30] sm:$0xff] }
 0x300   : > { %1677 = vmatpush.msrb.mxu1 %v1649_v31  ;;  %1697 = vmatpush.msrb.mxu2 %v1618_v48  ;;  %v1795_v31 = vld [vmem:[#allocation2 + $0xe60] sm:$0xff]  ;;  %v1845_v48 = vld [vmem:[#allocation2 + $0xff0] sm:$0xff] }
 0x302   : > { %1678 = vmatpush.msrb.mxu1 %v1647_v32  ;;  %1698 = vmatpush.msrb.mxu2 %v1616_v49  ;;  %v1634_v32 = vld [vmem:[#allocation2 + $0xd58] sm:$0xff]  ;;  %v1783_v49 = vld [vmem:[#allocation2 + $0xe00] sm:$0xff] }
 0x304   : > { %1679 = vmatpush.msrb.mxu1 %v1645_v33  ;;  %1699 = vmatpush.msrb.mxu2 %v1614_v50  ;;  %v1793_v33 = vld [vmem:[#allocation2 + $0xe50] sm:$0xff]  ;;  %v1843_v50 = vld [vmem:[#allocation2 + $0xfe0] sm:$0xff] }
 0x306   : > { %1680 = vmatpush.msrb.mxu1 %v1643_v34  ;;  %1700 = vmatpush.msrb.mxu2 %v1612_v51  ;;  %v1632_v34 = vld [vmem:[#allocation2 + $0xd48] sm:$0xff]  ;;  %v1841_v51 = vld [vmem:[#allocation2 + $0xfd0] sm:$0xff] }
 0x308   : > { %1681 = vmatpush.msrb.mxu1 %v1641_v35  ;;  %1701 = vmatpush.msrb.mxu2 %v1610_v54  ;;  %v1791_v35 = vld [vmem:[#allocation2 + $0xe40] sm:$0xff] }
 0x309   : > { %v1839_v54 = vld [vmem:[#allocation2 + $0xfc0] sm:$0xff] }
 0x30a   : > { %1682 = vmatpush.msrb.mxu1 %v1639_v36  ;;  %1702 = vmatpush.msrb.mxu2 %v1608_v55  ;;  %v1630_v36 = vld [vmem:[#allocation2 + $0xd38] sm:$0xff]  ;;  %v1837_v55 = vld [vmem:[#allocation2 + $0xfb0] sm:$0xff] }
 0x30c   : > { %1683 = vmatpush.msrb.mxu1 %v1637_v37  ;;  %1703 = vmatpush.msrb.mxu2 %v1606_v56  ;;  %v1789_v37 = vld [vmem:[#allocation2 + $0xe30] sm:$0xff]  ;;  %v1835_v56 = vld [vmem:[#allocation2 + $0xfa0] sm:$0xff] }
 0x30e   : > { %1684 = vmatpush.msrb.mxu1 %v1635_v39  ;;  %1704 = vmatpush.msrb.mxu2 %v1604_v57  ;;  %v1628_v39 = vld [vmem:[#allocation2 + $0xd28] sm:$0xff]  ;;  %v1833_v57 = vld [vmem:[#allocation2 + $0xf90] sm:$0xff] }
 0x310   : > { %1685 = vmatpush.msrb.mxu1 %v1633_v41  ;;  %1705 = vmatpush.msrb.mxu2 %v1602_v59  ;;  %v1787_v41 = vld [vmem:[#allocation2 + $0xe20] sm:$0xff] }
 0x311   : > { %v1831_v59 = vld [vmem:[#allocation2 + $0xf80] sm:$0xff] }
 0x312   : > { %1686 = vmatpush.msrb.mxu1 %v1631_v42  ;;  %1706 = vmatpush.msrb.mxu2 %v1600_v63  ;;  %v1829_v63 = vld [vmem:[#allocation2 + $0xf70] sm:$0xff] }
 0x314   : > { %1687 = vmatpush.msrb.mxu1 %v1629_v26  ;;  %1707 = vmatpush.msrb.mxu2 %v1598_v0  ;;  %v1626_v26 = vld [vmem:[#allocation2 + $0xd18] sm:$0xff]  ;;  %v1827_v0 = vld [vmem:[#allocation2 + $0xf60] sm:$0xff] }
 0x316   : > { %1688 = vmatpush.msrb.mxu1 %v1627_v43  ;;  %1708 = vmatpush.msrb.mxu2 %v1596_v1  ;;  %v1785_v43 = vld [vmem:[#allocation2 + $0xe10] sm:$0xff] }
 0x317   : > { %v1825_v1 = vld [vmem:[#allocation2 + $0xf50] sm:$0xff] }
 0x318   : > { %1689 = vmatpush.msrb.mxu1 %v1625_v44  ;;  %1709 = vmatpush.msrb.mxu2 %v1594_v3  ;;  %v1819_v3 = vld [vmem:[#allocation2 + $0xf20] sm:$0xff] }
 0x31a   : > { %1690 = vmatpush.msrb.mxu1 %v1623_v45  ;;  %1710 = vmatpush.msrb.mxu2 %v1592_v4  ;;  %v1624_v45 = vld [vmem:[#allocation2 + $0xd08] sm:$0xff]  ;;  %v1815_v4 = vld [vmem:[#allocation2 + $0xf00] sm:$0xff] }
 0x31b   : > { %1691 = vmatmul.f32.vlgmr.msrb.gmra.mxu1 %v6417_v8  ;;  %1711 = vmatmul.f32.vlgmr.msrb.gmra.mxu2 %v6404_v9 }
 0x31c   : > { %1847 = vmatpush.msra.mxu2 %v1813_v10 }
 0x31e   : > { %1848 = vmatpush.msra.mxu2 %v1811_v12 }
 0x320   : > { %1849 = vmatpush.msra.mxu2 %v1809_v14 }
 0x322   : > { %1850 = vmatpush.msra.mxu2 %v1807_v16  ;;  %v1812_v16 = vld [vmem:[#allocation2 + $0xee8] sm:$0xff] }
 0x324   : > { %1851 = vmatpush.msra.mxu2 %v1805_v18  ;;  %v1808_v18 = vld [vmem:[#allocation2 + $0xec8] sm:$0xff] }
 0x326   : > { %1852 = vmatpush.msra.mxu2 %v1803_v21 }
 0x328   : > { %1853 = vmatpush.msra.mxu2 %v1801_v24  ;;  %v1792_v24 = vld [vmem:[#allocation2 + $0xe48] sm:$0xff] }
 0x358   : > { %v6440_v62 = vpop.f32.mrf.mxu1 }
 0x368   : > { %v1672_v42 = vpop.f32.mrf.mxu0 }
 0x378   : > { %v1540_v2 = vpop.f32.mrf.mxu1 }
 0x379   : > { %v1541_v61 = vadd.f32 %v1540_v2, %v1520_v60  ;;  %v1823_v60 = vld [vmem:[#allocation2 + $0xf40] sm:$0xff]  ;;  %v1821_v2 = vld [vmem:[#allocation2 + $0xf30] sm:$0xff] }
 0x37b   : > { %1583 = vmatpush.msra.mxu3 %v1541_v61  ;;  %v1817_v61 = vld [vmem:[#allocation2 + $0xf10] sm:$0xff] }
 0x37c   : > { %5071 = vmatmul.msk.f32.vlgmr.msra.gmra.mxu3 %vm735_vm0, %v6431_v27  ;;  %v1799_v27 = vld [vmem:[#allocation2 + $0xe80] sm:$0xff] }
 0x37d   : > { %1715 = vmatpush.msrb.mxu3 %v1654_v7  ;;  %1854 = vmatpush.msra.mxu2 %v1799_v27  ;;  %v820_v7 = vadd.f32 %v6388_v53, %v6393_v6  ;;  %v1804_v53 = vld [vmem:[#allocation2 + $0xea8] sm:$0xff]  ;;  %v1802_v6 = vld [vmem:[#allocation2 + $0xe98] sm:$0xff] }
 0x37e   : > { %v6459_v21 = vpop.f32.mrf.mxu2  ;;  %v1788_v27 = vld [vmem:[#allocation2 + $0xe28] sm:$0xff] }
 0x37f   : > { %1716 = vmatpush.msrb.mxu3 %v1652_v11  ;;  %1855 = vmatpush.msra.mxu2 %v1797_v29  ;;  %v1013_v10 = vadd.f32 %v6407_v20, %v820_v7  ;;  %v1800_v20 = vld [vmem:[#allocation2 + $0xe88] sm:$0xff] }
 0x380   : > { %v1816_v7 = vld [vmem:[#allocation2 + $0xf08] sm:$0xff] }
 0x381   : > { %1717 = vmatpush.msrb.mxu3 %v1650_v13  ;;  %1856 = vmatpush.msra.mxu2 %v1795_v31  ;;  %v1205_v11 = vadd.f32 %v6426_v40, %v1013_v10  ;;  %v1798_v40 = vld [vmem:[#allocation2 + $0xe78] sm:$0xff] }
 0x383   : > { %1718 = vmatpush.msrb.mxu3 %v1648_v15  ;;  %1857 = vmatpush.msra.mxu2 %v1793_v33  ;;  %v1397_v12 = vadd.f32 %v6440_v62, %v1205_v11  ;;  %v1814_v15 = vld [vmem:[#allocation2 + $0xef8] sm:$0xff]  ;;  %v1796_v62 = vld [vmem:[#allocation2 + $0xe68] sm:$0xff] }
 0x384   : > { %v1846_v33 = vld [vmem:[#allocation2 + $0xff8] sm:$0xff] }
 0x385   : > { %1719 = vmatpush.msrb.mxu3 %v1646_v17  ;;  %1858 = vmatpush.msra.mxu2 %v1791_v35  ;;  %v1810_v17 = vld [vmem:[#allocation2 + $0xed8] sm:$0xff]  ;;  %v1844_v35 = vld [vmem:[#allocation2 + $0xfe8] sm:$0xff] }
 0x386   : > { %v6464_v11 = vld [vmem:[#allocation5 + $0x38] sm:$0xff] }
 0x387   : > { %1720 = vmatpush.msrb.mxu3 %v1644_v19  ;;  %1859 = vmatpush.msra.mxu2 %v1789_v37  ;;  %v1806_v19 = vld [vmem:[#allocation2 + $0xeb8] sm:$0xff] }
 0x388   : > { %v1842_v37 = vld [vmem:[#allocation2 + $0xfd8] sm:$0xff] }
 0x389   : > { %1721 = vmatpush.msrb.mxu3 %v1642_v23  ;;  %1860 = vmatpush.msra.mxu2 %v1787_v41  ;;  %v1794_v23 = vld [vmem:[#allocation2 + $0xe58] sm:$0xff]  ;;  %v1840_v41 = vld [vmem:[#allocation2 + $0xfc8] sm:$0xff] }
 0x38b   : > { %1722 = vmatpush.msrb.mxu3 %v1640_v25  ;;  %1861 = vmatpush.msra.mxu2 %v1785_v43  ;;  %v1790_v25 = vld [vmem:[#allocation2 + $0xe38] sm:$0xff]  ;;  %v1997_v43 = vld [vmem:[#allocation2 + $0x10b0] sm:$0xff] }
 0x38d   : > { %1723 = vmatpush.msrb.mxu3 %v1638_v28  ;;  %1862 = vmatpush.msra.mxu2 %v1783_v49  ;;  %v1830_v49 = vld [vmem:[#allocation2 + $0xf78] sm:$0xff] }
 0x38e   : > { %1863 = vmatmul.f32.vlgmr.msra.gmra.mxu2 %v6404_v9 }
 0x38f   : > { %1724 = vmatpush.msrb.mxu3 %v1636_v30  ;;  %v1786_v30 = vld [vmem:[#allocation2 + $0xe18] sm:$0xff] }
 0x391   : > { %1725 = vmatpush.msrb.mxu3 %v1634_v32  ;;  %v1784_v32 = vld [vmem:[#allocation2 + $0xe08] sm:$0xff] }
 0x393   : > { %1726 = vmatpush.msrb.mxu3 %v1632_v34  ;;  %v2005_v34 = vld [vmem:[#allocation2 + $0x10f0] sm:$0xff] }
 0x395   : > { %1727 = vmatpush.msrb.mxu3 %v1630_v36  ;;  %v2003_v36 = vld [vmem:[#allocation2 + $0x10e0] sm:$0xff] }
 0x397   : > { %1728 = vmatpush.msrb.mxu3 %v1628_v39  ;;  %v2001_v39 = vld [vmem:[#allocation2 + $0x10d0] sm:$0xff] }
 0x398   : > { %v1692_v44 = vpop.f32.mrf.mxu1 }
 0x399   : > { %v1693_v46 = vadd.f32 %v1692_v44, %v1672_v42  ;;  %1729 = vmatpush.msrb.mxu3 %v1626_v26  ;;  %v1999_v42 = vld [vmem:[#allocation2 + $0x10c0] sm:$0xff]  ;;  %v1838_v26 = vld [vmem:[#allocation2 + $0xfb8] sm:$0xff]  ;;  %v1836_v44 = vld [vmem:[#allocation2 + $0xfa8] sm:$0xff] }
 0x39b   : > { %1730 = vmatpush.msrb.mxu3 %v1624_v45  ;;  %1755 = vmatpush.msra.mxu0 %v1693_v46  ;;  %v1995_v45 = vld [vmem:[#allocation2 + $0x10a0] sm:$0xff]  ;;  %v1993_v46 = vld [vmem:[#allocation2 + $0x1090] sm:$0xff] }
 0x39c   : > { %1731 = vmatmul.f32.vlgmr.msrb.gmra.mxu3 %v6417_v8  ;;  %5072 = vmatmul.msk.f32.vlgmr.msra.gmra.mxu0 %vm735_vm0, %v6445_v47 }
 0x39d   : > { %1867 = vmatpush.msra.mxu3 %v1845_v48  ;;  %1887 = vmatpush.msrb.mxu0 %v1814_v15  ;;  %v1991_v48 = vld [vmem:[#allocation2 + $0x1080] sm:$0xff] }
 0x39e   : > { %v1712_v28 = vpop.f32.mrf.mxu2  ;;  %v2035_v15 = vld [vmem:[#allocation2 + $0x11e0] sm:$0xff] }
 0x39f   : > { %1868 = vmatpush.msra.mxu3 %v1843_v50  ;;  %1888 = vmatpush.msrb.mxu0 %v1812_v16  ;;  %v1989_v50 = vld [vmem:[#allocation2 + $0x1070] sm:$0xff] }
 0x3a0   : > { %v2033_v16 = vld [vmem:[#allocation2 + $0x11d0] sm:$0xff] }
 0x3a1   : > { %1869 = vmatpush.msra.mxu3 %v1841_v51  ;;  %1889 = vmatpush.msrb.mxu0 %v1810_v17  ;;  %v1828_v51 = vld [vmem:[#allocation2 + $0xf68] sm:$0xff]  ;;  %v6470_v17 = vld [vmem:[%s6360_s18] sm:$0xff] }
 0x3a3   : > { %1870 = vmatpush.msra.mxu3 %v1839_v54  ;;  %1890 = vmatpush.msrb.mxu0 %v1808_v18  ;;  %v1987_v54 = vld [vmem:[#allocation2 + $0x1060] sm:$0xff] }
 0x3a4   : > { %v2031_v18 = vld [vmem:[#allocation2 + $0x11c0] sm:$0xff] }
 0x3a5   : > { %1871 = vmatpush.msra.mxu3 %v1837_v55  ;;  %1891 = vmatpush.msrb.mxu0 %v1806_v19  ;;  %v1826_v55 = vld [vmem:[#allocation2 + $0xf58] sm:$0xff]  ;;  %v2029_v19 = vld [vmem:[#allocation2 + $0x11b0] sm:$0xff] }
 0x3a7   : > { %1872 = vmatpush.msra.mxu3 %v1835_v56  ;;  %1892 = vmatpush.msrb.mxu0 %v1804_v53  ;;  %v1985_v56 = vld [vmem:[#allocation2 + $0x1050] sm:$0xff]  ;;  %v2027_v53 = vld [vmem:[#allocation2 + $0x11a0] sm:$0xff] }
 0x3a9   : > { %1873 = vmatpush.msra.mxu3 %v1833_v57  ;;  %1893 = vmatpush.msrb.mxu0 %v1802_v6  ;;  %v1824_v57 = vld [vmem:[#allocation2 + $0xf48] sm:$0xff]  ;;  %v2025_v6 = vld [vmem:[#allocation2 + $0x1190] sm:$0xff] }
 0x3ab   : > { %1874 = vmatpush.msra.mxu3 %v1831_v59  ;;  %1894 = vmatpush.msrb.mxu0 %v1800_v20  ;;  %v1983_v59 = vld [vmem:[#allocation2 + $0x1040] sm:$0xff] }
 0x3ac   : > { %v2023_v20 = vld [vmem:[#allocation2 + $0x1180] sm:$0xff] }
 0x3ad   : > { %1875 = vmatpush.msra.mxu3 %v1829_v63  ;;  %1895 = vmatpush.msrb.mxu0 %v1798_v40  ;;  %v1822_v63 = vld [vmem:[#allocation2 + $0xf38] sm:$0xff]  ;;  %v2021_v40 = vld [vmem:[#allocation2 + $0x1170] sm:$0xff] }
 0x3af   : > { %1876 = vmatpush.msra.mxu3 %v1827_v0  ;;  %1896 = vmatpush.msrb.mxu0 %v1796_v62  ;;  %v1981_v0 = vld [vmem:[#allocation2 + $0x1030] sm:$0xff]  ;;  %v2019_v62 = vld [vmem:[#allocation2 + $0x1160] sm:$0xff] }
 0x3b1   : > { %1877 = vmatpush.msra.mxu3 %v1825_v1  ;;  %1897 = vmatpush.msrb.mxu0 %v1794_v23  ;;  %v1820_v1 = vld [vmem:[#allocation2 + $0xf28] sm:$0xff]  ;;  %v2017_v23 = vld [vmem:[#allocation2 + $0x1150] sm:$0xff] }
 0x3b3   : > { %1878 = vmatpush.msra.mxu3 %v1823_v60  ;;  %1898 = vmatpush.msrb.mxu0 %v1792_v24  ;;  %v1979_v60 = vld [vmem:[#allocation2 + $0x1020] sm:$0xff] }
 0x3b4   : > { %v2015_v24 = vld [vmem:[#allocation2 + $0x1140] sm:$0xff] }
 0x3b5   : > { %1879 = vmatpush.msra.mxu3 %v1821_v2  ;;  %1899 = vmatpush.msrb.mxu0 %v1790_v25  ;;  %v2013_v25 = vld [vmem:[#allocation2 + $0x1130] sm:$0xff] }
 0x3b7   : > { %1880 = vmatpush.msra.mxu3 %v1819_v3  ;;  %1900 = vmatpush.msrb.mxu0 %v1788_v27  ;;  %v1818_v3 = vld [vmem:[#allocation2 + $0xf18] sm:$0xff]  ;;  %v2011_v27 = vld [vmem:[#allocation2 + $0x1120] sm:$0xff] }
 0x3b9   : > { %1881 = vmatpush.msra.mxu3 %v1817_v61  ;;  %1901 = vmatpush.msrb.mxu0 %v1786_v30  ;;  %v1977_v61 = vld [vmem:[#allocation2 + $0x1010] sm:$0xff] }
 0x3bb   : > { %1882 = vmatpush.msra.mxu3 %v1815_v4  ;;  %1902 = vmatpush.msrb.mxu0 %v1784_v32  ;;  %v2006_v32 = vld [vmem:[#allocation2 + $0x10f8] sm:$0xff] }
 0x3bc   : > { %1883 = vmatmul.f32.vlgmr.msra.gmra.mxu3 %v6417_v8  ;;  %1903 = vmatmul.f32.vlgmr.msrb.gmra.mxu0 %v6404_v9  ;;  %v1834_v9 = vld [vmem:[#allocation2 + $0xf98] sm:$0xff] }
 0x3bd   : > { %2039 = vmatpush.msra.mxu0 %v2005_v34  ;;  %v2002_v34 = vld [vmem:[#allocation2 + $0x10d8] sm:$0xff] }
 0x3bf   : > { %2040 = vmatpush.msra.mxu0 %v2003_v36  ;;  %v1998_v36 = vld [vmem:[#allocation2 + $0x10b8] sm:$0xff] }
 0x3c1   : > { %2041 = vmatpush.msra.mxu0 %v2001_v39  ;;  %v1994_v39 = vld [vmem:[#allocation2 + $0x1098] sm:$0xff] }
 0x3c3   : > { %2042 = vmatpush.msra.mxu0 %v1999_v42 }
 0x3c5   : > { %2043 = vmatpush.msra.mxu0 %v1997_v43  ;;  %v1984_v43 = vld [vmem:[#allocation2 + $0x1048] sm:$0xff] }
 0x3c7   : > { %2044 = vmatpush.msra.mxu0 %v1995_v45  ;;  %v1980_v45 = vld [vmem:[#allocation2 + $0x1028] sm:$0xff] }
 0x3c9   : > { %2045 = vmatpush.msra.mxu0 %v1993_v46 }
 0x3cb   : > { %2046 = vmatpush.msra.mxu0 %v1991_v48 }
 0x3cd   : > { %2047 = vmatpush.msra.mxu0 %v1989_v50  ;;  %v2038_v50 = vld [vmem:[#allocation2 + $0x11f8] sm:$0xff] }
 0x3cf   : > { %2048 = vmatpush.msra.mxu0 %v1987_v54  ;;  %v5403_v54 = vld [vmem:[#allocation2 + $0xf0] sm:$0xff] }
 0x3d1   : > { %2049 = vmatpush.msra.mxu0 %v1985_v56  ;;  %v5404_v56 = vld [vmem:[#allocation2 + $0xe0] sm:$0xff] }
 0x3d3   : > { %2050 = vmatpush.msra.mxu0 %v1983_v59  ;;  %v5405_v59 = vld [vmem:[#allocation2 + $0xd0] sm:$0xff] }
 0x3d5   : > { %2051 = vmatpush.msra.mxu0 %v1981_v0  ;;  %v5406_v0 = vld [vmem:[#allocation2 + $0xc0] sm:$0xff] }
 0x3d7   : > { %2052 = vmatpush.msra.mxu0 %v1979_v60  ;;  %v5407_v60 = vld [vmem:[#allocation2 + $0xb0] sm:$0xff] }
 0x3d9   : > { %2053 = vmatpush.msra.mxu0 %v1977_v61  ;;  %v2024_v61 = vld [vmem:[#allocation2 + $0x1188] sm:$0xff] }
 0x3ff   : > { %v1585_v13 = vpop.f32.mrf.mxu3 }
 0x400   : > { %v6457_v14 = vadd.f32 %v1585_v13, %v1397_v12  ;;  %v2037_v12 = vld [vmem:[#allocation2 + $0x11f0] sm:$0xff]  ;;  %v1975_v13 = vld [vmem:[#allocation2 + $0x1000] sm:$0xff] }
 0x401   : > { %2054 = vmatpush.msra.mxu0 %v1975_v13  ;;  %v2018_v13 = vld [vmem:[#allocation2 + $0x1158] sm:$0xff] }
 0x402   : > { %2055 = vmatmul.f32.vlgmr.msra.gmra.mxu0 %v6470_v17 }
 0x411   : > { %v1864_v2 = vpop.f32.mrf.mxu2 }
 0x419   : > { %v6477_v42 = vpop.f32.mrf.mxu0 }
 0x41f   : > { %v1732_v29 = vpop.f32.mrf.mxu3 }
 0x420   : > { %v1733_v31 = vadd.f32 %v1732_v29, %v1712_v28  ;;  %v2009_v28 = vld [vmem:[#allocation2 + $0x1110] sm:$0xff]  ;;  %v2007_v29 = vld [vmem:[#allocation2 + $0x1100] sm:$0xff] }
 0x422   : > { %1775 = vmatpush.msra.mxu1 %v1733_v31 }
 0x423   : > { %5073 = vmatmul.msk.f32.vlgmr.msra.gmra.mxu1 %vm735_vm0, %v6445_v47  ;;  %v1832_v47 = vld [vmem:[#allocation2 + $0xf88] sm:$0xff] }
 0x424   : > { %1907 = vmatpush.msrb.mxu1 %v1846_v33  ;;  %v2004_v33 = vld [vmem:[#allocation2 + $0x10e8] sm:$0xff] }
 0x426   : > { %1908 = vmatpush.msrb.mxu1 %v1844_v35  ;;  %v2000_v35 = vld [vmem:[#allocation2 + $0x10c8] sm:$0xff] }
 0x428   : > { %1909 = vmatpush.msrb.mxu1 %v1842_v37  ;;  %v1996_v37 = vld [vmem:[#allocation2 + $0x10a8] sm:$0xff] }
 0x42a   : > { %1910 = vmatpush.msrb.mxu1 %v1840_v41  ;;  %v1992_v41 = vld [vmem:[#allocation2 + $0x1088] sm:$0xff] }
 0x42c   : > { %1911 = vmatpush.msrb.mxu1 %v1838_v26  ;;  %v1986_v26 = vld [vmem:[#allocation2 + $0x1058] sm:$0xff] }
 0x42e   : > { %1912 = vmatpush.msrb.mxu1 %v1836_v44  ;;  %v1982_v44 = vld [vmem:[#allocation2 + $0x1038] sm:$0xff] }
 0x430   : > { %1913 = vmatpush.msrb.mxu1 %v1834_v9 }
 0x432   : > { %1914 = vmatpush.msrb.mxu1 %v1832_v47  ;;  %v1978_v47 = vld [vmem:[#allocation2 + $0x1018] sm:$0xff] }
 0x434   : > { %1915 = vmatpush.msrb.mxu1 %v1830_v49  ;;  %v1976_v49 = vld [vmem:[#allocation2 + $0x1008] sm:$0xff] }
 0x436   : > { %1916 = vmatpush.msrb.mxu1 %v1828_v51  ;;  %v2036_v51 = vld [vmem:[#allocation2 + $0x11e8] sm:$0xff] }
 0x438   : > { %1917 = vmatpush.msrb.mxu1 %v1826_v55  ;;  %v2034_v55 = vld [vmem:[#allocation2 + $0x11d8] sm:$0xff] }
 0x439   : > { %v1904_v9 = vpop.f32.mrf.mxu0 }
 0x43a   : > { %1918 = vmatpush.msrb.mxu1 %v1824_v57  ;;  %v2032_v57 = vld [vmem:[#allocation2 + $0x11c8] sm:$0xff] }
 0x43c   : > { %1919 = vmatpush.msrb.mxu1 %v1822_v63  ;;  %v2030_v63 = vld [vmem:[#allocation2 + $0x11b8] sm:$0xff] }
 0x43e   : > { %1920 = vmatpush.msrb.mxu1 %v1820_v1  ;;  %v2028_v1 = vld [vmem:[#allocation2 + $0x11a8] sm:$0xff] }
 0x43f   : > { %v1884_v4 = vpop.f32.mrf.mxu3 }
 0x440   : > { %v1885_v10 = vadd.f32 %v1884_v4, %v1864_v2  ;;  %1921 = vmatpush.msrb.mxu1 %v1818_v3  ;;  %v2026_v2 = vld [vmem:[#allocation2 + $0x1198] sm:$0xff]  ;;  %v5408_v3 = vld [vmem:[#allocation2 + $0xa0] sm:$0xff]  ;;  %v5409_v4 = vld [vmem:[#allocation2 + $0x90] sm:$0xff] }
 0x442   : > { %1922 = vmatpush.msrb.mxu1 %v1816_v7  ;;  %1947 = vmatpush.msrb.mxu2 %v1885_v10  ;;  %v2022_v7 = vld [vmem:[#allocation2 + $0x1178] sm:$0xff]  ;;  %v5410_v10 = vld [vmem:[#allocation2 + $0x80] sm:$0xff] }
 0x443   : > { %1923 = vmatmul.f32.vlgmr.msrb.gmra.mxu1 %v6417_v8  ;;  %5074 = vmatmul.msk.f32.vlgmr.msrb.gmra.mxu2 %vm735_vm0, %v6464_v11 }
 0x444   : > { %2059 = vmatpush.msra.mxu1 %v2037_v12  ;;  %2079 = vmatpush.msra.mxu2 %v2006_v32  ;;  %v5411_v12 = vld [vmem:[#allocation2 + $0x70] sm:$0xff]  ;;  %v5420_v32 = vld [vmem:[#allocation2 + $0xf8] sm:$0xff] }
 0x446   : > { %2060 = vmatpush.msra.mxu1 %v2035_v15  ;;  %2080 = vmatpush.msra.mxu2 %v2004_v33  ;;  %v5412_v15 = vld [vmem:[#allocation2 + $0x60] sm:$0xff] }
 0x447   : > { %v5421_v33 = vld [vmem:[#allocation2] sm:$0xff] }
 0x448   : > { %2061 = vmatpush.msra.mxu1 %v2033_v16  ;;  %2081 = vmatpush.msra.mxu2 %v2002_v34  ;;  %v2016_v16 = vld [vmem:[#allocation2 + $0x1148] sm:$0xff]  ;;  %v5422_v34 = vld [vmem:[#allocation2 + $0x1e0] sm:$0xff] }
 0x44a   : > { %2062 = vmatpush.msra.mxu1 %v2031_v18  ;;  %2082 = vmatpush.msra.mxu2 %v2000_v35  ;;  %v2014_v18 = vld [vmem:[#allocation2 + $0x1138] sm:$0xff]  ;;  %v5423_v35 = vld [vmem:[#allocation2 + $0xe8] sm:$0xff] }
 0x44c   : > { %2063 = vmatpush.msra.mxu1 %v2029_v19  ;;  %2083 = vmatpush.msra.mxu2 %v1998_v36  ;;  %v5414_v19 = vld [vmem:[#allocation2 + $0x40] sm:$0xff]  ;;  %v5424_v36 = vld [vmem:[#allocation2 + $0x2f0] sm:$0xff] }
 0x44e   : > { %2064 = vmatpush.msra.mxu1 %v2027_v53  ;;  %2084 = vmatpush.msra.mxu2 %v1996_v37  ;;  %v2012_v53 = vld [vmem:[#allocation2 + $0x1128] sm:$0xff]  ;;  %v5425_v37 = vld [vmem:[#allocation2 + $0x1d0] sm:$0xff] }
 0x450   : > { %2065 = vmatpush.msra.mxu1 %v2025_v6  ;;  %2085 = vmatpush.msra.mxu2 %v1994_v39  ;;  %v5415_v6 = vld [vmem:[#allocation2 + $0x30] sm:$0xff]  ;;  %v5426_v39 = vld [vmem:[#allocation2 + $0xd8] sm:$0xff] }
 0x452   : > { %2066 = vmatpush.msra.mxu1 %v2023_v20  ;;  %2086 = vmatpush.msra.mxu2 %v1992_v41  ;;  %v5427_v41 = vld [vmem:[#allocation2 + $0x2e0] sm:$0xff] }
 0x454   : > { %2067 = vmatpush.msra.mxu1 %v2021_v40  ;;  %v2010_v40 = vld [vmem:[#allocation2 + $0x1118] sm:$0xff] }
 0x456   : > { %2068 = vmatpush.msra.mxu1 %v2019_v62  ;;  %v5416_v62 = vld [vmem:[#allocation2 + $0x20] sm:$0xff] }
 0x458   : > { %2069 = vmatpush.msra.mxu1 %v2017_v23 }
 0x45a   : > { %2070 = vmatpush.msra.mxu1 %v2015_v24  ;;  %v2008_v24 = vld [vmem:[#allocation2 + $0x1108] sm:$0xff] }
 0x45c   : > { %2071 = vmatpush.msra.mxu1 %v2013_v25 }
 0x45e   : > { %2072 = vmatpush.msra.mxu1 %v2011_v27  ;;  %v6482_v27 = vld [vmem:[#allocation5 + $0x40] sm:$0xff] }
 0x460   : > { %2073 = vmatpush.msra.mxu1 %v2009_v28  ;;  %v5417_v28 = vld [vmem:[#allocation2 + $0x10] sm:$0xff] }
 0x462   : > { %2074 = vmatpush.msra.mxu1 %v2007_v29  ;;  %v5418_v29 = vld [vmem:[%s6360_s18 + $0x8] sm:$0xff] }
 0x463   : > { %2075 = vmatmul.f32.vlgmr.msra.gmra.mxu1 %v6417_v8  ;;  %v1990_v8 = vld [vmem:[#allocation2 + $0x1078] sm:$0xff] }
 0x464   : > { %2087 = vmatpush.msra.mxu2 %v1990_v8  ;;  %v5428_v8 = vld [vmem:[#allocation2 + $0x1c0] sm:$0xff] }
 0x47f   : > { %v2056_v20 = vpop.f32.mrf.mxu0 }
 0x4a0   : > { %v1777_v30 = vpop.f32.mrf.mxu1 }
 0x4a1   : > { %v6475_v31 = vadd.f32 %v1777_v30, %v6457_v14  ;;  %v1988_v14 = vld [vmem:[#allocation2 + $0x1068] sm:$0xff]  ;;  %v5419_v30 = vld [vmem:[#allocation2 + $0x1f0] sm:$0xff] }
 0x4a2   : > { %2088 = vmatpush.msra.mxu2 %v1988_v14  ;;  %v5429_v14 = vld [vmem:[#allocation2 + $0xc8] sm:$0xff] }
 0x4a4   : > { %2089 = vmatpush.msra.mxu2 %v1986_v26  ;;  %v5430_v26 = vld [vmem:[#allocation2 + $0x2d0] sm:$0xff] }
 0x4a6   : > { %2090 = vmatpush.msra.mxu2 %v1984_v43  ;;  %v5431_v43 = vld [vmem:[#allocation2 + $0x1b0] sm:$0xff] }
 0x4a8   : > { %2091 = vmatpush.msra.mxu2 %v1982_v44  ;;  %v5432_v44 = vld [vmem:[#allocation2 + $0xb8] sm:$0xff] }
 0x4aa   : > { %2092 = vmatpush.msra.mxu2 %v1980_v45  ;;  %v5433_v45 = vld [vmem:[#allocation2 + $0x2c0] sm:$0xff] }
 0x4ac   : > { %2093 = vmatpush.msra.mxu2 %v1978_v47  ;;  %v5436_v47 = vld [vmem:[#allocation2 + $0x2b0] sm:$0xff] }
 0x4ae   : > { %2094 = vmatpush.msra.mxu2 %v1976_v49  ;;  %v5438_v49 = vld [vmem:[#allocation2 + $0x98] sm:$0xff] }
 0x4af   : > { %2095 = vmatmul.f32.vlgmr.msra.gmra.mxu2 %v6470_v17  ;;  %v5413_v17 = vld [vmem:[#allocation2 + $0x50] sm:$0xff] }
 0x4b0   : > { %2200 = vmatpush.msrb.mxu2 %v5403_v54  ;;  %v5441_v54 = vld [vmem:[#allocation2 + $0x88] sm:$0xff] }
 0x4b2   : > { %2201 = vmatpush.msrb.mxu2 %v5404_v56  ;;  %v5443_v56 = vld [vmem:[#allocation2 + $0x170] sm:$0xff] }
 0x4b4   : > { %2202 = vmatpush.msrb.mxu2 %v5405_v59  ;;  %v5445_v59 = vld [vmem:[#allocation2 + $0x280] sm:$0xff] }
 0x4b6   : > { %2203 = vmatpush.msrb.mxu2 %v5406_v0  ;;  %v5447_v0 = vld [vmem:[#allocation2 + $0x68] sm:$0xff] }
 0x4b8   : > { %2204 = vmatpush.msrb.mxu2 %v5407_v60  ;;  %v5449_v60 = vld [vmem:[#allocation2 + $0x150] sm:$0xff] }
 0x4ba   : > { %2205 = vmatpush.msrb.mxu2 %v5408_v3  ;;  %v5451_v3 = vld [vmem:[#allocation2 + $0x260] sm:$0xff] }
 0x4bc   : > { %2206 = vmatpush.msrb.mxu2 %v5409_v4  ;;  %v5453_v4 = vld [vmem:[#allocation2 + $0x48] sm:$0xff] }
 0x4be   : > { %2207 = vmatpush.msrb.mxu2 %v5410_v10  ;;  %v5455_v10 = vld [vmem:[#allocation2 + $0x130] sm:$0xff] }
 0x4c0   : > { %v1924_v46 = vpop.f32.mrf.mxu1  ;;  %2208 = vmatpush.msrb.mxu2 %v5411_v12  ;;  %v5457_v12 = vld [vmem:[#allocation2 + $0x240] sm:$0xff] }
 0x4c1   : > { %v1925_v48 = vadd.f32 %v1924_v46, %v1904_v9  ;;  %v5434_v9 = vld [vmem:[#allocation2 + $0x1a0] sm:$0xff]  ;;  %v5435_v46 = vld [vmem:[#allocation2 + $0xa8] sm:$0xff] }
 0x4c2   : > { %2209 = vmatpush.msrb.mxu2 %v5412_v15  ;;  %v5459_v15 = vld [vmem:[#allocation2 + $0x28] sm:$0xff] }
 0x4c3   : > { %1967 = vmatpush.msrb.mxu3 %v1925_v48  ;;  %v5437_v48 = vld [vmem:[#allocation2 + $0x190] sm:$0xff] }
 0x4c4   : > { %5075 = vmatmul.msk.f32.vlgmr.msrb.gmra.mxu3 %vm735_vm0, %v6464_v11  ;;  %v2020_v11 = vld [vmem:[#allocation2 + $0x1168] sm:$0xff]  ;;  %2210 = vmatpush.msrb.mxu2 %v5413_v17  ;;  %v5461_v17 = vld [vmem:[#allocation2 + $0x110] sm:$0xff] }
 0x4c5   : > { %2099 = vmatpush.msra.mxu3 %v2038_v50  ;;  %v5439_v50 = vld [vmem:[#allocation2 + $0x2a0] sm:$0xff] }
 0x4c6   : > { %2211 = vmatpush.msrb.mxu2 %v5414_v19  ;;  %v5463_v19 = vld [vmem:[#allocation2 + $0x220] sm:$0xff] }
 0x4c7   : > { %2100 = vmatpush.msra.mxu3 %v2036_v51  ;;  %v5440_v51 = vld [vmem:[#allocation2 + $0x180] sm:$0xff] }
 0x4c8   : > { %2212 = vmatpush.msrb.mxu2 %v5415_v6  ;;  %v5465_v6 = vld [vmem:[#allocation2 + $0x8] sm:$0xff] }
 0x4c9   : > { %2101 = vmatpush.msra.mxu3 %v2034_v55  ;;  %v5442_v55 = vld [vmem:[#allocation2 + $0x290] sm:$0xff] }
 0x4ca   : > { %2213 = vmatpush.msrb.mxu2 %v5416_v62  ;;  %v5468_v62 = vld [vmem:[#allocation2 + $0x210] sm:$0xff] }
 0x4cb   : > { %2102 = vmatpush.msra.mxu3 %v2032_v57  ;;  %v5444_v57 = vld [vmem:[#allocation2 + $0x78] sm:$0xff] }
 0x4cc   : > { %2214 = vmatpush.msrb.mxu2 %v5417_v28  ;;  %v5472_v28 = vld [vmem:[#allocation2 + $0x3d0] sm:$0xff] }
 0x4cd   : > { %2103 = vmatpush.msra.mxu3 %v2030_v63  ;;  %v5446_v63 = vld [vmem:[#allocation2 + $0x160] sm:$0xff] }
 0x4ce   : > { %2215 = vmatpush.msrb.mxu2 %v5421_v33  ;;  %v5476_v33 = vld [vmem:[#allocation2 + $0x3b0] sm:$0xff] }
 0x4cf   : > { %2104 = vmatpush.msra.mxu3 %v2028_v1  ;;  %v5448_v1 = vld [vmem:[#allocation2 + $0x270] sm:$0xff] }
 0x4d0   : > { %2281 = vmatpush.msra.mxu2 %v5424_v36  ;;  %v5479_v36 = vld [vmem:[#allocation2 + $0x2a8] sm:$0xff] }
 0x4d1   : > { %2105 = vmatpush.msra.mxu3 %v2026_v2  ;;  %v5450_v2 = vld [vmem:[#allocation2 + $0x58] sm:$0xff] }
 0x4d2   : > { %2282 = vmatpush.msra.mxu2 %v5427_v41  ;;  %v5482_v41 = vld [vmem:[#allocation2 + $0x380] sm:$0xff] }
 0x4d3   : > { %2106 = vmatpush.msra.mxu3 %v2024_v61  ;;  %v5452_v61 = vld [vmem:[#allocation2 + $0x140] sm:$0xff] }
 0x4d4   : > { %2283 = vmatpush.msra.mxu2 %v5430_v26  ;;  %v5485_v26 = vld [vmem:[#allocation2 + $0x278] sm:$0xff] }
 0x4d5   : > { %2107 = vmatpush.msra.mxu3 %v2022_v7  ;;  %v5454_v7 = vld [vmem:[#allocation2 + $0x250] sm:$0xff] }
 0x4d6   : > { %2284 = vmatpush.msra.mxu2 %v5433_v45  ;;  %v5488_v45 = vld [vmem:[#allocation2 + $0x350] sm:$0xff] }
 0x4d7   : > { %2108 = vmatpush.msra.mxu3 %v2020_v11  ;;  %v5456_v11 = vld [vmem:[#allocation2 + $0x38] sm:$0xff] }
 0x4d8   : > { %2285 = vmatpush.msra.mxu2 %v5436_v47  ;;  %v5491_v47 = vld [vmem:[#allocation2 + $0x248] sm:$0xff] }
 0x4d9   : > { %2109 = vmatpush.msra.mxu3 %v2018_v13  ;;  %v5458_v13 = vld [vmem:[#allocation2 + $0x120] sm:$0xff] }
 0x4da   : > { %2286 = vmatpush.msra.mxu2 %v5439_v50  ;;  %v5494_v50 = vld [vmem:[#allocation2 + $0x320] sm:$0xff] }
 0x4db   : > { %2110 = vmatpush.msra.mxu3 %v2016_v16  ;;  %v5460_v16 = vld [vmem:[#allocation2 + $0x230] sm:$0xff] }
 0x4dc   : > { %2287 = vmatpush.msra.mxu2 %v5442_v55  ;;  %v5497_v55 = vld [vmem:[#allocation2 + $0x218] sm:$0xff] }
 0x4dd   : > { %2111 = vmatpush.msra.mxu3 %v2014_v18  ;;  %v5462_v18 = vld [vmem:[#allocation2 + $0x18] sm:$0xff] }
 0x4de   : > { %2288 = vmatpush.msra.mxu2 %v5445_v59 }
 0x4df   : > { %2112 = vmatpush.msra.mxu3 %v2012_v53  ;;  %v5464_v53 = vld [vmem:[#allocation2 + $0x100] sm:$0xff] }
 0x4e0   : > { %v2076_v23 = vpop.f32.mrf.mxu1  ;;  %2289 = vmatpush.msra.mxu2 %v5448_v1 }
 0x4e1   : > { %v2077_v25 = vadd.f32 %v2076_v23, %v2056_v20  ;;  %2113 = vmatpush.msra.mxu3 %v2010_v40  ;;  %v5466_v20 = vld [vmem:[#allocation2 + $0x3f0] sm:$0xff]  ;;  %v5467_v40 = vld [vmem:[#allocation2 + $0x2f8] sm:$0xff]  ;;  %v5469_v23 = vld [vmem:[#allocation2 + $0x3e0] sm:$0xff] }
 0x4e2   : > { %2290 = vmatpush.msra.mxu2 %v5451_v3  ;;  %v5500_v3 = vld [vmem:[#allocation2 + $0x1f8] sm:$0xff] }
 0x4e3   : > { %2114 = vmatpush.msra.mxu3 %v2008_v24  ;;  %2139 = vmatpush.msrb.mxu0 %v2077_v25  ;;  %v5470_v24 = vld [vmem:[#allocation2 + $0x2e8] sm:$0xff]  ;;  %v5471_v25 = vld [vmem:[#allocation2 + $0x200] sm:$0xff] }
 0x4e4   : > { %2115 = vmatmul.f32.vlgmr.msra.gmra.mxu3 %v5418_v29  ;;  %5076 = vmatmul.msk.f32.vlgmr.msrb.gmra.mxu0 %vm735_vm0, %v6482_v27  ;;  %v5473_v29 = vld [vmem:[#allocation2 + $0x2d8] sm:$0xff] }
 0x4e5   : > { %2220 = vmatpush.msrb.mxu3 %v5419_v30  ;;  %2240 = vmatpush.msra.mxu0 %v5420_v32  ;;  %v5474_v30 = vld [vmem:[#allocation2 + $0x3c0] sm:$0xff]  ;;  %v5475_v32 = vld [vmem:[#allocation2 + $0x2c8] sm:$0xff] }
 0x4e6   : > { %2291 = vmatpush.msra.mxu2 %v5454_v7  ;;  %v5503_v7 = vld [vmem:[#allocation2 + $0x1c8] sm:$0xff] }
 0x4e7   : > { %2221 = vmatpush.msrb.mxu3 %v5422_v34  ;;  %2241 = vmatpush.msra.mxu0 %v5423_v35  ;;  %v5477_v34 = vld [vmem:[#allocation2 + $0x2b8] sm:$0xff]  ;;  %v5478_v35 = vld [vmem:[#allocation2 + $0x3a0] sm:$0xff] }
 0x4e8   : > { %2292 = vmatpush.msra.mxu2 %v5457_v12  ;;  %v5507_v12 = vld [vmem:[#allocation2 + $0x188] sm:$0xff] }
 0x4e9   : > { %2222 = vmatpush.msrb.mxu3 %v5425_v37  ;;  %2242 = vmatpush.msra.mxu0 %v5426_v39  ;;  %v5480_v37 = vld [vmem:[#allocation2 + $0x390] sm:$0xff]  ;;  %v5481_v39 = vld [vmem:[#allocation2 + $0x298] sm:$0xff] }
 0x4ea   : > { %2293 = vmatpush.msra.mxu2 %v5460_v16  ;;  %v5511_v16 = vld [vmem:[#allocation2 + $0x148] sm:$0xff] }
 0x4eb   : > { %2223 = vmatpush.msrb.mxu3 %v5428_v8  ;;  %2243 = vmatpush.msra.mxu0 %v5429_v14  ;;  %v5483_v8 = vld [vmem:[#allocation2 + $0x288] sm:$0xff]  ;;  %v5484_v14 = vld [vmem:[#allocation2 + $0x370] sm:$0xff] }
 0x4ec   : > { %2294 = vmatpush.msra.mxu2 %v5463_v19  ;;  %v5514_v19 = vld [vmem:[#allocation2 + $0x118] sm:$0xff] }
 0x4ed   : > { %2224 = vmatpush.msrb.mxu3 %v5431_v43  ;;  %2244 = vmatpush.msra.mxu0 %v5432_v44  ;;  %v5486_v43 = vld [vmem:[#allocation2 + $0x360] sm:$0xff]  ;;  %v5487_v44 = vld [vmem:[#allocation2 + $0x268] sm:$0xff] }
 0x4ee   : > { %2295 = vmatpush.msra.mxu2 %v5468_v62  ;;  %v5519_v62 = vld [vmem:[#allocation2 + $0x3c8] sm:$0xff] }
 0x4ef   : > { %2225 = vmatpush.msrb.mxu3 %v5434_v9  ;;  %2245 = vmatpush.msra.mxu0 %v5435_v46  ;;  %v5489_v9 = vld [vmem:[#allocation2 + $0x258] sm:$0xff]  ;;  %v5490_v46 = vld [vmem:[#allocation2 + $0x340] sm:$0xff] }
 0x4f0   : > { %2296 = vmatpush.msra.mxu2 %v5471_v25  ;;  %v5522_v25 = vld [vmem:[#allocation2 + $0x398] sm:$0xff] }
 0x4f1   : > { %2226 = vmatpush.msrb.mxu3 %v5437_v48  ;;  %2246 = vmatpush.msra.mxu0 %v5438_v49  ;;  %v5492_v48 = vld [vmem:[#allocation2 + $0x330] sm:$0xff]  ;;  %v5493_v49 = vld [vmem:[#allocation2 + $0x238] sm:$0xff] }
 0x4f3   : > { %2227 = vmatpush.msrb.mxu3 %v5440_v51  ;;  %2247 = vmatpush.msra.mxu0 %v5441_v54  ;;  %v5495_v51 = vld [vmem:[#allocation2 + $0x228] sm:$0xff]  ;;  %v5496_v54 = vld [vmem:[#allocation2 + $0x310] sm:$0xff] }
 0x4f5   : > { %2228 = vmatpush.msrb.mxu3 %v5443_v56  ;;  %2248 = vmatpush.msra.mxu0 %v5444_v57  ;;  %v5498_v56 = vld [vmem:[#allocation2 + $0x300] sm:$0xff]  ;;  %v5499_v57 = vld [vmem:[#allocation2 + $0x208] sm:$0xff] }
 0x4f7   : > { %2229 = vmatpush.msrb.mxu3 %v5446_v63  ;;  %2249 = vmatpush.msra.mxu0 %v5447_v0  ;;  %v6490_v0 = vpop.f32.mrf.mxu2 }
 0x4f9   : > { %2230 = vmatpush.msrb.mxu3 %v5449_v60  ;;  %2250 = vmatpush.msra.mxu0 %v5450_v2 }
 0x4fb   : > { %2231 = vmatpush.msrb.mxu3 %v5452_v61  ;;  %2251 = vmatpush.msra.mxu0 %v5453_v4  ;;  %v5501_v61 = vld [vmem:[#allocation2 + $0x1e8] sm:$0xff]  ;;  %v5502_v4 = vld [vmem:[#allocation2 + $0x1d8] sm:$0xff] }
 0x4fd   : > { %2232 = vmatpush.msrb.mxu3 %v5455_v10  ;;  %2252 = vmatpush.msra.mxu0 %v5456_v11  ;;  %v5504_v10 = vld [vmem:[#allocation2 + $0x1b8] sm:$0xff] }
 0x4fe   : > { %v5506_v11 = vld [vmem:[#allocation2 + $0x198] sm:$0xff] }
 0x4ff   : > { %2233 = vmatpush.msrb.mxu3 %v5458_v13  ;;  %2253 = vmatpush.msra.mxu0 %v5459_v15  ;;  %v5508_v13 = vld [vmem:[#allocation2 + $0x178] sm:$0xff]  ;;  %v5509_v15 = vld [vmem:[#allocation2 + $0x168] sm:$0xff] }
 0x501   : > { %2234 = vmatpush.msrb.mxu3 %v5461_v17  ;;  %2254 = vmatpush.msra.mxu0 %v5462_v18  ;;  %v5512_v17 = vld [vmem:[#allocation2 + $0x138] sm:$0xff]  ;;  %v5513_v18 = vld [vmem:[#allocation2 + $0x128] sm:$0xff] }
 0x503   : > { %2235 = vmatpush.msrb.mxu3 %v5464_v53  ;;  %2255 = vmatpush.msra.mxu0 %v5465_v6  ;;  %v5515_v53 = vld [vmem:[#allocation2 + $0x108] sm:$0xff]  ;;  %v5516_v6 = vld [vmem:[#allocation2 + $0x3f8] sm:$0xff] }
 0x505   : > { %2301 = vmatpush.msra.mxu3 %v5466_v20  ;;  %2321 = vmatpush.msrb.mxu0 %v5467_v40  ;;  %v5517_v20 = vld [vmem:[#allocation2 + $0x3e8] sm:$0xff]  ;;  %v5518_v40 = vld [vmem:[#allocation2 + $0x3d8] sm:$0xff] }
 0x507   : > { %2302 = vmatpush.msra.mxu3 %v5469_v23  ;;  %2322 = vmatpush.msrb.mxu0 %v5470_v24  ;;  %v5520_v23 = vld [vmem:[#allocation2 + $0x3b8] sm:$0xff]  ;;  %v5521_v24 = vld [vmem:[#allocation2 + $0x3a8] sm:$0xff] }
 0x509   : > { %2303 = vmatpush.msra.mxu3 %v5472_v28  ;;  %2323 = vmatpush.msrb.mxu0 %v5473_v29  ;;  %v5523_v28 = vld [vmem:[#allocation2 + $0x388] sm:$0xff]  ;;  %v5524_v29 = vld [vmem:[#allocation2 + $0x378] sm:$0xff] }
 0x50b   : > { %2304 = vmatpush.msra.mxu3 %v5474_v30  ;;  %2324 = vmatpush.msrb.mxu0 %v5475_v32  ;;  %v5525_v30 = vld [vmem:[#allocation2 + $0x368] sm:$0xff]  ;;  %v5526_v32 = vld [vmem:[#allocation2 + $0x358] sm:$0xff] }
 0x50d   : > { %2305 = vmatpush.msra.mxu3 %v5476_v33  ;;  %2325 = vmatpush.msrb.mxu0 %v5477_v34  ;;  %v5527_v33 = vld [vmem:[#allocation2 + $0x348] sm:$0xff]  ;;  %v5528_v34 = vld [vmem:[#allocation2 + $0x338] sm:$0xff] }
 0x50f   : > { %2306 = vmatpush.msra.mxu3 %v5478_v35  ;;  %2326 = vmatpush.msrb.mxu0 %v5479_v36  ;;  %v5529_v35 = vld [vmem:[#allocation2 + $0x328] sm:$0xff]  ;;  %v5530_v36 = vld [vmem:[#allocation2 + $0x318] sm:$0xff] }
 0x511   : > { %2307 = vmatpush.msra.mxu3 %v5480_v37  ;;  %2327 = vmatpush.msrb.mxu0 %v5481_v39  ;;  %v5531_v37 = vld [vmem:[#allocation2 + $0x308] sm:$0xff]  ;;  %v800_v39 = vadd.f32 %v6386_v52, %v6391_v5  ;;  %v6216_v52 = vmov 256.0  }
 0x512   : > { %5198 = vrcp.f32 %v6216_v52  ;;  %v5554_v52 = vld [vmem:[#allocation2 + $0x498] sm:$0xff] }
 0x513   : > { %2308 = vmatpush.msra.mxu3 %v5482_v41  ;;  %2328 = vmatpush.msrb.mxu0 %v5483_v8  ;;  %v1012_v41 = vadd.f32 %v6409_v22, %v800_v39  ;;  %v5542_v39 = vld [vmem:[#allocation2 + $0x5a8] sm:$0xff] }
 0x515   : > { %2309 = vmatpush.msra.mxu3 %v5484_v14  ;;  %2329 = vmatpush.msrb.mxu0 %v5485_v26  ;;  %v1204_v8 = vadd.f32 %v6424_v38, %v1012_v41  ;;  %v5543_v41 = vld [vmem:[#allocation2 + $0x4c8] sm:$0xff] }
 0x517   : > { %2310 = vmatpush.msra.mxu3 %v5486_v43  ;;  %2330 = vmatpush.msrb.mxu0 %v5487_v44  ;;  %v1396_v14 = vadd.f32 %v6438_v58, %v1204_v8  ;;  %v5544_v8 = vld [vmem:[#allocation2 + $0x5d0] sm:$0xff] }
 0x518   : > { %v5199_v5 = vpop.eup %5198 }
 0x519   : > { %2311 = vmatpush.msra.mxu3 %v5488_v45  ;;  %2331 = vmatpush.msrb.mxu0 %v5489_v9  ;;  %v1588_v26 = vadd.f32 %v6459_v21, %v1396_v14  ;;  %v2170_v22 = vmul.f32 256.0, %v5199_v5  ;;  %vm2174_vm1 = vweird.f32 %v5199_v5  ;;  %v5545_v14 = vld [vmem:[#allocation2 + $0x598] sm:$0xff] }
 0x51b   : > { %2312 = vmatpush.msra.mxu3 %v5490_v46  ;;  %2332 = vmatpush.msrb.mxu0 %v5491_v47  ;;  %v1780_v43 = vadd.f32 %v6477_v42, %v1588_v26  ;;  %v2171_v38 = vsub.f32 1.0, %v2170_v22  ;;  %v5546_v26 = vld [vmem:[#allocation2 + $0x4b8] sm:$0xff]  ;;  %v5556_v22 = vld [vmem:[#allocation2 + $0x5a0] sm:$0xff] }
 0x51d   : > { %2313 = vmatpush.msra.mxu3 %v5492_v48  ;;  %2333 = vmatpush.msrb.mxu0 %v5493_v49  ;;  %v1972_v45 = vadd.f32 %v6490_v0, %v1780_v43  ;;  %v2172_v49 = vmul.f32 %v5199_v5, %v2171_v38  ;;  %v5547_v43 = vld [vmem:[#allocation2 + $0x4f0] sm:$0xff]  ;;  %v5557_v38 = vld [vmem:[#allocation2 + $0x568] sm:$0xff] }
 0x51f   : > { %2314 = vmatpush.msra.mxu3 %v5494_v50  ;;  %2334 = vmatpush.msrb.mxu0 %v5495_v51  ;;  %v2173_v58 = vadd.f32 %v5199_v5, %v2172_v49  ;;  %v5558_v49 = vld [vmem:[#allocation2 + $0x488] sm:$0xff] }
 0x521   : > { %2315 = vmatpush.msra.mxu3 %v5496_v54  ;;  %2335 = vmatpush.msrb.mxu0 %v5497_v55  ;;  %v6503_v21 = vsel %vm2174_vm1, %v5199_v5, %v2173_v58  ;;  %v5555_v5 = vld [vmem:[#allocation2 + $0x4d0] sm:$0xff]  ;;  %v5559_v58 = vld [vmem:[#allocation2 + $0x4c0] sm:$0xff] }
 0x523   : > { %2316 = vmatpush.msra.mxu3 %v5498_v56  ;;  %2336 = vmatpush.msrb.mxu0 %v5499_v57 }
 0x532   : > { %v2096_v1 = vpop.f32.mrf.mxu2 }
 0x547   : > { %v1969_v59 = vpop.f32.mrf.mxu3 }
 0x548   : > { %v6488_v63 = vadd.f32 %v1969_v59, %v6475_v31  ;;  %v5505_v31 = vld [vmem:[#allocation2 + $0x1a8] sm:$0xff] }
 0x561   : > { %v2141_v44 = vpop.f32.mrf.mxu0 }
 0x562   : > { %v2164_v46 = vadd.f32 %v2141_v44, %v1972_v45  ;;  %v5548_v44 = vld [vmem:[#allocation2 + $0x5c0] sm:$0xff]  ;;  %v5549_v45 = vld [vmem:[#allocation2 + $0x588] sm:$0xff] }
 0x567   : > { %v2116_v60 = vpop.f32.mrf.mxu3 }
 0x568   : > { %v2117_v2 = vadd.f32 %v2116_v60, %v2096_v1 }
 0x56a   : > { %2159 = vmatpush.msrb.mxu1 %v2117_v2 }
 0x56b   : > { %5077 = vmatmul.msk.f32.vlgmr.msrb.gmra.mxu1 %vm735_vm0, %v6482_v27  ;;  %v5510_v27 = vld [vmem:[#allocation2 + $0x158] sm:$0xff] }
 0x56c   : > { %2260 = vmatpush.msra.mxu1 %v5500_v3 }
 0x56e   : > { %2261 = vmatpush.msra.mxu1 %v5501_v61 }
 0x570   : > { %2262 = vmatpush.msra.mxu1 %v5502_v4 }
 0x572   : > { %2263 = vmatpush.msra.mxu1 %v5503_v7 }
 0x574   : > { %2264 = vmatpush.msra.mxu1 %v5504_v10 }
 0x576   : > { %2265 = vmatpush.msra.mxu1 %v5505_v31 }
 0x578   : > { %2266 = vmatpush.msra.mxu1 %v5506_v11 }
 0x57a   : > { %2267 = vmatpush.msra.mxu1 %v5507_v12 }
 0x57c   : > { %2268 = vmatpush.msra.mxu1 %v5508_v13 }
 0x57e   : > { %2269 = vmatpush.msra.mxu1 %v5509_v15 }
 0x580   : > { %2270 = vmatpush.msra.mxu1 %v5510_v27 }
 0x582   : > { %2271 = vmatpush.msra.mxu1 %v5511_v16  ;;  %v2280_v16 = vld [vmem:[#allocation7] sm:$0xff] }
 0x584   : > { %2272 = vmatpush.msra.mxu1 %v5512_v17  ;;  %v5532_v17 = vld [vmem:[#allocation2 + $0x5f8] sm:$0xff] }
 0x586   : > { %2273 = vmatpush.msra.mxu1 %v5513_v18 }
 0x588   : > { %2274 = vmatpush.msra.mxu1 %v5514_v19 }
 0x58a   : > { %2275 = vmatpush.msra.mxu1 %v5515_v53 }
 0x58c   : > { %2341 = vmatpush.msrb.mxu1 %v5516_v6  ;;  %v5533_v6 = vld [vmem:[#allocation2 + $0x5e8] sm:$0xff] }
 0x58e   : > { %2342 = vmatpush.msrb.mxu1 %v5517_v20 }
 0x590   : > { %2343 = vmatpush.msrb.mxu1 %v5518_v40 }
 0x592   : > { %2344 = vmatpush.msrb.mxu1 %v5519_v62  ;;  %v5534_v62 = vld [vmem:[#allocation2 + $0x5d8] sm:$0xff] }
 0x594   : > { %2345 = vmatpush.msrb.mxu1 %v5520_v23 }
 0x596   : > { %2346 = vmatpush.msrb.mxu1 %v5521_v24  ;;  %v5535_v24 = vld [vmem:[#allocation2 + $0x4f8] sm:$0xff] }
 0x598   : > { %2347 = vmatpush.msrb.mxu1 %v5522_v25  ;;  %v5536_v25 = vld [vmem:[#allocation2 + $0x5c8] sm:$0xff] }
 0x59a   : > { %2348 = vmatpush.msrb.mxu1 %v5523_v28  ;;  %v6521_v28 = vld [vmem:[#allocation7 + $0x8] sm:$0xff] }
 0x59c   : > { %2349 = vmatpush.msrb.mxu1 %v5524_v29  ;;  %v5537_v29 = vld [vmem:[#allocation2 + $0x4e8] sm:$0xff] }
 0x59e   : > { %2350 = vmatpush.msrb.mxu1 %v5525_v30  ;;  %v5538_v30 = vld [vmem:[#allocation2 + $0x5f0] sm:$0xff] }
 0x5a0   : > { %2351 = vmatpush.msrb.mxu1 %v5526_v32  ;;  %v5539_v32 = vld [vmem:[#allocation2 + $0x5b8] sm:$0xff] }
 0x5a2   : > { %2352 = vmatpush.msrb.mxu1 %v5527_v33 }
 0x5a4   : > { %2353 = vmatpush.msrb.mxu1 %v5528_v34 }
 0x5a6   : > { %2354 = vmatpush.msrb.mxu1 %v5529_v35  ;;  %v5540_v35 = vld [vmem:[#allocation2 + $0x4d8] sm:$0xff] }
 0x5a8   : > { %2355 = vmatpush.msrb.mxu1 %v5530_v36 }
 0x5aa   : > { %2356 = vmatpush.msrb.mxu1 %v5531_v37  ;;  %v5541_v37 = vld [vmem:[#allocation2 + $0x5e0] sm:$0xff] }
 0x5e8   : > { %v2161_v9 = vpop.f32.mrf.mxu1 }
 0x5e9   : > { %v2165_v47 = vadd.f32 %v2161_v9, %v6488_v63  ;;  %v5550_v9 = vld [vmem:[#allocation2 + $0x4a8] sm:$0xff] }
 0x5eb   : > { %v2166_v48 = vadd.f32 %v2165_v47, %v2164_v46 }
 0x5ed   : > { %2167 = vadd.xlane.f32.xlu0 %v2166_v48  ;;  %v5553_v48 = vld [vmem:[#allocation2 + $0x578] sm:$0xff] }
 0x660   : > { %v2168_v42 = vpop.xlane.xlu0 %2167 }
 0x661   : > { %v2176_v50 = vmul.f32 %v6503_v21, %v2168_v42  ;;  %v5560_v42 = vld [vmem:[#allocation2 + $0x590] sm:$0xff] }
 0x663   : > { %v2177_v51 = vsub.f32 %v2164_v46, %v2176_v50  ;;  %v2178_v54 = vsub.f32 %v2165_v47, %v2176_v50  ;;  %v5551_v46 = vld [vmem:[#allocation2 + $0x4e0] sm:$0xff]  ;;  %v5552_v47 = vld [vmem:[#allocation2 + $0x5b0] sm:$0xff]  ;;  %v5561_v50 = vld [vmem:[#allocation2 + $0x558] sm:$0xff] }
 0x665   : > { %v2179_v55 = vmul.f32 %v2177_v51, %v2177_v51  ;;  %v2180_v56 = vmul.f32 %v2178_v54, %v2178_v54 }
 0x667   : > { %v2181_v57 = vadd.f32 %v2180_v56, %v2179_v55  ;;  %v5564_v55 = vld [vmem:[#allocation2 + $0x580] sm:$0xff]  ;;  %v5565_v56 = vld [vmem:[#allocation2 + $0x548] sm:$0xff] }
 0x669   : > { %2182 = vadd.xlane.f32.xlu0 %v2181_v57  ;;  %v5566_v57 = vld [vmem:[#allocation2 + $0x468] sm:$0xff] }
 0x6dc   : > { %v2183_v59 = vpop.xlane.xlu0 %2182 }
 0x6dd   : > { %v2184_v63 = vmul.f32 %v2183_v59, %v6503_v21  ;;  %v5567_v59 = vld [vmem:[#allocation2 + $0x4a0] sm:$0xff] }
 0x6df   : > { %v2185_v0 = vadd.f32 1e-05, %v2184_v63  ;;  %v5568_v63 = vld [vmem:[#allocation2 + $0x570] sm:$0xff] }
 0x6e1   : > { %5200 = vrsqrt.f32 %v2185_v0  ;;  %vm2192_vm3 = vweird.f32 %v2185_v0 }
 0x6e7   : > { %v5201_v1 = vpop.eup %5200 }
 0x6e8   : > { %v2187_v60 = vmul.f32 %v5201_v1, %v2185_v0  ;;  %vm2193_vm2 = vweird.f32 %v5201_v1  ;;  %v5569_v0 = vld [vmem:[#allocation2 + $0x538] sm:$0xff] }
 0x6e9   : > { %vm2194_vm4 = vmor %vm2192_vm3, %vm2193_vm2 }
 0x6ea   : > { %v2188_v2 = vmul.f32 %v5201_v1, %v2187_v60  ;;  %v5571_v60 = vld [vmem:[#allocation2 + $0x490] sm:$0xff] }
 0x6ec   : > { %v2189_v3 = vmul.f32 0.5, %v2188_v2  ;;  %v5572_v2 = vld [vmem:[#allocation2 + $0x560] sm:$0xff] }
 0x6ee   : > { %v2190_v61 = vsub.f32 1.5, %v2189_v3  ;;  %v5573_v3 = vld [vmem:[#allocation2 + $0x528] sm:$0xff] }
 0x6f0   : > { %v2191_v4 = vmul.f32 %v5201_v1, %v2190_v61  ;;  %v5574_v61 = vld [vmem:[#allocation2 + $0x448] sm:$0xff] }
 0x6f2   : > { %v2195_v7 = vsel %vm2194_vm4, %v5201_v1, %v2191_v4  ;;  %v5570_v1 = vld [vmem:[#allocation2 + $0x458] sm:$0xff]  ;;  %v5575_v4 = vld [vmem:[#allocation2 + $0x480] sm:$0xff] }
 0x6f3   : > { %v2196_v10 = vmul.f32 %v2195_v7, %v2177_v51  ;;  %v2197_v31 = vmul.f32 %v2195_v7, %v2178_v54  ;;  %v5562_v51 = vld [vmem:[#allocation2 + $0x478] sm:$0xff]  ;;  %v5563_v54 = vld [vmem:[#allocation2 + $0x4b0] sm:$0xff] }
 0x6f4   : > { %v5576_v7 = vld [vmem:[#allocation2 + $0x550] sm:$0xff] }
 0x6f5   : > { %v6507_v11 = vmax.f32 %v2196_v10, 0.0  ;;  %v6509_v12 = vmax.f32 %v2197_v31, 0.0  ;;  %v5577_v10 = vld [vmem:[#allocation2 + $0x518] sm:$0xff] }
 0x6f6   : > { %v5578_v31 = vld [vmem:[#allocation2 + $0x438] sm:$0xff] }
 0x6f7   : > { %2216 = vmatmul.f32.vlgmr.msrb.gmra.mxu2 %v6507_v11  ;;  %2236 = vmatmul.f32.vlgmr.msrb.gmra.mxu3 %v6509_v12 }
 0x6f8   : > { %2256 = vmatmul.f32.vlgmr.msra.gmra.mxu0 %v6507_v11  ;;  %2276 = vmatmul.f32.vlgmr.msra.gmra.mxu1 %v6509_v12 }
 0x6ff   : > { %2297 = vmatmul.f32.vlgmr.msra.gmra.mxu2 %v6507_v11  ;;  %2317 = vmatmul.f32.vlgmr.msra.gmra.mxu3 %v6509_v12 }
 0x700   : > { %2337 = vmatmul.f32.vlgmr.msrb.gmra.mxu0 %v6507_v11  ;;  %2357 = vmatmul.f32.vlgmr.msrb.gmra.mxu1 %v6509_v12 }
 0x775   : > { %v2257_v13 = vpop.f32.mrf.mxu0  ;;  %v2277_v15 = vpop.f32.mrf.mxu1 }
 0x776   : > { %v2278_v27 = vadd.f32 %v2277_v15, %v2257_v13  ;;  %v5579_v13 = vld [vmem:[#allocation2 + $0x470] sm:$0xff]  ;;  %v5580_v15 = vld [vmem:[#allocation2 + $0x540] sm:$0xff] }
 0x778   : > { %2444 = vmatpush.msra.mxu1 %v2278_v27  ;;  %v5581_v27 = vld [vmem:[#allocation2 + $0x508] sm:$0xff] }
 0x779   : > { %5081 = vmatmul.msk.f32.vlgmr.msra.gmra.mxu1 %vm735_vm0, %v2280_v16 }
 0x77a   : > { %2509 = vmatpush.msrb.mxu1 %v5532_v17  ;;  %v2217_v18 = vpop.f32.mrf.mxu2  ;;  %v2237_v19 = vpop.f32.mrf.mxu3  ;;  %v5583_v17 = vld [vmem:[#allocation2 + $0x460] sm:$0xff] }
 0x77b   : > { %v2238_v53 = vadd.f32 %v2237_v19, %v2217_v18  ;;  %v5584_v18 = vld [vmem:[#allocation2 + $0x7f0] sm:$0xff] }
 0x77c   : > { %2510 = vmatpush.msrb.mxu1 %v5533_v6  ;;  %v5585_v19 = vld [vmem:[#allocation2 + $0x530] sm:$0xff]  ;;  %v5587_v6 = vld [vmem:[#allocation2 + $0x418] sm:$0xff] }
 0x77d   : > { %v2338_v20 = vpop.f32.mrf.mxu0  ;;  %v2358_v40 = vpop.f32.mrf.mxu1  ;;  %2424 = vmatpush.msra.mxu0 %v2238_v53  ;;  %v5586_v53 = vld [vmem:[#allocation2 + $0x450] sm:$0xff] }
 0x77e   : > { %2511 = vmatpush.msrb.mxu1 %v5534_v62  ;;  %v2359_v23 = vadd.f32 %v2358_v40, %v2338_v20  ;;  %5080 = vmatmul.msk.f32.vlgmr.msra.gmra.mxu0 %vm735_vm0, %v2280_v16  ;;  %v5582_v16 = vld [vmem:[#allocation2 + $0x428] sm:$0xff]  ;;  %v5588_v20 = vld [vmem:[#allocation2 + $0x7e0] sm:$0xff] }
 0x77f   : > { %2489 = vmatpush.msrb.mxu0 %v5535_v24  ;;  %v5589_v40 = vld [vmem:[#allocation2 + $0x520] sm:$0xff]  ;;  %v5592_v24 = vld [vmem:[#allocation2 + $0x7d0] sm:$0xff] }
 0x780   : > { %2512 = vmatpush.msrb.mxu1 %v5536_v25  ;;  %2401 = vmatpush.msrb.mxu3 %v2359_v23  ;;  %v5590_v62 = vld [vmem:[#allocation2 + $0x440] sm:$0xff]  ;;  %v5591_v23 = vld [vmem:[#allocation2 + $0x408] sm:$0xff]  ;;  %v5593_v25 = vld [vmem:[#allocation2 + $0x510] sm:$0xff] }
 0x781   : > { %2490 = vmatpush.msrb.mxu0 %v5537_v29  ;;  %5079 = vmatmul.msk.f32.vlgmr.msrb.gmra.mxu3 %vm735_vm0, %v6521_v28  ;;  %v5594_v29 = vld [vmem:[#allocation2 + $0x6f0] sm:$0xff] }
 0x782   : > { %2469 = vmatpush.msra.mxu3 %v5538_v30  ;;  %2513 = vmatpush.msrb.mxu1 %v5539_v32  ;;  %v2298_v33 = vpop.f32.mrf.mxu2  ;;  %v2318_v34 = vpop.f32.mrf.mxu3  ;;  %v5595_v30 = vld [vmem:[#allocation2 + $0x7c0] sm:$0xff]  ;;  %v5596_v32 = vld [vmem:[#allocation2 + $0x430] sm:$0xff] }
 0x783   : > { %2491 = vmatpush.msrb.mxu0 %v5540_v35  ;;  %v2319_v36 = vadd.f32 %v2318_v34, %v2298_v33  ;;  %v5597_v33 = vld [vmem:[#allocation2 + $0x500] sm:$0xff]  ;;  %v5599_v35 = vld [vmem:[#allocation2 + $0x7b0] sm:$0xff] }
 0x784   : > { %2470 = vmatpush.msra.mxu3 %v5541_v37  ;;  %2514 = vmatpush.msrb.mxu1 %v5542_v39  ;;  %v5598_v34 = vld [vmem:[#allocation2 + $0x6e0] sm:$0xff]  ;;  %v5601_v37 = vld [vmem:[#allocation2 + $0x6d0] sm:$0xff] }
 0x785   : > { %2492 = vmatpush.msrb.mxu0 %v5543_v41  ;;  %2381 = vmatpush.msrb.mxu2 %v2319_v36  ;;  %v5600_v36 = vld [vmem:[#allocation2 + $0x420] sm:$0xff]  ;;  %v5603_v39 = vld [vmem:[#allocation2 + $0x410] sm:$0xff] }
 0x786   : > { %2471 = vmatpush.msra.mxu3 %v5544_v8  ;;  %2515 = vmatpush.msrb.mxu1 %v5545_v14  ;;  %v5604_v41 = vld [vmem:[#allocation2 + $0x6c0] sm:$0xff]  ;;  %v5605_v8 = vld [vmem:[#allocation2 + $0x790] sm:$0xff] }
 0x787   : > { %2493 = vmatpush.msrb.mxu0 %v5546_v26  ;;  %2449 = vmatpush.msra.mxu2 %v5547_v43  ;;  %v5606_v14 = vld [vmem:[#allocation2 + $0x400] sm:$0xff]  ;;  %v5607_v26 = vld [vmem:[#allocation2 + $0x6b0] sm:$0xff] }
 0x788   : > { %2472 = vmatpush.msra.mxu3 %v5548_v44  ;;  %2516 = vmatpush.msrb.mxu1 %v5549_v45  ;;  %v5608_v43 = vld [vmem:[#allocation2 + $0x780] sm:$0xff]  ;;  %v5610_v45 = vld [vmem:[#allocation2 + $0x770] sm:$0xff] }
 0x789   : > { %2494 = vmatpush.msrb.mxu0 %v5550_v9  ;;  %2450 = vmatpush.msra.mxu2 %v5551_v46  ;;  %v5609_v44 = vld [vmem:[#allocation2 + $0x6a0] sm:$0xff]  ;;  %v5611_v9 = vld [vmem:[#allocation2 + $0x690] sm:$0xff] }
 0x78a   : > { %2473 = vmatpush.msra.mxu3 %v5552_v47  ;;  %2517 = vmatpush.msrb.mxu1 %v5553_v48  ;;  %v5612_v46 = vld [vmem:[#allocation2 + $0x760] sm:$0xff]  ;;  %v5614_v48 = vld [vmem:[#allocation2 + $0x750] sm:$0xff] }
 0x78b   : > { %2495 = vmatpush.msrb.mxu0 %v5554_v52  ;;  %2451 = vmatpush.msra.mxu2 %v5555_v5  ;;  %v5613_v47 = vld [vmem:[#allocation2 + $0x680] sm:$0xff]  ;;  %v5615_v52 = vld [vmem:[#allocation2 + $0x670] sm:$0xff] }
 0x78c   : > { %2474 = vmatpush.msra.mxu3 %v5556_v22  ;;  %2518 = vmatpush.msrb.mxu1 %v5557_v38  ;;  %v5616_v5 = vld [vmem:[#allocation2 + $0x740] sm:$0xff]  ;;  %v5618_v38 = vld [vmem:[#allocation2 + $0x730] sm:$0xff] }
 0x78d   : > { %2496 = vmatpush.msrb.mxu0 %v5558_v49  ;;  %2452 = vmatpush.msra.mxu2 %v5559_v58  ;;  %v5617_v22 = vld [vmem:[#allocation2 + $0x660] sm:$0xff]  ;;  %v5619_v49 = vld [vmem:[#allocation2 + $0x650] sm:$0xff] }
 0x78e   : > { %2475 = vmatpush.msra.mxu3 %v5560_v42  ;;  %2519 = vmatpush.msrb.mxu1 %v5561_v50  ;;  %v5620_v58 = vld [vmem:[#allocation2 + $0x720] sm:$0xff]  ;;  %v5622_v50 = vld [vmem:[#allocation2 + $0x710] sm:$0xff] }
 0x78f   : > { %2497 = vmatpush.msrb.mxu0 %v5562_v51  ;;  %2453 = vmatpush.msra.mxu2 %v5563_v54  ;;  %v5621_v42 = vld [vmem:[#allocation2 + $0x640] sm:$0xff]  ;;  %v5623_v51 = vld [vmem:[#allocation2 + $0x630] sm:$0xff] }
 0x790   : > { %2476 = vmatpush.msra.mxu3 %v5564_v55  ;;  %2520 = vmatpush.msrb.mxu1 %v5565_v56  ;;  %v5624_v54 = vld [vmem:[#allocation2 + $0x700] sm:$0xff]  ;;  %v5626_v56 = vld [vmem:[#allocation2 + $0x610] sm:$0xff] }
 0x791   : > { %2498 = vmatpush.msrb.mxu0 %v5566_v57  ;;  %2454 = vmatpush.msra.mxu2 %v5567_v59  ;;  %v5625_v55 = vld [vmem:[#allocation2 + $0x620] sm:$0xff] }
 0x792   : > { %2477 = vmatpush.msra.mxu3 %v5568_v63  ;;  %2521 = vmatpush.msrb.mxu1 %v5569_v0  ;;  %v5627_v57 = vld [vmem:[#allocation2 + $0x600] sm:$0xff] }
 0x793   : > { %2499 = vmatpush.msrb.mxu0 %v5570_v1  ;;  %2455 = vmatpush.msra.mxu2 %v5571_v60 }
 0x794   : > { %2478 = vmatpush.msra.mxu3 %v5572_v2  ;;  %2522 = vmatpush.msrb.mxu1 %v5573_v3 }
 0x795   : > { %2500 = vmatpush.msrb.mxu0 %v5574_v61  ;;  %2456 = vmatpush.msra.mxu2 %v5575_v4  ;;  %v2530_v61 = vld [vmem:[#allocation7 + $0x10] sm:$0xff] }
 0x796   : > { %2479 = vmatpush.msra.mxu3 %v5576_v7  ;;  %2523 = vmatpush.msrb.mxu1 %v5577_v10  ;;  %v5628_v4 = vld [vmem:[#allocation2 + $0x7f8] sm:$0xff] }
 0x797   : > { %2501 = vmatpush.msrb.mxu0 %v5578_v31  ;;  %2457 = vmatpush.msra.mxu2 %v5579_v13  ;;  %v5629_v31 = vld [vmem:[#allocation2 + $0x7e8] sm:$0xff]  ;;  %v5630_v13 = vld [vmem:[#allocation2 + $0x7d8] sm:$0xff] }
 0x798   : > { %2480 = vmatpush.msra.mxu3 %v5580_v15  ;;  %2524 = vmatpush.msrb.mxu1 %v5581_v27  ;;  %v5631_v15 = vld [vmem:[#allocation2 + $0x7c8] sm:$0xff]  ;;  %v5632_v27 = vld [vmem:[#allocation2 + $0x7b8] sm:$0xff] }
 0x799   : > { %2502 = vmatpush.msrb.mxu0 %v5582_v16  ;;  %2525 = vmatmul.f32.vlgmr.msrb.gmra.mxu1 %v6509_v12 }
 0x79a   : > { %2458 = vmatpush.msra.mxu2 %v5583_v17  ;;  %2596 = vmatpush.msra.mxu1 %v5584_v18  ;;  %v5633_v18 = vld [vmem:[#allocation2 + $0x7a8] sm:$0xff] }
 0x79b   : > { %2481 = vmatpush.msra.mxu3 %v5585_v19  ;;  %2503 = vmatpush.msrb.mxu0 %v5587_v6  ;;  %v5635_v6 = vld [vmem:[#allocation2 + $0x788] sm:$0xff] }
 0x79c   : > { %2459 = vmatpush.msra.mxu2 %v5586_v53  ;;  %2597 = vmatpush.msra.mxu1 %v5588_v20  ;;  %v5634_v53 = vld [vmem:[#allocation2 + $0x798] sm:$0xff] }
 0x79d   : > { %2482 = vmatpush.msra.mxu3 %v5589_v40  ;;  %2504 = vmatpush.msrb.mxu0 %v5591_v23  ;;  %v5636_v20 = vld [vmem:[#allocation2 + $0x6f8] sm:$0xff]  ;;  %v5639_v23 = vld [vmem:[#allocation2 + $0x768] sm:$0xff] }
 0x79e   : > { %2460 = vmatpush.msra.mxu2 %v5590_v62  ;;  %2598 = vmatpush.msra.mxu1 %v5592_v24  ;;  %v5637_v40 = vld [vmem:[#allocation2 + $0x778] sm:$0xff]  ;;  %v5638_v62 = vld [vmem:[#allocation2 + $0x6e8] sm:$0xff] }
 0x79f   : > { %2483 = vmatpush.msra.mxu3 %v5593_v25  ;;  %5078 = vmatmul.msk.f32.vlgmr.msrb.gmra.mxu2 %vm735_vm0, %v6521_v28  ;;  %v5602_v28 = vld [vmem:[#allocation2 + $0x7a0] sm:$0xff]  ;;  %v5640_v24 = vld [vmem:[#allocation2 + $0x6d8] sm:$0xff] }
 0x7a0   : > { %2505 = vmatmul.f32.vlgmr.msrb.gmra.mxu0 %v6507_v11  ;;  %2599 = vmatpush.msra.mxu1 %v5595_v30  ;;  %v5641_v25 = vld [vmem:[#allocation2 + $0x758] sm:$0xff]  ;;  %v5643_v30 = vld [vmem:[#allocation2 + $0x748] sm:$0xff] }
 0x7a1   : > { %2576 = vmatpush.msra.mxu0 %v5594_v29  ;;  %2461 = vmatpush.msra.mxu2 %v5596_v32  ;;  %v5642_v29 = vld [vmem:[#allocation2 + $0x6c8] sm:$0xff]  ;;  %v5644_v32 = vld [vmem:[#allocation2 + $0x6b8] sm:$0xff] }
 0x7a2   : > { %2484 = vmatpush.msra.mxu3 %v5597_v33  ;;  %2600 = vmatpush.msra.mxu1 %v5599_v35  ;;  %v5645_v33 = vld [vmem:[#allocation2 + $0x738] sm:$0xff]  ;;  %v5647_v35 = vld [vmem:[#allocation2 + $0x728] sm:$0xff] }
 0x7a3   : > { %2485 = vmatmul.f32.vlgmr.msra.gmra.mxu3 %v6509_v12  ;;  %2577 = vmatpush.msra.mxu0 %v5598_v34  ;;  %v5646_v34 = vld [vmem:[#allocation2 + $0x6a8] sm:$0xff] }
 0x7a4   : > { %2462 = vmatpush.msra.mxu2 %v5600_v36  ;;  %2601 = vmatpush.msra.mxu1 %v5602_v28 }
 0x7a5   : > { %2578 = vmatpush.msra.mxu0 %v5601_v37  ;;  %v5648_v37 = vld [vmem:[#allocation2 + $0x698] sm:$0xff] }
 0x7a6   : > { %2463 = vmatpush.msra.mxu2 %v5603_v39  ;;  %2602 = vmatpush.msra.mxu1 %v5605_v8  ;;  %v5650_v8 = vld [vmem:[#allocation2 + $0x688] sm:$0xff] }
 0x7a7   : > { %2579 = vmatpush.msra.mxu0 %v5604_v41  ;;  %v5649_v41 = vld [vmem:[#allocation2 + $0x718] sm:$0xff] }
 0x7a8   : > { %2464 = vmatpush.msra.mxu2 %v5606_v14  ;;  %2603 = vmatpush.msra.mxu1 %v5608_v43  ;;  %v6539_v14 = vld [vmem:[#allocation7 + $0x18] sm:$0xff]  ;;  %v5652_v43 = vld [vmem:[#allocation2 + $0x678] sm:$0xff] }
 0x7a9   : > { %2465 = vmatmul.f32.vlgmr.msra.gmra.mxu2 %v6507_v11  ;;  %2580 = vmatpush.msra.mxu0 %v5607_v26  ;;  %v5651_v26 = vld [vmem:[#allocation2 + $0x708] sm:$0xff] }
 0x7aa   : > { %2604 = vmatpush.msra.mxu1 %v5610_v45  ;;  %v5654_v45 = vld [vmem:[#allocation2 + $0x8f8] sm:$0xff] }
 0x7ab   : > { %2581 = vmatpush.msra.mxu0 %v5609_v44  ;;  %v5653_v44 = vld [vmem:[#allocation2 + $0x9f0] sm:$0xff] }
 0x7ac   : > { %2605 = vmatpush.msra.mxu1 %v5612_v46  ;;  %v5656_v46 = vld [vmem:[#allocation2 + $0x9e0] sm:$0xff] }
 0x7ad   : > { %2582 = vmatpush.msra.mxu0 %v5611_v9  ;;  %v5655_v9 = vld [vmem:[#allocation2 + $0x668] sm:$0xff] }
 0x7ae   : > { %2606 = vmatpush.msra.mxu1 %v5614_v48  ;;  %v5658_v48 = vld [vmem:[#allocation2 + $0x658] sm:$0xff] }
 0x7af   : > { %2583 = vmatpush.msra.mxu0 %v5613_v47  ;;  %v5657_v47 = vld [vmem:[#allocation2 + $0x8e8] sm:$0xff] }
 0x7b0   : > { %2607 = vmatpush.msra.mxu1 %v5616_v5  ;;  %v5660_v5 = vld [vmem:[#allocation2 + $0x8d8] sm:$0xff] }
 0x7b1   : > { %2584 = vmatpush.msra.mxu0 %v5615_v52  ;;  %v5659_v52 = vld [vmem:[#allocation2 + $0x9d0] sm:$0xff] }
 0x7b2   : > { %2608 = vmatpush.msra.mxu1 %v5618_v38  ;;  %v5662_v38 = vld [vmem:[#allocation2 + $0x9c0] sm:$0xff] }
 0x7b3   : > { %2585 = vmatpush.msra.mxu0 %v5617_v22  ;;  %v5661_v22 = vld [vmem:[#allocation2 + $0x648] sm:$0xff] }
 0x7b4   : > { %2609 = vmatpush.msra.mxu1 %v5620_v58  ;;  %v5664_v58 = vld [vmem:[#allocation2 + $0x638] sm:$0xff] }
 0x7b5   : > { %2586 = vmatpush.msra.mxu0 %v5619_v49  ;;  %v5663_v49 = vld [vmem:[#allocation2 + $0x8c8] sm:$0xff] }
 0x7b6   : > { %2610 = vmatpush.msra.mxu1 %v5622_v50  ;;  %v5666_v50 = vld [vmem:[#allocation2 + $0x8b8] sm:$0xff] }
 0x7b7   : > { %2587 = vmatpush.msra.mxu0 %v5621_v42  ;;  %v5665_v42 = vld [vmem:[#allocation2 + $0x9b0] sm:$0xff] }
 0x7b8   : > { %2611 = vmatpush.msra.mxu1 %v5624_v54  ;;  %v5668_v54 = vld [vmem:[#allocation2 + $0x9a0] sm:$0xff] }
 0x7b9   : > { %2588 = vmatpush.msra.mxu0 %v5623_v51  ;;  %2612 = vmatmul.f32.vlgmr.msra.gmra.mxu1 %v6509_v12  ;;  %v5667_v51 = vld [vmem:[#allocation2 + $0x628] sm:$0xff] }
 0x7bb   : > { %2589 = vmatpush.msra.mxu0 %v5625_v55  ;;  %v5669_v55 = vld [vmem:[#allocation2 + $0x8a8] sm:$0xff] }
 0x7bd   : > { %2590 = vmatpush.msra.mxu0 %v5626_v56  ;;  %v5670_v56 = vld [vmem:[#allocation2 + $0x618] sm:$0xff] }
 0x7bf   : > { %2591 = vmatpush.msra.mxu0 %v5627_v57  ;;  %v5671_v57 = vld [vmem:[#allocation2 + $0x990] sm:$0xff] }
 0x7c0   : > { %2592 = vmatmul.f32.vlgmr.msra.gmra.mxu0 %v6507_v11 }
 0x7f6   : > { %v2446_v59 = vpop.f32.mrf.mxu1 }
 0x7fb   : > { %v2426_v1 = vpop.f32.mrf.mxu0 }
 0x804   : > { %v2403_v63 = vpop.f32.mrf.mxu3 }
 0x805   : > { %v6533_v0 = vadd.f32 %v2446_v59, %v2403_v63  ;;  %v5672_v59 = vld [vmem:[#allocation2 + $0x898] sm:$0xff]  ;;  %v5673_v63 = vld [vmem:[#allocation2 + $0x608] sm:$0xff] }
 0x816   : > { %v2526_v60 = vpop.f32.mrf.mxu1 }
 0x81d   : > { %v2506_v2 = vpop.f32.mrf.mxu0 }
 0x81e   : > { %v2527_v3 = vadd.f32 %v2526_v60, %v2506_v2  ;;  %v5675_v60 = vld [vmem:[#allocation2 + $0x8f0] sm:$0xff]  ;;  %v5676_v2 = vld [vmem:[#allocation2 + $0x888] sm:$0xff] }
 0x820   : > { %2569 = vmatpush.msrb.mxu3 %v2527_v3  ;;  %v5677_v3 = vld [vmem:[#allocation2 + $0x970] sm:$0xff] }
 0x821   : > { %5083 = vmatmul.msk.f32.vlgmr.msrb.gmra.mxu3 %vm735_vm0, %v2530_v61 }
 0x822   : > { %2636 = vmatpush.msra.mxu3 %v5628_v4  ;;  %v2383_v7 = vpop.f32.mrf.mxu2  ;;  %v5679_v4 = vld [vmem:[#allocation2 + $0x878] sm:$0xff] }
 0x823   : > { %v6536_v10 = vadd.f32 %v2426_v1, %v2383_v7  ;;  %v5674_v1 = vld [vmem:[#allocation2 + $0x980] sm:$0xff] }
 0x824   : > { %2637 = vmatpush.msra.mxu3 %v5629_v31  ;;  %v5680_v7 = vld [vmem:[#allocation2 + $0x960] sm:$0xff]  ;;  %v5681_v31 = vld [vmem:[#allocation2 + $0x8d0] sm:$0xff] }
 0x826   : > { %2638 = vmatpush.msra.mxu3 %v5630_v13  ;;  %v2486_v16 = vpop.f32.mrf.mxu3  ;;  %v5682_v13 = vld [vmem:[#allocation2 + $0x868] sm:$0xff] }
 0x828   : > { %2639 = vmatpush.msra.mxu3 %v5631_v15  ;;  %v5683_v15 = vld [vmem:[#allocation2 + $0x950] sm:$0xff] }
 0x82a   : > { %2640 = vmatpush.msra.mxu3 %v5632_v27  ;;  %v5684_v27 = vld [vmem:[#allocation2 + $0x8c0] sm:$0xff] }
 0x82c   : > { %v2466_v17 = vpop.f32.mrf.mxu2  ;;  %2641 = vmatpush.msra.mxu3 %v5633_v18  ;;  %v5687_v18 = vld [vmem:[#allocation2 + $0x8b0] sm:$0xff] }
 0x82d   : > { %v2487_v19 = vadd.f32 %v2486_v16, %v2466_v17  ;;  %v5685_v16 = vld [vmem:[#allocation2 + $0x858] sm:$0xff]  ;;  %v5686_v17 = vld [vmem:[#allocation2 + $0x940] sm:$0xff] }
 0x82e   : > { %2642 = vmatpush.msra.mxu3 %v5634_v53  ;;  %v5689_v53 = vld [vmem:[#allocation2 + $0x930] sm:$0xff] }
 0x82f   : > { %2549 = vmatpush.msrb.mxu2 %v2487_v19  ;;  %v5688_v19 = vld [vmem:[#allocation2 + $0x848] sm:$0xff] }
 0x830   : > { %5082 = vmatmul.msk.f32.vlgmr.msrb.gmra.mxu2 %vm735_vm0, %v2530_v61  ;;  %2643 = vmatpush.msra.mxu3 %v5635_v6  ;;  %v5678_v61 = vld [vmem:[#allocation2 + $0x8e0] sm:$0xff] }
 0x831   : > { %2616 = vmatpush.msra.mxu2 %v5636_v20  ;;  %v5690_v6 = vld [vmem:[#allocation2 + $0x8a0] sm:$0xff]  ;;  %v5691_v20 = vld [vmem:[#allocation2 + $0x838] sm:$0xff] }
 0x832   : > { %2644 = vmatpush.msra.mxu3 %v5637_v40  ;;  %v5692_v40 = vld [vmem:[#allocation2 + $0x920] sm:$0xff] }
 0x833   : > { %2617 = vmatpush.msra.mxu2 %v5638_v62  ;;  %v5693_v62 = vld [vmem:[#allocation2 + $0x890] sm:$0xff] }
 0x834   : > { %2645 = vmatpush.msra.mxu3 %v5639_v23  ;;  %v5694_v23 = vld [vmem:[#allocation2 + $0x828] sm:$0xff] }
 0x835   : > { %2618 = vmatpush.msra.mxu2 %v5640_v24  ;;  %v5695_v24 = vld [vmem:[#allocation2 + $0x910] sm:$0xff] }
 0x836   : > { %2646 = vmatpush.msra.mxu3 %v5641_v25  ;;  %v2613_v36 = vpop.f32.mrf.mxu1  ;;  %v5696_v25 = vld [vmem:[#allocation2 + $0x880] sm:$0xff] }
 0x837   : > { %2619 = vmatpush.msra.mxu2 %v5642_v29  ;;  %v5697_v29 = vld [vmem:[#allocation2 + $0x818] sm:$0xff] }
 0x838   : > { %2647 = vmatpush.msra.mxu3 %v5643_v30  ;;  %v5698_v30 = vld [vmem:[#allocation2 + $0x900] sm:$0xff] }
 0x839   : > { %2620 = vmatpush.msra.mxu2 %v5644_v32  ;;  %v5699_v32 = vld [vmem:[#allocation2 + $0x870] sm:$0xff] }
 0x83a   : > { %2648 = vmatpush.msra.mxu3 %v5645_v33  ;;  %v5700_v33 = vld [vmem:[#allocation2 + $0x808] sm:$0xff] }
 0x83b   : > { %2621 = vmatpush.msra.mxu2 %v5646_v34  ;;  %v5701_v34 = vld [vmem:[#allocation2 + $0xaf0] sm:$0xff] }
 0x83c   : > { %2649 = vmatpush.msra.mxu3 %v5647_v35  ;;  %v5702_v35 = vld [vmem:[#allocation2 + $0x860] sm:$0xff] }
 0x83d   : > { %2622 = vmatpush.msra.mxu2 %v5648_v37  ;;  %v2593_v28 = vpop.f32.mrf.mxu0  ;;  %v5704_v37 = vld [vmem:[#allocation2 + $0x850] sm:$0xff] }
 0x83e   : > { %v2614_v39 = vadd.f32 %v2613_v36, %v2593_v28  ;;  %2650 = vmatpush.msra.mxu3 %v5649_v41  ;;  %v5703_v36 = vld [vmem:[#allocation2 + $0xae0] sm:$0xff]  ;;  %v5705_v28 = vld [vmem:[#allocation2 + $0xad0] sm:$0xff] }
 0x83f   : > { %2623 = vmatpush.msra.mxu2 %v5650_v8  ;;  %v5707_v41 = vld [vmem:[#allocation2 + $0xac0] sm:$0xff]  ;;  %v5708_v8 = vld [vmem:[#allocation2 + $0x830] sm:$0xff] }
 0x840   : > { %2651 = vmatpush.msra.mxu3 %v5651_v26  ;;  %2676 = vmatpush.msrb.mxu0 %v2614_v39  ;;  %v5706_v39 = vld [vmem:[#allocation2 + $0x840] sm:$0xff]  ;;  %v5709_v26 = vld [vmem:[#allocation2 + $0xab0] sm:$0xff] }
 0x841   : > { %2624 = vmatpush.msra.mxu2 %v5652_v43  ;;  %2652 = vmatmul.f32.vlgmr.msra.gmra.mxu3 %v6509_v12  ;;  %v5710_v43 = vld [vmem:[#allocation2 + $0x820] sm:$0xff] }
 0x842   : > { %5084 = vmatmul.msk.f32.vlgmr.msrb.gmra.mxu0 %vm735_vm0, %v6539_v14  ;;  %2723 = vmatpush.msrb.mxu3 %v5653_v44  ;;  %v5711_v44 = vld [vmem:[#allocation2 + $0xaa0] sm:$0xff] }
 0x843   : > { %2743 = vmatpush.msra.mxu0 %v5654_v45  ;;  %2625 = vmatpush.msra.mxu2 %v5655_v9  ;;  %v5712_v45 = vld [vmem:[#allocation2 + $0x810] sm:$0xff] }
 0x844   : > { %2724 = vmatpush.msrb.mxu3 %v5656_v46  ;;  %v5713_v9 = vld [vmem:[#allocation2 + $0xa90] sm:$0xff]  ;;  %v5714_v46 = vld [vmem:[#allocation2 + $0x800] sm:$0xff] }
 0x845   : > { %2744 = vmatpush.msra.mxu0 %v5657_v47  ;;  %2626 = vmatpush.msra.mxu2 %v5658_v48  ;;  %v5715_v47 = vld [vmem:[#allocation2 + $0xa80] sm:$0xff]  ;;  %v5716_v48 = vld [vmem:[#allocation2 + $0xa70] sm:$0xff] }
 0x846   : > { %2725 = vmatpush.msrb.mxu3 %v5659_v52  ;;  %v5717_v52 = vld [vmem:[#allocation2 + $0xa60] sm:$0xff] }
 0x847   : > { %2745 = vmatpush.msra.mxu0 %v5660_v5  ;;  %2627 = vmatpush.msra.mxu2 %v5661_v22  ;;  %v5718_v5 = vld [vmem:[#allocation2 + $0xa50] sm:$0xff]  ;;  %v5719_v22 = vld [vmem:[#allocation2 + $0xa40] sm:$0xff] }
 0x848   : > { %2726 = vmatpush.msrb.mxu3 %v5662_v38  ;;  %v5720_v38 = vld [vmem:[#allocation2 + $0xa30] sm:$0xff] }
 0x849   : > { %2746 = vmatpush.msra.mxu0 %v5663_v49  ;;  %2628 = vmatpush.msra.mxu2 %v5664_v58  ;;  %v5721_v49 = vld [vmem:[#allocation2 + $0xa20] sm:$0xff]  ;;  %v5722_v58 = vld [vmem:[#allocation2 + $0xa10] sm:$0xff] }
 0x84a   : > { %2727 = vmatpush.msrb.mxu3 %v5665_v42  ;;  %v5723_v42 = vld [vmem:[#allocation2 + $0xa00] sm:$0xff] }
 0x84b   : > { %2747 = vmatpush.msra.mxu0 %v5666_v50  ;;  %2629 = vmatpush.msra.mxu2 %v5667_v51 }
 0x84c   : > { %2728 = vmatpush.msrb.mxu3 %v5668_v54 }
 0x84d   : > { %2748 = vmatpush.msra.mxu0 %v5669_v55  ;;  %2630 = vmatpush.msra.mxu2 %v5670_v56 }
 0x84e   : > { %2729 = vmatpush.msrb.mxu3 %v5671_v57 }
 0x84f   : > { %2749 = vmatpush.msra.mxu0 %v5672_v59  ;;  %2631 = vmatpush.msra.mxu2 %v5673_v63 }
 0x850   : > { %2632 = vmatmul.f32.vlgmr.msra.gmra.mxu2 %v6507_v11  ;;  %2730 = vmatpush.msrb.mxu3 %v5674_v1 }
 0x851   : > { %2703 = vmatpush.msrb.mxu2 %v5675_v60  ;;  %2750 = vmatpush.msra.mxu0 %v5676_v2  ;;  %v5724_v60 = vld [vmem:[#allocation2 + $0x9f8] sm:$0xff]  ;;  %v5725_v2 = vld [vmem:[#allocation2 + $0x9e8] sm:$0xff] }
 0x852   : > { %2731 = vmatpush.msrb.mxu3 %v5677_v3  ;;  %v5726_v3 = vld [vmem:[#allocation2 + $0x9d8] sm:$0xff] }
 0x853   : > { %2704 = vmatpush.msrb.mxu2 %v5678_v61  ;;  %2751 = vmatpush.msra.mxu0 %v5679_v4  ;;  %v5728_v61 = vld [vmem:[#allocation2 + $0x9b8] sm:$0xff] }
 0x854   : > { %2732 = vmatpush.msrb.mxu3 %v5680_v7  ;;  %v5730_v4 = vld [vmem:[#allocation2 + $0x998] sm:$0xff]  ;;  %v5731_v7 = vld [vmem:[#allocation2 + $0x988] sm:$0xff] }
 0x855   : > { %2705 = vmatpush.msrb.mxu2 %v5681_v31  ;;  %2752 = vmatpush.msra.mxu0 %v5682_v13  ;;  %v5732_v31 = vld [vmem:[#allocation2 + $0x978] sm:$0xff]  ;;  %v5733_v13 = vld [vmem:[#allocation2 + $0x968] sm:$0xff] }
 0x856   : > { %2733 = vmatpush.msrb.mxu3 %v5683_v15  ;;  %v5735_v15 = vld [vmem:[#allocation2 + $0x948] sm:$0xff] }
 0x857   : > { %2706 = vmatpush.msrb.mxu2 %v5684_v27  ;;  %2753 = vmatpush.msra.mxu0 %v5685_v16  ;;  %v5736_v27 = vld [vmem:[#allocation2 + $0x938] sm:$0xff]  ;;  %v5737_v16 = vld [vmem:[#allocation2 + $0x928] sm:$0xff] }
 0x858   : > { %2734 = vmatpush.msrb.mxu3 %v5686_v17 }
 0x859   : > { %2707 = vmatpush.msrb.mxu2 %v5687_v18  ;;  %2754 = vmatpush.msra.mxu0 %v5688_v19 }
 0x85a   : > { %2735 = vmatpush.msrb.mxu3 %v5689_v53  ;;  %v5738_v53 = vld [vmem:[#allocation2 + $0x918] sm:$0xff] }
 0x85b   : > { %2708 = vmatpush.msrb.mxu2 %v5690_v6  ;;  %2755 = vmatpush.msra.mxu0 %v5691_v20  ;;  %v6557_v6 = vld [vmem:[#allocation7 + $0x20] sm:$0xff] }
 0x85c   : > { %2736 = vmatpush.msrb.mxu3 %v5692_v40  ;;  %v5739_v20 = vld [vmem:[#allocation2 + $0x908] sm:$0xff]  ;;  %v5740_v40 = vld [vmem:[#allocation2 + $0xbf0] sm:$0xff] }
 0x85d   : > { %2709 = vmatpush.msrb.mxu2 %v5693_v62  ;;  %2756 = vmatpush.msra.mxu0 %v5694_v23  ;;  %v5741_v62 = vld [vmem:[#allocation2 + $0xaf8] sm:$0xff]  ;;  %v5742_v23 = vld [vmem:[#allocation2 + $0xbe0] sm:$0xff] }
 0x85e   : > { %2737 = vmatpush.msrb.mxu3 %v5695_v24  ;;  %v5743_v24 = vld [vmem:[#allocation2 + $0xae8] sm:$0xff] }
 0x85f   : > { %2710 = vmatpush.msrb.mxu2 %v5696_v25  ;;  %2757 = vmatpush.msra.mxu0 %v5697_v29  ;;  %v5744_v25 = vld [vmem:[#allocation2 + $0xbd0] sm:$0xff]  ;;  %v5745_v29 = vld [vmem:[#allocation2 + $0xad8] sm:$0xff] }
 0x860   : > { %2738 = vmatpush.msrb.mxu3 %v5698_v30  ;;  %v5746_v30 = vld [vmem:[#allocation2 + $0xbc0] sm:$0xff] }
 0x861   : > { %2711 = vmatpush.msrb.mxu2 %v5699_v32  ;;  %2758 = vmatpush.msra.mxu0 %v5700_v33  ;;  %v5747_v32 = vld [vmem:[#allocation2 + $0xac8] sm:$0xff]  ;;  %v5748_v33 = vld [vmem:[#allocation2 + $0xbb0] sm:$0xff] }
 0x862   : > { %2739 = vmatmul.f32.vlgmr.msrb.gmra.mxu3 %v6509_v12  ;;  %2759 = vmatmul.f32.vlgmr.msra.gmra.mxu0 %v6507_v11 }
 0x863   : > { %2830 = vmatpush.msrb.mxu0 %v5701_v34  ;;  %2712 = vmatpush.msrb.mxu2 %v5702_v35  ;;  %v5749_v34 = vld [vmem:[#allocation2 + $0xab8] sm:$0xff]  ;;  %v5750_v35 = vld [vmem:[#allocation2 + $0xba0] sm:$0xff] }
 0x865   : > { %2831 = vmatpush.msrb.mxu0 %v5703_v36  ;;  %2713 = vmatpush.msrb.mxu2 %v5704_v37  ;;  %v5751_v36 = vld [vmem:[#allocation2 + $0xaa8] sm:$0xff]  ;;  %v5752_v37 = vld [vmem:[#allocation2 + $0xb90] sm:$0xff] }
 0x867   : > { %2832 = vmatpush.msrb.mxu0 %v5705_v28  ;;  %2714 = vmatpush.msrb.mxu2 %v5706_v39  ;;  %v5753_v28 = vld [vmem:[#allocation2 + $0xa98] sm:$0xff]  ;;  %v5754_v39 = vld [vmem:[#allocation2 + $0xb80] sm:$0xff] }
 0x869   : > { %2833 = vmatpush.msrb.mxu0 %v5707_v41  ;;  %2715 = vmatpush.msrb.mxu2 %v5708_v8  ;;  %v5755_v41 = vld [vmem:[#allocation2 + $0xa88] sm:$0xff]  ;;  %v5756_v8 = vld [vmem:[#allocation2 + $0xb70] sm:$0xff] }
 0x86b   : > { %2834 = vmatpush.msrb.mxu0 %v5709_v26  ;;  %2716 = vmatpush.msrb.mxu2 %v5710_v43  ;;  %v5757_v26 = vld [vmem:[#allocation2 + $0xa78] sm:$0xff]  ;;  %v5758_v43 = vld [vmem:[#allocation2 + $0xb60] sm:$0xff] }
 0x86d   : > { %2835 = vmatpush.msrb.mxu0 %v5711_v44  ;;  %2717 = vmatpush.msrb.mxu2 %v5712_v45  ;;  %v5759_v44 = vld [vmem:[#allocation2 + $0xa68] sm:$0xff]  ;;  %v5760_v45 = vld [vmem:[#allocation2 + $0xb50] sm:$0xff] }
 0x86f   : > { %2836 = vmatpush.msrb.mxu0 %v5713_v9  ;;  %2718 = vmatpush.msrb.mxu2 %v5714_v46  ;;  %v5761_v9 = vld [vmem:[#allocation2 + $0xa58] sm:$0xff]  ;;  %v5762_v46 = vld [vmem:[#allocation2 + $0xb40] sm:$0xff] }
 0x870   : > { %2719 = vmatmul.f32.vlgmr.msrb.gmra.mxu2 %v6507_v11 }
 0x871   : > { %2837 = vmatpush.msrb.mxu0 %v5715_v47  ;;  %v5763_v47 = vld [vmem:[#allocation2 + $0xa48] sm:$0xff] }
 0x873   : > { %2838 = vmatpush.msrb.mxu0 %v5716_v48  ;;  %v5764_v48 = vld [vmem:[#allocation2 + $0xb30] sm:$0xff] }
 0x875   : > { %2839 = vmatpush.msrb.mxu0 %v5717_v52  ;;  %v5765_v52 = vld [vmem:[#allocation2 + $0xa38] sm:$0xff] }
 0x877   : > { %2840 = vmatpush.msrb.mxu0 %v5718_v5  ;;  %v5766_v5 = vld [vmem:[#allocation2 + $0xb20] sm:$0xff] }
 0x879   : > { %2841 = vmatpush.msrb.mxu0 %v5719_v22  ;;  %v5767_v22 = vld [vmem:[#allocation2 + $0xa28] sm:$0xff] }
 0x87b   : > { %2842 = vmatpush.msrb.mxu0 %v5720_v38  ;;  %v5768_v38 = vld [vmem:[#allocation2 + $0xb10] sm:$0xff] }
 0x87d   : > { %2843 = vmatpush.msrb.mxu0 %v5721_v49  ;;  %v5769_v49 = vld [vmem:[#allocation2 + $0xa18] sm:$0xff] }
 0x87f   : > { %2844 = vmatpush.msrb.mxu0 %v5722_v58  ;;  %v5770_v58 = vld [vmem:[#allocation2 + $0xb00] sm:$0xff] }
 0x881   : > { %2845 = vmatpush.msrb.mxu0 %v5723_v42  ;;  %v5771_v42 = vld [vmem:[#allocation2 + $0xa08] sm:$0xff] }
 0x882   : > { %2846 = vmatmul.f32.vlgmr.msrb.gmra.mxu0 %v6507_v11 }
 0x8a4   : > { %v2571_v50 = vpop.f32.mrf.mxu3 }
 0x8a5   : > { %v6550_v51 = vadd.f32 %v2571_v50, %v6533_v0  ;;  %v5727_v0 = vld [vmem:[#allocation2 + $0x9c8] sm:$0xff]  ;;  %v5772_v50 = vld [vmem:[#allocation2 + $0xcf0] sm:$0xff] }
 0x8b3   : > { %v2551_v54 = vpop.f32.mrf.mxu2 }
 0x8b4   : > { %v2574_v55 = vadd.f32 %v2551_v54, %v6536_v10  ;;  %v5729_v10 = vld [vmem:[#allocation2 + $0x9a8] sm:$0xff]  ;;  %v5773_v54 = vld [vmem:[#allocation2 + $0xce0] sm:$0xff] }
 0x8bf   : > { %v2678_v56 = vpop.f32.mrf.mxu0 }
 0x8c0   : > { %v6553_v57 = vadd.f32 %v2678_v56, %v2574_v55  ;;  %v5774_v55 = vld [vmem:[#allocation2 + $0xcd0] sm:$0xff]  ;;  %v5775_v56 = vld [vmem:[#allocation2 + $0xcc0] sm:$0xff] }
 0x8c4   : > { %v2653_v59 = vpop.f32.mrf.mxu3 }
 0x8d3   : > { %v2633_v63 = vpop.f32.mrf.mxu2 }
 0x8d4   : > { %v2654_v1 = vadd.f32 %v2653_v59, %v2633_v63  ;;  %v5776_v59 = vld [vmem:[#allocation2 + $0xcb0] sm:$0xff]  ;;  %v5777_v63 = vld [vmem:[#allocation2 + $0xca0] sm:$0xff] }
 0x8d6   : > { %2696 = vmatpush.msrb.mxu1 %v2654_v1  ;;  %v5778_v1 = vld [vmem:[#allocation2 + $0xc90] sm:$0xff] }
 0x8d7   : > { %5085 = vmatmul.msk.f32.vlgmr.msrb.gmra.mxu1 %vm735_vm0, %v6539_v14  ;;  %v5734_v14 = vld [vmem:[#allocation2 + $0x958] sm:$0xff] }
 0x8d8   : > { %2763 = vmatpush.msra.mxu1 %v5724_v60  ;;  %v5779_v60 = vld [vmem:[#allocation2 + $0xc80] sm:$0xff] }
 0x8da   : > { %2764 = vmatpush.msra.mxu1 %v5725_v2  ;;  %v5780_v2 = vld [vmem:[#allocation2 + $0xc70] sm:$0xff] }
 0x8dc   : > { %2765 = vmatpush.msra.mxu1 %v5726_v3  ;;  %v5781_v3 = vld [vmem:[#allocation2 + $0xc60] sm:$0xff] }
 0x8de   : > { %2766 = vmatpush.msra.mxu1 %v5727_v0  ;;  %v5782_v0 = vld [vmem:[#allocation2 + $0xc50] sm:$0xff] }
 0x8e0   : > { %2767 = vmatpush.msra.mxu1 %v5728_v61  ;;  %v5783_v61 = vld [vmem:[#allocation2 + $0xc40] sm:$0xff] }
 0x8e2   : > { %2768 = vmatpush.msra.mxu1 %v5729_v10  ;;  %v5784_v10 = vld [vmem:[#allocation2 + $0xc30] sm:$0xff] }
 0x8e4   : > { %2769 = vmatpush.msra.mxu1 %v5730_v4  ;;  %v5785_v4 = vld [vmem:[#allocation2 + $0xc20] sm:$0xff] }
 0x8e5   : > { %v2740_v17 = vpop.f32.mrf.mxu3 }
 0x8e6   : > { %2770 = vmatpush.msra.mxu1 %v5731_v7  ;;  %v5786_v7 = vld [vmem:[#allocation2 + $0xc10] sm:$0xff] }
 0x8e8   : > { %2771 = vmatpush.msra.mxu1 %v5732_v31  ;;  %v5787_v31 = vld [vmem:[#allocation2 + $0xc00] sm:$0xff] }
 0x8ea   : > { %2772 = vmatpush.msra.mxu1 %v5733_v13 }
 0x8ec   : > { %2773 = vmatpush.msra.mxu1 %v5734_v14 }
 0x8ee   : > { %2774 = vmatpush.msra.mxu1 %v5735_v15  ;;  %v2760_v15 = vpop.f32.mrf.mxu0 }
 0x8f0   : > { %2775 = vmatpush.msra.mxu1 %v5736_v27 }
 0x8f2   : > { %2776 = vmatpush.msra.mxu1 %v5737_v16 }
 0x8f3   : > { %v2720_v18 = vpop.f32.mrf.mxu2 }
 0x8f4   : > { %v2741_v19 = vadd.f32 %v2740_v17, %v2720_v18  ;;  %2777 = vmatpush.msra.mxu1 %v5738_v53  ;;  %v5788_v17 = vld [vmem:[#allocation2 + $0xbf8] sm:$0xff]  ;;  %v5789_v53 = vld [vmem:[#allocation2 + $0xbe8] sm:$0xff] }
 0x8f6   : > { %2778 = vmatpush.msra.mxu1 %v5739_v20  ;;  %2803 = vmatpush.msra.mxu2 %v2741_v19  ;;  %v5790_v20 = vld [vmem:[#allocation2 + $0xbd8] sm:$0xff] }
 0x8f7   : > { %2779 = vmatmul.f32.vlgmr.msra.gmra.mxu1 %v6509_v12  ;;  %5086 = vmatmul.msk.f32.vlgmr.msra.gmra.mxu2 %vm735_vm0, %v6557_v6 }
 0x8f8   : > { %2850 = vmatpush.msrb.mxu1 %v5740_v40  ;;  %2870 = vmatpush.msrb.mxu2 %v5741_v62  ;;  %v5791_v40 = vld [vmem:[#allocation2 + $0xbc8] sm:$0xff] }
 0x8f9   : > { %v5793_v62 = vld [vmem:[#allocation2 + $0xba8] sm:$0xff] }
 0x8fa   : > { %2851 = vmatpush.msrb.mxu1 %v5742_v23  ;;  %2871 = vmatpush.msrb.mxu2 %v5743_v24  ;;  %v5794_v23 = vld [vmem:[#allocation2 + $0xb98] sm:$0xff]  ;;  %v5795_v24 = vld [vmem:[#allocation2 + $0xb88] sm:$0xff] }
 0x8fc   : > { %2852 = vmatpush.msrb.mxu1 %v5744_v25  ;;  %2872 = vmatpush.msrb.mxu2 %v5745_v29  ;;  %v5797_v25 = vld [vmem:[#allocation2 + $0xb68] sm:$0xff] }
 0x8fd   : > { %v5799_v29 = vld [vmem:[#allocation2 + $0xb48] sm:$0xff] }
 0x8fe   : > { %2853 = vmatpush.msrb.mxu1 %v5746_v30  ;;  %2873 = vmatpush.msrb.mxu2 %v5747_v32  ;;  %v5800_v30 = vld [vmem:[#allocation2 + $0xb38] sm:$0xff]  ;;  %v5801_v32 = vld [vmem:[#allocation2 + $0xb28] sm:$0xff] }
 0x900   : > { %2854 = vmatpush.msrb.mxu1 %v5748_v33  ;;  %2874 = vmatpush.msrb.mxu2 %v5749_v34  ;;  %v2847_v33 = vpop.f32.mrf.mxu0 }
 0x902   : > { %2855 = vmatpush.msrb.mxu1 %v5750_v35  ;;  %2875 = vmatpush.msrb.mxu2 %v5751_v36  ;;  %v5802_v36 = vld [vmem:[#allocation2 + $0xb18] sm:$0xff] }
 0x904   : > { %2856 = vmatpush.msrb.mxu1 %v5752_v37  ;;  %2876 = vmatpush.msrb.mxu2 %v5753_v28  ;;  %v6573_v37 = vld [vmem:[#allocation7 + $0x28] sm:$0xff]  ;;  %v5803_v28 = vld [vmem:[#allocation2 + $0xb08] sm:$0xff] }
 0x906   : > { %2857 = vmatpush.msrb.mxu1 %v5754_v39  ;;  %2877 = vmatpush.msrb.mxu2 %v5755_v41  ;;  %v5804_v39 = vld [vmem:[#allocation2 + $0xdf0] sm:$0xff]  ;;  %v5805_v41 = vld [vmem:[#allocation2 + $0xcf8] sm:$0xff] }
 0x908   : > { %2858 = vmatpush.msrb.mxu1 %v5756_v8  ;;  %2878 = vmatpush.msrb.mxu2 %v5757_v26  ;;  %v5806_v8 = vld [vmem:[#allocation2 + $0xde0] sm:$0xff]  ;;  %v5807_v26 = vld [vmem:[#allocation2 + $0xce8] sm:$0xff] }
 0x90a   : > { %2859 = vmatpush.msrb.mxu1 %v5758_v43  ;;  %2879 = vmatpush.msrb.mxu2 %v5759_v44  ;;  %v5808_v43 = vld [vmem:[#allocation2 + $0xdd0] sm:$0xff]  ;;  %v5809_v44 = vld [vmem:[#allocation2 + $0xcd8] sm:$0xff] }
 0x90c   : > { %2860 = vmatpush.msrb.mxu1 %v5760_v45  ;;  %2880 = vmatpush.msrb.mxu2 %v5761_v9  ;;  %v5810_v45 = vld [vmem:[#allocation2 + $0xdc0] sm:$0xff]  ;;  %v5811_v9 = vld [vmem:[#allocation2 + $0xcc8] sm:$0xff] }
 0x90e   : > { %2861 = vmatpush.msrb.mxu1 %v5762_v46  ;;  %2881 = vmatpush.msrb.mxu2 %v5763_v47  ;;  %v5812_v46 = vld [vmem:[#allocation2 + $0xdb0] sm:$0xff]  ;;  %v5813_v47 = vld [vmem:[#allocation2 + $0xcb8] sm:$0xff] }
 0x910   : > { %2862 = vmatpush.msrb.mxu1 %v5764_v48  ;;  %2882 = vmatpush.msrb.mxu2 %v5765_v52  ;;  %v5814_v48 = vld [vmem:[#allocation2 + $0xda0] sm:$0xff]  ;;  %v5815_v52 = vld [vmem:[#allocation2 + $0xca8] sm:$0xff] }
 0x912   : > { %2863 = vmatpush.msrb.mxu1 %v5766_v5  ;;  %2883 = vmatpush.msrb.mxu2 %v5767_v22  ;;  %v5816_v5 = vld [vmem:[#allocation2 + $0xd90] sm:$0xff]  ;;  %v5817_v22 = vld [vmem:[#allocation2 + $0xc98] sm:$0xff] }
 0x914   : > { %2864 = vmatpush.msrb.mxu1 %v5768_v38  ;;  %2884 = vmatpush.msrb.mxu2 %v5769_v49  ;;  %v5818_v38 = vld [vmem:[#allocation2 + $0xd80] sm:$0xff]  ;;  %v5819_v49 = vld [vmem:[#allocation2 + $0xc88] sm:$0xff] }
 0x916   : > { %2865 = vmatpush.msrb.mxu1 %v5770_v58  ;;  %2885 = vmatpush.msrb.mxu2 %v5771_v42  ;;  %v5820_v58 = vld [vmem:[#allocation2 + $0xd70] sm:$0xff]  ;;  %v5821_v42 = vld [vmem:[#allocation2 + $0xc78] sm:$0xff] }
 0x917   : > { %2866 = vmatmul.f32.vlgmr.msrb.gmra.mxu1 %v6509_v12  ;;  %2886 = vmatmul.f32.vlgmr.msrb.gmra.mxu2 %v6507_v11 }
 0x918   : > { %2957 = vmatpush.msra.mxu2 %v5772_v50  ;;  %v5822_v50 = vld [vmem:[#allocation2 + $0xd60] sm:$0xff] }
 0x91a   : > { %2958 = vmatpush.msra.mxu2 %v5773_v54  ;;  %v5823_v54 = vld [vmem:[#allocation2 + $0xc68] sm:$0xff] }
 0x91c   : > { %2959 = vmatpush.msra.mxu2 %v5774_v55  ;;  %v5824_v55 = vld [vmem:[#allocation2 + $0xd50] sm:$0xff] }
 0x91e   : > { %2960 = vmatpush.msra.mxu2 %v5775_v56  ;;  %v5825_v56 = vld [vmem:[#allocation2 + $0xc58] sm:$0xff] }
 0x920   : > { %2961 = vmatpush.msra.mxu2 %v5776_v59  ;;  %v5826_v59 = vld [vmem:[#allocation2 + $0xd40] sm:$0xff] }
 0x922   : > { %2962 = vmatpush.msra.mxu2 %v5777_v63  ;;  %v5827_v63 = vld [vmem:[#allocation2 + $0xc48] sm:$0xff] }
 0x924   : > { %2963 = vmatpush.msra.mxu2 %v5778_v1  ;;  %v5828_v1 = vld [vmem:[#allocation2 + $0xd30] sm:$0xff] }
 0x926   : > { %2964 = vmatpush.msra.mxu2 %v5779_v60  ;;  %v5829_v60 = vld [vmem:[#allocation2 + $0xc38] sm:$0xff] }
 0x928   : > { %2965 = vmatpush.msra.mxu2 %v5780_v2  ;;  %v5830_v2 = vld [vmem:[#allocation2 + $0xd20] sm:$0xff] }
 0x92a   : > { %2966 = vmatpush.msra.mxu2 %v5781_v3  ;;  %v5831_v3 = vld [vmem:[#allocation2 + $0xc28] sm:$0xff] }
 0x92c   : > { %2967 = vmatpush.msra.mxu2 %v5782_v0  ;;  %v5832_v0 = vld [vmem:[#allocation2 + $0xd10] sm:$0xff] }
 0x92e   : > { %2968 = vmatpush.msra.mxu2 %v5783_v61  ;;  %v5833_v61 = vld [vmem:[#allocation2 + $0xc18] sm:$0xff] }
 0x930   : > { %2969 = vmatpush.msra.mxu2 %v5784_v10  ;;  %v5834_v10 = vld [vmem:[#allocation2 + $0xd00] sm:$0xff] }
 0x932   : > { %2970 = vmatpush.msra.mxu2 %v5785_v4  ;;  %v5835_v4 = vld [vmem:[#allocation2 + $0xc08] sm:$0xff] }
 0x934   : > { %2971 = vmatpush.msra.mxu2 %v5786_v7  ;;  %v5836_v7 = vld [vmem:[#allocation2 + $0xef0] sm:$0xff] }
 0x936   : > { %2972 = vmatpush.msra.mxu2 %v5787_v31  ;;  %v5837_v31 = vld [vmem:[#allocation2 + $0xee0] sm:$0xff] }
 0x937   : > { %2973 = vmatmul.f32.vlgmr.msra.gmra.mxu2 %v6507_v11 }
 0x954   : > { %v2698_v13 = vpop.f32.mrf.mxu1 }
 0x955   : > { %v6566_v14 = vadd.f32 %v2698_v13, %v6550_v51  ;;  %v5792_v51 = vld [vmem:[#allocation2 + $0xbb8] sm:$0xff]  ;;  %v5838_v13 = vld [vmem:[#allocation2 + $0xed0] sm:$0xff] }
 0x974   : > { %v2780_v27 = vpop.f32.mrf.mxu1 }
 0x975   : > { %v2781_v16 = vadd.f32 %v2780_v27, %v2760_v15  ;;  %v5839_v15 = vld [vmem:[#allocation2 + $0xec0] sm:$0xff]  ;;  %v5840_v27 = vld [vmem:[#allocation2 + $0xeb0] sm:$0xff] }
 0x977   : > { %2823 = vmatpush.msra.mxu3 %v2781_v16  ;;  %v5841_v16 = vld [vmem:[#allocation2 + $0xea0] sm:$0xff] }
 0x978   : > { %5087 = vmatmul.msk.f32.vlgmr.msra.gmra.mxu3 %vm735_vm0, %v6557_v6  ;;  %v5796_v6 = vld [vmem:[#allocation2 + $0xb78] sm:$0xff] }
 0x979   : > { %2890 = vmatpush.msrb.mxu3 %v5788_v17  ;;  %v5842_v17 = vld [vmem:[#allocation2 + $0xe90] sm:$0xff] }
 0x97a   : > { %v2805_v18 = vpop.f32.mrf.mxu2 }
 0x97b   : > { %v6571_v19 = vadd.f32 %v2805_v18, %v6553_v57  ;;  %2891 = vmatpush.msrb.mxu3 %v5789_v53  ;;  %v5798_v57 = vld [vmem:[#allocation2 + $0xb58] sm:$0xff]  ;;  %v5843_v18 = vld [vmem:[#allocation2 + $0xe80] sm:$0xff]  ;;  %v5844_v53 = vld [vmem:[#allocation2 + $0xe70] sm:$0xff] }
 0x97d   : > { %2892 = vmatpush.msrb.mxu3 %v5790_v20  ;;  %v5845_v20 = vld [vmem:[#allocation2 + $0xe60] sm:$0xff] }
 0x97f   : > { %2893 = vmatpush.msrb.mxu3 %v5791_v40  ;;  %v5846_v40 = vld [vmem:[#allocation2 + $0xe50] sm:$0xff] }
 0x981   : > { %2894 = vmatpush.msrb.mxu3 %v5792_v51  ;;  %v5847_v51 = vld [vmem:[#allocation2 + $0xe40] sm:$0xff] }
 0x983   : > { %2895 = vmatpush.msrb.mxu3 %v5793_v62  ;;  %v5848_v62 = vld [vmem:[#allocation2 + $0xe30] sm:$0xff] }
 0x985   : > { %2896 = vmatpush.msrb.mxu3 %v5794_v23  ;;  %v5849_v23 = vld [vmem:[#allocation2 + $0xe20] sm:$0xff] }
 0x987   : > { %2897 = vmatpush.msrb.mxu3 %v5795_v24  ;;  %v5850_v24 = vld [vmem:[#allocation2 + $0xe10] sm:$0xff] }
 0x989   : > { %2898 = vmatpush.msrb.mxu3 %v5796_v6  ;;  %v5851_v6 = vld [vmem:[#allocation2 + $0xe00] sm:$0xff] }
 0x98b   : > { %2899 = vmatpush.msrb.mxu3 %v5797_v25 }
 0x98d   : > { %2900 = vmatpush.msrb.mxu3 %v5798_v57 }
 0x98f   : > { %2901 = vmatpush.msrb.mxu3 %v5799_v29 }
 0x991   : > { %2902 = vmatpush.msrb.mxu3 %v5800_v30 }
 0x993   : > { %2903 = vmatpush.msrb.mxu3 %v5801_v32 }
 0x994   : > { %v2867_v34 = vpop.f32.mrf.mxu1 }
 0x995   : > { %v2868_v35 = vadd.f32 %v2867_v34, %v2847_v33  ;;  %2904 = vmatpush.msrb.mxu3 %v5802_v36  ;;  %v5853_v36 = vld [vmem:[#allocation2 + $0xde8] sm:$0xff] }
 0x997   : > { %2905 = vmatpush.msrb.mxu3 %v5803_v28  ;;  %2930 = vmatpush.msra.mxu0 %v2868_v35  ;;  %v5852_v35 = vld [vmem:[#allocation2 + $0xdf8] sm:$0xff] }
 0x998   : > { %2906 = vmatmul.f32.vlgmr.msrb.gmra.mxu3 %v6509_v12  ;;  %5088 = vmatmul.msk.f32.vlgmr.msra.gmra.mxu0 %vm735_vm0, %v6573_v37  ;;  %v5854_v28 = vld [vmem:[#allocation2 + $0xdd8] sm:$0xff] }
 0x999   : > { %2977 = vmatpush.msra.mxu3 %v5804_v39  ;;  %2997 = vmatpush.msrb.mxu0 %v5805_v41  ;;  %v5855_v39 = vld [vmem:[#allocation2 + $0xdc8] sm:$0xff] }
 0x99a   : > { %v2887_v32 = vpop.f32.mrf.mxu2  ;;  %v5857_v41 = vld [vmem:[#allocation2 + $0xda8] sm:$0xff] }
 0x99b   : > { %2978 = vmatpush.msra.mxu3 %v5806_v8  ;;  %2998 = vmatpush.msrb.mxu0 %v5807_v26  ;;  %v5859_v8 = vld [vmem:[#allocation2 + $0xd88] sm:$0xff]  ;;  %v5860_v26 = vld [vmem:[#allocation2 + $0xd78] sm:$0xff] }
 0x99d   : > { %2979 = vmatpush.msra.mxu3 %v5808_v43  ;;  %2999 = vmatpush.msrb.mxu0 %v5809_v44  ;;  %v5861_v43 = vld [vmem:[#allocation2 + $0xd68] sm:$0xff] }
 0x99e   : > { %v5863_v44 = vld [vmem:[#allocation2 + $0xd48] sm:$0xff] }
 0x99f   : > { %2980 = vmatpush.msra.mxu3 %v5810_v45  ;;  %3000 = vmatpush.msrb.mxu0 %v5811_v9  ;;  %v5864_v45 = vld [vmem:[#allocation2 + $0xd38] sm:$0xff]  ;;  %v5865_v9 = vld [vmem:[#allocation2 + $0xd28] sm:$0xff] }
 0x9a1   : > { %2981 = vmatpush.msra.mxu3 %v5812_v46  ;;  %3001 = vmatpush.msrb.mxu0 %v5813_v47 }
 0x9a3   : > { %2982 = vmatpush.msra.mxu3 %v5814_v48  ;;  %3002 = vmatpush.msrb.mxu0 %v5815_v52  ;;  %v5866_v52 = vld [vmem:[#allocation2 + $0xd18] sm:$0xff] }
 0x9a5   : > { %2983 = vmatpush.msra.mxu3 %v5816_v5  ;;  %3003 = vmatpush.msrb.mxu0 %v5817_v22  ;;  %v6589_v5 = vld [vmem:[#allocation7 + $0x30] sm:$0xff]  ;;  %v5867_v22 = vld [vmem:[#allocation2 + $0xd08] sm:$0xff] }
 0x9a7   : > { %2984 = vmatpush.msra.mxu3 %v5818_v38  ;;  %3004 = vmatpush.msrb.mxu0 %v5819_v49  ;;  %v5868_v38 = vld [vmem:[#allocation2 + $0xff0] sm:$0xff]  ;;  %v5869_v49 = vld [vmem:[#allocation2 + $0xef8] sm:$0xff] }
 0x9a9   : > { %2985 = vmatpush.msra.mxu3 %v5820_v58  ;;  %3005 = vmatpush.msrb.mxu0 %v5821_v42  ;;  %v5870_v58 = vld [vmem:[#allocation2 + $0xfe0] sm:$0xff]  ;;  %v5871_v42 = vld [vmem:[#allocation2 + $0xee8] sm:$0xff] }
 0x9ab   : > { %2986 = vmatpush.msra.mxu3 %v5822_v50  ;;  %3006 = vmatpush.msrb.mxu0 %v5823_v54  ;;  %v5872_v50 = vld [vmem:[#allocation2 + $0xfd0] sm:$0xff]  ;;  %v5873_v54 = vld [vmem:[#allocation2 + $0xed8] sm:$0xff] }
 0x9ad   : > { %2987 = vmatpush.msra.mxu3 %v5824_v55  ;;  %3007 = vmatpush.msrb.mxu0 %v5825_v56  ;;  %v5874_v55 = vld [vmem:[#allocation2 + $0xfc0] sm:$0xff]  ;;  %v5875_v56 = vld [vmem:[#allocation2 + $0xec8] sm:$0xff] }
 0x9af   : > { %2988 = vmatpush.msra.mxu3 %v5826_v59  ;;  %3008 = vmatpush.msrb.mxu0 %v5827_v63  ;;  %v5876_v59 = vld [vmem:[#allocation2 + $0xfb0] sm:$0xff]  ;;  %v5877_v63 = vld [vmem:[#allocation2 + $0xeb8] sm:$0xff] }
 0x9b1   : > { %2989 = vmatpush.msra.mxu3 %v5828_v1  ;;  %3009 = vmatpush.msrb.mxu0 %v5829_v60  ;;  %v5878_v1 = vld [vmem:[#allocation2 + $0xfa0] sm:$0xff]  ;;  %v5879_v60 = vld [vmem:[#allocation2 + $0xea8] sm:$0xff] }
 0x9b3   : > { %2990 = vmatpush.msra.mxu3 %v5830_v2  ;;  %3010 = vmatpush.msrb.mxu0 %v5831_v3  ;;  %v5880_v2 = vld [vmem:[#allocation2 + $0xf90] sm:$0xff]  ;;  %v5881_v3 = vld [vmem:[#allocation2 + $0xe98] sm:$0xff] }
 0x9b5   : > { %2991 = vmatpush.msra.mxu3 %v5832_v0  ;;  %3011 = vmatpush.msrb.mxu0 %v5833_v61  ;;  %v5882_v0 = vld [vmem:[#allocation2 + $0xf80] sm:$0xff]  ;;  %v5883_v61 = vld [vmem:[#allocation2 + $0xe88] sm:$0xff] }
 0x9b7   : > { %2992 = vmatpush.msra.mxu3 %v5834_v10  ;;  %3012 = vmatpush.msrb.mxu0 %v5835_v4  ;;  %v5884_v10 = vld [vmem:[#allocation2 + $0xf70] sm:$0xff]  ;;  %v5885_v4 = vld [vmem:[#allocation2 + $0xe78] sm:$0xff] }
 0x9b8   : > { %2993 = vmatmul.f32.vlgmr.msra.gmra.mxu3 %v6509_v12  ;;  %3013 = vmatmul.f32.vlgmr.msrb.gmra.mxu0 %v6507_v11 }
 0x9b9   : > { %3084 = vmatpush.msra.mxu0 %v5836_v7  ;;  %v5886_v7 = vld [vmem:[#allocation2 + $0xf60] sm:$0xff] }
 0x9ba   : > { %v2974_v46 = vpop.f32.mrf.mxu2 }
 0x9bb   : > { %3085 = vmatpush.msra.mxu0 %v5837_v31  ;;  %v5887_v31 = vld [vmem:[#allocation2 + $0xe68] sm:$0xff] }
 0x9bd   : > { %3086 = vmatpush.msra.mxu0 %v5838_v13  ;;  %v5888_v13 = vld [vmem:[#allocation2 + $0xf50] sm:$0xff] }
 0x9bf   : > { %3087 = vmatpush.msra.mxu0 %v5839_v15  ;;  %v5889_v15 = vld [vmem:[#allocation2 + $0xe58] sm:$0xff] }
 0x9c1   : > { %3088 = vmatpush.msra.mxu0 %v5840_v27  ;;  %v5890_v27 = vld [vmem:[#allocation2 + $0xf40] sm:$0xff] }
 0x9c3   : > { %3089 = vmatpush.msra.mxu0 %v5841_v16  ;;  %v5891_v16 = vld [vmem:[#allocation2 + $0xe48] sm:$0xff] }
 0x9c5   : > { %3090 = vmatpush.msra.mxu0 %v5842_v17  ;;  %v5892_v17 = vld [vmem:[#allocation2 + $0xf30] sm:$0xff] }
 0x9c7   : > { %3091 = vmatpush.msra.mxu0 %v5843_v18  ;;  %v5893_v18 = vld [vmem:[#allocation2 + $0xe38] sm:$0xff] }
 0x9c9   : > { %3092 = vmatpush.msra.mxu0 %v5844_v53  ;;  %v5894_v53 = vld [vmem:[#allocation2 + $0xf20] sm:$0xff] }
 0x9cb   : > { %3093 = vmatpush.msra.mxu0 %v5845_v20  ;;  %v5895_v20 = vld [vmem:[#allocation2 + $0xe28] sm:$0xff] }
 0x9cd   : > { %3094 = vmatpush.msra.mxu0 %v5846_v40  ;;  %v5896_v40 = vld [vmem:[#allocation2 + $0xf10] sm:$0xff] }
 0x9cf   : > { %3095 = vmatpush.msra.mxu0 %v5847_v51  ;;  %v5897_v51 = vld [vmem:[#allocation2 + $0xe18] sm:$0xff] }
 0x9d1   : > { %3096 = vmatpush.msra.mxu0 %v5848_v62  ;;  %v5898_v62 = vld [vmem:[#allocation2 + $0xf00] sm:$0xff] }
 0x9d3   : > { %3097 = vmatpush.msra.mxu0 %v5849_v23  ;;  %v5899_v23 = vld [vmem:[#allocation2 + $0xe08] sm:$0xff] }
 0x9d5   : > { %3098 = vmatpush.msra.mxu0 %v5850_v24  ;;  %v5900_v24 = vld [vmem:[#allocation2 + $0x10f0] sm:$0xff] }
 0x9d7   : > { %3099 = vmatpush.msra.mxu0 %v5851_v6  ;;  %v5901_v6 = vld [vmem:[#allocation2 + $0x10e0] sm:$0xff] }
 0x9d8   : > { %3100 = vmatmul.f32.vlgmr.msra.gmra.mxu0 %v6507_v11 }
 0x9fb   : > { %v2825_v25 = vpop.f32.mrf.mxu3 }
 0x9fc   : > { %v6582_v57 = vadd.f32 %v2825_v25, %v6566_v14  ;;  %v5856_v14 = vld [vmem:[#allocation2 + $0xdb8] sm:$0xff]  ;;  %v5902_v25 = vld [vmem:[#allocation2 + $0x10d0] sm:$0xff] }
 0xa15   : > { %v2932_v29 = vpop.f32.mrf.mxu0 }
 0xa16   : > { %v6585_v30 = vadd.f32 %v2932_v29, %v6571_v19  ;;  %v5858_v19 = vld [vmem:[#allocation2 + $0xd98] sm:$0xff]  ;;  %v5903_v29 = vld [vmem:[#allocation2 + $0x10c0] sm:$0xff] }
 0xa1b   : > { %v2907_v33 = vpop.f32.mrf.mxu3 }
 0xa1c   : > { %v2908_v34 = vadd.f32 %v2907_v33, %v2887_v32  ;;  %v5904_v32 = vld [vmem:[#allocation2 + $0x10b0] sm:$0xff]  ;;  %v5905_v33 = vld [vmem:[#allocation2 + $0x10a0] sm:$0xff] }
 0xa1e   : > { %2950 = vmatpush.msra.mxu1 %v2908_v34  ;;  %v5906_v34 = vld [vmem:[#allocation2 + $0x1090] sm:$0xff] }
 0xa1f   : > { %5089 = vmatmul.msk.f32.vlgmr.msra.gmra.mxu1 %vm735_vm0, %v6573_v37  ;;  %v5862_v37 = vld [vmem:[#allocation2 + $0xd58] sm:$0xff] }
 0xa20   : > { %3017 = vmatpush.msrb.mxu1 %v5852_v35  ;;  %v5907_v35 = vld [vmem:[#allocation2 + $0x1080] sm:$0xff] }
 0xa22   : > { %3018 = vmatpush.msrb.mxu1 %v5853_v36  ;;  %v5908_v36 = vld [vmem:[#allocation2 + $0x1070] sm:$0xff] }
 0xa24   : > { %3019 = vmatpush.msrb.mxu1 %v5854_v28  ;;  %v5909_v28 = vld [vmem:[#allocation2 + $0x1060] sm:$0xff] }
 0xa26   : > { %3020 = vmatpush.msrb.mxu1 %v5855_v39  ;;  %v5910_v39 = vld [vmem:[#allocation2 + $0x1050] sm:$0xff] }
 0xa28   : > { %3021 = vmatpush.msrb.mxu1 %v5856_v14  ;;  %v5911_v14 = vld [vmem:[#allocation2 + $0x1040] sm:$0xff] }
 0xa2a   : > { %3022 = vmatpush.msrb.mxu1 %v5857_v41  ;;  %v5912_v41 = vld [vmem:[#allocation2 + $0x1030] sm:$0xff] }
 0xa2c   : > { %3023 = vmatpush.msrb.mxu1 %v5858_v19  ;;  %v5913_v19 = vld [vmem:[#allocation2 + $0x1020] sm:$0xff] }
 0xa2e   : > { %3024 = vmatpush.msrb.mxu1 %v5859_v8  ;;  %v5914_v8 = vld [vmem:[#allocation2 + $0x1010] sm:$0xff] }
 0xa30   : > { %3025 = vmatpush.msrb.mxu1 %v5860_v26  ;;  %v5915_v26 = vld [vmem:[#allocation2 + $0x1000] sm:$0xff] }
 0xa32   : > { %3026 = vmatpush.msrb.mxu1 %v5861_v43 }
 0xa34   : > { %3027 = vmatpush.msrb.mxu1 %v5862_v37 }
 0xa36   : > { %3028 = vmatpush.msrb.mxu1 %v5863_v44  ;;  %v3014_v44 = vpop.f32.mrf.mxu0 }
 0xa38   : > { %3029 = vmatpush.msrb.mxu1 %v5864_v45 }
 0xa3a   : > { %3030 = vmatpush.msrb.mxu1 %v5865_v9 }
 0xa3b   : > { %v2994_v47 = vpop.f32.mrf.mxu3 }
 0xa3c   : > { %v2995_v48 = vadd.f32 %v2994_v47, %v2974_v46  ;;  %3031 = vmatpush.msrb.mxu1 %v5866_v52  ;;  %v5916_v46 = vld [vmem:[#allocation2 + $0xff8] sm:$0xff]  ;;  %v5917_v52 = vld [vmem:[#allocation2 + $0xfe8] sm:$0xff] }
 0xa3e   : > { %3032 = vmatpush.msrb.mxu1 %v5867_v22  ;;  %3057 = vmatpush.msrb.mxu2 %v2995_v48  ;;  %v5918_v22 = vld [vmem:[#allocation2 + $0xfd8] sm:$0xff] }
 0xa3f   : > { %3033 = vmatmul.f32.vlgmr.msrb.gmra.mxu1 %v6509_v12  ;;  %5090 = vmatmul.msk.f32.vlgmr.msrb.gmra.mxu2 %vm735_vm0, %v6589_v5 }
 0xa40   : > { %3104 = vmatpush.msra.mxu1 %v5868_v38  ;;  %3124 = vmatpush.msra.mxu2 %v5869_v49  ;;  %v5919_v38 = vld [vmem:[#allocation2 + $0xfc8] sm:$0xff] }
 0xa41   : > { %v5921_v49 = vld [vmem:[#allocation2 + $0xfa8] sm:$0xff] }
 0xa42   : > { %3105 = vmatpush.msra.mxu1 %v5870_v58  ;;  %3125 = vmatpush.msra.mxu2 %v5871_v42  ;;  %v5922_v58 = vld [vmem:[#allocation2 + $0xf98] sm:$0xff]  ;;  %v5923_v42 = vld [vmem:[#allocation2 + $0xf88] sm:$0xff] }
 0xa44   : > { %3106 = vmatpush.msra.mxu1 %v5872_v50  ;;  %3126 = vmatpush.msra.mxu2 %v5873_v54  ;;  %v5925_v50 = vld [vmem:[#allocation2 + $0xf68] sm:$0xff] }
 0xa45   : > { %v5927_v54 = vld [vmem:[#allocation2 + $0xf48] sm:$0xff] }
 0xa46   : > { %3107 = vmatpush.msra.mxu1 %v5874_v55  ;;  %3127 = vmatpush.msra.mxu2 %v5875_v56  ;;  %v5928_v55 = vld [vmem:[#allocation2 + $0xf38] sm:$0xff]  ;;  %v5929_v56 = vld [vmem:[#allocation2 + $0xf28] sm:$0xff] }
 0xa48   : > { %3108 = vmatpush.msra.mxu1 %v5876_v59  ;;  %3128 = vmatpush.msra.mxu2 %v5877_v63 }
 0xa4a   : > { %3109 = vmatpush.msra.mxu1 %v5878_v1  ;;  %3129 = vmatpush.msra.mxu2 %v5879_v60  ;;  %v5930_v60 = vld [vmem:[#allocation2 + $0xf18] sm:$0xff] }
 0xa4c   : > { %3110 = vmatpush.msra.mxu1 %v5880_v2  ;;  %3130 = vmatpush.msra.mxu2 %v5881_v3  ;;  %v6605_v2 = vld [vmem:[#allocation7 + $0x38] sm:$0xff]  ;;  %v5931_v3 = vld [vmem:[#allocation2 + $0xf08] sm:$0xff] }
 0xa4e   : > { %3111 = vmatpush.msra.mxu1 %v5882_v0  ;;  %3131 = vmatpush.msra.mxu2 %v5883_v61  ;;  %v5932_v0 = vld [vmem:[#allocation2 + $0x11f0] sm:$0xff]  ;;  %v5933_v61 = vld [vmem:[#allocation2 + $0x10f8] sm:$0xff] }
 0xa50   : > { %3112 = vmatpush.msra.mxu1 %v5884_v10  ;;  %3132 = vmatpush.msra.mxu2 %v5885_v4  ;;  %v5934_v10 = vld [vmem:[#allocation2 + $0x11e0] sm:$0xff]  ;;  %v5935_v4 = vld [vmem:[#allocation2 + $0x10e8] sm:$0xff] }
 0xa52   : > { %3113 = vmatpush.msra.mxu1 %v5886_v7  ;;  %3133 = vmatpush.msra.mxu2 %v5887_v31  ;;  %v5936_v7 = vld [vmem:[#allocation2 + $0x11d0] sm:$0xff]  ;;  %v5937_v31 = vld [vmem:[#allocation2 + $0x10d8] sm:$0xff] }
 0xa54   : > { %3114 = vmatpush.msra.mxu1 %v5888_v13  ;;  %3134 = vmatpush.msra.mxu2 %v5889_v15  ;;  %v5938_v13 = vld [vmem:[#allocation2 + $0x11c0] sm:$0xff]  ;;  %v5939_v15 = vld [vmem:[#allocation2 + $0x10c8] sm:$0xff] }
 0xa55   : > { %v3101_v59 = vpop.f32.mrf.mxu0 }
 0xa56   : > { %3115 = vmatpush.msra.mxu1 %v5890_v27  ;;  %3135 = vmatpush.msra.mxu2 %v5891_v16  ;;  %v5940_v27 = vld [vmem:[#allocation2 + $0x11b0] sm:$0xff]  ;;  %v5941_v16 = vld [vmem:[#allocation2 + $0x10b8] sm:$0xff] }
 0xa58   : > { %3116 = vmatpush.msra.mxu1 %v5892_v17  ;;  %3136 = vmatpush.msra.mxu2 %v5893_v18  ;;  %v5942_v17 = vld [vmem:[#allocation2 + $0x11a0] sm:$0xff]  ;;  %v5943_v18 = vld [vmem:[#allocation2 + $0x10a8] sm:$0xff] }
 0xa5a   : > { %3117 = vmatpush.msra.mxu1 %v5894_v53  ;;  %3137 = vmatpush.msra.mxu2 %v5895_v20  ;;  %v5944_v53 = vld [vmem:[#allocation2 + $0x1190] sm:$0xff]  ;;  %v5945_v20 = vld [vmem:[#allocation2 + $0x1098] sm:$0xff] }
 0xa5c   : > { %3118 = vmatpush.msra.mxu1 %v5896_v40  ;;  %3138 = vmatpush.msra.mxu2 %v5897_v51  ;;  %v5946_v40 = vld [vmem:[#allocation2 + $0x1180] sm:$0xff]  ;;  %v5947_v51 = vld [vmem:[#allocation2 + $0x1088] sm:$0xff] }
 0xa5e   : > { %3119 = vmatpush.msra.mxu1 %v5898_v62  ;;  %3139 = vmatpush.msra.mxu2 %v5899_v23  ;;  %v5948_v62 = vld [vmem:[#allocation2 + $0x1170] sm:$0xff]  ;;  %v5949_v23 = vld [vmem:[#allocation2 + $0x1078] sm:$0xff] }
 0xa5f   : > { %3120 = vmatmul.f32.vlgmr.msra.gmra.mxu1 %v6509_v12  ;;  %3140 = vmatmul.f32.vlgmr.msra.gmra.mxu2 %v6507_v11 }
 0xa60   : > { %3211 = vmatpush.msrb.mxu2 %v5900_v24  ;;  %v5950_v24 = vld [vmem:[#allocation2 + $0x1160] sm:$0xff] }
 0xa62   : > { %3212 = vmatpush.msrb.mxu2 %v5901_v6  ;;  %v5951_v6 = vld [vmem:[#allocation2 + $0x1068] sm:$0xff] }
 0xa64   : > { %3213 = vmatpush.msrb.mxu2 %v5902_v25  ;;  %v5952_v25 = vld [vmem:[#allocation2 + $0x1150] sm:$0xff] }
 0xa66   : > { %3214 = vmatpush.msrb.mxu2 %v5903_v29  ;;  %v5953_v29 = vld [vmem:[#allocation2 + $0x1058] sm:$0xff] }
 0xa68   : > { %3215 = vmatpush.msrb.mxu2 %v5904_v32  ;;  %v5954_v32 = vld [vmem:[#allocation2 + $0x1140] sm:$0xff] }
 0xa6a   : > { %3216 = vmatpush.msrb.mxu2 %v5905_v33  ;;  %v5955_v33 = vld [vmem:[#allocation2 + $0x1048] sm:$0xff] }
 0xa6c   : > { %3217 = vmatpush.msrb.mxu2 %v5906_v34  ;;  %v5956_v34 = vld [vmem:[#allocation2 + $0x1130] sm:$0xff] }
 0xa6e   : > { %3218 = vmatpush.msrb.mxu2 %v5907_v35  ;;  %v5957_v35 = vld [vmem:[#allocation2 + $0x1038] sm:$0xff] }
 0xa70   : > { %3219 = vmatpush.msrb.mxu2 %v5908_v36  ;;  %v5958_v36 = vld [vmem:[#allocation2 + $0x1120] sm:$0xff] }
 0xa72   : > { %3220 = vmatpush.msrb.mxu2 %v5909_v28  ;;  %v5959_v28 = vld [vmem:[#allocation2 + $0x1028] sm:$0xff] }
 0xa74   : > { %3221 = vmatpush.msrb.mxu2 %v5910_v39  ;;  %v5960_v39 = vld [vmem:[#allocation2 + $0x1110] sm:$0xff] }
 0xa76   : > { %3222 = vmatpush.msrb.mxu2 %v5911_v14  ;;  %v5961_v14 = vld [vmem:[#allocation2 + $0x1018] sm:$0xff] }
 0xa78   : > { %3223 = vmatpush.msrb.mxu2 %v5912_v41  ;;  %v5962_v41 = vld [vmem:[#allocation2 + $0x1100] sm:$0xff] }
 0xa7a   : > { %3224 = vmatpush.msrb.mxu2 %v5913_v19  ;;  %v5963_v19 = vld [vmem:[#allocation2 + $0x1008] sm:$0xff] }
 0xa7c   : > { %3225 = vmatpush.msrb.mxu2 %v5914_v8 }
 0xa7e   : > { %3226 = vmatpush.msrb.mxu2 %v5915_v26 }
 0xa7f   : > { %3227 = vmatmul.f32.vlgmr.msrb.gmra.mxu2 %v6507_v11 }
 0xa9c   : > { %v2952_v43 = vpop.f32.mrf.mxu1 }
 0xa9d   : > { %v6598_v37 = vadd.f32 %v2952_v43, %v6582_v57  ;;  %v5920_v57 = vld [vmem:[#allocation2 + $0xfb8] sm:$0xff] }
 0xabc   : > { %v3034_v45 = vpop.f32.mrf.mxu1 }
 0xabd   : > { %v3035_v9 = vadd.f32 %v3034_v45, %v3014_v44 }
 0xabf   : > { %3077 = vmatpush.msrb.mxu3 %v3035_v9 }
 0xac0   : > { %5091 = vmatmul.msk.f32.vlgmr.msrb.gmra.mxu3 %vm735_vm0, %v6589_v5  ;;  %v5924_v5 = vld [vmem:[#allocation2 + $0xf78] sm:$0xff] }
 0xac1   : > { %3144 = vmatpush.msra.mxu3 %v5916_v46 }
 0xac2   : > { %v3059_v47 = vpop.f32.mrf.mxu2 }
 0xac3   : > { %v6603_v48 = vadd.f32 %v3059_v47, %v6585_v30  ;;  %3145 = vmatpush.msra.mxu3 %v5917_v52  ;;  %v5926_v30 = vld [vmem:[#allocation2 + $0xf58] sm:$0xff]  ;;  %v5965_v52 = vld [vmem:[#allocation2 + $0x11e8] sm:$0xff] }
 0xac4   : > { %v5964_v47 = vld [vmem:[#allocation2 + $0x11f8] sm:$0xff] }
 0xac5   : > { %3146 = vmatpush.msra.mxu3 %v5918_v22  ;;  %v5966_v22 = vld [vmem:[#allocation2 + $0x11d8] sm:$0xff] }
 0xac7   : > { %3147 = vmatpush.msra.mxu3 %v5919_v38  ;;  %v5968_v38 = vld [vmem:[#allocation2 + $0x11b8] sm:$0xff] }
 0xac9   : > { %3148 = vmatpush.msra.mxu3 %v5920_v57  ;;  %v5971_v57 = vld [vmem:[#allocation2 + $0x1188] sm:$0xff] }
 0xacb   : > { %3149 = vmatpush.msra.mxu3 %v5921_v49  ;;  %v5972_v49 = vld [vmem:[#allocation2 + $0x1178] sm:$0xff] }
 0xacd   : > { %3150 = vmatpush.msra.mxu3 %v5922_v58  ;;  %v5973_v58 = vld [vmem:[#allocation2 + $0x1168] sm:$0xff] }
 0xacf   : > { %3151 = vmatpush.msra.mxu3 %v5923_v42  ;;  %v5974_v42 = vld [vmem:[#allocation2 + $0x1158] sm:$0xff] }
 0xad1   : > { %3152 = vmatpush.msra.mxu3 %v5924_v5  ;;  %v5975_v5 = vld [vmem:[#allocation2 + $0x1148] sm:$0xff] }
 0xad3   : > { %3153 = vmatpush.msra.mxu3 %v5925_v50  ;;  %v5976_v50 = vld [vmem:[#allocation2 + $0x1138] sm:$0xff] }
 0xad5   : > { %3154 = vmatpush.msra.mxu3 %v5926_v30  ;;  %v5977_v30 = vld [vmem:[#allocation2 + $0x1128] sm:$0xff] }
 0xad7   : > { %3155 = vmatpush.msra.mxu3 %v5927_v54 }
 0xad9   : > { %3156 = vmatpush.msra.mxu3 %v5928_v55 }
 0xadb   : > { %3157 = vmatpush.msra.mxu3 %v5929_v56 }
 0xadc   : > { %v3121_v63 = vpop.f32.mrf.mxu1 }
 0xadd   : > { %v3122_v1 = vadd.f32 %v3121_v63, %v3101_v59  ;;  %3158 = vmatpush.msra.mxu3 %v5930_v60  ;;  %v5978_v59 = vld [vmem:[#allocation2 + $0x1118] sm:$0xff]  ;;  %v3292_v63 = vld [vmem:[#allocation7 + $0x40] sm:$0xff] }
 0xadf   : > { %3159 = vmatpush.msra.mxu3 %v5931_v3  ;;  %3184 = vmatpush.msrb.mxu0 %v3122_v1  ;;  %v5979_v1 = vld [vmem:[#allocation2 + $0x1108] sm:$0xff] }
 0xae0   : > { %3160 = vmatmul.f32.vlgmr.msra.gmra.mxu3 %v6509_v12  ;;  %5092 = vmatmul.msk.f32.vlgmr.msrb.gmra.mxu0 %vm735_vm0, %v6605_v2 }
 0xae1   : > { %3231 = vmatpush.msrb.mxu3 %v5932_v0  ;;  %3251 = vmatpush.msra.mxu0 %v5933_v61 }
 0xae2   : > { %v3141_v45 = vpop.f32.mrf.mxu2 }
 0xae3   : > { %3232 = vmatpush.msrb.mxu3 %v5934_v10  ;;  %3252 = vmatpush.msra.mxu0 %v5935_v4 }
 0xae5   : > { %3233 = vmatpush.msrb.mxu3 %v5936_v7  ;;  %3253 = vmatpush.msra.mxu0 %v5937_v31 }
 0xae7   : > { %3234 = vmatpush.msrb.mxu3 %v5938_v13  ;;  %3254 = vmatpush.msra.mxu0 %v5939_v15 }
 0xae9   : > { %3235 = vmatpush.msrb.mxu3 %v5940_v27  ;;  %3255 = vmatpush.msra.mxu0 %v5941_v16 }
 0xaeb   : > { %3236 = vmatpush.msrb.mxu3 %v5942_v17  ;;  %3256 = vmatpush.msra.mxu0 %v5943_v18 }
 0xaed   : > { %3237 = vmatpush.msrb.mxu3 %v5944_v53  ;;  %3257 = vmatpush.msra.mxu0 %v5945_v20  ;;  %v3363_v20 = vld [vmem:[%s7617_s7] sm:$0xff] }
 0xaef   : > { %3238 = vmatpush.msrb.mxu3 %v5946_v40  ;;  %3258 = vmatpush.msra.mxu0 %v5947_v51  ;;  %v6217_v40 = vmov 0  }
 0xaf0   : > { %5195 = vset.pattern.permute.xlu2 %v6217_v40  ;;  %5197 = vset.pattern.permute.xlu0 %v6217_v40 }
 0xaf1   : > { %3239 = vmatpush.msrb.mxu3 %v5948_v62  ;;  %3259 = vmatpush.msra.mxu0 %v5949_v23 }
 0xaf2   : > { %3368 = vperm.xlu2 %5195, %v3363_v20   ;;  %5196 = vset.pattern.permute.xlu1 %v6217_v40 }
 0xaf3   : > { %3240 = vmatpush.msrb.mxu3 %v5950_v24  ;;  %3260 = vmatpush.msra.mxu0 %v5951_v6 }
 0xaf5   : > { %3241 = vmatpush.msrb.mxu3 %v5952_v25  ;;  %3261 = vmatpush.msra.mxu0 %v5953_v29 }
 0xaf7   : > { %3242 = vmatpush.msrb.mxu3 %v5954_v32  ;;  %3262 = vmatpush.msra.mxu0 %v5955_v33 }
 0xaf9   : > { %3243 = vmatpush.msrb.mxu3 %v5956_v34  ;;  %3263 = vmatpush.msra.mxu0 %v5957_v35 }
 0xafb   : > { %3244 = vmatpush.msrb.mxu3 %v5958_v36  ;;  %3264 = vmatpush.msra.mxu0 %v5959_v28  ;;  %v3365_v28 = vld [vmem:[#allocation8] sm:$0x1] }
 0xafd   : > { %3245 = vmatpush.msrb.mxu3 %v5960_v39  ;;  %3265 = vmatpush.msra.mxu0 %v5961_v14 }
 0xaff   : > { %3246 = vmatpush.msrb.mxu3 %v5962_v41  ;;  %3266 = vmatpush.msra.mxu0 %v5963_v19 }
 0xb00   : > { %3247 = vmatmul.f32.vlgmr.msrb.gmra.mxu3 %v6509_v12  ;;  %3267 = vmatmul.f32.vlgmr.msra.gmra.mxu0 %v6507_v11  ;;  %v5967_v11 = vld [vmem:[#allocation2 + $0x11c8] sm:$0xff] }
 0xb02   : > { %v3228_v54 = vpop.f32.mrf.mxu2 }
 0xb43   : > { %v3079_v8 = vpop.f32.mrf.mxu3 }
 0xb44   : > { %v3083_v26 = vadd.f32 %v3079_v8, %v6598_v37  ;;  %v5969_v37 = vld [vmem:[#allocation2 + $0x11a8] sm:$0xff] }
 0xb4c   : > { %v6638_v39 = vpop.permute.xlu2 %3368 }
 0xb4d   : > { %7637 = vst [vmem:[#allocation21_spill] sm:$0xff] %v6638_v39 }
 0xb5d   : > { %v3186_v43 = vpop.f32.mrf.mxu0 }
 0xb5e   : > { %v3209_v44 = vadd.f32 %v3186_v43, %v6603_v48  ;;  %v5970_v48 = vld [vmem:[#allocation2 + $0x1198] sm:$0xff] }
 0xb63   : > { %v3161_v9 = vpop.f32.mrf.mxu3 }
 0xb64   : > { %v3162_v46 = vadd.f32 %v3161_v9, %v3141_v45 }
 0xb66   : > { %3204 = vmatpush.msrb.mxu1 %v3162_v46 }
 0xb67   : > { %5093 = vmatmul.msk.f32.vlgmr.msrb.gmra.mxu1 %vm735_vm0, %v6605_v2 }
 0xb68   : > { %3271 = vmatpush.msra.mxu1 %v5964_v47 }
 0xb6a   : > { %3272 = vmatpush.msra.mxu1 %v5965_v52 }
 0xb6c   : > { %3273 = vmatpush.msra.mxu1 %v5966_v22 }
 0xb6e   : > { %3274 = vmatpush.msra.mxu1 %v5967_v11 }
 0xb70   : > { %3275 = vmatpush.msra.mxu1 %v5968_v38 }
 0xb72   : > { %3276 = vmatpush.msra.mxu1 %v5969_v37 }
 0xb74   : > { %3277 = vmatpush.msra.mxu1 %v5970_v48 }
 0xb76   : > { %3278 = vmatpush.msra.mxu1 %v5971_v57 }
 0xb78   : > { %3279 = vmatpush.msra.mxu1 %v5972_v49 }
 0xb7a   : > { %3280 = vmatpush.msra.mxu1 %v5973_v58 }
 0xb7c   : > { %3281 = vmatpush.msra.mxu1 %v5974_v42  ;;  %v3415_v42 = vrot.slane %v6638_v39, 1 }
 0xb7d   : > { %v3268_v3 = vpop.f32.mrf.mxu0 }
 0xb7e   : > { %3282 = vmatpush.msra.mxu1 %v5975_v5 }
 0xb80   : > { %3283 = vmatpush.msra.mxu1 %v5976_v50 }
 0xb82   : > { %3284 = vmatpush.msra.mxu1 %v5977_v30 }
 0xb83   : > { %v3248_v55 = vpop.f32.mrf.mxu3 }
 0xb84   : > { %v3249_v56 = vadd.f32 %v3248_v55, %v3228_v54  ;;  %3285 = vmatpush.msra.mxu1 %v5978_v59 }
 0xb86   : > { %3286 = vmatpush.msra.mxu1 %v5979_v1  ;;  %3311 = vmatpush.msra.mxu2 %v3249_v56 }
 0xb87   : > { %3287 = vmatmul.f32.vlgmr.msra.gmra.mxu1 %v6509_v12  ;;  %5094 = vmatmul.msk.f32.vlgmr.msra.gmra.mxu2 %vm735_vm0, %v3292_v63 }
 0xbe4   : > { %v3206_v60 = vpop.f32.mrf.mxu1 }
 0xbe5   : > { %v3210_v2 = vadd.f32 %v3206_v60, %v3083_v26 }
 0xc04   : > { %v3288_v0 = vpop.f32.mrf.mxu1 }
 0xc05   : > { %v3289_v61 = vadd.f32 %v3288_v0, %v3268_v3 }
 0xc07   : > { %3331 = vmatpush.msra.mxu3 %v3289_v61 }
 0xc08   : > { %5095 = vmatmul.msk.f32.vlgmr.msra.gmra.mxu3 %vm735_vm0, %v3292_v63 }
 0xc0a   : > { %v3313_v10 = vpop.f32.mrf.mxu2 }
 0xc0b   : > { %v3336_v7 = vadd.f32 %v3313_v10, %v3209_v44 }
 0xc8b   : > { %v3333_v4 = vpop.f32.mrf.mxu3 }
 0xc8c   : > { %v3337_v31 = vadd.f32 %v3333_v4, %v3210_v2 }
 0xc8e   : > { %v3338_v13 = vadd.f32 %v3337_v31, %v3336_v7 }
 0xc90   : > { %3339 = vadd.xlane.f32.xlu1 %v3338_v13 }
 0xd03   : > { %v3340_v15 = vpop.xlane.xlu1 %3339 }
 0xd04   : > { %v3341_v27 = vmul.f32 %v3340_v15, %v6503_v21 }
 0xd06   : > { %v3342_v12 = vsub.f32 %v3336_v7, %v3341_v27  ;;  %v3343_v16 = vsub.f32 %v3337_v31, %v3341_v27 }
 0xd08   : > { %v3344_v17 = vmul.f32 %v3342_v12, %v3342_v12  ;;  %v3345_v18 = vmul.f32 %v3343_v16, %v3343_v16 }
 0xd0a   : > { %v3346_v53 = vadd.f32 %v3345_v18, %v3344_v17 }
 0xd0c   : > { %3347 = vadd.xlane.f32.xlu1 %v3346_v53 }
 0xd7f   : > { %v3348_v51 = vpop.xlane.xlu1 %3347 }
 0xd80   : > { %v3349_v62 = vmul.f32 %v3348_v51, %v6503_v21  ;;  %v3414_v21 = vld [vmem:[#allocation10] sm:$0x1] }
 0xd82   : > { %v3350_v23 = vadd.f32 1e-05, %v3349_v62 }
 0xd84   : > { %5202 = vrsqrt.f32 %v3350_v23  ;;  %vm3357_vm6 = vweird.f32 %v3350_v23 }
 0xd8a   : > { %v5203_v24 = vpop.eup %5202 }
 0xd8b   : > { %v3352_v6 = vmul.f32 %v5203_v24, %v3350_v23  ;;  %vm3358_vm5 = vweird.f32 %v5203_v24 }
 0xd8c   : > { %vm3359_vm7 = vmor %vm3357_vm6, %vm3358_vm5 }
 0xd8d   : > { %v3353_v25 = vmul.f32 %v5203_v24, %v3352_v6 }
 0xd8f   : > { %v3354_v29 = vmul.f32 0.5, %v3353_v25 }
 0xd91   : > { %v3355_v32 = vsub.f32 1.5, %v3354_v29 }
 0xd93   : > { %v3356_v33 = vmul.f32 %v5203_v24, %v3355_v32 }
 0xd95   : > { %v3360_v34 = vsel %vm3359_vm7, %v5203_v24, %v3356_v33 }
 0xd96   : > { %v6624_v35 = vmul.f32 %v3360_v34, %v3342_v12  ;;  %v6626_v36 = vmul.f32 %v3360_v34, %v3343_v16 }
 0xd98   : > { %7635 = vst [vmem:[#allocation19_spill] sm:$0xff] %v6624_v35  ;;  %3389 = vmatpush.msrb.mxu0 %v6624_v35  ;;  %3409 = vmatpush.msrb.mxu1 %v6626_v36 }
 0xd99   : > { %7636 = vst [vmem:[#allocation20_spill] sm:$0xff] %v6626_v36  ;;  %3435 = vmatpush.msrb.mxu2 %v6624_v35  ;;  %3455 = vmatpush.msrb.mxu3 %v6626_v36 }
 0xd9a   : > { %5096 = vmatmul.msk.f32.vlgmr.msrb.gmra.mxu0 %vm735_vm0, %v3365_v28  ;;  %3508 = vmatpush.msra.mxu1 %v6626_v36 }
 0xd9b   : > { %3488 = vmatpush.msra.mxu0 %v6624_v35  ;;  %5098 = vmatmul.msk.f32.vlgmr.msrb.gmra.mxu2 %vm735_vm0, %v3414_v21 }
 0xd9c   : > { %5099 = vmatmul.msk.f32.vlgmr.msrb.gmra.mxu3 %vm735_vm0, %v3414_v21  ;;  %5097 = vmatmul.msk.f32.vlgmr.msrb.gmra.mxu1 %vm735_vm0, %v3365_v28 }
 0xe17   : > { %v3391_v14 = vpop.f32.mrf.mxu0 }
 0xe18   : > { %v3392_v41 = vadd.f32 %v3391_v14, %v6638_v39 }
 0xe1a   : > { %3513 = vxpose.xlu2.b32.start.end [1/1] (short) %v3392_v41, 128 }
 0xe1e   : > { %v3437_v49 = vpop.f32.mrf.mxu2 }
 0xe1f   : > { %v3457_v58 = vpop.f32.mrf.mxu3  ;;  %v3438_v5 = vadd.f32 %v3437_v49, %v3415_v42 }
 0xe20   : > { %v3458_v50 = vadd.f32 %v3457_v58, %v3415_v42 }
 0xe21   : > { %v6642_v30 = vperm.slane %v3438_v5, 0 }
 0xe22   : > { %v6644_v54 = vperm.slane %v3458_v50, 0 }
 0xe23   : > { %7638 = vst [vmem:[#allocation22_spill] sm:$0xff] %v6642_v30 }
 0xe24   : > { %7639 = vst [vmem:[#allocation23_spill] sm:$0xff] %v6644_v54 }
 0xeb3   : > { %v3529_v19 = vpop.trf.xlu2 }
 0xebb   : > { %v3530_v8 = vpop.trf.xlu2 }
 0xec3   : > { %v3531_v26 = vpop.trf.xlu2 }
 0xecb   : > { %v3532_v43 = vpop.trf.xlu2 }
 0xed3   : > { %v3533_v44 = vpop.trf.xlu2 }
 0xedb   : > { %v3534_v45 = vpop.trf.xlu2 }
 0xee3   : > { %v3535_v9 = vpop.trf.xlu2 }
 0xeeb   : > { %v3536_v46 = vpop.trf.xlu2 }
 0xef3   : > { %v3537_v47 = vpop.trf.xlu2 }
 0xefb   : > { %v3538_v52 = vpop.trf.xlu2 }
 0xf03   : > { %v3539_v22 = vpop.trf.xlu2 }
 0xf04   : > { %3629 = vperm.xlu0 %5197, %v3539_v22  }
 0xf0b   : > { %v3540_v11 = vpop.trf.xlu2 }
 0xf0c   : > { %3619 = vperm.xlu0 %5197, %v3537_v47   ;;  %3634 = vperm.xlu1 %5196, %v3540_v11  }
 0xf13   : > { %v3541_v38 = vpop.trf.xlu2 }
 0xf14   : > { %3609 = vperm.xlu0 %5197, %v3535_v9   ;;  %3624 = vperm.xlu1 %5196, %v3538_v52  }
 0xf15   : > { %3639 = vperm.xlu2 %5195, %v3541_v38  }
 0xf1b   : > { %v3542_v37 = vpop.trf.xlu2 }
 0xf1c   : > { %3594 = vperm.xlu0 %5197, %v3532_v43   ;;  %3614 = vperm.xlu1 %5196, %v3536_v46  }
 0xf23   : > { %v3543_v48 = vpop.trf.xlu2 }
 0xf24   : > { %3579 = vperm.xlu0 %5197, %v3529_v19   ;;  %3604 = vperm.xlu1 %5196, %v3534_v45  }
 0xf2b   : > { %v3544_v57 = vpop.trf.xlu2 }
 0xf2c   : > { %3599 = vperm.xlu1 %5196, %v3533_v44   ;;  %3654 = vperm.xlu0 %5197, %v3544_v57  }
 0xf34   : > { %3589 = vperm.xlu1 %5196, %v3531_v26  }
 0xf3c   : > { %3584 = vperm.xlu1 %5196, %v3530_v8  }
 0xf44   : > { %3644 = vperm.xlu1 %5196, %v3542_v37  }
 0xf4c   : > { %3649 = vperm.xlu1 %5196, %v3543_v48  }
 0xf6f   : > { %v3640_v1 = vpop.permute.xlu2 %3639 }
 0xf70   : > { %v6655_v60 = vmul.f32 %v6642_v30, %v3640_v1  ;;  %v6658_v2 = vmul.f32 %v6644_v54, %v3640_v1 }
 0xf72   : > { %v3839_v61 = vmax.f32 %v6655_v60, %v6658_v2 }
 0xf76   : > { %v3630_v55 = vpop.permute.xlu0 %3629 }
 0xf77   : > { %v6647_v56 = vmul.f32 %v6642_v30, %v3630_v55  ;;  %v6650_v59 = vmul.f32 %v6644_v54, %v3630_v55 }
 0xf79   : > { %v3833_v63 = vmax.f32 %v6647_v56, %v6650_v59 }
 0xf7b   : > { %3834 = vmax.xlane.f32.xlu0 %v3833_v63 }
 0xf7e   : > { %v3620_v3 = vpop.permute.xlu0 %3619  ;;  %v3635_v0 = vpop.permute.xlu1 %3634 }
 0xf7f   : > { %v6671_v15 = vmul.f32 %v6642_v30, %v3635_v0  ;;  %v6674_v27 = vmul.f32 %v6644_v54, %v3635_v0  ;;  %v6719_v45 = vmul.f32 %v6642_v30, %v3620_v3  ;;  %v6722_v9 = vmul.f32 %v6644_v54, %v3620_v3 }
 0xf81   : > { %v3836_v17 = vmax.f32 %v6671_v15, %v6674_v27  ;;  %v3827_v46 = vmax.f32 %v6719_v45, %v6722_v9 }
 0xf83   : > { %3840 = vmax.xlane.f32.xlu0 %v3839_v61 }
 0xf86   : > { %v3610_v10 = vpop.permute.xlu0 %3609  ;;  %v3625_v4 = vpop.permute.xlu1 %3624 }
 0xf87   : > { %v6663_v7 = vmul.f32 %v6642_v30, %v3625_v4  ;;  %v6666_v31 = vmul.f32 %v6644_v54, %v3625_v4  ;;  %v6735_v11 = vmul.f32 %v6642_v30, %v3610_v10  ;;  %v6738_v38 = vmul.f32 %v6644_v54, %v3610_v10 }
 0xf89   : > { %v3830_v13 = vmax.f32 %v6663_v7, %v6666_v31  ;;  %v3821_v37 = vmax.f32 %v6735_v11, %v6738_v38 }
 0xf8b   : > { %3831 = vmax.xlane.f32.xlu1 %v3830_v13 }
 0xf8e   : > { %v3595_v12 = vpop.permute.xlu0 %3594  ;;  %v3615_v16 = vpop.permute.xlu1 %3614 }
 0xf8f   : > { %v6687_v62 = vmul.f32 %v6642_v30, %v3595_v12  ;;  %v6690_v23 = vmul.f32 %v6644_v54, %v3595_v12  ;;  %v6727_v47 = vmul.f32 %v6642_v30, %v3615_v16  ;;  %v6730_v52 = vmul.f32 %v6644_v54, %v3615_v16 }
 0xf91   : > { %v3812_v6 = vmax.f32 %v6687_v62, %v6690_v23  ;;  %v3824_v22 = vmax.f32 %v6727_v47, %v6730_v52 }
 0xf93   : > { %3837 = vmax.xlane.f32.xlu1 %v3836_v17 }
 0xf96   : > { %v3605_v18 = vpop.permute.xlu1 %3604  ;;  %v3580_v40 = vpop.permute.xlu0 %3579 }
 0xf97   : > { %v6679_v53 = vmul.f32 %v6642_v30, %v3605_v18  ;;  %v6682_v20 = vmul.f32 %v6644_v54, %v3605_v18  ;;  %v6767_v3 = vmul.f32 %v6642_v30, %v3580_v40  ;;  %v6770_v0 = vmul.f32 %v6644_v54, %v3580_v40 }
 0xf99   : > { %v3818_v51 = vmax.f32 %v6679_v53, %v6682_v20  ;;  %v3803_v17 = vmax.f32 %v6767_v3, %v6770_v0 }
 0xf9b   : > { %3819 = vmax.xlane.f32.xlu0 %v3818_v51 }
 0xf9e   : > { %v3600_v24 = vpop.permute.xlu1 %3599  ;;  %v3655_v25 = vpop.permute.xlu0 %3654 }
 0xf9f   : > { %v6695_v29 = vmul.f32 %v6642_v30, %v3655_v25  ;;  %v6698_v32 = vmul.f32 %v6644_v54, %v3655_v25  ;;  %v6743_v48 = vmul.f32 %v6642_v30, %v3600_v24  ;;  %v6746_v57 = vmul.f32 %v6644_v54, %v3600_v24 }
 0xfa1   : > { %v3848_v34 = vmax.f32 %v6695_v29, %v6698_v32  ;;  %v3815_v49 = vmax.f32 %v6743_v48, %v6746_v57 }
 0xfa3   : > { %3813 = vmax.xlane.f32.xlu0 %v3812_v6 }
 0xfa6   : > { %v3590_v33 = vpop.permute.xlu1 %3589 }
 0xfa7   : > { %v6751_v58 = vmul.f32 %v6642_v30, %v3590_v33  ;;  %v6754_v42 = vmul.f32 %v6644_v54, %v3590_v33 }
 0xfa9   : > { %v3809_v5 = vmax.f32 %v6751_v58, %v6754_v42 }
 0xfab   : > { %3849 = vmax.xlane.f32.xlu0 %v3848_v34 }
 0xfae   : > { %v3585_v28 = vpop.permute.xlu1 %3584 }
 0xfaf   : > { %v6759_v50 = vmul.f32 %v6642_v30, %v3585_v28  ;;  %v6762_v55 = vmul.f32 %v6644_v54, %v3585_v28 }
 0xfb1   : > { %v3806_v1 = vmax.f32 %v6759_v50, %v6762_v55 }
 0xfb6   : > { %v3645_v21 = vpop.permute.xlu1 %3644 }
 0xfb7   : > { %v6703_v14 = vmul.f32 %v6642_v30, %v3645_v21  ;;  %v6706_v41 = vmul.f32 %v6644_v54, %v3645_v21 }
 0xfb9   : > { %v3842_v19 = vmax.f32 %v6703_v14, %v6706_v41 }
 0xfbb   : > { %3843 = vmax.xlane.f32.xlu1 %v3842_v19 }
 0xfbe   : > { %v3650_v8 = vpop.permute.xlu1 %3649 }
 0xfbf   : > { %v6711_v26 = vmul.f32 %v6642_v30, %v3650_v8  ;;  %v6714_v43 = vmul.f32 %v6644_v54, %v3650_v8 }
 0xfc1   : > { %v3845_v44 = vmax.f32 %v6711_v26, %v6714_v43 }
 0xfc3   : > { %3846 = vmax.xlane.f32.xlu1 %v3845_v44 }
 0xfcb   : > { %3828 = vmax.xlane.f32.xlu1 %v3827_v46 }
 0xfd3   : > { %3825 = vmax.xlane.f32.xlu1 %v3824_v22 }
 0xfdb   : > { %3822 = vmax.xlane.f32.xlu1 %v3821_v37 }
 0xfe3   : > { %3816 = vmax.xlane.f32.xlu1 %v3815_v49 }
 0xfeb   : > { %3810 = vmax.xlane.f32.xlu1 %v3809_v5 }
 0xfee   : > { %v3835_v63 = vpop.xlane.xlu0 %3834 }
 0xfef   : > { %v3919_v13 = vsub.f32 %v6647_v56, %v3835_v63  ;;  %v3920_v18 = vsub.f32 %v6650_v59, %v3835_v63 }
 0xff1   : > { %v4003_v51 = vmul.f32 1.442695, %v3919_v13  ;;  %v4005_v40 = vmul.f32 1.442695, %v3920_v18 }
 0xff3   : > { %3807 = vmax.xlane.f32.xlu1 %v3806_v1 }
 0xff6   : > { %v3841_v61 = vpop.xlane.xlu0 %3840 }
 0xff7   : > { %v3923_v10 = vsub.f32 %v6655_v60, %v3841_v61  ;;  %v3924_v4 = vsub.f32 %v6658_v2, %v3841_v61 }
 0xff9   : > { %v4011_v12 = vmul.f32 1.442695, %v3923_v10  ;;  %v4013_v16 = vmul.f32 1.442695, %v3924_v4 }
 0xffb   : > { %5204 = vpow2.f32 %v4011_v12  ;;  %3804 = vmax.xlane.f32.xlu1 %v3803_v17 }
 0xffc   : > { %5206 = vpow2.f32 %v4013_v16 }
 0xffd   : > { %5208 = vpow2.f32 %v4003_v51 }
 0xffe   : > { %v3832_v24 = vpop.xlane.xlu1 %3831  ;;  %5210 = vpow2.f32 %v4005_v40 }
 0xfff   : > { %v3917_v28 = vsub.f32 %v6663_v7, %v3832_v24  ;;  %v3918_v8 = vsub.f32 %v6666_v31, %v3832_v24 }
0x1001   : > { %v6778_v6 = vpop.eup %5204  ;;  %v3999_v46 = vmul.f32 1.442695, %v3917_v28  ;;  %v4001_v22 = vmul.f32 1.442695, %v3918_v8 }
0x1002   : > { %v6780_v60 = vpop.eup %5206 }
0x1003   : > { %v4127_v56 = vadd.f32 %v6780_v60, %v6778_v6  ;;  %v6784_v25 = vpop.eup %5208 }
0x1004   : > { %v6788_v34 = vpop.eup %5210 }
0x1005   : > { %4128 = vadd.xlane.f32.xlu0 %v4127_v56  ;;  %v4121_v44 = vadd.f32 %v6788_v34, %v6784_v25 }
0x1006   : > { %v3838_v2 = vpop.xlane.xlu1 %3837 }
0x1007   : > { %v3921_v59 = vsub.f32 %v6671_v15, %v3838_v2  ;;  %v3922_v33 = vsub.f32 %v6674_v27, %v3838_v2 }
0x1009   : > { %v4007_v21 = vmul.f32 1.442695, %v3921_v59  ;;  %v4009_v19 = vmul.f32 1.442695, %v3922_v33 }
0x100b   : > { %5212 = vpow2.f32 %v4007_v21 }
0x100c   : > { %5214 = vpow2.f32 %v4009_v19 }
0x100d   : > { %4122 = vadd.xlane.f32.xlu0 %v4121_v44  ;;  %5216 = vpow2.f32 %v3999_v46 }
0x100e   : > { %5218 = vpow2.f32 %v4001_v22  ;;  %v3820_v40 = vpop.xlane.xlu0 %3819 }
0x100f   : > { %v3909_v33 = vsub.f32 %v6679_v53, %v3820_v40 }
0x1011   : > { %v6794_v37 = vpop.eup %5212  ;;  %v3983_v8 = vmul.f32 1.442695, %v3909_v33 }
0x1012   : > { %v6796_v15 = vpop.eup %5214 }
0x1013   : > { %v4124_v7 = vadd.f32 %v6796_v15, %v6794_v37  ;;  %v6800_v27 = vpop.eup %5216 }
0x1014   : > { %v6802_v31 = vpop.eup %5218 }
0x1015   : > { %4125 = vadd.xlane.f32.xlu1 %v4124_v7  ;;  %v4118_v49 = vadd.f32 %v6802_v31, %v6800_v27 }
0x101d   : > { %4119 = vadd.xlane.f32.xlu1 %v4118_v49 }
0x102e   : > { %v3844_v5 = vpop.xlane.xlu1 %3843 }
0x102f   : > { %v3925_v63 = vsub.f32 %v6703_v14, %v3844_v5  ;;  %v3926_v1 = vsub.f32 %v6706_v41, %v3844_v5 }
0x1031   : > { %v4015_v61 = vmul.f32 1.442695, %v3925_v63  ;;  %v4017_v10 = vmul.f32 1.442695, %v3926_v1 }
0x1033   : > { %5220 = vpow2.f32 %v4015_v61 }
0x1034   : > { %5222 = vpow2.f32 %v4017_v10 }
0x1036   : > { %v6808_v4 = vpop.xlane.xlu1 %3846 }
0x1039   : > { %v6810_v13 = vpop.eup %5220 }
0x103a   : > { %v6812_v12 = vpop.eup %5222 }
0x103b   : > { %v4130_v16 = vadd.f32 %v6812_v12, %v6810_v13 }
0x103d   : > { %4131 = vadd.xlane.f32.xlu2 %v4130_v16 }
0x103e   : > { %v3829_v17 = vpop.xlane.xlu1 %3828 }
0x103f   : > { %v3915_v18 = vsub.f32 %v6719_v45, %v3829_v17  ;;  %v3916_v14 = vsub.f32 %v6722_v9, %v3829_v17  ;;  %v3910_v45 = vsub.f32 %v6682_v20, %v3820_v40 }
0x1041   : > { %v3995_v41 = vmul.f32 1.442695, %v3915_v18  ;;  %v3997_v51 = vmul.f32 1.442695, %v3916_v14  ;;  %v3985_v44 = vmul.f32 1.442695, %v3910_v45 }
0x1043   : > { %5224 = vpow2.f32 %v3995_v41 }
0x1044   : > { %5226 = vpow2.f32 %v3997_v51 }
0x1046   : > { %v3826_v24 = vpop.xlane.xlu1 %3825 }
0x1047   : > { %v3913_v56 = vsub.f32 %v6727_v47, %v3826_v24  ;;  %v3914_v2 = vsub.f32 %v6730_v52, %v3826_v24  ;;  %v3460_v47 = vld [vmem:[#allocation11] sm:$0xff]  ;;  %v3814_v52 = vpop.xlane.xlu0 %3813 }
0x1048   : > { %5100 = vmatmul.msk.f32.vlgmr.msra.gmra.mxu0 %vm735_vm0, %v3460_v47  ;;  %5101 = vmatmul.msk.f32.vlgmr.msra.gmra.mxu1 %vm735_vm0, %v3460_v47  ;;  %v3905_v7 = vsub.f32 %v6687_v62, %v3814_v52  ;;  %v3906_v1 = vsub.f32 %v6690_v23, %v3814_v52 }
0x1049   : > { %v6820_v59 = vpop.eup %5224  ;;  %v3991_v28 = vmul.f32 1.442695, %v3913_v56  ;;  %v3993_v21 = vmul.f32 1.442695, %v3914_v2 }
0x104a   : > { %v6823_v19 = vpop.eup %5226 }
0x104b   : > { %5228 = vpow2.f32 %v3991_v28  ;;  %v4115_v9 = vadd.f32 %v6823_v19, %v6820_v59 }
0x104c   : > { %5230 = vpow2.f32 %v3993_v21 }
0x104d   : > { %4116 = vadd.xlane.f32.xlu0 %v4115_v9  ;;  %5232 = vpow2.f32 %v3983_v8 }
0x104e   : > { %v3823_v46 = vpop.xlane.xlu1 %3822  ;;  %5234 = vpow2.f32 %v3985_v44 }
0x104f   : > { %v3911_v53 = vsub.f32 %v6735_v11, %v3823_v46  ;;  %v3912_v22 = vsub.f32 %v6738_v38, %v3823_v46  ;;  %v3975_v11 = vmul.f32 1.442695, %v3905_v7  ;;  %v3977_v38 = vmul.f32 1.442695, %v3906_v1 }
0x1050   : > { %v3927_v46 = vsub.f32 %v6711_v26, %v6808_v4 }
0x1051   : > { %v6832_v20 = vpop.eup %5228  ;;  %v3987_v49 = vmul.f32 1.442695, %v3911_v53  ;;  %v3989_v5 = vmul.f32 1.442695, %v3912_v22 }
0x1052   : > { %v6835_v63 = vpop.eup %5230 }
0x1053   : > { %5236 = vpow2.f32 %v3987_v49  ;;  %v4112_v61 = vadd.f32 %v6835_v63, %v6832_v20  ;;  %v6840_v16 = vpop.eup %5232  ;;  %v3928_v49 = vsub.f32 %v6714_v43, %v6808_v4 }
0x1054   : > { %5238 = vpow2.f32 %v3989_v5  ;;  %v6844_v18 = vpop.eup %5234 }
0x1055   : > { %4113 = vadd.xlane.f32.xlu1 %v4112_v61  ;;  %5240 = vpow2.f32 %v3975_v11  ;;  %v4106_v24 = vadd.f32 %v6844_v18, %v6840_v16  ;;  %v4021_v1 = vmul.f32 1.442695, %v3928_v49 }
0x1056   : > { %v3817_v10 = vpop.xlane.xlu1 %3816  ;;  %5242 = vpow2.f32 %v3977_v38 }
0x1057   : > { %v3907_v62 = vsub.f32 %v6743_v48, %v3817_v10  ;;  %v3908_v17 = vsub.f32 %v6746_v57, %v3817_v10 }
0x1059   : > { %v6846_v14 = vpop.eup %5236  ;;  %v3979_v23 = vmul.f32 1.442695, %v3907_v62  ;;  %v3981_v41 = vmul.f32 1.442695, %v3908_v17 }
0x105a   : > { %v6848_v51 = vpop.eup %5238 }
0x105b   : > { %5244 = vpow2.f32 %v3979_v23  ;;  %v4109_v40 = vadd.f32 %v6848_v51, %v6846_v14  ;;  %v6854_v57 = vpop.eup %5240 }
0x105c   : > { %5246 = vpow2.f32 %v3981_v41  ;;  %v6858_v33 = vpop.eup %5242 }
0x105d   : > { %4110 = vadd.xlane.f32.xlu0 %v4109_v40  ;;  %4107 = vadd.xlane.f32.xlu1 %v4106_v24  ;;  %v4100_v47 = vadd.f32 %v6858_v33, %v6854_v57 }
0x105e   : > { %v3811_v48 = vpop.xlane.xlu1 %3810 }
0x105f   : > { %v3903_v56 = vsub.f32 %v6751_v58, %v3811_v48  ;;  %v3904_v2 = vsub.f32 %v6754_v42, %v3811_v48 }
0x1061   : > { %v6860_v28 = vpop.eup %5244  ;;  %v3971_v21 = vmul.f32 1.442695, %v3903_v56  ;;  %v3973_v45 = vmul.f32 1.442695, %v3904_v2 }
0x1062   : > { %v6862_v9 = vpop.eup %5246 }
0x1063   : > { %5248 = vpow2.f32 %v3971_v21  ;;  %v4103_v8 = vadd.f32 %v6862_v9, %v6860_v28  ;;  %v3364_v21 = vld [vmem:[%s7617_s7 + $0x8] sm:$0x3] }
0x1064   : > { %5250 = vpow2.f32 %v3973_v45 }
0x1065   : > { %4104 = vadd.xlane.f32.xlu0 %v4103_v8  ;;  %4101 = vadd.xlane.f32.xlu1 %v4100_v47  ;;  %v3411_v8 = vpop.f32.mrf.mxu1 }
0x1066   : > { %v3808_v58 = vpop.xlane.xlu1 %3807  ;;  %v3412_v47 = vadd.f32 %v3411_v8, %v6638_v39 }
0x1067   : > { %v3901_v42 = vsub.f32 %v6759_v50, %v3808_v58  ;;  %v3902_v44 = vsub.f32 %v6762_v55, %v3808_v58  ;;  %v4019_v50 = vmul.f32 1.442695, %v3927_v46  ;;  %v3850_v55 = vpop.xlane.xlu0 %3849 }
0x1068   : > { %v3929_v10 = vsub.f32 %v6695_v29, %v3850_v55  ;;  %v3930_v17 = vsub.f32 %v6698_v32, %v3850_v55 }
0x1069   : > { %v6870_v52 = vpop.eup %5248  ;;  %v3967_v53 = vmul.f32 1.442695, %v3901_v42  ;;  %v3969_v22 = vmul.f32 1.442695, %v3902_v44 }
0x106a   : > { %v6874_v7 = vpop.eup %5250 }
0x106b   : > { %5252 = vpow2.f32 %v3967_v53  ;;  %v4097_v5 = vadd.f32 %v6874_v7, %v6870_v52 }
0x106c   : > { %5254 = vpow2.f32 %v3969_v22 }
0x106d   : > { %4098 = vadd.xlane.f32.xlu2 %v4097_v5  ;;  %5256 = vpow2.f32 %v4019_v50 }
0x106e   : > { %v3805_v61 = vpop.xlane.xlu1 %3804  ;;  %5258 = vpow2.f32 %v4021_v1 }
0x106f   : > { %v3899_v11 = vsub.f32 %v6767_v3, %v3805_v61  ;;  %v3900_v26 = vsub.f32 %v6770_v0, %v3805_v61  ;;  %v4023_v3 = vmul.f32 1.442695, %v3929_v10  ;;  %v4025_v0 = vmul.f32 1.442695, %v3930_v17 }
0x1071   : > { %v6882_v38 = vpop.eup %5252  ;;  %v3963_v43 = vmul.f32 1.442695, %v3899_v11  ;;  %v3965_v4 = vmul.f32 1.442695, %v3900_v26 }
0x1072   : > { %7640 = vst [vmem:[#allocation24_spill] sm:$0xff] %v6882_v38  ;;  %v6885_v62 = vpop.eup %5254 }
0x1073   : > { %7641 = vst [vmem:[#allocation25_spill] sm:$0xff] %v6885_v62  ;;  %5260 = vpow2.f32 %v3963_v43  ;;  %v4094_v23 = vadd.f32 %v6885_v62, %v6882_v38  ;;  %v6890_v41 = vpop.eup %5256 }
0x1074   : > { %5262 = vpow2.f32 %v3965_v4  ;;  %v6892_v40 = vpop.eup %5258 }
0x1075   : > { %4095 = vadd.xlane.f32.xlu0 %v4094_v23  ;;  %5264 = vpow2.f32 %v4023_v3  ;;  %v4133_v32 = vadd.f32 %v6892_v40, %v6890_v41 }
0x1076   : > { %5266 = vpow2.f32 %v4025_v0 }
0x1078   : > { %v6912_v58 = vpop.xlane.xlu0 %4128 }
0x1079   : > { %v6894_v29 = vpop.eup %5260  ;;  %vm4360_vm5 = vweird.f32 %v6912_v58 }
0x107a   : > { %7642 = vst [vmem:[#allocation26_spill] sm:$0xff] %v6894_v29  ;;  %v6896_v24 = vpop.eup %5262 }
0x107b   : > { %7643 = vst [vmem:[#allocation27_spill] sm:$0xff] %v6896_v24  ;;  %v4091_v48 = vadd.f32 %v6896_v24, %v6894_v29  ;;  %v6902_v56 = vpop.eup %5264 }
0x107c   : > { %v6904_v2 = vpop.eup %5266 }
0x107d   : > { %4134 = vadd.xlane.f32.xlu0 %v4133_v32  ;;  %4092 = vadd.xlane.f32.xlu1 %v4091_v48  ;;  %v4136_v45 = vadd.f32 %v6904_v2, %v6902_v56 }
0x1080   : > { %v6914_v42 = vpop.xlane.xlu0 %4122 }
0x1085   : > { %3463 = vperm.xlu2 %5195, %v3364_v21   ;;  %4137 = vadd.xlane.f32.xlu0 %v4136_v45 }
0x1088   : > { %v6926_v50 = vpop.xlane.xlu1 %4125 }
0x1090   : > { %v6935_v10 = vpop.xlane.xlu1 %4119 }
0x10ae   : > { %3545 = vxpose.xlu0.b32.start.end [1/1] (short) %v3412_v47, 128 }
0x10b0   : > { %v6924_v49 = vpop.xlane.xlu2 %4131 }
0x10b1   : > { %5268 = vrcp.f32 %v6924_v49  ;;  %vm4374_vm1 = vweird.f32 %v6924_v49 }
0x10b7   : > { %v6930_v55 = vpop.eup %5268 }
0x10b8   : > { %v4370_v43 = vmul.f32 %v6930_v55, %v6924_v49  ;;  %vm4375_vm14 = vweird.f32 %v6930_v55 }
0x10b9   : > { %vm6974_vm3 = vmor %vm4374_vm1, %vm4375_vm14 }
0x10ba   : > { %v4371_v0 = vsub.f32 1.0, %v4370_v43 }
0x10bc   : > { %v4372_v47 = vmul.f32 %v6930_v55, %v4371_v0 }
0x10c0   : > { %v6916_v44 = vpop.xlane.xlu0 %4116 }
0x10d0   : > { %v6918_v46 = vpop.xlane.xlu0 %4110 }
0x10d8   : > { %v6920_v53 = vpop.xlane.xlu0 %4104 }
0x10e8   : > { %v6922_v22 = vpop.xlane.xlu0 %4095 }
0x10f0   : > { %v4135_v5 = vpop.xlane.xlu0 %4134 }
0x10f1   : > { %5270 = vrcp.f32 %v4135_v5  ;;  %vm4388_vm10 = vweird.f32 %v4135_v5  ;;  %v4394_v35 = vand.u32 2147483648, %v4135_v5  ;;  %v4392_v24 = vand.u32 2147483647, %v4135_v5 }
0x10f2   : > { %5272 = vrcp.f32 %v6912_v58 }
0x10f3   : > { %5274 = vrcp.f32 %v6926_v50  ;;  %v4395_v62 = vor.u32 1.1754944e-38, %v4394_v35  ;;  %vm4393_vm2 = vcmp.eq.f32.partialorder %v4392_v24, 8.507059e+37 }
0x10f7   : > { %v5271_v1 = vpop.eup %5270 }
0x10f8   : > { %v4138_v61 = vpop.xlane.xlu0 %4137  ;;  %v4384_v11 = vmul.f32 %v5271_v1, %v4135_v5  ;;  %v6933_v26 = vpop.eup %5272  ;;  %vm4389_vm8 = vweird.f32 %v5271_v1  ;;  %v4380_v5 = vand.u32 2147483648, %v6924_v49 }
0x10f9   : > { %5276 = vrcp.f32 %v4138_v61  ;;  %v4356_v17 = vmul.f32 %v6933_v26, %v6912_v58  ;;  %v6941_v23 = vpop.eup %5274  ;;  %v4408_v54 = vand.u32 2147483648, %v4138_v61  ;;  %v4406_v43 = vand.u32 2147483647, %v4138_v61  ;;  %vm6954_vm12 = vmor %vm4388_vm10, %vm4389_vm8 }
0x10fa   : > { %v4385_v4 = vsub.f32 1.0, %v4384_v11  ;;  %5278 = vrcp.f32 %v6914_v42  ;;  %v4342_v45 = vmul.f32 %v6941_v23, %v6926_v50  ;;  %v6948_v11 = vpop.xlane.xlu1 %4113  ;;  %vm4402_vm11 = vweird.f32 %v4138_v61 }
0x10fb   : > { %v4357_v21 = vsub.f32 1.0, %v4356_v17  ;;  %5280 = vrcp.f32 %v6935_v10  ;;  %v4409_v39 = vor.u32 1.1754944e-38, %v4408_v54  ;;  %vm4407_vm15 = vcmp.eq.f32.partialorder %v4406_v43, 8.507059e+37 }
0x10fc   : > { %v4386_v32 = vmul.f32 %v5271_v1, %v4385_v4  ;;  %5282 = vrcp.f32 %v6916_v44  ;;  %vm4361_vm4 = vweird.f32 %v6933_v26  ;;  %v4381_v24 = vor.u32 1.1754944e-38, %v4380_v5 }
0x10fd   : > { %v4358_v17 = vmul.f32 %v6933_v26, %v4357_v21  ;;  %5284 = vrcp.f32 %v6948_v11  ;;  %vm6999_vm7 = vmor %vm4360_vm5, %vm4361_vm4  ;;  %vm4347_vm8 = vweird.f32 %v6941_v23 }
0x10fe   : > { %v4387_v4 = vadd.f32 %v5271_v1, %v4386_v32  ;;  %5286 = vrcp.f32 %v6918_v46 }
0x10ff   : > { %v5277_v3 = vpop.eup %5276  ;;  %v4359_v35 = vadd.f32 %v6933_v26, %v4358_v17 }
0x1100   : > { %v4398_v48 = vmul.f32 %v5277_v3, %v4138_v61  ;;  %v6950_v30 = vpop.eup %5278  ;;  %vm4403_vm9 = vweird.f32 %v5277_v3  ;;  %v4391_v21 = vsel %vm6954_vm12, %v5271_v1, %v4387_v4 }
0x1101   : > { %v4328_v29 = vmul.f32 %v6950_v30, %v6914_v42  ;;  %vm4404_vm13 = vmor %vm4402_vm11, %vm4403_vm9  ;;  %v6964_v61 = vpop.eup %5280  ;;  %v4396_v1 = vsel %vm4393_vm2, %v4395_v62, %v4391_v21  ;;  %vm4346_vm9 = vweird.f32 %v6926_v50  ;;  %vm4333_vm12 = vweird.f32 %v6950_v30 }
0x1102   : > { %v4399_v8 = vsub.f32 1.0, %v4398_v48  ;;  %v4663_v4 = vmul.f32 %v6890_v41, %v4396_v1  ;;  %v4664_v17 = vmul.f32 %v6892_v40, %v4396_v1  ;;  %v4363_v41 = vsel %vm6999_vm7, %v6933_v26, %v4359_v35  ;;  %vm7016_vm11 = vmor %vm4346_vm9, %vm4347_vm8 }
0x1103   : > { %v4329_v43 = vsub.f32 1.0, %v4328_v29  ;;  %v4366_v29 = vand.u32 2147483648, %v6912_v58  ;;  %v4350_v26 = vand.u32 2147483647, %v6926_v50  ;;  %vm4319_vm1 = vweird.f32 %v6964_v61 }
0x1104   : > { %v4400_v36 = vmul.f32 %v5277_v3, %v4399_v8  ;;  %v4343_v8 = vsub.f32 1.0, %v4342_v45  ;;  %vm4318_vm2 = vweird.f32 %v6935_v10 }
0x1105   : > { %v4367_v21 = vor.u32 1.1754944e-38, %v4366_v29  ;;  %vm4351_vm14 = vcmp.eq.f32.partialorder %v4350_v26, 8.507059e+37  ;;  %vm7060_vm4 = vmor %vm4318_vm2, %vm4319_vm1 }
0x1106   : > { %v4401_v48 = vadd.f32 %v5277_v3, %v4400_v36  ;;  %v4373_v36 = vadd.f32 %v6930_v55, %v4372_v47 }
0x1108   : > { %v4405_v32 = vsel %vm4404_vm13, %v5277_v3, %v4401_v48  ;;  %v4378_v3 = vand.u32 2147483647, %v6924_v49  ;;  %v4377_v62 = vsel %vm6974_vm3, %v6930_v55, %v4373_v36  ;;  %v4364_v49 = vand.u32 2147483647, %v6912_v58 }
0x1109   : > { %v4410_v38 = vsel %vm4407_vm15, %v4409_v39, %v4405_v32  ;;  %v6979_v39 = vpop.eup %5282  ;;  %v4330_v48 = vmul.f32 %v6950_v30, %v4329_v43  ;;  %v4352_v36 = vand.u32 2147483648, %v6926_v50  ;;  %vm4332_vm13 = vweird.f32 %v6914_v42 }
0x110a   : > { %v4665_v45 = vmul.f32 %v6902_v56, %v4410_v38  ;;  %v4666_v54 = vmul.f32 %v6904_v2, %v4410_v38  ;;  %v4344_v56 = vmul.f32 %v6941_v23, %v4343_v8  ;;  %v4314_v38 = vmul.f32 %v6964_v61, %v6935_v10  ;;  %v6989_v2 = vpop.xlane.xlu1 %4107  ;;  %v7008_v58 = vpop.eup %5284  ;;  %vm7035_vm15 = vmor %vm4332_vm13, %vm4333_vm12 }
0x110b   : > { %vm4379_vm6 = vcmp.eq.f32.partialorder %v4378_v3, 8.507059e+37  ;;  %v4300_v55 = vmul.f32 %v6979_v39, %v6916_v44  ;;  %vm4365_vm10 = vcmp.eq.f32.partialorder %v4364_v49, 8.507059e+37  ;;  %5288 = vrcp.f32 %v6989_v2 }
0x110c   : > { %4699 = vmatpush.xpose.msra.mxu2 %v4665_v45  ;;  %4719 = vmatpush.xpose.msra.mxu3 %v4666_v54  ;;  %v4382_v0 = vsel %vm4379_vm6, %v4381_v24, %v4377_v62  ;;  %v4315_v32 = vsub.f32 1.0, %v4314_v38  ;;  %v4345_v40 = vadd.f32 %v6941_v23, %v4344_v56  ;;  %v4368_v3 = vsel %vm4365_vm10, %v4367_v21, %v4363_v41 }
0x110d   : > { %v4661_v5 = vmul.f32 %v6810_v13, %v4382_v0  ;;  %v4662_v45 = vmul.f32 %v6812_v12, %v4382_v0  ;;  %v4301_v54 = vsub.f32 1.0, %v4300_v55  ;;  %v4331_v1 = vadd.f32 %v6950_v30, %v4330_v48  ;;  %v7028_v12 = vpop.eup %5286 }
0x110e   : > { %v4316_v47 = vmul.f32 %v6964_v61, %v4315_v32  ;;  %v4286_v35 = vmul.f32 %v7008_v58, %v6948_v11  ;;  %v4349_v13 = vsel %vm7016_vm11, %v6941_v23, %v4345_v40  ;;  %v4338_v50 = vand.u32 2147483648, %v6914_v42 }
0x110f   : > { %v4353_v56 = vor.u32 1.1754944e-38, %v4352_v36  ;;  %v4336_v38 = vand.u32 2147483647, %v6914_v42  ;;  %v4659_v62 = vmul.f32 %v6778_v6, %v4368_v3  ;;  %v4660_v29 = vmul.f32 %v6780_v60, %v4368_v3 }
0x1110   : > { %4700 = vmatpush.xpose.msra.mxu2 %v4663_v4  ;;  %4720 = vmatpush.xpose.msra.mxu3 %v4664_v17  ;;  %v4302_v23 = vmul.f32 %v6979_v39, %v4301_v54  ;;  %5290 = vrcp.f32 %v6920_v53  ;;  %v4335_v42 = vsel %vm7035_vm15, %v6950_v30, %v4331_v1  ;;  %v4287_v6 = vsub.f32 1.0, %v4286_v35 }
0x1111   : > { %v4354_v4 = vsel %vm4351_vm14, %v4353_v56, %v4349_v13  ;;  %v7046_v17 = vpop.eup %5288  ;;  %v4272_v60 = vmul.f32 %v7028_v12, %v6918_v46  ;;  %v4317_v48 = vadd.f32 %v6964_v61, %v4316_v47  ;;  %v4339_v55 = vor.u32 1.1754944e-38, %v4338_v50 }
0x1112   : > { %v7040_v49 = vpop.xlane.xlu1 %4101  ;;  %v4324_v0 = vand.u32 2147483648, %v6935_v10  ;;  %vm4337_vm3 = vcmp.eq.f32.partialorder %v4336_v38, 8.507059e+37  ;;  %v4657_v30 = vmul.f32 %v6794_v37, %v4354_v4  ;;  %v4658_v8 = vmul.f32 %v6796_v15, %v4354_v4  ;;  %v7067_v37 = vpop.xlane.xlu2 %4098 }
0x1113   : > { %5292 = vrcp.f32 %v7040_v49  ;;  %v4322_v32 = vand.u32 2147483647, %v6935_v10  ;;  %v4258_v41 = vmul.f32 %v7046_v17, %v6989_v2  ;;  %v4340_v40 = vsel %vm4337_vm3, %v4339_v55, %v4335_v42 }
0x1114   : > { %4701 = vmatpush.xpose.msra.mxu2 %v4661_v5  ;;  %4721 = vmatpush.xpose.msra.mxu3 %v4662_v45  ;;  %v4303_v36 = vadd.f32 %v6979_v39, %v4302_v23  ;;  %vm4305_vm5 = vweird.f32 %v6979_v39  ;;  %v4288_v5 = vmul.f32 %v7008_v58, %v4287_v6  ;;  %v4273_v45 = vsub.f32 1.0, %v4272_v60 }
0x1115   : > { %v4321_v15 = vsel %vm7060_vm4, %v6964_v61, %v4317_v48  ;;  %v4325_v26 = vor.u32 1.1754944e-38, %v4324_v0  ;;  %vm4304_vm6 = vweird.f32 %v6916_v44  ;;  %v4310_v54 = vand.u32 2147483648, %v6916_v44 }
0x1116   : > { %v7072_v10 = vpop.eup %5290  ;;  %v4655_v3 = vmul.f32 %v6784_v25, %v4340_v40  ;;  %v4656_v43 = vmul.f32 %v6788_v34, %v4340_v40  ;;  %vm4323_vm7 = vcmp.eq.f32.partialorder %v4322_v32, 8.507059e+37  ;;  %vm7078_vm8 = vmor %vm4304_vm6, %vm4305_vm5  ;;  %v4308_v47 = vand.u32 2147483647, %v6916_v44 }
0x1117   : > { %v4259_v35 = vsub.f32 1.0, %v4258_v41  ;;  %5294 = vrcp.f32 %v7067_v37  ;;  %v4326_v61 = vsel %vm4323_vm7, %v4325_v26, %v4321_v15  ;;  %v4307_v13 = vsel %vm7078_vm8, %v6979_v39, %v4303_v36 }
0x1118   : > { %4702 = vmatpush.xpose.msra.mxu2 %v4659_v62  ;;  %4722 = vmatpush.xpose.msra.mxu3 %v4660_v29  ;;  %v4274_v25 = vmul.f32 %v7028_v12, %v4273_v45  ;;  %v4244_v34 = vmul.f32 %v7072_v10, %v6920_v53  ;;  %v4289_v56 = vadd.f32 %v7008_v58, %v4288_v5  ;;  %vm4291_vm9 = vweird.f32 %v7008_v58 }
0x1119   : > { %v7087_v50 = vpop.eup %5292  ;;  %v4311_v44 = vor.u32 1.1754944e-38, %v4310_v54  ;;  %v4296_v38 = vand.u32 2147483648, %v6948_v11  ;;  %v4294_v62 = vand.u32 2147483647, %v6948_v11  ;;  %vm4290_vm10 = vweird.f32 %v6948_v11 }
0x111a   : > { %v4653_v39 = vmul.f32 %v6800_v27, %v4326_v61  ;;  %v4654_v29 = vmul.f32 %v6802_v31, %v4326_v61  ;;  %vm4309_vm11 = vcmp.eq.f32.partialorder %v4308_v47, 8.507059e+37  ;;  %v4260_v24 = vmul.f32 %v7046_v17, %v4259_v35  ;;  %vm7103_vm12 = vmor %vm4290_vm10, %vm4291_vm9  ;;  %v7107_v60 = vpop.xlane.xlu1 %4092 }
0x111b   : > { %v4230_v23 = vmul.f32 %v7087_v50, %v7040_v49  ;;  %5296 = vrcp.f32 %v6922_v22  ;;  %v4312_v4 = vsel %vm4309_vm11, %v4311_v44, %v4307_v13  ;;  %v4245_v6 = vsub.f32 1.0, %v4244_v34 }
0x111c   : > { %4703 = vmatpush.xpose.msra.mxu2 %v4657_v30  ;;  %4723 = vmatpush.xpose.msra.mxu3 %v4658_v8  ;;  %v4293_v27 = vsel %vm7103_vm12, %v7008_v58, %v4289_v56  ;;  %v4275_v31 = vadd.f32 %v7028_v12, %v4274_v25  ;;  %vm4277_vm13 = vweird.f32 %v7028_v12  ;;  %v4297_v48 = vor.u32 1.1754944e-38, %v4296_v38 }
0x111d   : > { %v7114_v11 = vpop.eup %5294  ;;  %vm4276_vm14 = vweird.f32 %v6918_v46  ;;  %v4282_v55 = vand.u32 2147483648, %v6918_v46  ;;  %vm4295_vm15 = vcmp.eq.f32.partialorder %v4294_v62, 8.507059e+37  ;;  %v4651_v0 = vmul.f32 %v6820_v59, %v4312_v4 }
0x111e   : > { %v4652_v30 = vmul.f32 %v6823_v19, %v4312_v4  ;;  %v4280_v8 = vand.u32 2147483647, %v6918_v46  ;;  %vm4263_vm1 = vweird.f32 %v7046_v17  ;;  %v4231_v58 = vsub.f32 1.0, %v4230_v23  ;;  %vm7123_vm2 = vmor %vm4276_vm14, %vm4277_vm13 }
0x111f   : > { %5298 = vrcp.f32 %v7107_v60  ;;  %v4298_v32 = vsel %vm4295_vm15, %v4297_v48, %v4293_v27  ;;  %v4261_v40 = vadd.f32 %v7046_v17, %v4260_v24  ;;  %v4246_v21 = vmul.f32 %v7072_v10, %v4245_v6 }
0x1120   : > { %4704 = vmatpush.xpose.msra.mxu2 %v4655_v3  ;;  %4724 = vmatpush.xpose.msra.mxu3 %v4656_v43  ;;  %v4216_v59 = vmul.f32 %v7114_v11, %v7067_v37  ;;  %v4279_v19 = vsel %vm7123_vm2, %v7028_v12, %v4275_v31  ;;  %vm4262_vm3 = vweird.f32 %v6989_v2  ;;  %v4268_v36 = vand.u32 2147483648, %v6989_v2 }
0x1121   : > { %v7134_v46 = vpop.eup %5296  ;;  %v4283_v5 = vor.u32 1.1754944e-38, %v4282_v55  ;;  %v4266_v45 = vand.u32 2147483647, %v6989_v2  ;;  %v4649_v15 = vmul.f32 %v6832_v20, %v4298_v32  ;;  %v4650_v26 = vmul.f32 %v6835_v63, %v4298_v32  ;;  %vm7143_vm5 = vmor %vm4262_vm3, %vm4263_vm1 }
0x1122   : > { %vm4281_vm4 = vcmp.eq.f32.partialorder %v4280_v8, 8.507059e+37  ;;  %v4232_v12 = vmul.f32 %v7087_v50, %v4231_v58  ;;  %v4265_v43 = vsel %vm7143_vm5, %v7046_v17, %v4261_v40  ;;  %v4217_v1 = vsub.f32 1.0, %v4216_v59  ;;  %v3464_v59 = vpop.permute.xlu2 %3463 }
0x1123   : > { %v4284_v3 = vsel %vm4281_vm4, %v4283_v5, %v4279_v19  ;;  %v4202_v20 = vmul.f32 %v7134_v46, %v6922_v22  ;;  %v4247_v63 = vadd.f32 %v7072_v10, %v4246_v21  ;;  %vm4249_vm6 = vweird.f32 %v7072_v10 }
0x1124   : > { %4705 = vmatpush.xpose.msra.mxu2 %v4653_v39  ;;  %4725 = vmatpush.xpose.msra.mxu3 %v4654_v29  ;;  %v4269_v47 = vor.u32 1.1754944e-38, %v4268_v36  ;;  %v4254_v35 = vand.u32 2147483648, %v6920_v53  ;;  %vm4267_vm7 = vcmp.eq.f32.partialorder %v4266_v45, 8.507059e+37  ;;  %vm4248_vm8 = vweird.f32 %v6920_v53  ;;  %v7668_v45 = vld [vmem:[#allocation24_spill] sm:$0xff] }
0x1125   : > { %v7155_v2 = vpop.eup %5298  ;;  %v4647_v17 = vmul.f32 %v6846_v14, %v4284_v3  ;;  %v4648_v61 = vmul.f32 %v6848_v51, %v4284_v3  ;;  %v4252_v13 = vand.u32 2147483647, %v6920_v53  ;;  %vm7162_vm9 = vmor %vm4248_vm8, %vm4249_vm6  ;;  %v4233_v56 = vadd.f32 %v7087_v50, %v4232_v12  ;;  %v7670_v12 = vld [vmem:[#allocation21_spill] sm:$0xff]  ;;  %v3490_v3 = vpop.f32.mrf.mxu0 }
0x1126   : > { %v4270_v25 = vsel %vm4267_vm7, %v4269_v47, %v4265_v43  ;;  %vm4235_vm10 = vweird.f32 %v7087_v50  ;;  %v4218_v44 = vmul.f32 %v7114_v11, %v4217_v1  ;;  %v4203_v38 = vsub.f32 1.0, %v4202_v20  ;;  %v3510_v43 = vpop.f32.mrf.mxu1  ;;  %v7671_v1 = vld [vmem:[#allocation26_spill] sm:$0xff] }
0x1127   : > { %v4188_v62 = vmul.f32 %v7155_v2, %v7107_v60  ;;  %v4251_v14 = vsel %vm7162_vm9, %v7072_v10, %v4247_v63  ;;  %vm4234_vm11 = vweird.f32 %v7040_v49  ;;  %v4240_v51 = vand.u32 2147483648, %v7040_v49  ;;  %v7672_v63 = vld [vmem:[#allocation27_spill] sm:$0xff] }
0x1128   : > { %4706 = vmatpush.xpose.msra.mxu2 %v4651_v0  ;;  %4726 = vmatpush.xpose.msra.mxu3 %v4652_v30  ;;  %v4255_v53 = vor.u32 1.1754944e-38, %v4254_v35  ;;  %v4238_v39 = vand.u32 2147483647, %v7040_v49  ;;  %v4645_v29 = vmul.f32 %v6840_v16, %v4270_v25  ;;  %v4646_v24 = vmul.f32 %v6844_v18, %v4270_v25  ;;  %vm7179_vm13 = vmor %vm4234_vm11, %vm4235_vm10 }
0x1129   : > { %vm4253_vm12 = vcmp.eq.f32.partialorder %v4252_v13, 8.507059e+37  ;;  %v4237_v10 = vsel %vm7179_vm13, %v7087_v50, %v4233_v56  ;;  %v4204_v42 = vmul.f32 %v7134_v46, %v4203_v38  ;;  %v4189_v6 = vsub.f32 1.0, %v4188_v62 }
0x112a   : > { %v4256_v4 = vsel %vm4253_vm12, %v4255_v53, %v4251_v14  ;;  %v4219_v49 = vadd.f32 %v7114_v11, %v4218_v44  ;;  %vm4221_vm14 = vweird.f32 %v7114_v11  ;;  %v4241_v16 = vor.u32 1.1754944e-38, %v4240_v51 }
0x112b   : > { %v4226_v18 = vand.u32 2147483648, %v7067_v37  ;;  %vm4239_vm15 = vcmp.eq.f32.partialorder %v4238_v39, 8.507059e+37  ;;  %vm4220_vm1 = vweird.f32 %v7067_v37  ;;  %v4643_v27 = vmul.f32 %v6860_v28, %v4256_v4 }
0x112c   : > { %4707 = vmatpush.xpose.msra.mxu2 %v4649_v15  ;;  %4727 = vmatpush.xpose.msra.mxu3 %v4650_v26  ;;  %v4644_v31 = vmul.f32 %v6862_v9, %v4256_v4  ;;  %v4224_v50 = vand.u32 2147483647, %v7067_v37  ;;  %v4242_v48 = vsel %vm4239_vm15, %v4241_v16, %v4237_v10  ;;  %vm4222_vm2 = vmor %vm4220_vm1, %vm4221_vm14  ;;  %v4190_v55 = vmul.f32 %v7155_v2, %v4189_v6  ;;  %v7669_v26 = vld [vmem:[#allocation25_spill] sm:$0xff] }
0x112d   : > { %v4223_v0 = vsel %vm4222_vm2, %v7114_v11, %v4219_v49  ;;  %v4205_v30 = vadd.f32 %v7134_v46, %v4204_v42  ;;  %vm4207_vm3 = vweird.f32 %v7134_v46  ;;  %v4227_v8 = vor.u32 1.1754944e-38, %v4226_v18  ;;  %v7675_v18 = vld [vmem:[#allocation22_spill] sm:$0xff] }
0x112e   : > { %v4212_v58 = vand.u32 2147483648, %v6922_v22  ;;  %v4210_v28 = vand.u32 2147483647, %v6922_v22  ;;  %vm4206_vm4 = vweird.f32 %v6922_v22  ;;  %v4641_v9 = vmul.f32 %v6854_v57, %v4242_v48 }
0x112f   : > { %v4642_v37 = vmul.f32 %v6858_v33, %v4242_v48  ;;  %vm4225_vm5 = vcmp.eq.f32.partialorder %v4224_v50, 8.507059e+37  ;;  %vm4208_vm6 = vmor %vm4206_vm4, %vm4207_vm3  ;;  %v4191_v41 = vadd.f32 %v7155_v2, %v4190_v55  ;;  %vm4193_vm7 = vweird.f32 %v7155_v2 }
0x1130   : > { %4708 = vmatpush.xpose.msra.mxu2 %v4647_v17  ;;  %4728 = vmatpush.xpose.msra.mxu3 %v4648_v61  ;;  %v4228_v32 = vsel %vm4225_vm5, %v4227_v8, %v4223_v0  ;;  %v4209_v11 = vsel %vm4208_vm6, %v7134_v46, %v4205_v30  ;;  %v4213_v40 = vor.u32 1.1754944e-38, %v4212_v58  ;;  %v4198_v21 = vand.u32 2147483648, %v7107_v60  ;;  %v7673_v17 = vld [vmem:[#allocation19_spill] sm:$0xff]  ;;  %v7674_v61 = vld [vmem:[#allocation20_spill] sm:$0xff] }
0x1131   : > { %vm4211_vm8 = vcmp.eq.f32.partialorder %v4210_v28, 8.507059e+37  ;;  %vm4192_vm9 = vweird.f32 %v7107_v60  ;;  %v4639_v57 = vmul.f32 %v6870_v52, %v4228_v32  ;;  %v4640_v33 = vmul.f32 %v6874_v7, %v4228_v32 }
0x1132   : > { %v4196_v22 = vand.u32 2147483647, %v7107_v60  ;;  %v4214_v19 = vsel %vm4211_vm8, %v4213_v40, %v4209_v11  ;;  %vm4194_vm10 = vmor %vm4192_vm9, %vm4193_vm7  ;;  %v4199_v36 = vor.u32 1.1754944e-38, %v4198_v21  ;;  %v3467_v5 = vrot.slane %v3464_v59, 2 }
0x1133   : > { %v4195_v46 = vsel %vm4194_vm10, %v7155_v2, %v4191_v41  ;;  %v4637_v15 = vmul.f32 %v7668_v45, %v4214_v19  ;;  %v4638_v54 = vmul.f32 %v7669_v26, %v4214_v19  ;;  %vm3465_vm12 = vcmask 1045504  }
0x1134   : > { %4709 = vmatpush.xpose.msra.mxu2 %v4645_v29  ;;  %4729 = vmatpush.xpose.msra.mxu3 %v4646_v24  ;;  %vm4197_vm11 = vcmp.eq.f32.partialorder %v4196_v22, 8.507059e+37  ;;  %v3466_v7 = vrot.slane %v7670_v12, 2 }
0x1135   : > { %v4200_v52 = vsel %vm4197_vm11, %v4199_v36, %v4195_v46 }
0x1136   : > { %v3468_v60 = vsel %vm3465_vm12, %v3466_v7, %v3467_v5  ;;  %v4635_v20 = vmul.f32 %v7671_v1, %v4200_v52  ;;  %v4636_v2 = vmul.f32 %v7672_v63, %v4200_v52 }
0x1137   : > { %v7217_v47 = vadd.f32 %v3490_v3, %v3468_v60  ;;  %v7219_v35 = vadd.f32 %v3510_v43, %v3468_v60 }
0x1138   : > { %4710 = vmatpush.xpose.msra.mxu2 %v4643_v27  ;;  %4730 = vmatpush.xpose.msra.mxu3 %v4644_v31  ;;  %v7676_v31 = vld [vmem:[#allocation23_spill] sm:$0xff] }
0x113c   : > { %4711 = vmatpush.xpose.msra.mxu2 %v4641_v9  ;;  %4731 = vmatpush.xpose.msra.mxu3 %v4642_v37 }
0x1140   : > { %4712 = vmatpush.xpose.msra.mxu2 %v4639_v57  ;;  %4732 = vmatpush.xpose.msra.mxu3 %v4640_v33 }
0x1144   : > { %4713 = vmatpush.xpose.msra.mxu2 %v4637_v15  ;;  %4733 = vmatpush.xpose.msra.mxu3 %v4638_v54 }
0x1148   : > { %4714 = vmatpush.xpose.msra.mxu2 %v4635_v20  ;;  %4734 = vmatpush.xpose.msra.mxu3 %v4636_v2 }
0x114b   : > { %4715 = vmatmul.f32.vlgmr.msra.gmra.mxu2 %v7217_v47  ;;  %4735 = vmatmul.f32.vlgmr.msra.gmra.mxu3 %v7219_v35 }
0x114c   : > { %4800 = vmatpush.xpose.msrb.mxu2 %v7673_v17  ;;  %4820 = vmatpush.xpose.msrb.mxu3 %v7674_v61 }
0x1152   : > { %v3561_v13 = vpop.trf.xlu0 }
0x1153   : > { %4801 = vmatmul.f32.vlgmr.msrb.gmra.mxu2 %v7673_v17  ;;  %4821 = vmatmul.f32.vlgmr.msrb.gmra.mxu3 %v7674_v61 }
0x115a   : > { %v3562_v25 = vpop.trf.xlu0 }
0x1162   : > { %v3563_v34 = vpop.trf.xlu0 }
0x116a   : > { %v3564_v56 = vpop.trf.xlu0 }
0x1172   : > { %v3565_v44 = vpop.trf.xlu0 }
0x117a   : > { %v3566_v38 = vpop.trf.xlu0 }
0x1182   : > { %v3567_v62 = vpop.trf.xlu0 }
0x118a   : > { %v3568_v14 = vpop.trf.xlu0 }
0x1192   : > { %v3569_v51 = vpop.trf.xlu0 }
0x119a   : > { %v3570_v53 = vpop.trf.xlu0 }
0x119b   : > { %3704 = vperm.xlu0 %5197, %v3570_v53  }
0x11a2   : > { %v3571_v39 = vpop.trf.xlu0 }
0x11aa   : > { %v3572_v29 = vpop.trf.xlu0 }
0x11b2   : > { %v3573_v24 = vpop.trf.xlu0 }
0x11ba   : > { %v3574_v23 = vpop.trf.xlu0 }
0x11c2   : > { %v3575_v4 = vpop.trf.xlu0 }
0x11c3   : > { %3729 = vperm.xlu2 %5195, %v3575_v4  }
0x11ca   : > { %v3576_v10 = vpop.trf.xlu0 }
0x11cb   : > { %3734 = vperm.xlu1 %5196, %v3576_v10  }
0x11ce   : > { %v4716_v42 = vpop.f32.mrf.mxu2  ;;  %v4736_v6 = vpop.f32.mrf.mxu3 }
0x11cf   : > { %v7227_v49 = vadd.f32 %v4736_v6, %v4716_v42 }
0x11d3   : > { %3724 = vperm.xlu1 %5196, %v3574_v23  }
0x120d   : > { %v3705_v19 = vpop.permute.xlu0 %3704 }
0x120e   : > { %v7260_v46 = vmul.f32 %v7675_v18, %v3705_v19  ;;  %v7263_v36 = vmul.f32 %v7676_v31, %v3705_v19 }
0x1210   : > { %v3878_v45 = vmax.f32 %v7260_v46, %v7263_v36 }
0x121d   : > { %v3730_v16 = vpop.permute.xlu2 %3729 }
0x121e   : > { %v7230_v27 = vmul.f32 %v7675_v18, %v3730_v16  ;;  %v7233_v50 = vmul.f32 %v7676_v31, %v3730_v16 }
0x1220   : > { %v3893_v48 = vmax.f32 %v7230_v27, %v7233_v50 }
0x1222   : > { %3894 = vmax.xlane.f32.xlu2 %v3893_v48 }
0x123d   : > { %v3735_v55 = vpop.permute.xlu1 %3734 }
0x123e   : > { %v7238_v0 = vmul.f32 %v7675_v18, %v3735_v55  ;;  %v7241_v30 = vmul.f32 %v7676_v31, %v3735_v55 }
0x1240   : > { %v3896_v8 = vmax.f32 %v7238_v0, %v7241_v30 }
0x1242   : > { %3897 = vmax.xlane.f32.xlu1 %v3896_v8 }
0x1245   : > { %v3725_v58 = vpop.permute.xlu1 %3724 }
0x1246   : > { %v7246_v28 = vmul.f32 %v7675_v18, %v3725_v58  ;;  %v7249_v9 = vmul.f32 %v7676_v31, %v3725_v58 }
0x1248   : > { %v3890_v37 = vmax.f32 %v7246_v28, %v7249_v9 }
0x124a   : > { %3891 = vmax.xlane.f32.xlu2 %v3890_v37 }
0x1262   : > { %3719 = vperm.xlu2 %5195, %v3573_v24  }
0x126a   : > { %3709 = vperm.xlu2 %5195, %v3571_v39  }
0x1272   : > { %3694 = vperm.xlu2 %5195, %v3568_v14  }
0x127a   : > { %3684 = vperm.xlu2 %5195, %v3566_v38  }
0x1282   : > { %3679 = vperm.xlu2 %5195, %v3565_v44  }
0x128a   : > { %3669 = vperm.xlu2 %5195, %v3563_v34  }
0x1292   : > { %3664 = vperm.xlu2 %5195, %v3562_v25  }
0x1295   : > { %v7253_v32 = vpop.xlane.xlu2 %3894 }
0x12b5   : > { %v3898_v63 = vpop.xlane.xlu1 %3897 }
0x12bd   : > { %v7255_v11 = vpop.xlane.xlu2 %3891 }
0x12c5   : > { %v3720_v41 = vpop.permute.xlu2 %3719 }
0x12c6   : > { %v3795_v40 = vmul.f32 %v7675_v18, %v3720_v41  ;;  %v3796_v21 = vmul.f32 %v7676_v31, %v3720_v41 }
0x12c8   : > { %v3887_v57 = vmax.f32 %v3795_v40, %v3796_v21 }
0x12ca   : > { %3888 = vmax.xlane.f32.xlu1 %v3887_v57 }
0x12cd   : > { %v3710_v33 = vpop.permute.xlu2 %3709 }
0x12ce   : > { %v7300_v44 = vmul.f32 %v7675_v18, %v3710_v33  ;;  %v7303_v38 = vmul.f32 %v7676_v31, %v3710_v33 }
0x12d0   : > { %v3881_v14 = vmax.f32 %v7300_v44, %v7303_v38 }
0x12d5   : > { %v3695_v22 = vpop.permute.xlu2 %3694 }
0x12d6   : > { %v7316_v24 = vmul.f32 %v7675_v18, %v3695_v22  ;;  %v7319_v23 = vmul.f32 %v7676_v31, %v3695_v22 }
0x12d8   : > { %v3872_v6 = vmax.f32 %v7316_v24, %v7319_v23 }
0x12dd   : > { %v3685_v59 = vpop.permute.xlu2 %3684 }
0x12de   : > { %v7342_v33 = vmul.f32 %v7675_v18, %v3685_v59  ;;  %v7345_v22 = vmul.f32 %v7676_v31, %v3685_v59 }
0x12e3   : > { %3714 = vperm.xlu1 %5196, %v3572_v29  }
0x12e5   : > { %v3680_v5 = vpop.permute.xlu2 %3679 }
0x12e6   : > { %v7268_v15 = vmul.f32 %v7675_v18, %v3680_v5  ;;  %v7271_v26 = vmul.f32 %v7676_v31, %v3680_v5  ;;  %v3866_v5 = vmax.f32 %v7342_v33, %v7345_v22 }
0x12e8   : > { %v3863_v52 = vmax.f32 %v7268_v15, %v7271_v26 }
0x12eb   : > { %3699 = vperm.xlu1 %5196, %v3569_v51  }
0x12ed   : > { %v3670_v54 = vpop.permute.xlu2 %3669 }
0x12ee   : > { %v7276_v12 = vmul.f32 %v7675_v18, %v3670_v54  ;;  %v7279_v7 = vmul.f32 %v7676_v31, %v3670_v54  ;;  %v4802_v54 = vpop.f32.mrf.mxu2 }
0x12f0   : > { %v3857_v60 = vmax.f32 %v7276_v12, %v7279_v7 }
0x12f3   : > { %3689 = vperm.xlu1 %5196, %v3567_v62  }
0x12f5   : > { %v3665_v3 = vpop.permute.xlu2 %3664 }
0x12f6   : > { %v7284_v43 = vmul.f32 %v7675_v18, %v3665_v3  ;;  %v7287_v1 = vmul.f32 %v7676_v31, %v3665_v3  ;;  %v3961_v3 = vsub.f32 %v7238_v0, %v3898_v63  ;;  %v3960_v0 = vsub.f32 %v7233_v50, %v7253_v32 }
0x12f8   : > { %v3854_v20 = vmax.f32 %v7284_v43, %v7287_v1 }
0x12fb   : > { %3674 = vperm.xlu1 %5196, %v3564_v56  }
0x1303   : > { %3659 = vperm.xlu1 %5196, %v3561_v13  }
0x132d   : > { %3879 = vmax.xlane.f32.xlu1 %v3878_v45 }
0x1335   : > { %3864 = vmax.xlane.f32.xlu1 %v3863_v52  ;;  %v4822_v52 = vpop.f32.mrf.mxu3 }
0x133d   : > { %3858 = vmax.xlane.f32.xlu1 %v3857_v60  ;;  %v3889_v2 = vpop.xlane.xlu1 %3888  ;;  %v7353_v60 = vadd.f32 %v4822_v52, %v4802_v54 }
0x133e   : > { %v3955_v10 = vsub.f32 %v3795_v40, %v3889_v2  ;;  %v3956_v42 = vsub.f32 %v3796_v21, %v3889_v2  ;;  %v4087_v2 = vmul.f32 1.442695, %v3961_v3 }
0x133f   : > { %v4825_v59 = vsel %vm735_vm0, %v7353_v60, -inf }
0x1340   : > { %v4075_v16 = vmul.f32 1.442695, %v3955_v10  ;;  %v4077_v48 = vmul.f32 1.442695, %v3956_v42 }
0x1342   : > { %5300 = vpow2.f32 %v4075_v16 }
0x1343   : > { %5302 = vpow2.f32 %v4077_v48 }
0x1344   : > { %5304 = vpow2.f32 %v4087_v2 }
0x1345   : > { %3855 = vmax.xlane.f32.xlu1 %v3854_v20  ;;  %v3962_v20 = vsub.f32 %v7241_v30, %v3898_v63 }
0x1348   : > { %v7339_v57 = vpop.eup %5300 }
0x1349   : > { %v7347_v19 = vpop.eup %5302 }
0x134a   : > { %v4175_v45 = vadd.f32 %v7347_v19, %v7339_v57 }
0x1355   : > { %v3715_v13 = vpop.permute.xlu1 %3714 }
0x1356   : > { %v7292_v25 = vmul.f32 %v7675_v18, %v3715_v13  ;;  %v7295_v34 = vmul.f32 %v7676_v31, %v3715_v13  ;;  %v4089_v13 = vmul.f32 1.442695, %v3962_v20 }
0x1358   : > { %v3884_v56 = vmax.f32 %v7292_v25, %v7295_v34  ;;  %5306 = vpow2.f32 %v4089_v13 }
0x135a   : > { %3885 = vmax.xlane.f32.xlu2 %v3884_v56 }
0x135d   : > { %v3700_v62 = vpop.permute.xlu1 %3699 }
0x135e   : > { %v7308_v51 = vmul.f32 %v7675_v18, %v3700_v62  ;;  %v7311_v53 = vmul.f32 %v7676_v31, %v3700_v62 }
0x1360   : > { %v3875_v29 = vmax.f32 %v7308_v51, %v7311_v53 }
0x1362   : > { %3882 = vmax.xlane.f32.xlu2 %v3881_v14  ;;  %v3959_v14 = vsub.f32 %v7230_v27, %v7253_v32  ;;  %v3958_v27 = vsub.f32 %v7249_v9, %v7255_v11 }
0x1364   : > { %v4083_v63 = vmul.f32 1.442695, %v3959_v14 }
0x1365   : > { %v3690_v39 = vpop.permute.xlu1 %3689 }
0x1366   : > { %v7324_v55 = vmul.f32 %v7675_v18, %v3690_v39  ;;  %v7327_v8 = vmul.f32 %v7676_v31, %v3690_v39  ;;  %v4085_v39 = vmul.f32 1.442695, %v3960_v0  ;;  %5308 = vpow2.f32 %v4083_v63 }
0x1368   : > { %v3869_v40 = vmax.f32 %v7324_v55, %v7327_v8  ;;  %5310 = vpow2.f32 %v4085_v39 }
0x136a   : > { %3876 = vmax.xlane.f32.xlu2 %v3875_v29  ;;  %v7371_v29 = vpop.eup %5304 }
0x136d   : > { %v3675_v4 = vpop.permute.xlu1 %3674 }
0x136e   : > { %v7360_v56 = vmul.f32 %v7675_v18, %v3675_v4  ;;  %v7363_v62 = vmul.f32 %v7676_v31, %v3675_v4  ;;  %v4081_v4 = vmul.f32 1.442695, %v3958_v27 }
0x1370   : > { %v3860_v30 = vmax.f32 %v7360_v56, %v7363_v62 }
0x1372   : > { %3873 = vmax.xlane.f32.xlu2 %v3872_v6 }
0x1375   : > { %v3660_v58 = vpop.permute.xlu1 %3659 }
0x1376   : > { %v7330_v37 = vmul.f32 %v7675_v18, %v3660_v58  ;;  %v7333_v41 = vmul.f32 %v7676_v31, %v3660_v58  ;;  %v7373_v18 = vpop.eup %5306  ;;  %v3957_v31 = vsub.f32 %v7246_v28, %v7255_v11 }
0x1377   : > { %v4184_v50 = vadd.f32 %v7373_v18, %v7371_v29  ;;  %v7381_v10 = vpop.eup %5308 }
0x1378   : > { %v3851_v21 = vmax.f32 %v7330_v37, %v7333_v41  ;;  %v4079_v32 = vmul.f32 1.442695, %v3957_v31  ;;  %v7383_v42 = vpop.eup %5310 }
0x1379   : > { %v4181_v6 = vadd.f32 %v7383_v42, %v7381_v10 }
0x137a   : > { %3870 = vmax.xlane.f32.xlu2 %v3869_v40  ;;  %3852 = vmax.xlane.f32.xlu1 %v3851_v21  ;;  %5312 = vpow2.f32 %v4079_v32 }
0x137b   : > { %5314 = vpow2.f32 %v4081_v4 }
0x1380   : > { %v7387_v28 = vpop.eup %5312 }
0x1381   : > { %v7389_v16 = vpop.eup %5314 }
0x1382   : > { %3867 = vmax.xlane.f32.xlu2 %v3866_v5  ;;  %4176 = vadd.xlane.f32.xlu1 %v4175_v45  ;;  %v4178_v9 = vadd.f32 %v7389_v16, %v7387_v28 }
0x138a   : > { %4826 = vmax.xlane.f32.xlu2 %v4825_v59 }
0x1392   : > { %3861 = vmax.xlane.f32.xlu2 %v3860_v30 }
0x139a   : > { %4185 = vadd.xlane.f32.xlu2 %v4184_v50 }
0x13a0   : > { %v3880_v11 = vpop.xlane.xlu1 %3879 }
0x13a1   : > { %v3949_v21 = vsub.f32 %v7260_v46, %v3880_v11  ;;  %v3950_v54 = vsub.f32 %v7263_v36, %v3880_v11 }
0x13a2   : > { %4182 = vadd.xlane.f32.xlu2 %v4181_v6 }
0x13a3   : > { %v4063_v52 = vmul.f32 1.442695, %v3949_v21  ;;  %v4065_v3 = vmul.f32 1.442695, %v3950_v54 }
0x13a8   : > { %v3865_v59 = vpop.xlane.xlu1 %3864 }
0x13aa   : > { %4179 = vadd.xlane.f32.xlu2 %v4178_v9 }
0x13b0   : > { %v7413_v31 = vpop.xlane.xlu1 %3858 }
0x13b8   : > { %v7427_v21 = vpop.xlane.xlu1 %3855 }
0x13cd   : > { %v3886_v48 = vpop.xlane.xlu2 %3885 }
0x13ce   : > { %v3953_v58 = vsub.f32 %v7292_v25, %v3886_v48  ;;  %v3954_v40 = vsub.f32 %v7295_v34, %v3886_v48 }
0x13d0   : > { %v4071_v5 = vmul.f32 1.442695, %v3953_v58  ;;  %v4073_v45 = vmul.f32 1.442695, %v3954_v40 }
0x13d2   : > { %5316 = vpow2.f32 %v4071_v5 }
0x13d3   : > { %5318 = vpow2.f32 %v4073_v45 }
0x13d4   : > { %5320 = vpow2.f32 %v4063_v52  ;;  %v3939_v52 = vsub.f32 %v7268_v15, %v3865_v59 }
0x13d5   : > { %v3883_v20 = vpop.xlane.xlu2 %3882  ;;  %5322 = vpow2.f32 %v4065_v3 }
0x13d6   : > { %v3951_v2 = vsub.f32 %v7300_v44, %v3883_v20  ;;  %v3952_v13 = vsub.f32 %v7303_v38, %v3883_v20 }
0x13d8   : > { %v7399_v14 = vpop.eup %5316  ;;  %v4067_v25 = vmul.f32 1.442695, %v3951_v2  ;;  %v4069_v34 = vmul.f32 1.442695, %v3952_v13  ;;  %v3940_v2 = vsub.f32 %v7271_v26, %v3865_v59 }
0x13d9   : > { %v7401_v46 = vpop.eup %5318 }
0x13da   : > { %5324 = vpow2.f32 %v4067_v25  ;;  %v4172_v36 = vadd.f32 %v7401_v46, %v7399_v14  ;;  %v7405_v30 = vpop.eup %5320 }
0x13db   : > { %5326 = vpow2.f32 %v4069_v34  ;;  %v7409_v63 = vpop.eup %5322 }
0x13dc   : > { %4173 = vadd.xlane.f32.xlu2 %v4172_v36  ;;  %v4166_v4 = vadd.f32 %v7409_v63, %v7405_v30  ;;  %v4043_v36 = vmul.f32 1.442695, %v3939_v52 }
0x13dd   : > { %v3877_v0 = vpop.xlane.xlu2 %3876 }
0x13de   : > { %v3947_v44 = vsub.f32 %v7308_v51, %v3877_v0  ;;  %v3948_v38 = vsub.f32 %v7311_v53, %v3877_v0 }
0x13e0   : > { %v7411_v39 = vpop.eup %5324  ;;  %v4059_v27 = vmul.f32 1.442695, %v3947_v44  ;;  %v4061_v50 = vmul.f32 1.442695, %v3948_v38 }
0x13e1   : > { %v7415_v32 = vpop.eup %5326 }
0x13e2   : > { %5328 = vpow2.f32 %v4059_v27  ;;  %v4169_v6 = vadd.f32 %v7415_v32, %v7411_v39 }
0x13e3   : > { %5330 = vpow2.f32 %v4061_v50 }
0x13e4   : > { %4167 = vadd.xlane.f32.xlu2 %v4166_v4  ;;  %4170 = vadd.xlane.f32.xlu1 %v4169_v6  ;;  %v3935_v4 = vsub.f32 %v7276_v12, %v7413_v31 }
0x13e5   : > { %v3874_v51 = vpop.xlane.xlu2 %3873 }
0x13e6   : > { %v3945_v53 = vsub.f32 %v7316_v24, %v3874_v51  ;;  %v3946_v9 = vsub.f32 %v7319_v23, %v3874_v51 }
0x13e8   : > { %v7423_v11 = vpop.eup %5328  ;;  %v4055_v48 = vmul.f32 1.442695, %v3945_v53  ;;  %v4057_v58 = vmul.f32 1.442695, %v3946_v9  ;;  %v4035_v53 = vmul.f32 1.442695, %v3935_v4 }
0x13e9   : > { %v7425_v40 = vpop.eup %5330 }
0x13ea   : > { %5332 = vpow2.f32 %v4055_v48  ;;  %v4163_v5 = vadd.f32 %v7425_v40, %v7423_v11 }
0x13eb   : > { %5334 = vpow2.f32 %v4057_v58 }
0x13ec   : > { %4164 = vadd.xlane.f32.xlu1 %v4163_v5 }
0x13ed   : > { %v3871_v45 = vpop.xlane.xlu2 %3870  ;;  %v3853_v25 = vpop.xlane.xlu1 %3852 }
0x13ee   : > { %v3943_v54 = vsub.f32 %v7324_v55, %v3871_v45  ;;  %v3944_v24 = vsub.f32 %v7327_v8, %v3871_v45  ;;  %v4045_v55 = vmul.f32 1.442695, %v3940_v2  ;;  %v3931_v8 = vsub.f32 %v7330_v37, %v3853_v25 }
0x13ef   : > { %v3932_v15 = vsub.f32 %v7333_v41, %v3853_v25  ;;  %v3936_v41 = vsub.f32 %v7279_v7, %v7413_v31  ;;  %v3933_v25 = vsub.f32 %v7284_v43, %v7427_v21 }
0x13f0   : > { %v7433_v23 = vpop.eup %5332  ;;  %v4051_v3 = vmul.f32 1.442695, %v3943_v54  ;;  %v4053_v13 = vmul.f32 1.442695, %v3944_v24  ;;  %v4027_v59 = vmul.f32 1.442695, %v3931_v8  ;;  %v3934_v8 = vsub.f32 %v7287_v1, %v7427_v21 }
0x13f1   : > { %v7436_v20 = vpop.eup %5334  ;;  %v4029_v6 = vmul.f32 1.442695, %v3932_v15  ;;  %v4037_v48 = vmul.f32 1.442695, %v3936_v41 }
0x13f2   : > { %v4160_v34 = vadd.f32 %v7436_v20, %v7433_v23  ;;  %5336 = vpow2.f32 %v4051_v3 }
0x13f3   : > { %5338 = vpow2.f32 %v4053_v13 }
0x13f4   : > { %4161 = vadd.xlane.f32.xlu2 %v4160_v34  ;;  %5340 = vpow2.f32 %v4043_v36 }
0x13f5   : > { %v3868_v0 = vpop.xlane.xlu2 %3867  ;;  %5342 = vpow2.f32 %v4045_v55 }
0x13f6   : > { %v3941_v44 = vsub.f32 %v7342_v33, %v3868_v0  ;;  %v3942_v38 = vsub.f32 %v7345_v22, %v3868_v0  ;;  %v4033_v0 = vmul.f32 1.442695, %v3934_v8 }
0x13f8   : > { %v4047_v26 = vmul.f32 1.442695, %v3941_v44  ;;  %v4049_v27 = vmul.f32 1.442695, %v3942_v38  ;;  %v7445_v50 = vpop.eup %5336  ;;  %v7494_v38 = vpop.xlane.xlu1 %4176 }
0x13f9   : > { %v7449_v37 = vpop.eup %5338  ;;  %vm4584_vm8 = vweird.f32 %v7494_v38 }
0x13fa   : > { %5344 = vpow2.f32 %v4047_v26  ;;  %v4157_v33 = vadd.f32 %v7449_v37, %v7445_v50  ;;  %v7455_v51 = vpop.eup %5340 }
0x13fb   : > { %5346 = vpow2.f32 %v4049_v27  ;;  %v7460_v9 = vpop.eup %5342 }
0x13fc   : > { %5348 = vpow2.f32 %v4027_v59  ;;  %4158 = vadd.xlane.f32.xlu1 %v4157_v33  ;;  %v4151_v54 = vadd.f32 %v7460_v9, %v7455_v51 }
0x13fd   : > { %v4827_v22 = vpop.xlane.xlu2 %4826  ;;  %5350 = vpow2.f32 %v4029_v6 }
0x13fe   : > { %v7458_v12 = vsub.f32 %v4827_v22, %v7353_v60  ;;  %5352 = vpow2.f32 %v4035_v53 }
0x13ff   : > { %5354 = vpow2.f32 %v4037_v48 }
0x1400   : > { %v7462_v58 = vpop.eup %5344  ;;  %v4829_v7 = vsel %vm735_vm0, %v7458_v12, -inf }
0x1401   : > { %v7466_v31 = vpop.eup %5346  ;;  %4830 = vmax.xlane.f32.xlu0 %v4829_v7 }
0x1402   : > { %v4154_v5 = vadd.f32 %v7466_v31, %v7462_v58  ;;  %v7470_v45 = vpop.eup %5348 }
0x1403   : > { %v7472_v60 = vpop.eup %5350 }
0x1404   : > { %4155 = vadd.xlane.f32.xlu2 %v4154_v5  ;;  %4152 = vadd.xlane.f32.xlu1 %v4151_v54  ;;  %v4139_v2 = vadd.f32 %v7472_v60, %v7470_v45  ;;  %v7480_v13 = vpop.eup %5352 }
0x1405   : > { %v3862_v24 = vpop.xlane.xlu2 %3861  ;;  %v7484_v55 = vpop.eup %5354 }
0x1406   : > { %v3937_v52 = vsub.f32 %v7360_v56, %v3862_v24  ;;  %v3938_v3 = vsub.f32 %v7363_v62, %v3862_v24  ;;  %v4031_v56 = vmul.f32 1.442695, %v3933_v25  ;;  %v4145_v62 = vadd.f32 %v7484_v55, %v7480_v13 }
0x1408   : > { %v4039_v34 = vmul.f32 1.442695, %v3937_v52  ;;  %v4041_v36 = vmul.f32 1.442695, %v3938_v3 }
0x1409   : > { %4140 = vadd.xlane.f32.xlu0 %v4139_v2 }
0x140a   : > { %5356 = vpow2.f32 %v4039_v34 }
0x140b   : > { %5358 = vpow2.f32 %v4041_v36 }
0x140c   : > { %4146 = vadd.xlane.f32.xlu1 %v4145_v62 }
0x140d   : > { %v4186_v15 = vpop.xlane.xlu2 %4185 }
0x140e   : > { %5360 = vrcp.f32 %v4186_v15  ;;  %v4632_v41 = vand.u32 2147483648, %v4186_v15  ;;  %v4630_v22 = vand.u32 2147483647, %v4186_v15  ;;  %vm4626_vm14 = vweird.f32 %v4186_v15 }
0x140f   : > { %5362 = vpow2.f32 %v4031_v56 }
0x1410   : > { %v7490_v44 = vpop.eup %5356  ;;  %5364 = vpow2.f32 %v4033_v0  ;;  %v4633_v54 = vor.u32 1.1754944e-38, %v4632_v41  ;;  %vm4631_vm1 = vcmp.eq.f32.partialorder %v4630_v22, 8.507059e+37 }
0x1411   : > { %v7492_v43 = vpop.eup %5358  ;;  %5366 = vrcp.f32 %v7494_v38 }
0x1412   : > { %v4148_v1 = vadd.f32 %v7492_v43, %v7490_v44 }
0x1414   : > { %v5361_v21 = vpop.eup %5360  ;;  %4149 = vadd.xlane.f32.xlu2 %v4148_v1 }
0x1415   : > { %v4622_v26 = vmul.f32 %v5361_v21, %v4186_v15  ;;  %v4183_v59 = vpop.xlane.xlu2 %4182  ;;  %v7499_v27 = vpop.eup %5362  ;;  %vm4627_vm13 = vweird.f32 %v5361_v21 }
0x1416   : > { %5368 = vrcp.f32 %v4183_v59  ;;  %v7501_v4 = vpop.eup %5364  ;;  %vm4628_vm15 = vmor %vm4626_vm14, %vm4627_vm13  ;;  %v4618_v56 = vand.u32 2147483648, %v4183_v59  ;;  %v4616_v15 = vand.u32 2147483647, %v4183_v59  ;;  %vm4612_vm3 = vweird.f32 %v4183_v59 }
0x1417   : > { %v4623_v6 = vsub.f32 1.0, %v4622_v26  ;;  %v7503_v53 = vpop.eup %5366  ;;  %v4142_v48 = vadd.f32 %v7501_v4, %v7499_v27 }
0x1418   : > { %v4580_v24 = vmul.f32 %v7503_v53, %v7494_v38  ;;  %vm4617_vm5 = vcmp.eq.f32.partialorder %v4616_v15, 8.507059e+37  ;;  %vm4585_vm6 = vweird.f32 %v7503_v53 }
0x1419   : > { %v4624_v33 = vmul.f32 %v5361_v21, %v4623_v6  ;;  %v4619_v6 = vor.u32 1.1754944e-38, %v4618_v56  ;;  %vm4586_vm10 = vmor %vm4584_vm8, %vm4585_vm6 }
0x141a   : > { %v4581_v62 = vsub.f32 1.0, %v4580_v24 }
0x141b   : > { %v4625_v7 = vadd.f32 %v5361_v21, %v4624_v33 }
0x141c   : > { %v5369_v5 = vpop.eup %5368  ;;  %4143 = vadd.xlane.f32.xlu2 %v4142_v48 }
0x141d   : > { %v4608_v52 = vmul.f32 %v5369_v5, %v4183_v59  ;;  %v4180_v3 = vpop.xlane.xlu2 %4179  ;;  %v4629_v2 = vsel %vm4628_vm15, %v5361_v21, %v4625_v7  ;;  %vm4613_vm2 = vweird.f32 %v5369_v5  ;;  %v4582_v21 = vmul.f32 %v7503_v53, %v4581_v62 }
0x141e   : > { %5370 = vrcp.f32 %v4180_v3  ;;  %v4634_v25 = vsel %vm4631_vm1, %v4633_v54, %v4629_v2  ;;  %vm4614_vm4 = vmor %vm4612_vm3, %vm4613_vm2  ;;  %v4604_v7 = vand.u32 2147483648, %v4180_v3  ;;  %v4602_v59 = vand.u32 2147483647, %v4180_v3 }
0x141f   : > { %v4609_v34 = vsub.f32 1.0, %v4608_v52  ;;  %v4697_v36 = vmul.f32 %v7371_v29, %v4634_v25  ;;  %v4698_v8 = vmul.f32 %v7373_v18, %v4634_v25  ;;  %v4583_v24 = vadd.f32 %v7503_v53, %v4582_v21 }
0x1420   : > { %vm4598_vm9 = vweird.f32 %v4180_v3  ;;  %vm4603_vm12 = vcmp.eq.f32.partialorder %v4602_v59, 8.507059e+37 }
0x1421   : > { %v4610_v0 = vmul.f32 %v5369_v5, %v4609_v34  ;;  %4739 = vmatpush.xpose.msrb.mxu0 %v4697_v36  ;;  %4759 = vmatpush.xpose.msrb.mxu1 %v4698_v8  ;;  %v4587_v25 = vsel %vm4586_vm10, %v7503_v53, %v4583_v24 }
0x1423   : > { %v4611_v1 = vadd.f32 %v5369_v5, %v4610_v0 }
0x1424   : > { %v5371_v26 = vpop.eup %5370 }
0x1425   : > { %v4594_v41 = vmul.f32 %v5371_v26, %v4180_v3  ;;  %v4615_v33 = vsel %vm4614_vm4, %v5369_v5, %v4611_v1  ;;  %vm4599_vm7 = vweird.f32 %v5371_v26  ;;  %v4590_v5 = vand.u32 2147483648, %v7494_v38 }
0x1426   : > { %v4620_v29 = vsel %vm4617_vm5, %v4619_v6, %v4615_v33  ;;  %vm4600_vm11 = vmor %vm4598_vm9, %vm4599_vm7 }
0x1427   : > { %v4595_v22 = vsub.f32 1.0, %v4594_v41  ;;  %v4695_v18 = vmul.f32 %v7381_v10, %v4620_v29  ;;  %v4696_v48 = vmul.f32 %v7383_v42, %v4620_v29  ;;  %v4588_v10 = vand.u32 2147483647, %v7494_v38 }
0x1428   : > { %v4605_v42 = vor.u32 1.1754944e-38, %v4604_v7  ;;  %v4591_v34 = vor.u32 1.1754944e-38, %v4590_v5 }
0x1429   : > { %v4596_v54 = vmul.f32 %v5371_v26, %v4595_v22  ;;  %4740 = vmatpush.xpose.msrb.mxu0 %v4695_v18  ;;  %4760 = vmatpush.xpose.msrb.mxu1 %v4696_v48  ;;  %vm4589_vm13 = vcmp.eq.f32.partialorder %v4588_v10, 8.507059e+37 }
0x142a   : > { %v4592_v62 = vsel %vm4589_vm13, %v4591_v34, %v4587_v25 }
0x142b   : > { %v4597_v52 = vadd.f32 %v5371_v26, %v4596_v54  ;;  %v4691_v3 = vmul.f32 %v7339_v57, %v4592_v62  ;;  %v4692_v38 = vmul.f32 %v7347_v19, %v4592_v62 }
0x142d   : > { %v4601_v2 = vsel %vm4600_vm11, %v5371_v26, %v4597_v52 }
0x142e   : > { %v4606_v36 = vsel %vm4603_vm12, %v4605_v42, %v4601_v2 }
0x142f   : > { %v4693_v8 = vmul.f32 %v7387_v28, %v4606_v36  ;;  %v4694_v56 = vmul.f32 %v7389_v16, %v4606_v36 }
0x1431   : > { %4741 = vmatpush.xpose.msrb.mxu0 %v4693_v8  ;;  %4761 = vmatpush.xpose.msrb.mxu1 %v4694_v56 }
0x1435   : > { %4742 = vmatpush.xpose.msrb.mxu0 %v4691_v3  ;;  %4762 = vmatpush.xpose.msrb.mxu1 %v4692_v38 }
0x144f   : > { %v4174_v0 = vpop.xlane.xlu2 %4173 }
0x1450   : > { %5372 = vrcp.f32 %v4174_v0  ;;  %v4576_v6 = vand.u32 2147483648, %v4174_v0  ;;  %v4574_v21 = vand.u32 2147483647, %v4174_v0  ;;  %vm4570_vm15 = vweird.f32 %v4174_v0 }
0x1452   : > { %v4577_v33 = vor.u32 1.1754944e-38, %v4576_v6  ;;  %vm4575_vm2 = vcmp.eq.f32.partialorder %v4574_v21, 8.507059e+37 }
0x1456   : > { %v5373_v15 = vpop.eup %5372 }
0x1457   : > { %v4566_v53 = vmul.f32 %v5373_v15, %v4174_v0  ;;  %v4171_v1 = vpop.xlane.xlu1 %4170  ;;  %v4168_v26 = vpop.xlane.xlu2 %4167  ;;  %vm4571_vm14 = vweird.f32 %v5373_v15 }
0x1458   : > { %5374 = vrcp.f32 %v4171_v1  ;;  %vm4572_vm1 = vmor %vm4570_vm15, %vm4571_vm14  ;;  %v4562_v59 = vand.u32 2147483648, %v4171_v1  ;;  %v4560_v42 = vand.u32 2147483647, %v4171_v1  ;;  %v4548_v25 = vand.u32 2147483648, %v4168_v26 }
0x1459   : > { %v4567_v28 = vsub.f32 1.0, %v4566_v53  ;;  %5376 = vrcp.f32 %v4168_v26  ;;  %v4546_v34 = vand.u32 2147483647, %v4168_v26  ;;  %vm4556_vm4 = vweird.f32 %v4171_v1 }
0x145a   : > { %v4563_v56 = vor.u32 1.1754944e-38, %v4562_v59  ;;  %vm4542_vm7 = vweird.f32 %v4168_v26  ;;  %vm4561_vm8 = vcmp.eq.f32.partialorder %v4560_v42, 8.507059e+37 }
0x145b   : > { %v4568_v16 = vmul.f32 %v5373_v15, %v4567_v28  ;;  %vm4547_vm10 = vcmp.eq.f32.partialorder %v4546_v34, 8.507059e+37 }
0x145d   : > { %v4569_v41 = vadd.f32 %v5373_v15, %v4568_v16 }
0x145e   : > { %v5375_v57 = vpop.eup %5374 }
0x145f   : > { %v5377_v19 = vpop.eup %5376  ;;  %v4552_v29 = vmul.f32 %v5375_v57, %v4171_v1  ;;  %v4165_v22 = vpop.xlane.xlu1 %4164  ;;  %v4573_v18 = vsel %vm4572_vm1, %v5373_v15, %v4569_v41  ;;  %vm4557_vm3 = vweird.f32 %v5375_v57 }
0x1460   : > { %v4538_v48 = vmul.f32 %v5377_v19, %v4168_v26  ;;  %5378 = vrcp.f32 %v4165_v22  ;;  %v4578_v54 = vsel %vm4575_vm2, %v4577_v33, %v4573_v18  ;;  %vm4543_vm5 = vweird.f32 %v5377_v19  ;;  %vm4558_vm6 = vmor %vm4556_vm4, %vm4557_vm3 }
0x1461   : > { %v4553_v7 = vsub.f32 1.0, %v4552_v29  ;;  %v4689_v5 = vmul.f32 %v7399_v14, %v4578_v54  ;;  %v4690_v52 = vmul.f32 %v7401_v46, %v4578_v54  ;;  %v4549_v46 = vor.u32 1.1754944e-38, %v4548_v25  ;;  %vm4544_vm9 = vmor %vm4542_vm7, %vm4543_vm5 }
0x1462   : > { %v4539_v24 = vsub.f32 1.0, %v4538_v48  ;;  %v4534_v16 = vand.u32 2147483648, %v4165_v22  ;;  %v4532_v26 = vand.u32 2147483647, %v4165_v22  ;;  %vm4528_vm12 = vweird.f32 %v4165_v22 }
0x1463   : > { %v4554_v10 = vmul.f32 %v5375_v57, %v4553_v7  ;;  %4743 = vmatpush.xpose.msrb.mxu0 %v4689_v5  ;;  %4763 = vmatpush.xpose.msrb.mxu1 %v4690_v52 }
0x1464   : > { %v4540_v2 = vmul.f32 %v5377_v19, %v4539_v24  ;;  %v4535_v18 = vor.u32 1.1754944e-38, %v4534_v16  ;;  %vm4533_vm14 = vcmp.eq.f32.partialorder %v4532_v26, 8.507059e+37 }
0x1465   : > { %v4555_v36 = vadd.f32 %v5375_v57, %v4554_v10 }
0x1466   : > { %v5379_v8 = vpop.eup %5378  ;;  %v4541_v62 = vadd.f32 %v5377_v19, %v4540_v2 }
0x1467   : > { %v4524_v3 = vmul.f32 %v5379_v8, %v4165_v22  ;;  %v4162_v14 = vpop.xlane.xlu2 %4161  ;;  %v4559_v38 = vsel %vm4558_vm6, %v5375_v57, %v4555_v36  ;;  %vm4529_vm11 = vweird.f32 %v5379_v8 }
0x1468   : > { %5380 = vrcp.f32 %v4162_v14  ;;  %v4564_v0 = vsel %vm4561_vm8, %v4563_v56, %v4559_v38  ;;  %v4545_v28 = vsel %vm4544_vm9, %v5377_v19, %v4541_v62  ;;  %vm4530_vm13 = vmor %vm4528_vm12, %vm4529_vm11  ;;  %v4520_v59 = vand.u32 2147483648, %v4162_v14 }
0x1469   : > { %v4525_v15 = vsub.f32 1.0, %v4524_v3  ;;  %v4687_v53 = vmul.f32 %v7411_v39, %v4564_v0  ;;  %v4688_v1 = vmul.f32 %v7415_v32, %v4564_v0  ;;  %v4550_v6 = vsel %vm4547_vm10, %v4549_v46, %v4545_v28 }
0x146a   : > { %v4685_v41 = vmul.f32 %v7405_v30, %v4550_v6  ;;  %v4686_v57 = vmul.f32 %v7409_v63, %v4550_v6  ;;  %v4518_v63 = vand.u32 2147483647, %v4162_v14  ;;  %vm4514_vm1 = vweird.f32 %v4162_v14 }
0x146b   : > { %v4526_v21 = vmul.f32 %v5379_v8, %v4525_v15  ;;  %4744 = vmatpush.xpose.msrb.mxu0 %v4687_v53  ;;  %4764 = vmatpush.xpose.msrb.mxu1 %v4688_v1  ;;  %v4521_v10 = vor.u32 1.1754944e-38, %v4520_v59 }
0x146c   : > { %vm4519_vm3 = vcmp.eq.f32.partialorder %v4518_v63, 8.507059e+37 }
0x146d   : > { %v4527_v33 = vadd.f32 %v5379_v8, %v4526_v21 }
0x146e   : > { %v5381_v29 = vpop.eup %5380 }
0x146f   : > { %v4510_v39 = vmul.f32 %v5381_v29, %v4162_v14  ;;  %4745 = vmatpush.xpose.msrb.mxu0 %v4685_v41  ;;  %4765 = vmatpush.xpose.msrb.mxu1 %v4686_v57  ;;  %v4531_v32 = vsel %vm4530_vm13, %v5379_v8, %v4527_v33  ;;  %v4159_v7 = vpop.xlane.xlu1 %4158  ;;  %vm4515_vm15 = vweird.f32 %v5381_v29 }
0x1470   : > { %v4536_v19 = vsel %vm4533_vm14, %v4535_v18, %v4531_v32  ;;  %5382 = vrcp.f32 %v4159_v7  ;;  %vm4516_vm2 = vmor %vm4514_vm1, %vm4515_vm15  ;;  %v4504_v14 = vand.u32 2147483647, %v4159_v7  ;;  %vm4500_vm5 = vweird.f32 %v4159_v7 }
0x1471   : > { %v4511_v48 = vsub.f32 1.0, %v4510_v39  ;;  %v4683_v54 = vmul.f32 %v7423_v11, %v4536_v19  ;;  %v4684_v22 = vmul.f32 %v7425_v40, %v4536_v19 }
0x1472   : > { %vm4505_vm7 = vcmp.eq.f32.partialorder %v4504_v14, 8.507059e+37 }
0x1473   : > { %v4512_v30 = vmul.f32 %v5381_v29, %v4511_v48  ;;  %4746 = vmatpush.xpose.msrb.mxu0 %v4683_v54  ;;  %4766 = vmatpush.xpose.msrb.mxu1 %v4684_v22 }
0x1474   : > { %v4831_v24 = vpop.xlane.xlu0 %4830 }
0x1475   : > { %v4832_v5 = vsub.f32 %v7458_v12, %v4831_v24  ;;  %v4513_v52 = vadd.f32 %v5381_v29, %v4512_v30  ;;  %v4506_v12 = vand.u32 2147483648, %v4159_v7 }
0x1476   : > { %v5383_v11 = vpop.eup %5382 }
0x1477   : > { %v4833_v42 = vmul.f32 1.442695, %v4832_v5  ;;  %v4156_v2 = vpop.xlane.xlu2 %4155  ;;  %v4517_v25 = vsel %vm4516_vm2, %v5381_v29, %v4513_v52  ;;  %v4496_v34 = vmul.f32 %v5383_v11, %v4159_v7  ;;  %v4153_v36 = vpop.xlane.xlu1 %4152  ;;  %vm4501_vm4 = vweird.f32 %v5383_v11 }
0x1478   : > { %5384 = vrcp.f32 %v4156_v2  ;;  %v4522_v40 = vsel %vm4519_vm3, %v4521_v10, %v4517_v25  ;;  %v4507_v1 = vor.u32 1.1754944e-38, %v4506_v12  ;;  %vm4502_vm6 = vmor %vm4500_vm5, %vm4501_vm4  ;;  %v4492_v21 = vand.u32 2147483648, %v4156_v2 }
0x1479   : > { %5386 = vpow2.f32 %v4833_v42  ;;  %v4681_v8 = vmul.f32 %v7433_v23, %v4522_v40  ;;  %v4682_v56 = vmul.f32 %v7436_v20, %v4522_v40  ;;  %v4497_v62 = vsub.f32 1.0, %v4496_v34 }
0x147a   : > { %5388 = vrcp.f32 %v4153_v36  ;;  %v4478_v39 = vand.u32 2147483648, %v4153_v36  ;;  %vm4486_vm9 = vweird.f32 %v4156_v2  ;;  %v4490_v32 = vand.u32 2147483647, %v4156_v2 }
0x147b   : > { %4747 = vmatpush.xpose.msrb.mxu0 %v4681_v8  ;;  %4767 = vmatpush.xpose.msrb.mxu1 %v4682_v56  ;;  %v4498_v3 = vmul.f32 %v5383_v11, %v4497_v62  ;;  %v4476_v7 = vand.u32 2147483647, %v4153_v36  ;;  %vm4472_vm12 = vweird.f32 %v4153_v36  ;;  %v4493_v54 = vor.u32 1.1754944e-38, %v4492_v21 }
0x147c   : > { %v7541_v26 = vpop.xlane.xlu0 %4140  ;;  %vm4491_vm13 = vcmp.eq.f32.partialorder %v4490_v32, 8.507059e+37 }
0x147d   : > { %v4499_v15 = vadd.f32 %v5383_v11, %v4498_v3  ;;  %vm4477_vm15 = vcmp.eq.f32.partialorder %v4476_v7, 8.507059e+37 }
0x147e   : > { %v5385_v38 = vpop.eup %5384 }
0x147f   : > { %v7535_v46 = vpop.eup %5386  ;;  %v4482_v0 = vmul.f32 %v5385_v38, %v4156_v2  ;;  %v7539_v16 = vpop.xlane.xlu1 %4146  ;;  %v4503_v6 = vsel %vm4502_vm6, %v5383_v11, %v4499_v15  ;;  %vm4487_vm8 = vweird.f32 %v5385_v38 }
0x1480   : > { %v5389_v53 = vpop.eup %5388  ;;  %v4835_v23 = vsel %vm735_vm0, %v7535_v46, 0.0  ;;  %5390 = vrcp.f32 %v7539_v16  ;;  %v4508_v41 = vsel %vm4505_vm7, %v4507_v1, %v4503_v6  ;;  %vm4488_vm11 = vmor %vm4486_vm9, %vm4487_vm8  ;;  %vm4444_vm3 = vweird.f32 %v7539_v16 }
0x1481   : > { %v4468_v20 = vmul.f32 %v5389_v53, %v4153_v36  ;;  %v4483_v28 = vsub.f32 1.0, %v4482_v0  ;;  %4836 = vadd.xlane.f32.xlu1 %v4835_v23  ;;  %v4679_v29 = vmul.f32 %v7445_v50, %v4508_v41  ;;  %v4680_v18 = vmul.f32 %v7449_v37, %v4508_v41  ;;  %v5981_v0 = vld [vmem:[%s6360_s18 + $0x8] sm:$0xff] }
0x1482   : > { %5392 = vrcp.f32 %v7541_v26  ;;  %vm4473_vm10 = vweird.f32 %v5389_v53  ;;  %v4479_v37 = vor.u32 1.1754944e-38, %v4478_v39  ;;  %v4448_v15 = vand.u32 2147483647, %v7539_v16 }
0x1483   : > { %v4469_v57 = vsub.f32 1.0, %v4468_v20  ;;  %v4484_v33 = vmul.f32 %v5385_v38, %v4483_v28  ;;  %4748 = vmatpush.xpose.msrb.mxu0 %v4679_v29  ;;  %4768 = vmatpush.xpose.msrb.mxu1 %v4680_v18  ;;  %vm4474_vm14 = vmor %vm4472_vm12, %vm4473_vm10 }
0x1484   : > { %vm4449_vm8 = vcmp.eq.f32.partialorder %v4448_v15, 8.507059e+37  ;;  %v4903_v15 = vadd.f32 %v5981_v0, %v7674_v61 }
0x1485   : > { %v4470_v19 = vmul.f32 %v5389_v53, %v4469_v57  ;;  %v4485_v48 = vadd.f32 %v5385_v38, %v4484_v33 }
0x1486   : > { %v5391_v50 = vpop.eup %5390 }
0x1487   : > { %v4150_v22 = vpop.xlane.xlu2 %4149  ;;  %v4489_v59 = vsel %vm4488_vm11, %v5385_v38, %v4485_v48  ;;  %v4471_v30 = vadd.f32 %v5389_v53, %v4470_v19  ;;  %v4440_v63 = vmul.f32 %v5391_v50, %v7539_v16  ;;  %vm4445_vm1 = vweird.f32 %v5391_v50 }
0x1488   : > { %5394 = vrcp.f32 %v4150_v22  ;;  %v4494_v24 = vsel %vm4491_vm13, %v4493_v54, %v4489_v59  ;;  %v7550_v42 = vpop.eup %5392  ;;  %v4464_v12 = vand.u32 2147483648, %v4150_v22  ;;  %v4462_v14 = vand.u32 2147483647, %v4150_v22  ;;  %vm7558_vm5 = vmor %vm4444_vm3, %vm4445_vm1 }
0x1489   : > { %v4475_v5 = vsel %vm4474_vm14, %v5389_v53, %v4471_v30  ;;  %v4677_v52 = vmul.f32 %v7462_v58, %v4494_v24  ;;  %v4678_v10 = vmul.f32 %v7466_v31, %v4494_v24  ;;  %v4441_v2 = vsub.f32 1.0, %v4440_v63 }
0x148a   : > { %v4480_v25 = vsel %vm4477_vm15, %v4479_v37, %v4475_v5  ;;  %v4412_v40 = vmul.f32 %v7550_v42, %v7541_v26  ;;  %vm4458_vm4 = vweird.f32 %v4150_v22  ;;  %v4465_v23 = vor.u32 1.1754944e-38, %v4464_v12 }
0x148b   : > { %4749 = vmatpush.xpose.msrb.mxu0 %v4677_v52  ;;  %4769 = vmatpush.xpose.msrb.mxu1 %v4678_v10  ;;  %v4675_v34 = vmul.f32 %v7455_v51, %v4480_v25  ;;  %v4676_v36 = vmul.f32 %v7460_v9, %v4480_v25  ;;  %v4442_v8 = vmul.f32 %v5391_v50, %v4441_v2  ;;  %v4450_v51 = vand.u32 2147483648, %v7539_v16 }
0x148c   : > { %v4413_v62 = vsub.f32 1.0, %v4412_v40  ;;  %vm4463_vm7 = vcmp.eq.f32.partialorder %v4462_v14, 8.507059e+37  ;;  %vm4417_vm9 = vweird.f32 %v7550_v42  ;;  %vm4416_vm11 = vweird.f32 %v7541_v26 }
0x148d   : > { %v4443_v38 = vadd.f32 %v5391_v50, %v4442_v8  ;;  %v4451_v21 = vor.u32 1.1754944e-38, %v4450_v51  ;;  %v4420_v48 = vand.u32 2147483647, %v7541_v26  ;;  %vm7573_vm12 = vmor %vm4416_vm11, %vm4417_vm9  ;;  %v4780_v8 = vstv %s4779_s22 }
0x148e   : > { %v5395_v11 = vpop.eup %5394  ;;  %v4414_v1 = vmul.f32 %v7550_v42, %v4413_v62 }
0x148f   : > { %v4454_v56 = vmul.f32 %v5395_v11, %v4150_v22  ;;  %v4144_v58 = vpop.xlane.xlu2 %4143  ;;  %4750 = vmatpush.xpose.msrb.mxu0 %v4675_v34  ;;  %4770 = vmatpush.xpose.msrb.mxu1 %v4676_v36  ;;  %vm4459_vm2 = vweird.f32 %v5395_v11  ;;  %v4447_v6 = vsel %vm7558_vm5, %v5391_v50, %v4443_v38  ;;  %vm4421_vm1 = vcmp.eq.f32.partialorder %v4420_v48, 8.507059e+37  ;;  %v5980_v38 = vld [vmem:[%s6360_s18] sm:$0xff] }
0x1490   : > { %5396 = vrcp.f32 %v4144_v58  ;;  %vm4460_vm6 = vmor %vm4458_vm4, %vm4459_vm2  ;;  %v4436_v16 = vand.u32 2147483648, %v4144_v58  ;;  %v4452_v18 = vsel %vm4449_vm8, %v4451_v21, %v4447_v6  ;;  %v4415_v39 = vadd.f32 %v7550_v42, %v4414_v1 }
0x1491   : > { %v4455_v31 = vsub.f32 1.0, %v4454_v56  ;;  %v4434_v19 = vand.u32 2147483647, %v4144_v58  ;;  %vm4430_vm13 = vweird.f32 %v4144_v58  ;;  %v4671_v54 = vmul.f32 %v7480_v13, %v4452_v18 }
0x1492   : > { %v4672_v22 = vmul.f32 %v7484_v55, %v4452_v18  ;;  %v4437_v59 = vor.u32 1.1754944e-38, %v4436_v16  ;;  %v4781_v56 = vmul.f32 %v4780_v8, %v7227_v49  ;;  %v4902_v51 = vadd.f32 %v5980_v38, %v7673_v17 }
0x1493   : > { %v4456_v3 = vmul.f32 %v5395_v11, %v4455_v31  ;;  %vm4435_vm15 = vcmp.eq.f32.partialorder %v4434_v19, 8.507059e+37  ;;  %v4897_v31 = vstv %s5104_s24 }
0x1494   : > { %v4783_v62 = vadd.f32 %v4781_v56, %v7673_v17 }
0x1495   : > { %v4457_v9 = vadd.f32 %v5395_v11, %v4456_v3 }
0x1496   : > { %v5397_v53 = vpop.eup %5396  ;;  %v4904_v49 = vadd.f32 %v4902_v51, %v4783_v62 }
0x1497   : > { %v4426_v20 = vmul.f32 %v5397_v53, %v4144_v58  ;;  %v4461_v28 = vsel %vm4460_vm6, %v5395_v11, %v4457_v9  ;;  %vm4431_vm10 = vweird.f32 %v5397_v53 }
0x1498   : > { %v4466_v41 = vsel %vm4463_vm7, %v4465_v23, %v4461_v28  ;;  %vm4432_vm14 = vmor %vm4430_vm13, %vm4431_vm10 }
0x1499   : > { %v4427_v57 = vsub.f32 1.0, %v4426_v20  ;;  %v4673_v33 = vmul.f32 %v7490_v44, %v4466_v41  ;;  %v4674_v29 = vmul.f32 %v7492_v43, %v4466_v41  ;;  %v4422_v44 = vand.u32 2147483648, %v7541_v26 }
0x149a   : > { %v4419_v26 = vsel %vm7573_vm12, %v7550_v42, %v4415_v39 }
0x149b   : > { %v4428_v32 = vmul.f32 %v5397_v53, %v4427_v57  ;;  %4751 = vmatpush.xpose.msrb.mxu0 %v4673_v33  ;;  %4771 = vmatpush.xpose.msrb.mxu1 %v4674_v29  ;;  %v4423_v50 = vor.u32 1.1754944e-38, %v4422_v44 }
0x149d   : > { %v4429_v7 = vadd.f32 %v5397_v53, %v4428_v32  ;;  %v4424_v13 = vsel %vm4421_vm1, %v4423_v50, %v4419_v26 }
0x149e   : > { %v4667_v55 = vmul.f32 %v7470_v45, %v4424_v13  ;;  %v4668_v5 = vmul.f32 %v7472_v60, %v4424_v13 }
0x149f   : > { %4752 = vmatpush.xpose.msrb.mxu0 %v4671_v54  ;;  %4772 = vmatpush.xpose.msrb.mxu1 %v4672_v22  ;;  %v4433_v30 = vsel %vm4432_vm14, %v5397_v53, %v4429_v7 }
0x14a0   : > { %v4438_v37 = vsel %vm4435_vm15, %v4437_v59, %v4433_v30 }
0x14a1   : > { %v4669_v63 = vmul.f32 %v7499_v27, %v4438_v37  ;;  %v4670_v24 = vmul.f32 %v7501_v4, %v4438_v37 }
0x14a3   : > { %4753 = vmatpush.xpose.msrb.mxu0 %v4669_v63  ;;  %4773 = vmatpush.xpose.msrb.mxu1 %v4670_v24 }
0x14a7   : > { %4754 = vmatpush.xpose.msrb.mxu0 %v4667_v55  ;;  %4774 = vmatpush.xpose.msrb.mxu1 %v4668_v5 }
0x14aa   : > { %4755 = vmatmul.f32.vlgmr.msrb.gmra.mxu0 %v7217_v47  ;;  %4775 = vmatmul.f32.vlgmr.msrb.gmra.mxu1 %v7219_v35 }
0x14ab   : > { %4871 = vmatpush.msra.mxu0 %v7673_v17  ;;  %4891 = vmatpush.msra.mxu1 %v7674_v61 }
0x14f4   : > { %v4837_v27 = vpop.xlane.xlu1 %4836 }
0x14f5   : > { %5398 = vrcp.f32 %v4837_v27  ;;  %v4849_v42 = vand.u32 2147483648, %v4837_v27  ;;  %v4847_v45 = vand.u32 2147483647, %v4837_v27  ;;  %vm4843_vm3 = vweird.f32 %v4837_v27 }
0x14f7   : > { %v4850_v25 = vor.u32 1.1754944e-38, %v4849_v42  ;;  %vm4848_vm5 = vcmp.eq.f32.partialorder %v4847_v45, 8.507059e+37 }
0x14fb   : > { %v5399_v4 = vpop.eup %5398 }
0x14fc   : > { %v4839_v52 = vmul.f32 %v5399_v4, %v4837_v27  ;;  %vm4844_vm2 = vweird.f32 %v5399_v4 }
0x14fd   : > { %vm4845_vm4 = vmor %vm4843_vm3, %vm4844_vm2 }
0x14fe   : > { %v4840_v10 = vsub.f32 1.0, %v4839_v52 }
0x1500   : > { %v4841_v2 = vmul.f32 %v5399_v4, %v4840_v10 }
0x1502   : > { %v4842_v60 = vadd.f32 %v5399_v4, %v4841_v2 }
0x1504   : > { %v4846_v11 = vsel %vm4845_vm4, %v5399_v4, %v4842_v60 }
0x1505   : > { %v4851_v40 = vsel %vm4848_vm5, %v4850_v25, %v4846_v11 }
0x1506   : > { %v4852_v47 = vmul.f32 %v7535_v46, %v4851_v40 }
0x1508   : > { %5102 = vmatmul.msk.f32.vlgmr.msra.gmra.mxu0 %vm735_vm0, %v4852_v47  ;;  %5103 = vmatmul.msk.f32.vlgmr.msra.gmra.mxu1 %vm735_vm0, %v4852_v47 }
0x1527   : > { %v4756_v35 = vpop.f32.mrf.mxu0  ;;  %v4776_v34 = vpop.f32.mrf.mxu1 }
0x1528   : > { %v4777_v36 = vadd.f32 %v4776_v34, %v4756_v35 }
0x152a   : > { %v4782_v58 = vmul.f32 %v4780_v8, %v4777_v36 }
0x152c   : > { %v4784_v46 = vadd.f32 %v4782_v58, %v7674_v61 }
0x152e   : > { %v4905_v23 = vadd.f32 %v4903_v15, %v4784_v46 }
0x1585   : > { %v4873_v12 = vpop.f32.mrf.mxu0  ;;  %v4893_v3 = vpop.f32.mrf.mxu1 }
0x1586   : > { %v4898_v14 = vmul.f32 %v4897_v31, %v4873_v12  ;;  %v4899_v9 = vmul.f32 %v4897_v31, %v4893_v3 }
0x1588   : > { %v4900_v53 = vadd.f32 %v4898_v14, %v7673_v17  ;;  %v4901_v1 = vadd.f32 %v4899_v9, %v7674_v61 }
0x158a   : > { %v4906_v20 = vadd.f32 %v4904_v49, %v4900_v53  ;;  %v4907_v28 = vadd.f32 %v4905_v23, %v4901_v1 }
0x158c   : > { %4908 = vst [vmem:[%s440_s29] sm:$0xff] %v4906_v20 }
0x158d   : > { %4909 = vst [vmem:[%s440_s29 + $0x8] sm:$0xff] %v4907_v28 }
0x158e PF: > { %s24_s30 = sadd.s32 1, %s6203_s30  }
0x158f   : > { %p21_p7 = scmp.ge.s32.totalorder %s24_s30, 4  }
0x1591   :  { %23 = sbr.rel (!%p21_p7) target bundleno = 5 (0x5), region = 140 }
0x1596   :  { %4931 = vsyncpa [#allocation3], 1 }
0x1597   :  { %4933 = vsyncpa [#allocation3 + $0x1], 1 }
0x1598   :  { %4934 = vsyncpa [#allocation6], 1 }
0x1599   :  { %4935 = vsyncpa [#allocation9], 1 }
0x159a   :  { %4936 = vsyncpa [#allocation12], 1 }
0x159b   :  { %4937 = vsyncpa [#allocation4], 1 }
0x159c   :  { %4939 = vsyncpa [#allocation4 + $0x1], 1 }

</bundles_post_ra>
